<compile_context>
chip_gen: v5e
topology: v5e:2x2
jax: 0.10.0
libtpu: 0.0.40
codegen_flags: <defaults>
</compile_context>

<pallas_src>
import functools

import jax
import jax.numpy as jnp
from jax.experimental import pallas as pl
from jax.experimental.pallas import tpu as pltpu

_VMEM_LIMIT = 32 * 1024 * 1024
NUM_CLASSES = 10


# ----------------------------------------------------------------------------
# Tiling helpers (Python-level, trace-time)
# ----------------------------------------------------------------------------
def _round_up(x, m):
    return ((x + m - 1) // m) * m


def _tiles_m(m, max_tile=512, align=16):
    """Split M into nt near-equal tiles (multiple of `align`); tile*nt >= m."""
    nt = -(-m // max_tile)
    tile = _round_up(-(-m // nt), align)
    return tile, nt, tile * nt


def _tiles_k(k, max_tile=2048):
    """Single K block if it fits, else the largest 128-multiple divisor."""
    if k <= max_tile:
        return k, 1
    for cand in range(max_tile - max_tile % 128, 127, -128):
        if k % cand == 0:
            return cand, k // cand
    return k, 1


# ----------------------------------------------------------------------------
# Fused matmul + bias + ReLU (M-tiled, optional K-grid accumulator)
# ----------------------------------------------------------------------------
def _mm_bias_act_kernel(x_ref, w_ref, b_ref, o_ref, acc_ref, *, apply_relu, n_k):
    kk = pl.program_id(1)

    @pl.when(kk == 0)
    def _init():
        acc_ref[...] = jnp.zeros_like(acc_ref)

    acc_ref[...] += jnp.dot(x_ref[...], w_ref[...],
                            preferred_element_type=jnp.float32)

    @pl.when(kk == n_k - 1)
    def _finalize():
        y = acc_ref[...] + b_ref[...]          # b: (1, N) broadcast over rows
        if apply_relu:
            y = jnp.maximum(y, 0.0)
        o_ref[...] = y.astype(o_ref.dtype)


def matmul_bias_act(x, w, b2, apply_relu, out_dtype=jnp.bfloat16):
    """x: (M, K) bf16, w: (K, N) bf16, b2: (1, N) f32 -> (M, N) out_dtype.

    N must be a multiple of 128 (callers pad); M is padded/tiled here.
    """
    m, k = x.shape
    k2, n = w.shape
    assert k == k2 and n % 128 == 0
    tile_m, nt_m, m_pad = _tiles_m(m)
    tile_k, nt_k = _tiles_k(k)
    if m_pad != m:
        x = jnp.pad(x, ((0, m_pad - m), (0, 0)))

    kernel = functools.partial(_mm_bias_act_kernel,
                               apply_relu=apply_relu, n_k=nt_k)
    in_bytes = jnp.dtype(x.dtype).itemsize
    out_bytes = jnp.dtype(out_dtype).itemsize
    cost = pl.CostEstimate(
        flops=int(2 * m_pad * k * n),
        transcendentals=0,
        bytes_accessed=int(in_bytes * (m_pad * k + k * n)
                           + out_bytes * m_pad * n + 4 * n))

    out = pl.pallas_call(
        kernel,
        out_shape=jax.ShapeDtypeStruct((m_pad, n), out_dtype),
        grid=(nt_m, nt_k),
        in_specs=[
            pl.BlockSpec((tile_m, tile_k), lambda i, kk: (i, kk)),
            pl.BlockSpec((tile_k, n), lambda i, kk: (kk, 0)),
            pl.BlockSpec((1, n), lambda i, kk: (0, 0)),
        ],
        out_specs=pl.BlockSpec((tile_m, n), lambda i, kk: (i, 0)),
        scratch_shapes=[pltpu.VMEM((tile_m, n), jnp.float32)],
        compiler_params=pltpu.CompilerParams(
            dimension_semantics=("parallel", "arbitrary"),
            vmem_limit_bytes=_VMEM_LIMIT),
        cost_estimate=cost,
    )(x, w, b2)
    if m_pad != m:
        out = out[:m]
    return out


# ----------------------------------------------------------------------------
# 2x2 max pool (single kernel, lane-packed horizontal pairs)
# ----------------------------------------------------------------------------
def _maxpool2x2_kernel(x_ref, o_ref):
    # x_ref: (ROWS, OW/2, 2*C).  Horizontal 2x2 partners live in the lane axis
    # (cols [0:C] and [C:2C]); vertical partners are adjacent leading rows.
    rows, ow2, c2 = x_ref.shape
    c = c2 // 2
    x = x_ref[...]
    h = jnp.maximum(x[..., :c], x[..., c:])        # horizontal max (lane slices)
    h = h.reshape(rows // 2, 2, ow2, c)            # leading-dim regroup (free)
    o_ref[...] = jnp.maximum(h[:, 0], h[:, 1])     # vertical max


def max_pool_2x2(rows, n, oh, ow, c):
    """rows: (n*oh*ow, c) conv-output rows -> (n*(oh//2), ow//2, c)."""
    x = rows.reshape(n * oh, ow // 2, 2 * c)       # free row-major regroup
    return pl.pallas_call(
        _maxpool2x2_kernel,
        out_shape=jax.ShapeDtypeStruct((n * (oh // 2), ow // 2, c), rows.dtype),
        grid=(n,),
        in_specs=[pl.BlockSpec((oh, ow // 2, 2 * c), lambda i: (i, 0, 0))],
        out_specs=pl.BlockSpec((oh // 2, ow // 2, c), lambda i: (i, 0, 0)),
        compiler_params=pltpu.CompilerParams(
            dimension_semantics=("parallel",),
            vmem_limit_bytes=_VMEM_LIMIT),
    )(x)


# ----------------------------------------------------------------------------
# Fused final linear + log_softmax
# ----------------------------------------------------------------------------
def _fc_log_softmax_kernel(x_ref, w_ref, b_ref, o_ref):
    y = jnp.dot(x_ref[...], w_ref[...], preferred_element_type=jnp.float32)
    y = y + b_ref[...]                              # padded classes carry -1e30
    m = jnp.max(y, axis=-1, keepdims=True)
    s = y - m
    lse = jnp.log(jnp.sum(jnp.exp(s), axis=-1, keepdims=True))
    o_ref[...] = s - lse


def fc_log_softmax(x, w, b2):
    m, k = x.shape
    n = w.shape[1]
    tile_m, nt_m, m_pad = _tiles_m(m)
    if m_pad != m:
        x = jnp.pad(x, ((0, m_pad - m), (0, 0)))
    out = pl.pallas_call(
        _fc_log_softmax_kernel,
        out_shape=jax.ShapeDtypeStruct((m_pad, n), jnp.float32),
        grid=(nt_m,),
        in_specs=[
            pl.BlockSpec((tile_m, k), lambda i: (i, 0)),
            pl.BlockSpec((k, n), lambda i: (0, 0)),
            pl.BlockSpec((1, n), lambda i: (0, 0)),
        ],
        out_specs=pl.BlockSpec((tile_m, n), lambda i: (i, 0)),
        compiler_params=pltpu.CompilerParams(
            dimension_semantics=("parallel",),
            vmem_limit_bytes=_VMEM_LIMIT),
    )(x, w, b2)
    return out[:m] if m_pad != m else out


# ----------------------------------------------------------------------------
# Conv via NHWC im2col (glue) + Pallas matmul (hot path)
# ----------------------------------------------------------------------------
def conv3x3_relu(x_nhwc, w2d, b2):
    """x_nhwc: (N, H, W, C) bf16; w2d: (9*C, OC_pad) bf16; b2: (1, OC_pad) f32."""
    n, h, w, c = x_nhwc.shape
    oh, ow = h - 2, w - 2
    # im2col glue: 9 shifted windows concatenated on the channel (lane) axis.
    cols = [x_nhwc[:, i:i + oh, j:j + ow, :] for i in range(3) for j in range(3)]
    patches = jnp.concatenate(cols, axis=-1).reshape(n * oh * ow, 9 * c)
    rows = matmul_bias_act(patches, w2d, b2, apply_relu=True)
    return rows, oh, ow


# ----------------------------------------------------------------------------
# Parameter init (PyTorch-style uniform(-1/sqrt(fan_in), +), pre-padded/packed)
# ----------------------------------------------------------------------------
def _init_conv(key, ic_real, oc_real, ic_pad, oc_pad, kh=3, kw=3):
    kw_key, kb_key = jax.random.split(key)
    fan_in = ic_real * kh * kw
    bound = 1.0 / (fan_in ** 0.5)
    w = jax.random.uniform(kw_key, (kh, kw, ic_real, oc_real), jnp.float32,
                           -bound, bound)
    b = jax.random.uniform(kb_key, (oc_real,), jnp.float32, -bound, bound)
    # Zero-pad in/out channels: numerically inert, keeps activations lane-dense.
    w = jnp.pad(w, ((0, 0), (0, 0), (0, ic_pad - ic_real), (0, oc_pad - oc_real)))
    b = jnp.pad(b, (0, oc_pad - oc_real))
    return (w.reshape(kh * kw * ic_pad, oc_pad).astype(jnp.bfloat16),
            b.reshape(1, oc_pad).astype(jnp.float32))


def _init_linear(key, in_f, out_f, out_pad=None, pad_bias=0.0):
    out_pad = out_f if out_pad is None else out_pad
    kw_key, kb_key = jax.random.split(key)
    bound = 1.0 / (in_f ** 0.5)
    w = jax.random.uniform(kw_key, (in_f, out_f), jnp.float32, -bound, bound)
    b = jax.random.uniform(kb_key, (out_f,), jnp.float32, -bound, bound)
    w = jnp.pad(w, ((0, 0), (0, out_pad - out_f)))
    b = jnp.pad(b, (0, out_pad - out_f), constant_values=pad_bias)
    return w.astype(jnp.bfloat16), b.reshape(1, out_pad).astype(jnp.float32)


def init_net3_params(key):
    ks = jax.random.split(key, 7)
    return {
        "conv1": _init_conv(ks[0], 3, 64, 3, 128),       # Conv2d(3, 64, 3)
        "conv2": _init_conv(ks[1], 64, 64, 128, 128),    # Conv2d(64, 64, 3)
        "conv3": _init_conv(ks[2], 64, 128, 128, 128),   # Conv2d(64, 128, 3)
        "conv4": _init_conv(ks[3], 128, 128, 128, 128),  # Conv2d(128, 128, 3)
        # NOTE: features flatten in (h, w, c) order (NHWC); PyTorch flattens
        # (c, h, w).  Self-initialized here, so it is just a fixed permutation
        # of fc1's weight rows; loading torch checkpoints would need a permute.
        "fc1": _init_linear(ks[4], 3200, 256),
        "fc2": _init_linear(ks[5], 256, 256),
        # fc3: classes padded 10 -> 128; padded biases are -1e30 so the fused
        # log_softmax is exact (their exp underflows to 0); pads sliced off.
        "fc3": _init_linear(ks[6], 256, 10, out_pad=128, pad_bias=-1e30),
    }


# ----------------------------------------------------------------------------
# Net3 forward
# ----------------------------------------------------------------------------
def net3_forward(params, x):
    """x: (N, 3, 32, 32) NCHW f32 -> log-probs (N, 10) f32."""
    n = x.shape[0]
    x = jnp.transpose(x, (0, 2, 3, 1)).astype(jnp.bfloat16)      # NCHW -> NHWC
    # TODO(synk): mutation branches ('s'/'c'/'r') are no-ops with the default
    # module state (mutationType == 0) and are not ported.
    r, oh, ow = conv3x3_relu(x, *params["conv1"])                # (n*30*30, 128)
    x = r.reshape(n, oh, ow, -1)
    r, oh, ow = conv3x3_relu(x, *params["conv2"])                # (n*28*28, 128)
    c = r.shape[-1]
    p = max_pool_2x2(r, n, oh, ow, c)                            # (n*14, 14, 128)
    x = p.reshape(n, oh // 2, ow // 2, c)
    r, oh, ow = conv3x3_relu(x, *params["conv3"])                # (n*12*12, 128)
    x = r.reshape(n, oh, ow, -1)
    r, oh, ow = conv3x3_relu(x, *params["conv4"])                # (n*10*10, 128)
    c = r.shape[-1]
    p = max_pool_2x2(r, n, oh, ow, c)                            # (n*5, 5, 128)
    feat = p.reshape(n, (oh // 2) * (ow // 2) * c)               # (n, 3200)
    h = matmul_bias_act(feat, *params["fc1"], apply_relu=True)   # (n, 256)
    h = matmul_bias_act(h, *params["fc2"], apply_relu=True)      # (n, 256)
    logp = fc_log_softmax(h, *params["fc3"])                     # (n, 128) f32
    return logp[:, :NUM_CLASSES]                                 # (n, 10)


if __name__ == "__main__":
    key = jax.random.PRNGKey(0)
    k_params, k_x = jax.random.split(key)
    params = init_net3_params(k_params)
    # Net3's fc1 expects 3200 = 128 * 5 * 5 features -> 32x32 RGB input.
    x = jax.random.normal(k_x, (2, 3, 32, 32), jnp.float32)

    fwd = jax.jit(net3_forward)
    out = jax.block_until_ready(fwd(params, x))

    assert out.shape == (2, 10), out.shape
    # log_softmax rows must (approximately) normalize to 1 in prob space.
    row_sums = jnp.exp(out.astype(jnp.float32)).sum(axis=1)
    assert jnp.allclose(row_sums, 1.0, atol=1e-4), row_sums
    print("KERNEL_OK")
</pallas_src>

<mosaic_0001>
module attributes {stable_mosaic.version = 11 : i64} {
  func.func @_mm_bias_act_kernel(%arg0: i32, %arg1: i32, %arg2: memref<464x27xbf16, #tpu.memory_space<vmem>>, %arg3: memref<27x128xbf16, #tpu.memory_space<vmem>>, %arg4: memref<1x128xf32, #tpu.memory_space<vmem>>, %arg5: memref<464x128xbf16, #tpu.memory_space<vmem>>, %arg6: memref<464x128xf32, #tpu.memory_space<vmem>>) attributes {dimension_semantics = [#tpu.dimension_semantics<parallel>, #tpu.dimension_semantics<arbitrary>], iteration_bounds = array<i64: 4, 1>, scalar_prefetch = 0 : i64, scratch_operands = 1 : i64, tpu.core_type = #tpu.core_type<tc>, window_params = [{transform_indices = @transform_0, window_bounds = array<i64: 464, 27>}, {transform_indices = @transform_1, window_bounds = array<i64: 27, 128>}, {pipeline_mode = #tpu.pipeline_mode<synchronous>, transform_indices = @transform_2, window_bounds = array<i64: 1, 128>}, {transform_indices = @transform_3, window_bounds = array<i64: 464, 128>}]} {
    %c0_i32 = arith.constant 0 : i32
    %0 = arith.cmpi eq, %arg1, %c0_i32 : i32
    %1 = arith.extui %0 : i1 to i32
    %c0_i32_0 = arith.constant 0 : i32
    %2 = arith.cmpi ne, %1, %c0_i32_0 : i32
    scf.if %2 {
      %cst_10 = arith.constant 0.000000e+00 : f32
      %12 = vector.broadcast %cst_10 : f32 to vector<464x128xf32>
      %c0_11 = arith.constant 0 : index
      %c0_12 = arith.constant 0 : index
      %13 = vector.load %arg6[%c0_11, %c0_12] : memref<464x128xf32, #tpu.memory_space<vmem>>, vector<464x128xf32>
      tpu.vector_store %arg6[%c0_11, %c0_12], %12 {strides = array<i32>} : memref<464x128xf32, #tpu.memory_space<vmem>>, vector<464x128xf32>,
    } else {
    }
    %c0 = arith.constant 0 : index
    %c0_1 = arith.constant 0 : index
    %3 = vector.load %arg6[%c0, %c0_1] : memref<464x128xf32, #tpu.memory_space<vmem>>, vector<464x128xf32>
    %c0_2 = arith.constant 0 : index
    %c0_3 = arith.constant 0 : index
    %4 = vector.load %arg2[%c0_2, %c0_3] : memref<464x27xbf16, #tpu.memory_space<vmem>>, vector<464x27xbf16>
    %c0_4 = arith.constant 0 : index
    %c0_5 = arith.constant 0 : index
    %5 = vector.load %arg3[%c0_4, %c0_5] : memref<27x128xbf16, #tpu.memory_space<vmem>>, vector<27x128xbf16>
    %cst = arith.constant dense<0.000000e+00> : vector<464x128xf32>
    %6 = tpu.matmul %4, %5, %cst {dimension_numbers = #tpu.dot_dimension_numbers<[1], [0], [0], [1], [0, 0, 1, 1], [], []>} : vector<464x27xbf16>, vector<27x128xbf16>, vector<464x128xf32> -> vector<464x128xf32>
    %7 = arith.addf %3, %6 : vector<464x128xf32>
    %c0_6 = arith.constant 0 : index
    %c0_7 = arith.constant 0 : index
    %8 = vector.load %arg6[%c0_6, %c0_7] : memref<464x128xf32, #tpu.memory_space<vmem>>, vector<464x128xf32>
    tpu.vector_store %arg6[%c0_6, %c0_7], %7 {strides = array<i32>} : memref<464x128xf32, #tpu.memory_space<vmem>>, vector<464x128xf32>,
    %c0_i32_8 = arith.constant 0 : i32
    %9 = arith.cmpi eq, %arg1, %c0_i32_8 : i32
    %10 = arith.extui %9 : i1 to i32
    %c0_i32_9 = arith.constant 0 : i32
    %11 = arith.cmpi ne, %10, %c0_i32_9 : i32
    scf.if %11 {
      %c0_10 = arith.constant 0 : index
      %c0_11 = arith.constant 0 : index
      %12 = vector.load %arg6[%c0_10, %c0_11] : memref<464x128xf32, #tpu.memory_space<vmem>>, vector<464x128xf32>
      %c0_12 = arith.constant 0 : index
      %c0_13 = arith.constant 0 : index
      %13 = vector.load %arg4[%c0_12, %c0_13] : memref<1x128xf32, #tpu.memory_space<vmem>>, vector<1x128xf32>
      %14 = vector.broadcast %13 : vector<1x128xf32> to vector<464x128xf32>
      %15 = arith.addf %12, %14 : vector<464x128xf32>
      %cst_14 = arith.constant 0.000000e+00 : f32
      %16 = vector.broadcast %cst_14 : f32 to vector<464x128xf32>
      %17 = arith.maximumf %15, %16 : vector<464x128xf32>
      %18 = arith.truncf %17 : vector<464x128xf32> to vector<464x128xbf16>
      %c0_15 = arith.constant 0 : index
      %c0_16 = arith.constant 0 : index
      %19 = vector.load %arg5[%c0_15, %c0_16] : memref<464x128xbf16, #tpu.memory_space<vmem>>, vector<464x128xbf16>
      tpu.vector_store %arg5[%c0_15, %c0_16], %18 {strides = array<i32>} : memref<464x128xbf16, #tpu.memory_space<vmem>>, vector<464x128xbf16>,
    } else {
    }
    return
  }
  func.func @transform_0(%arg0: i32, %arg1: i32) -> (i32, i32) {
    %c0_i32 = arith.constant 0 : i32
    return %arg0, %arg1 : i32, i32
  }
  func.func @transform_1(%arg0: i32, %arg1: i32) -> (i32, i32) {
    %c0_i32 = arith.constant 0 : i32
    %c0_i32_0 = arith.constant 0 : i32
    return %arg1, %c0_i32 : i32, i32
  }
  func.func @transform_2(%arg0: i32, %arg1: i32) -> (i32, i32) {
    %c0_i32 = arith.constant 0 : i32
    %c0_i32_0 = arith.constant 0 : i32
    %c0_i32_1 = arith.constant 0 : i32
    return %c0_i32, %c0_i32_0 : i32, i32
  }
  func.func @transform_3(%arg0: i32, %arg1: i32) -> (i32, i32) {
    %c0_i32 = arith.constant 0 : i32
    %c0_i32_0 = arith.constant 0 : i32
    return %arg0, %c0_i32 : i32, i32
  }
}

module attributes {stable_mosaic.version = 11 : i64} {
  func.func @_mm_bias_act_kernel(%arg0: i32, %arg1: i32, %arg2: memref<400x1152xbf16, #tpu.memory_space<vmem>>, %arg3: memref<1152x128xbf16, #tpu.memory_space<vmem>>, %arg4: memref<1x128xf32, #tpu.memory_space<vmem>>, %arg5: memref<400x128xbf16, #tpu.memory_space<vmem>>, %arg6: memref<400x128xf32, #tpu.memory_space<vmem>>) attributes {dimension_semantics = [#tpu.dimension_semantics<parallel>, #tpu.dimension_semantics<arbitrary>], iteration_bounds = array<i64: 4, 1>, scalar_prefetch = 0 : i64, scratch_operands = 1 : i64, tpu.core_type = #tpu.core_type<tc>, window_params = [{transform_indices = @transform_0, window_bounds = array<i64: 400, 1152>}, {transform_indices = @transform_1, window_bounds = array<i64: 1152, 128>}, {pipeline_mode = #tpu.pipeline_mode<synchronous>, transform_indices = @transform_2, window_bounds = array<i64: 1, 128>}, {transform_indices = @transform_3, window_bounds = array<i64: 400, 128>}]} {
    %c0_i32 = arith.constant 0 : i32
    %0 = arith.cmpi eq, %arg1, %c0_i32 : i32
    %1 = arith.extui %0 : i1 to i32
    %c0_i32_0 = arith.constant 0 : i32
    %2 = arith.cmpi ne, %1, %c0_i32_0 : i32
    scf.if %2 {
      %cst_10 = arith.constant 0.000000e+00 : f32
      %12 = vector.broadcast %cst_10 : f32 to vector<400x128xf32>
      %c0_11 = arith.constant 0 : index
      %c0_12 = arith.constant 0 : index
      %13 = vector.load %arg6[%c0_11, %c0_12] : memref<400x128xf32, #tpu.memory_space<vmem>>, vector<400x128xf32>
      tpu.vector_store %arg6[%c0_11, %c0_12], %12 {strides = array<i32>} : memref<400x128xf32, #tpu.memory_space<vmem>>, vector<400x128xf32>,
    } else {
    }
    %c0 = arith.constant 0 : index
    %c0_1 = arith.constant 0 : index
    %3 = vector.load %arg6[%c0, %c0_1] : memref<400x128xf32, #tpu.memory_space<vmem>>, vector<400x128xf32>
    %c0_2 = arith.constant 0 : index
    %c0_3 = arith.constant 0 : index
    %4 = vector.load %arg2[%c0_2, %c0_3] : memref<400x1152xbf16, #tpu.memory_space<vmem>>, vector<400x1152xbf16>
    %c0_4 = arith.constant 0 : index
    %c0_5 = arith.constant 0 : index
    %5 = vector.load %arg3[%c0_4, %c0_5] : memref<1152x128xbf16, #tpu.memory_space<vmem>>, vector<1152x128xbf16>
    %cst = arith.constant dense<0.000000e+00> : vector<400x128xf32>
    %6 = tpu.matmul %4, %5, %cst {dimension_numbers = #tpu.dot_dimension_numbers<[1], [0], [0], [1], [0, 0, 1, 1], [], []>} : vector<400x1152xbf16>, vector<1152x128xbf16>, vector<400x128xf32> -> vector<400x128xf32>
    %7 = arith.addf %3, %6 : vector<400x128xf32>
    %c0_6 = arith.constant 0 : index
    %c0_7 = arith.constant 0 : index
    %8 = vector.load %arg6[%c0_6, %c0_7] : memref<400x128xf32, #tpu.memory_space<vmem>>, vector<400x128xf32>
    tpu.vector_store %arg6[%c0_6, %c0_7], %7 {strides = array<i32>} : memref<400x128xf32, #tpu.memory_space<vmem>>, vector<400x128xf32>,
    %c0_i32_8 = arith.constant 0 : i32
    %9 = arith.cmpi eq, %arg1, %c0_i32_8 : i32
    %10 = arith.extui %9 : i1 to i32
    %c0_i32_9 = arith.constant 0 : i32
    %11 = arith.cmpi ne, %10, %c0_i32_9 : i32
    scf.if %11 {
      %c0_10 = arith.constant 0 : index
      %c0_11 = arith.constant 0 : index
      %12 = vector.load %arg6[%c0_10, %c0_11] : memref<400x128xf32, #tpu.memory_space<vmem>>, vector<400x128xf32>
      %c0_12 = arith.constant 0 : index
      %c0_13 = arith.constant 0 : index
      %13 = vector.load %arg4[%c0_12, %c0_13] : memref<1x128xf32, #tpu.memory_space<vmem>>, vector<1x128xf32>
      %14 = vector.broadcast %13 : vector<1x128xf32> to vector<400x128xf32>
      %15 = arith.addf %12, %14 : vector<400x128xf32>
      %cst_14 = arith.constant 0.000000e+00 : f32
      %16 = vector.broadcast %cst_14 : f32 to vector<400x128xf32>
      %17 = arith.maximumf %15, %16 : vector<400x128xf32>
      %18 = arith.truncf %17 : vector<400x128xf32> to vector<400x128xbf16>
      %c0_15 = arith.constant 0 : index
      %c0_16 = arith.constant 0 : index
      %19 = vector.load %arg5[%c0_15, %c0_16] : memref<400x128xbf16, #tpu.memory_space<vmem>>, vector<400x128xbf16>
      tpu.vector_store %arg5[%c0_15, %c0_16], %18 {strides = array<i32>} : memref<400x128xbf16, #tpu.memory_space<vmem>>, vector<400x128xbf16>,
    } else {
    }
    return
  }
  func.func @transform_0(%arg0: i32, %arg1: i32) -> (i32, i32) {
    %c0_i32 = arith.constant 0 : i32
    return %arg0, %arg1 : i32, i32
  }
  func.func @transform_1(%arg0: i32, %arg1: i32) -> (i32, i32) {
    %c0_i32 = arith.constant 0 : i32
    %c0_i32_0 = arith.constant 0 : i32
    return %arg1, %c0_i32 : i32, i32
  }
  func.func @transform_2(%arg0: i32, %arg1: i32) -> (i32, i32) {
    %c0_i32 = arith.constant 0 : i32
    %c0_i32_0 = arith.constant 0 : i32
    %c0_i32_1 = arith.constant 0 : i32
    return %c0_i32, %c0_i32_0 : i32, i32
  }
  func.func @transform_3(%arg0: i32, %arg1: i32) -> (i32, i32) {
    %c0_i32 = arith.constant 0 : i32
    %c0_i32_0 = arith.constant 0 : i32
    return %arg0, %c0_i32 : i32, i32
  }
}

module attributes {stable_mosaic.version = 11 : i64} {
  func.func @_maxpool2x2_kernel(%arg0: i32, %arg1: memref<28x14x256xbf16, #tpu.memory_space<vmem>>, %arg2: memref<14x14x128xbf16, #tpu.memory_space<vmem>>) attributes {dimension_semantics = [#tpu.dimension_semantics<parallel>], iteration_bounds = array<i64: 2>, scalar_prefetch = 0 : i64, scratch_operands = 0 : i64, tpu.core_type = #tpu.core_type<tc>, window_params = [{transform_indices = @transform_0, window_bounds = array<i64: 28, 14, 256>}, {transform_indices = @transform_1, window_bounds = array<i64: 14, 14, 128>}]} {
    %c0 = arith.constant 0 : index
    %c0_0 = arith.constant 0 : index
    %c0_1 = arith.constant 0 : index
    %0 = vector.load %arg1[%c0, %c0_0, %c0_1] : memref<28x14x256xbf16, #tpu.memory_space<vmem>>, vector<28x14x256xbf16>
    %1 = vector.extract_strided_slice %0 {offsets = [0, 0, 0], sizes = [28, 14, 128], strides = [1, 1, 1]} : vector<28x14x256xbf16> to vector<28x14x128xbf16>
    %2 = vector.extract_strided_slice %0 {offsets = [0, 0, 128], sizes = [28, 14, 128], strides = [1, 1, 1]} : vector<28x14x256xbf16> to vector<28x14x128xbf16>
    %3 = arith.maximumf %1, %2 : vector<28x14x128xbf16>
    %4 = vector.shape_cast %3 : vector<28x14x128xbf16> to vector<14x2x14x128xbf16>
    %5 = vector.extract_strided_slice %4 {offsets = [0, 0, 0, 0], sizes = [14, 1, 14, 128], strides = [1, 1, 1, 1]} : vector<14x2x14x128xbf16> to vector<14x1x14x128xbf16>
    %6 = vector.shape_cast %5 : vector<14x1x14x128xbf16> to vector<14x14x128xbf16>
    %7 = vector.extract_strided_slice %4 {offsets = [0, 1, 0, 0], sizes = [14, 1, 14, 128], strides = [1, 1, 1, 1]} : vector<14x2x14x128xbf16> to vector<14x1x14x128xbf16>
    %8 = vector.shape_cast %7 : vector<14x1x14x128xbf16> to vector<14x14x128xbf16>
    %9 = arith.maximumf %6, %8 : vector<14x14x128xbf16>
    %c0_2 = arith.constant 0 : index
    %c0_3 = arith.constant 0 : index
    %c0_4 = arith.constant 0 : index
    %10 = vector.load %arg2[%c0_2, %c0_3, %c0_4] : memref<14x14x128xbf16, #tpu.memory_space<vmem>>, vector<14x14x128xbf16>
    tpu.vector_store %arg2[%c0_2, %c0_3, %c0_4], %9 {strides = array<i32>} : memref<14x14x128xbf16, #tpu.memory_space<vmem>>, vector<14x14x128xbf16>,
    return
  }
  func.func @transform_0(%arg0: i32) -> (i32, i32, i32) {
    %c0_i32 = arith.constant 0 : i32
    %c0_i32_0 = arith.constant 0 : i32
    %c0_i32_1 = arith.constant 0 : i32
    return %arg0, %c0_i32, %c0_i32_0 : i32, i32, i32
  }
  func.func @transform_1(%arg0: i32) -> (i32, i32, i32) {
    %c0_i32 = arith.constant 0 : i32
    %c0_i32_0 = arith.constant 0 : i32
    %c0_i32_1 = arith.constant 0 : i32
    return %arg0, %c0_i32, %c0_i32_0 : i32, i32, i32
  }
}

module attributes {stable_mosaic.version = 11 : i64} {
  func.func @_mm_bias_act_kernel(%arg0: i32, %arg1: i32, %arg2: memref<288x1152xbf16, #tpu.memory_space<vmem>>, %arg3: memref<1152x128xbf16, #tpu.memory_space<vmem>>, %arg4: memref<1x128xf32, #tpu.memory_space<vmem>>, %arg5: memref<288x128xbf16, #tpu.memory_space<vmem>>, %arg6: memref<288x128xf32, #tpu.memory_space<vmem>>) attributes {dimension_semantics = [#tpu.dimension_semantics<parallel>, #tpu.dimension_semantics<arbitrary>], iteration_bounds = array<i64: 1, 1>, scalar_prefetch = 0 : i64, scratch_operands = 1 : i64, tpu.core_type = #tpu.core_type<tc>, window_params = [{transform_indices = @transform_0, window_bounds = array<i64: 288, 1152>}, {transform_indices = @transform_1, window_bounds = array<i64: 1152, 128>}, {pipeline_mode = #tpu.pipeline_mode<synchronous>, transform_indices = @transform_2, window_bounds = array<i64: 1, 128>}, {transform_indices = @transform_3, window_bounds = array<i64: 288, 128>}]} {
    %c0_i32 = arith.constant 0 : i32
    %0 = arith.cmpi eq, %arg1, %c0_i32 : i32
    %1 = arith.extui %0 : i1 to i32
    %c0_i32_0 = arith.constant 0 : i32
    %2 = arith.cmpi ne, %1, %c0_i32_0 : i32
    scf.if %2 {
      %cst_10 = arith.constant 0.000000e+00 : f32
      %12 = vector.broadcast %cst_10 : f32 to vector<288x128xf32>
      %c0_11 = arith.constant 0 : index
      %c0_12 = arith.constant 0 : index
      %13 = vector.load %arg6[%c0_11, %c0_12] : memref<288x128xf32, #tpu.memory_space<vmem>>, vector<288x128xf32>
      tpu.vector_store %arg6[%c0_11, %c0_12], %12 {strides = array<i32>} : memref<288x128xf32, #tpu.memory_space<vmem>>, vector<288x128xf32>,
    } else {
    }
    %c0 = arith.constant 0 : index
    %c0_1 = arith.constant 0 : index
    %3 = vector.load %arg6[%c0, %c0_1] : memref<288x128xf32, #tpu.memory_space<vmem>>, vector<288x128xf32>
    %c0_2 = arith.constant 0 : index
    %c0_3 = arith.constant 0 : index
    %4 = vector.load %arg2[%c0_2, %c0_3] : memref<288x1152xbf16, #tpu.memory_space<vmem>>, vector<288x1152xbf16>
    %c0_4 = arith.constant 0 : index
    %c0_5 = arith.constant 0 : index
    %5 = vector.load %arg3[%c0_4, %c0_5] : memref<1152x128xbf16, #tpu.memory_space<vmem>>, vector<1152x128xbf16>
    %cst = arith.constant dense<0.000000e+00> : vector<288x128xf32>
    %6 = tpu.matmul %4, %5, %cst {dimension_numbers = #tpu.dot_dimension_numbers<[1], [0], [0], [1], [0, 0, 1, 1], [], []>} : vector<288x1152xbf16>, vector<1152x128xbf16>, vector<288x128xf32> -> vector<288x128xf32>
    %7 = arith.addf %3, %6 : vector<288x128xf32>
    %c0_6 = arith.constant 0 : index
    %c0_7 = arith.constant 0 : index
    %8 = vector.load %arg6[%c0_6, %c0_7] : memref<288x128xf32, #tpu.memory_space<vmem>>, vector<288x128xf32>
    tpu.vector_store %arg6[%c0_6, %c0_7], %7 {strides = array<i32>} : memref<288x128xf32, #tpu.memory_space<vmem>>, vector<288x128xf32>,
    %c0_i32_8 = arith.constant 0 : i32
    %9 = arith.cmpi eq, %arg1, %c0_i32_8 : i32
    %10 = arith.extui %9 : i1 to i32
    %c0_i32_9 = arith.constant 0 : i32
    %11 = arith.cmpi ne, %10, %c0_i32_9 : i32
    scf.if %11 {
      %c0_10 = arith.constant 0 : index
      %c0_11 = arith.constant 0 : index
      %12 = vector.load %arg6[%c0_10, %c0_11] : memref<288x128xf32, #tpu.memory_space<vmem>>, vector<288x128xf32>
      %c0_12 = arith.constant 0 : index
      %c0_13 = arith.constant 0 : index
      %13 = vector.load %arg4[%c0_12, %c0_13] : memref<1x128xf32, #tpu.memory_space<vmem>>, vector<1x128xf32>
      %14 = vector.broadcast %13 : vector<1x128xf32> to vector<288x128xf32>
      %15 = arith.addf %12, %14 : vector<288x128xf32>
      %cst_14 = arith.constant 0.000000e+00 : f32
      %16 = vector.broadcast %cst_14 : f32 to vector<288x128xf32>
      %17 = arith.maximumf %15, %16 : vector<288x128xf32>
      %18 = arith.truncf %17 : vector<288x128xf32> to vector<288x128xbf16>
      %c0_15 = arith.constant 0 : index
      %c0_16 = arith.constant 0 : index
      %19 = vector.load %arg5[%c0_15, %c0_16] : memref<288x128xbf16, #tpu.memory_space<vmem>>, vector<288x128xbf16>
      tpu.vector_store %arg5[%c0_15, %c0_16], %18 {strides = array<i32>} : memref<288x128xbf16, #tpu.memory_space<vmem>>, vector<288x128xbf16>,
    } else {
    }
    return
  }
  func.func @transform_0(%arg0: i32, %arg1: i32) -> (i32, i32) {
    %c0_i32 = arith.constant 0 : i32
    return %arg0, %arg1 : i32, i32
  }
  func.func @transform_1(%arg0: i32, %arg1: i32) -> (i32, i32) {
    %c0_i32 = arith.constant 0 : i32
    %c0_i32_0 = arith.constant 0 : i32
    return %arg1, %c0_i32 : i32, i32
  }
  func.func @transform_2(%arg0: i32, %arg1: i32) -> (i32, i32) {
    %c0_i32 = arith.constant 0 : i32
    %c0_i32_0 = arith.constant 0 : i32
    %c0_i32_1 = arith.constant 0 : i32
    return %c0_i32, %c0_i32_0 : i32, i32
  }
  func.func @transform_3(%arg0: i32, %arg1: i32) -> (i32, i32) {
    %c0_i32 = arith.constant 0 : i32
    %c0_i32_0 = arith.constant 0 : i32
    return %arg0, %c0_i32 : i32, i32
  }
}

module attributes {stable_mosaic.version = 11 : i64} {
  func.func @_mm_bias_act_kernel(%arg0: i32, %arg1: i32, %arg2: memref<208x1152xbf16, #tpu.memory_space<vmem>>, %arg3: memref<1152x128xbf16, #tpu.memory_space<vmem>>, %arg4: memref<1x128xf32, #tpu.memory_space<vmem>>, %arg5: memref<208x128xbf16, #tpu.memory_space<vmem>>, %arg6: memref<208x128xf32, #tpu.memory_space<vmem>>) attributes {dimension_semantics = [#tpu.dimension_semantics<parallel>, #tpu.dimension_semantics<arbitrary>], iteration_bounds = array<i64: 1, 1>, scalar_prefetch = 0 : i64, scratch_operands = 1 : i64, tpu.core_type = #tpu.core_type<tc>, window_params = [{transform_indices = @transform_0, window_bounds = array<i64: 208, 1152>}, {transform_indices = @transform_1, window_bounds = array<i64: 1152, 128>}, {pipeline_mode = #tpu.pipeline_mode<synchronous>, transform_indices = @transform_2, window_bounds = array<i64: 1, 128>}, {transform_indices = @transform_3, window_bounds = array<i64: 208, 128>}]} {
    %c0_i32 = arith.constant 0 : i32
    %0 = arith.cmpi eq, %arg1, %c0_i32 : i32
    %1 = arith.extui %0 : i1 to i32
    %c0_i32_0 = arith.constant 0 : i32
    %2 = arith.cmpi ne, %1, %c0_i32_0 : i32
    scf.if %2 {
      %cst_10 = arith.constant 0.000000e+00 : f32
      %12 = vector.broadcast %cst_10 : f32 to vector<208x128xf32>
      %c0_11 = arith.constant 0 : index
      %c0_12 = arith.constant 0 : index
      %13 = vector.load %arg6[%c0_11, %c0_12] : memref<208x128xf32, #tpu.memory_space<vmem>>, vector<208x128xf32>
      tpu.vector_store %arg6[%c0_11, %c0_12], %12 {strides = array<i32>} : memref<208x128xf32, #tpu.memory_space<vmem>>, vector<208x128xf32>,
    } else {
    }
    %c0 = arith.constant 0 : index
    %c0_1 = arith.constant 0 : index
    %3 = vector.load %arg6[%c0, %c0_1] : memref<208x128xf32, #tpu.memory_space<vmem>>, vector<208x128xf32>
    %c0_2 = arith.constant 0 : index
    %c0_3 = arith.constant 0 : index
    %4 = vector.load %arg2[%c0_2, %c0_3] : memref<208x1152xbf16, #tpu.memory_space<vmem>>, vector<208x1152xbf16>
    %c0_4 = arith.constant 0 : index
    %c0_5 = arith.constant 0 : index
    %5 = vector.load %arg3[%c0_4, %c0_5] : memref<1152x128xbf16, #tpu.memory_space<vmem>>, vector<1152x128xbf16>
    %cst = arith.constant dense<0.000000e+00> : vector<208x128xf32>
    %6 = tpu.matmul %4, %5, %cst {dimension_numbers = #tpu.dot_dimension_numbers<[1], [0], [0], [1], [0, 0, 1, 1], [], []>} : vector<208x1152xbf16>, vector<1152x128xbf16>, vector<208x128xf32> -> vector<208x128xf32>
    %7 = arith.addf %3, %6 : vector<208x128xf32>
    %c0_6 = arith.constant 0 : index
    %c0_7 = arith.constant 0 : index
    %8 = vector.load %arg6[%c0_6, %c0_7] : memref<208x128xf32, #tpu.memory_space<vmem>>, vector<208x128xf32>
    tpu.vector_store %arg6[%c0_6, %c0_7], %7 {strides = array<i32>} : memref<208x128xf32, #tpu.memory_space<vmem>>, vector<208x128xf32>,
    %c0_i32_8 = arith.constant 0 : i32
    %9 = arith.cmpi eq, %arg1, %c0_i32_8 : i32
    %10 = arith.extui %9 : i1 to i32
    %c0_i32_9 = arith.constant 0 : i32
    %11 = arith.cmpi ne, %10, %c0_i32_9 : i32
    scf.if %11 {
      %c0_10 = arith.constant 0 : index
      %c0_11 = arith.constant 0 : index
      %12 = vector.load %arg6[%c0_10, %c0_11] : memref<208x128xf32, #tpu.memory_space<vmem>>, vector<208x128xf32>
      %c0_12 = arith.constant 0 : index
      %c0_13 = arith.constant 0 : index
      %13 = vector.load %arg4[%c0_12, %c0_13] : memref<1x128xf32, #tpu.memory_space<vmem>>, vector<1x128xf32>
      %14 = vector.broadcast %13 : vector<1x128xf32> to vector<208x128xf32>
      %15 = arith.addf %12, %14 : vector<208x128xf32>
      %cst_14 = arith.constant 0.000000e+00 : f32
      %16 = vector.broadcast %cst_14 : f32 to vector<208x128xf32>
      %17 = arith.maximumf %15, %16 : vector<208x128xf32>
      %18 = arith.truncf %17 : vector<208x128xf32> to vector<208x128xbf16>
      %c0_15 = arith.constant 0 : index
      %c0_16 = arith.constant 0 : index
      %19 = vector.load %arg5[%c0_15, %c0_16] : memref<208x128xbf16, #tpu.memory_space<vmem>>, vector<208x128xbf16>
      tpu.vector_store %arg5[%c0_15, %c0_16], %18 {strides = array<i32>} : memref<208x128xbf16, #tpu.memory_space<vmem>>, vector<208x128xbf16>,
    } else {
    }
    return
  }
  func.func @transform_0(%arg0: i32, %arg1: i32) -> (i32, i32) {
    %c0_i32 = arith.constant 0 : i32
    return %arg0, %arg1 : i32, i32
  }
  func.func @transform_1(%arg0: i32, %arg1: i32) -> (i32, i32) {
    %c0_i32 = arith.constant 0 : i32
    %c0_i32_0 = arith.constant 0 : i32
    return %arg1, %c0_i32 : i32, i32
  }
  func.func @transform_2(%arg0: i32, %arg1: i32) -> (i32, i32) {
    %c0_i32 = arith.constant 0 : i32
    %c0_i32_0 = arith.constant 0 : i32
    %c0_i32_1 = arith.constant 0 : i32
    return %c0_i32, %c0_i32_0 : i32, i32
  }
  func.func @transform_3(%arg0: i32, %arg1: i32) -> (i32, i32) {
    %c0_i32 = arith.constant 0 : i32
    %c0_i32_0 = arith.constant 0 : i32
    return %arg0, %c0_i32 : i32, i32
  }
}

module attributes {stable_mosaic.version = 11 : i64} {
  func.func @_maxpool2x2_kernel(%arg0: i32, %arg1: memref<10x5x256xbf16, #tpu.memory_space<vmem>>, %arg2: memref<5x5x128xbf16, #tpu.memory_space<vmem>>) attributes {dimension_semantics = [#tpu.dimension_semantics<parallel>], iteration_bounds = array<i64: 2>, scalar_prefetch = 0 : i64, scratch_operands = 0 : i64, tpu.core_type = #tpu.core_type<tc>, window_params = [{transform_indices = @transform_0, window_bounds = array<i64: 10, 5, 256>}, {transform_indices = @transform_1, window_bounds = array<i64: 5, 5, 128>}]} {
    %c0 = arith.constant 0 : index
    %c0_0 = arith.constant 0 : index
    %c0_1 = arith.constant 0 : index
    %0 = vector.load %arg1[%c0, %c0_0, %c0_1] : memref<10x5x256xbf16, #tpu.memory_space<vmem>>, vector<10x5x256xbf16>
    %1 = vector.extract_strided_slice %0 {offsets = [0, 0, 0], sizes = [10, 5, 128], strides = [1, 1, 1]} : vector<10x5x256xbf16> to vector<10x5x128xbf16>
    %2 = vector.extract_strided_slice %0 {offsets = [0, 0, 128], sizes = [10, 5, 128], strides = [1, 1, 1]} : vector<10x5x256xbf16> to vector<10x5x128xbf16>
    %3 = arith.maximumf %1, %2 : vector<10x5x128xbf16>
    %4 = vector.shape_cast %3 : vector<10x5x128xbf16> to vector<5x2x5x128xbf16>
    %5 = vector.extract_strided_slice %4 {offsets = [0, 0, 0, 0], sizes = [5, 1, 5, 128], strides = [1, 1, 1, 1]} : vector<5x2x5x128xbf16> to vector<5x1x5x128xbf16>
    %6 = vector.shape_cast %5 : vector<5x1x5x128xbf16> to vector<5x5x128xbf16>
    %7 = vector.extract_strided_slice %4 {offsets = [0, 1, 0, 0], sizes = [5, 1, 5, 128], strides = [1, 1, 1, 1]} : vector<5x2x5x128xbf16> to vector<5x1x5x128xbf16>
    %8 = vector.shape_cast %7 : vector<5x1x5x128xbf16> to vector<5x5x128xbf16>
    %9 = arith.maximumf %6, %8 : vector<5x5x128xbf16>
    %c0_2 = arith.constant 0 : index
    %c0_3 = arith.constant 0 : index
    %c0_4 = arith.constant 0 : index
    %10 = vector.load %arg2[%c0_2, %c0_3, %c0_4] : memref<5x5x128xbf16, #tpu.memory_space<vmem>>, vector<5x5x128xbf16>
    tpu.vector_store %arg2[%c0_2, %c0_3, %c0_4], %9 {strides = array<i32>} : memref<5x5x128xbf16, #tpu.memory_space<vmem>>, vector<5x5x128xbf16>,
    return
  }
  func.func @transform_0(%arg0: i32) -> (i32, i32, i32) {
    %c0_i32 = arith.constant 0 : i32
    %c0_i32_0 = arith.constant 0 : i32
    %c0_i32_1 = arith.constant 0 : i32
    return %arg0, %c0_i32, %c0_i32_0 : i32, i32, i32
  }
  func.func @transform_1(%arg0: i32) -> (i32, i32, i32) {
    %c0_i32 = arith.constant 0 : i32
    %c0_i32_0 = arith.constant 0 : i32
    %c0_i32_1 = arith.constant 0 : i32
    return %arg0, %c0_i32, %c0_i32_0 : i32, i32, i32
  }
}

module attributes {stable_mosaic.version = 11 : i64} {
  func.func @_mm_bias_act_kernel(%arg0: i32, %arg1: i32, %arg2: memref<16x640xbf16, #tpu.memory_space<vmem>>, %arg3: memref<640x256xbf16, #tpu.memory_space<vmem>>, %arg4: memref<1x256xf32, #tpu.memory_space<vmem>>, %arg5: memref<16x256xbf16, #tpu.memory_space<vmem>>, %arg6: memref<16x256xf32, #tpu.memory_space<vmem>>) attributes {dimension_semantics = [#tpu.dimension_semantics<parallel>, #tpu.dimension_semantics<arbitrary>], iteration_bounds = array<i64: 1, 5>, scalar_prefetch = 0 : i64, scratch_operands = 1 : i64, tpu.core_type = #tpu.core_type<tc>, window_params = [{transform_indices = @transform_0, window_bounds = array<i64: 16, 640>}, {transform_indices = @transform_1, window_bounds = array<i64: 640, 256>}, {pipeline_mode = #tpu.pipeline_mode<synchronous>, transform_indices = @transform_2, window_bounds = array<i64: 1, 256>}, {transform_indices = @transform_3, window_bounds = array<i64: 16, 256>}]} {
    %c0_i32 = arith.constant 0 : i32
    %0 = arith.cmpi eq, %arg1, %c0_i32 : i32
    %1 = arith.extui %0 : i1 to i32
    %c0_i32_0 = arith.constant 0 : i32
    %2 = arith.cmpi ne, %1, %c0_i32_0 : i32
    scf.if %2 {
      %cst_9 = arith.constant 0.000000e+00 : f32
      %12 = vector.broadcast %cst_9 : f32 to vector<16x256xf32>
      %c0_10 = arith.constant 0 : index
      %c0_11 = arith.constant 0 : index
      %13 = vector.load %arg6[%c0_10, %c0_11] : memref<16x256xf32, #tpu.memory_space<vmem>>, vector<16x256xf32>
      tpu.vector_store %arg6[%c0_10, %c0_11], %12 {strides = array<i32>} : memref<16x256xf32, #tpu.memory_space<vmem>>, vector<16x256xf32>,
    } else {
    }
    %c0 = arith.constant 0 : index
    %c0_1 = arith.constant 0 : index
    %3 = vector.load %arg6[%c0, %c0_1] : memref<16x256xf32, #tpu.memory_space<vmem>>, vector<16x256xf32>
    %c0_2 = arith.constant 0 : index
    %c0_3 = arith.constant 0 : index
    %4 = vector.load %arg2[%c0_2, %c0_3] : memref<16x640xbf16, #tpu.memory_space<vmem>>, vector<16x640xbf16>
    %c0_4 = arith.constant 0 : index
    %c0_5 = arith.constant 0 : index
    %5 = vector.load %arg3[%c0_4, %c0_5] : memref<640x256xbf16, #tpu.memory_space<vmem>>, vector<640x256xbf16>
    %cst = arith.constant dense<0.000000e+00> : vector<16x256xf32>
    %6 = tpu.matmul %4, %5, %cst {dimension_numbers = #tpu.dot_dimension_numbers<[1], [0], [0], [1], [0, 0, 1, 1], [], []>} : vector<16x640xbf16>, vector<640x256xbf16>, vector<16x256xf32> -> vector<16x256xf32>
    %7 = arith.addf %3, %6 : vector<16x256xf32>
    %c0_6 = arith.constant 0 : index
    %c0_7 = arith.constant 0 : index
    %8 = vector.load %arg6[%c0_6, %c0_7] : memref<16x256xf32, #tpu.memory_space<vmem>>, vector<16x256xf32>
    tpu.vector_store %arg6[%c0_6, %c0_7], %7 {strides = array<i32>} : memref<16x256xf32, #tpu.memory_space<vmem>>, vector<16x256xf32>,
    %c4_i32 = arith.constant 4 : i32
    %9 = arith.cmpi eq, %arg1, %c4_i32 : i32
    %10 = arith.extui %9 : i1 to i32
    %c0_i32_8 = arith.constant 0 : i32
    %11 = arith.cmpi ne, %10, %c0_i32_8 : i32
    scf.if %11 {
      %c0_9 = arith.constant 0 : index
      %c0_10 = arith.constant 0 : index
      %12 = vector.load %arg6[%c0_9, %c0_10] : memref<16x256xf32, #tpu.memory_space<vmem>>, vector<16x256xf32>
      %c0_11 = arith.constant 0 : index
      %c0_12 = arith.constant 0 : index
      %13 = vector.load %arg4[%c0_11, %c0_12] : memref<1x256xf32, #tpu.memory_space<vmem>>, vector<1x256xf32>
      %14 = vector.broadcast %13 : vector<1x256xf32> to vector<16x256xf32>
      %15 = arith.addf %12, %14 : vector<16x256xf32>
      %cst_13 = arith.constant 0.000000e+00 : f32
      %16 = vector.broadcast %cst_13 : f32 to vector<16x256xf32>
      %17 = arith.maximumf %15, %16 : vector<16x256xf32>
      %18 = arith.truncf %17 : vector<16x256xf32> to vector<16x256xbf16>
      %c0_14 = arith.constant 0 : index
      %c0_15 = arith.constant 0 : index
      %19 = vector.load %arg5[%c0_14, %c0_15] : memref<16x256xbf16, #tpu.memory_space<vmem>>, vector<16x256xbf16>
      tpu.vector_store %arg5[%c0_14, %c0_15], %18 {strides = array<i32>} : memref<16x256xbf16, #tpu.memory_space<vmem>>, vector<16x256xbf16>,
    } else {
    }
    return
  }
  func.func @transform_0(%arg0: i32, %arg1: i32) -> (i32, i32) {
    %c0_i32 = arith.constant 0 : i32
    return %arg0, %arg1 : i32, i32
  }
  func.func @transform_1(%arg0: i32, %arg1: i32) -> (i32, i32) {
    %c0_i32 = arith.constant 0 : i32
    %c0_i32_0 = arith.constant 0 : i32
    return %arg1, %c0_i32 : i32, i32
  }
  func.func @transform_2(%arg0: i32, %arg1: i32) -> (i32, i32) {
    %c0_i32 = arith.constant 0 : i32
    %c0_i32_0 = arith.constant 0 : i32
    %c0_i32_1 = arith.constant 0 : i32
    return %c0_i32, %c0_i32_0 : i32, i32
  }
  func.func @transform_3(%arg0: i32, %arg1: i32) -> (i32, i32) {
    %c0_i32 = arith.constant 0 : i32
    %c0_i32_0 = arith.constant 0 : i32
    return %arg0, %c0_i32 : i32, i32
  }
}

module attributes {stable_mosaic.version = 11 : i64} {
  func.func @_mm_bias_act_kernel(%arg0: i32, %arg1: i32, %arg2: memref<16x256xbf16, #tpu.memory_space<vmem>>, %arg3: memref<256x256xbf16, #tpu.memory_space<vmem>>, %arg4: memref<1x256xf32, #tpu.memory_space<vmem>>, %arg5: memref<16x256xbf16, #tpu.memory_space<vmem>>, %arg6: memref<16x256xf32, #tpu.memory_space<vmem>>) attributes {dimension_semantics = [#tpu.dimension_semantics<parallel>, #tpu.dimension_semantics<arbitrary>], iteration_bounds = array<i64: 1, 1>, scalar_prefetch = 0 : i64, scratch_operands = 1 : i64, tpu.core_type = #tpu.core_type<tc>, window_params = [{transform_indices = @transform_0, window_bounds = array<i64: 16, 256>}, {transform_indices = @transform_1, window_bounds = array<i64: 256, 256>}, {pipeline_mode = #tpu.pipeline_mode<synchronous>, transform_indices = @transform_2, window_bounds = array<i64: 1, 256>}, {transform_indices = @transform_3, window_bounds = array<i64: 16, 256>}]} {
    %c0_i32 = arith.constant 0 : i32
    %0 = arith.cmpi eq, %arg1, %c0_i32 : i32
    %1 = arith.extui %0 : i1 to i32
    %c0_i32_0 = arith.constant 0 : i32
    %2 = arith.cmpi ne, %1, %c0_i32_0 : i32
    scf.if %2 {
      %cst_10 = arith.constant 0.000000e+00 : f32
      %12 = vector.broadcast %cst_10 : f32 to vector<16x256xf32>
      %c0_11 = arith.constant 0 : index
      %c0_12 = arith.constant 0 : index
      %13 = vector.load %arg6[%c0_11, %c0_12] : memref<16x256xf32, #tpu.memory_space<vmem>>, vector<16x256xf32>
      tpu.vector_store %arg6[%c0_11, %c0_12], %12 {strides = array<i32>} : memref<16x256xf32, #tpu.memory_space<vmem>>, vector<16x256xf32>,
    } else {
    }
    %c0 = arith.constant 0 : index
    %c0_1 = arith.constant 0 : index
    %3 = vector.load %arg6[%c0, %c0_1] : memref<16x256xf32, #tpu.memory_space<vmem>>, vector<16x256xf32>
    %c0_2 = arith.constant 0 : index
    %c0_3 = arith.constant 0 : index
    %4 = vector.load %arg2[%c0_2, %c0_3] : memref<16x256xbf16, #tpu.memory_space<vmem>>, vector<16x256xbf16>
    %c0_4 = arith.constant 0 : index
    %c0_5 = arith.constant 0 : index
    %5 = vector.load %arg3[%c0_4, %c0_5] : memref<256x256xbf16, #tpu.memory_space<vmem>>, vector<256x256xbf16>
    %cst = arith.constant dense<0.000000e+00> : vector<16x256xf32>
    %6 = tpu.matmul %4, %5, %cst {dimension_numbers = #tpu.dot_dimension_numbers<[1], [0], [0], [1], [0, 0, 1, 1], [], []>} : vector<16x256xbf16>, vector<256x256xbf16>, vector<16x256xf32> -> vector<16x256xf32>
    %7 = arith.addf %3, %6 : vector<16x256xf32>
    %c0_6 = arith.constant 0 : index
    %c0_7 = arith.constant 0 : index
    %8 = vector.load %arg6[%c0_6, %c0_7] : memref<16x256xf32, #tpu.memory_space<vmem>>, vector<16x256xf32>
    tpu.vector_store %arg6[%c0_6, %c0_7], %7 {strides = array<i32>} : memref<16x256xf32, #tpu.memory_space<vmem>>, vector<16x256xf32>,
    %c0_i32_8 = arith.constant 0 : i32
    %9 = arith.cmpi eq, %arg1, %c0_i32_8 : i32
    %10 = arith.extui %9 : i1 to i32
    %c0_i32_9 = arith.constant 0 : i32
    %11 = arith.cmpi ne, %10, %c0_i32_9 : i32
    scf.if %11 {
      %c0_10 = arith.constant 0 : index
      %c0_11 = arith.constant 0 : index
      %12 = vector.load %arg6[%c0_10, %c0_11] : memref<16x256xf32, #tpu.memory_space<vmem>>, vector<16x256xf32>
      %c0_12 = arith.constant 0 : index
      %c0_13 = arith.constant 0 : index
      %13 = vector.load %arg4[%c0_12, %c0_13] : memref<1x256xf32, #tpu.memory_space<vmem>>, vector<1x256xf32>
      %14 = vector.broadcast %13 : vector<1x256xf32> to vector<16x256xf32>
      %15 = arith.addf %12, %14 : vector<16x256xf32>
      %cst_14 = arith.constant 0.000000e+00 : f32
      %16 = vector.broadcast %cst_14 : f32 to vector<16x256xf32>
      %17 = arith.maximumf %15, %16 : vector<16x256xf32>
      %18 = arith.truncf %17 : vector<16x256xf32> to vector<16x256xbf16>
      %c0_15 = arith.constant 0 : index
      %c0_16 = arith.constant 0 : index
      %19 = vector.load %arg5[%c0_15, %c0_16] : memref<16x256xbf16, #tpu.memory_space<vmem>>, vector<16x256xbf16>
      tpu.vector_store %arg5[%c0_15, %c0_16], %18 {strides = array<i32>} : memref<16x256xbf16, #tpu.memory_space<vmem>>, vector<16x256xbf16>,
    } else {
    }
    return
  }
  func.func @transform_0(%arg0: i32, %arg1: i32) -> (i32, i32) {
    %c0_i32 = arith.constant 0 : i32
    return %arg0, %arg1 : i32, i32
  }
  func.func @transform_1(%arg0: i32, %arg1: i32) -> (i32, i32) {
    %c0_i32 = arith.constant 0 : i32
    %c0_i32_0 = arith.constant 0 : i32
    return %arg1, %c0_i32 : i32, i32
  }
  func.func @transform_2(%arg0: i32, %arg1: i32) -> (i32, i32) {
    %c0_i32 = arith.constant 0 : i32
    %c0_i32_0 = arith.constant 0 : i32
    %c0_i32_1 = arith.constant 0 : i32
    return %c0_i32, %c0_i32_0 : i32, i32
  }
  func.func @transform_3(%arg0: i32, %arg1: i32) -> (i32, i32) {
    %c0_i32 = arith.constant 0 : i32
    %c0_i32_0 = arith.constant 0 : i32
    return %arg0, %c0_i32 : i32, i32
  }
}

module attributes {stable_mosaic.version = 11 : i64} {
  func.func @_fc_log_softmax_kernel(%arg0: i32, %arg1: memref<16x256xbf16, #tpu.memory_space<vmem>>, %arg2: memref<256x128xbf16, #tpu.memory_space<vmem>>, %arg3: memref<1x128xf32, #tpu.memory_space<vmem>>, %arg4: memref<16x128xf32, #tpu.memory_space<vmem>>) attributes {dimension_semantics = [#tpu.dimension_semantics<parallel>], iteration_bounds = array<i64: 1>, scalar_prefetch = 0 : i64, scratch_operands = 0 : i64, tpu.core_type = #tpu.core_type<tc>, window_params = [{transform_indices = @transform_0, window_bounds = array<i64: 16, 256>}, {pipeline_mode = #tpu.pipeline_mode<synchronous>, transform_indices = @transform_1, window_bounds = array<i64: 256, 128>}, {pipeline_mode = #tpu.pipeline_mode<synchronous>, transform_indices = @transform_2, window_bounds = array<i64: 1, 128>}, {transform_indices = @transform_3, window_bounds = array<i64: 16, 128>}]} {
    %c0 = arith.constant 0 : index
    %c0_0 = arith.constant 0 : index
    %0 = vector.load %arg1[%c0, %c0_0] : memref<16x256xbf16, #tpu.memory_space<vmem>>, vector<16x256xbf16>
    %c0_1 = arith.constant 0 : index
    %c0_2 = arith.constant 0 : index
    %1 = vector.load %arg2[%c0_1, %c0_2] : memref<256x128xbf16, #tpu.memory_space<vmem>>, vector<256x128xbf16>
    %cst = arith.constant dense<0.000000e+00> : vector<16x128xf32>
    %2 = tpu.matmul %0, %1, %cst {dimension_numbers = #tpu.dot_dimension_numbers<[1], [0], [0], [1], [0, 0, 1, 1], [], []>} : vector<16x256xbf16>, vector<256x128xbf16>, vector<16x128xf32> -> vector<16x128xf32>
    %c0_3 = arith.constant 0 : index
    %c0_4 = arith.constant 0 : index
    %3 = vector.load %arg3[%c0_3, %c0_4] : memref<1x128xf32, #tpu.memory_space<vmem>>, vector<1x128xf32>
    %4 = vector.broadcast %3 : vector<1x128xf32> to vector<16x128xf32>
    %5 = arith.addf %2, %4 : vector<16x128xf32>
    %cst_5 = arith.constant dense<0xFF800000> : vector<16xf32>
    %6 = vector.multi_reduction <maximumf>, %5, %cst_5 [1] : vector<16x128xf32> to vector<16xf32>
    %7 = vector.shape_cast %6 : vector<16xf32> to vector<16x1xf32>
    %8 = vector.broadcast %7 : vector<16x1xf32> to vector<16x128xf32>
    %9 = arith.subf %5, %8 : vector<16x128xf32>
    %10 = math.exp %9 : vector<16x128xf32>
    %cst_6 = arith.constant dense<0.000000e+00> : vector<16xf32>
    %11 = vector.multi_reduction <add>, %10, %cst_6 [1] : vector<16x128xf32> to vector<16xf32>
    %12 = vector.shape_cast %11 : vector<16xf32> to vector<16x1xf32>
    %13 = math.log %12 : vector<16x1xf32>
    %14 = vector.broadcast %13 : vector<16x1xf32> to vector<16x128xf32>
    %15 = arith.subf %9, %14 : vector<16x128xf32>
    %c0_7 = arith.constant 0 : index
    %c0_8 = arith.constant 0 : index
    %16 = vector.load %arg4[%c0_7, %c0_8] : memref<16x128xf32, #tpu.memory_space<vmem>>, vector<16x128xf32>
    tpu.vector_store %arg4[%c0_7, %c0_8], %15 {strides = array<i32>} : memref<16x128xf32, #tpu.memory_space<vmem>>, vector<16x128xf32>,
    return
  }
  func.func @transform_0(%arg0: i32) -> (i32, i32) {
    %c0_i32 = arith.constant 0 : i32
    %c0_i32_0 = arith.constant 0 : i32
    return %arg0, %c0_i32 : i32, i32
  }
  func.func @transform_1(%arg0: i32) -> (i32, i32) {
    %c0_i32 = arith.constant 0 : i32
    %c0_i32_0 = arith.constant 0 : i32
    %c0_i32_1 = arith.constant 0 : i32
    return %c0_i32, %c0_i32_0 : i32, i32
  }
  func.func @transform_2(%arg0: i32) -> (i32, i32) {
    %c0_i32 = arith.constant 0 : i32
    %c0_i32_0 = arith.constant 0 : i32
    %c0_i32_1 = arith.constant 0 : i32
    return %c0_i32, %c0_i32_0 : i32, i32
  }
  func.func @transform_3(%arg0: i32) -> (i32, i32) {
    %c0_i32 = arith.constant 0 : i32
    %c0_i32_0 = arith.constant 0 : i32
    return %arg0, %c0_i32 : i32, i32
  }
}

</mosaic_0001>

<bundles_post_ra>
// kernel: net3_forward.9
= control target key start
LH: loop header
LB: loop body
LE: loop exit
PB: predicated region body
PF: predicated region fallthrough
CT: control target
= control target key end

     0   :  { %8 = vsyncpa [#allocation4], 0  ;;  %s2096_s0 = inlined_call_operand.vmem [shape: bf16[1856,27], index: 0, kind: input, shape index: {}]   ;;  %s2097_s1 = inlined_call_operand.hbm [shape: bf16[27,128], index: 1, kind: input, shape index: {}]   ;;  %s2098_s2 = inlined_call_operand.hbm [shape: f32[1,128], index: 2, kind: input, shape index: {}]   ;;  %s2099_s3 = inlined_call_operand.vmem [shape: bf16[1856,128], index: 3, kind: output, shape index: {}]  }
   0x1   :  { %9 = vsyncpa [#allocation6], 0  ;;  %s1873_s12 = smov 0   ;;  %s1875_s13 = smov 0  }
   0x2   :  { %s1877_s14 = smov 0  }
   0x3 LB: > { %s1331_s15 = sadd.s32 4294967295, %s1846_s14   ;;  %s27_s16 = sadd.s32 1, %s1842_s13  ;;  %s1846_s14 = sphi %s1877_s14, %s15_s14   ;;  %s1842_s13 = sphi %s1875_s13, %s2103_s13   ;;  %s1838_s12 = sphi %s1873_s12, %s2102_s12  }
   0x4   : > { %p29_p0 = scmp.ge.s32.totalorder %s27_s16, 4  ;;  %p1333_p1 = scmp.ge.s32.totalorder %s1846_s14, 1 }
   0x5   : > { %p133_p2 = scmp.lt.s32.totalorder %s1846_s14, 5  ;;  %p1898_p4 = scmp.eq.s32.totalorder %s1331_s15, 0 }
   0x6   : > { %s2105_s16 = smov (%p29_p0, %s27_s16), 0  ;;  %s147_s21 = sshll.u32 %s2097_s1, 4  ;;  %s148_s21 = int_to_ptr.hbm [resolvable:$true] %s147_s21 }
   0x7   : > { %p1894_p3 = pnand %p1333_p1, %p133_p2  ;;  %s1848_s22 = smov [#allocation3]  }
   0x8   : > { %s149_s23 = sshll.u32 %s1848_s22, 4  ;;  %s162_s26 = sshll.u32 %s2098_s2, 4  ;;  %s150_s23 = int_to_ptr.vmem [resolvable:$true] %s149_s23  ;;  %s163_s26 = int_to_ptr.hbm [resolvable:$true] %s162_s26 }
   0x9   : > { %p1715_p5 = pneg %p1894_p3  ;;  %s1849_s27 = smov 64  }
   0xa   : > { %s1850_s28 = smov 4   ;;  %s1851_s29 = smov [#allocation5]  }
   0xb   : > { %p1716_p6 = pnand %p1898_p4, %p1715_p5  ;;  %s164_s30 = sshll.u32 %s1851_s29, 4  ;;  %s165_s30 = int_to_ptr.vmem [resolvable:$true] %s164_s30 }
   0xc   : > { %189 = sbr.rel (%p1894_p3) target bundleno = 292 (0x124), region = 32 }
   0xd   : > { %1718 = dma.hbm_to_vmem [thread:$0]  (!%p1716_p6), %s148_s21, 256, %s150_s23, [#allocation4], %s1849_s27, %s1849_s27, %s1850_s28  }
   0xe   : > { %1721 = dma.hbm_to_vmem [thread:$0]  (!%p1716_p6), %s163_s26, 16, %s165_s30, [#allocation6]  }
  0x11   : > { %1829 = dma.done.wait (%p1898_p4), [#allocation4], 256  }
  0x12   : > { %1831 = vsyncadd (%p1898_p4), [#allocation4], 4294967040 }
  0x13   : > { %1833 = dma.done.wait (%p1898_p4), [#allocation6], 16  }
  0x14   : > { %1835 = vsyncadd (%p1898_p4), [#allocation6], 4294967280  ;;  %s222_s4 = smul.u32 58, %s1838_s12  ;;  %vm665_vm0 = vcmask 1044480   ;;  %vm666_vm1 = vcmask 1045504   ;;  %v1852_v0 = vmov 65535  }
  0x15   : > { %v667_v1 = vsel %vm665_vm0, 4294967295, %v1852_v0  ;;  %v1464_v2 = vld [vmem:[#allocation3 + $0x8] sm:$0xf]  ;;  %v1527_v3 = vld [vmem:[#allocation3 + $0x8] sm:$0x30]  ;;  %v1526_v7 = vld [vmem:[#allocation3] sm:$0xff] }
  0x16   : > { %p223_p7 = scmp.lt.s32.totalorder %s222_s4, 231  ;;  %v668_v4 = vsel %vm666_vm1, %v667_v1, 0  ;;  %v1465_v5 = vor.u32 %v1527_v3, %v1464_v2  ;;  %vm577_vm2 = vcmask 220160   ;;  %v1991_v39 = vld [vmem:[#allocation5] ss:$0 sm:$0xff] }
  0x18   : > { %s2107_s4 = smov (!%p223_p7, %s222_s4), 231  ;;  %v670_v6 = vand.u32 %v1465_v5, %v668_v4 }
  0x19   : > { %s1340_s5 = sshll.u32 %s2107_s4, 2 }
  0x1a   : > { %1701 = vmatpush.bf16.msra.mxu1 %v670_v6  ;;  %1702 = vmatpush.bf16.msra.mxu2 %v670_v6  ;;  %s1931_s8 = scalar_lea.vmem %s2096_s0, %s1340_s5  ;;  %s2002_s11 = scalar_lea.vmem %s2099_s3, %s1340_s5 }
  0x1b   : > { %678 = vmatpush.bf16.msra.mxu0 %v670_v6  ;;  %1703 = vmatpush.bf16.msra.mxu3 %v670_v6  ;;  %v1504_v8 = vld [vmem:[%s1931_s8 + $0x38] sm:$0xff]  ;;  %v1497_v10 = vld [vmem:[%s1931_s8] sm:$0xff]  ;;  %v1498_v14 = vld [vmem:[%s1931_s8 + $0x8] sm:$0xff] }
  0x1c   : > { %v1512_v9 = vld [vmem:[%s1931_s8 + $0x78] sm:$0xff]  ;;  %v1505_v12 = vld [vmem:[%s1931_s8 + $0x40] sm:$0xff]  ;;  %v1506_v16 = vld [vmem:[%s1931_s8 + $0x48] sm:$0xff] }
  0x1d   : > { %v1520_v11 = vld [vmem:[%s1931_s8 + $0xb8] sm:$0xff]  ;;  %v1513_v13 = vld [vmem:[%s1931_s8 + $0x80] sm:$0xff]  ;;  %v1514_v17 = vld [vmem:[%s1931_s8 + $0x88] sm:$0xff] }
  0x1e   : > { %1704 = vmatpush.bf16.msra.mxu1 %v1526_v7  ;;  %1705 = vmatpush.bf16.msra.mxu2 %v1526_v7  ;;  %v1521_v15 = vld [vmem:[%s1931_s8 + $0xc0] sm:$0xff]  ;;  %v1499_v18 = vld [vmem:[%s1931_s8 + $0x10] sm:$0xff]  ;;  %v1522_v19 = vld [vmem:[%s1931_s8 + $0xc8] sm:$0xff] }
  0x1f   : > { %679 = vmatpush.bf16.msra.mxu0 %v1526_v7  ;;  %1706 = vmatpush.bf16.msra.mxu3 %v1526_v7  ;;  %v1507_v20 = vld [vmem:[%s1931_s8 + $0x50] sm:$0xff]  ;;  %v1500_v22 = vld [vmem:[%s1931_s8 + $0x18] sm:$0xff]  ;;  %v1501_v26 = vld [vmem:[%s1931_s8 + $0x20] sm:$0xff] }
  0x20   : > { %v1515_v21 = vld [vmem:[%s1931_s8 + $0x90] sm:$0xff]  ;;  %v1508_v24 = vld [vmem:[%s1931_s8 + $0x58] sm:$0xff]  ;;  %v1509_v28 = vld [vmem:[%s1931_s8 + $0x60] sm:$0xff] }
  0x21   : > { %1473 = vmatmul.msk.bf16.vlgmr.msra.gmra.mxu1 %vm577_vm2, %v1504_v8  ;;  %1481 = vmatmul.msk.bf16.vlgmr.msra.gmra.mxu2 %vm577_vm2, %v1512_v9  ;;  %v1523_v23 = vld [vmem:[%s1931_s8 + $0xd0] sm:$0xff]  ;;  %v1516_v25 = vld [vmem:[%s1931_s8 + $0x98] sm:$0xff]  ;;  %v1517_v29 = vld [vmem:[%s1931_s8 + $0xa0] sm:$0xff] }
  0x22   : > { %1466 = vmatmul.msk.bf16.vlgmr.msra.gmra.mxu0 %vm577_vm2, %v1497_v10  ;;  %1489 = vmatmul.msk.bf16.vlgmr.msra.gmra.mxu3 %vm577_vm2, %v1520_v11  ;;  %v1524_v27 = vld [vmem:[%s1931_s8 + $0xd8] sm:$0xff]  ;;  %v1502_v30 = vld [vmem:[%s1931_s8 + $0x28] sm:$0xff]  ;;  %v1525_v31 = vld [vmem:[%s1931_s8 + $0xe0] sm:$0xff] }
  0x23   : > { %v1510_v32 = vld [vmem:[%s1931_s8 + $0x68] sm:$0xff]  ;;  %v1503_v34 = vld [vmem:[%s1931_s8 + $0x30] sm:$0xff] }
  0x24   : > { %v1518_v33 = vld [vmem:[%s1931_s8 + $0xa8] sm:$0xff]  ;;  %v1511_v35 = vld [vmem:[%s1931_s8 + $0x70] sm:$0xff] }
  0x25   : > { %v1519_v36 = vld [vmem:[%s1931_s8 + $0xb0] sm:$0xff] }
  0x31   : > { %1474 = vmatmul.msk.bf16.gmra.mxu1 %vm577_vm2, %v1505_v12  ;;  %1482 = vmatmul.msk.bf16.gmra.mxu2 %vm577_vm2, %v1513_v13 }
  0x32   : > { %1467 = vmatmul.msk.bf16.gmra.mxu0 %vm577_vm2, %v1498_v14  ;;  %1490 = vmatmul.msk.bf16.gmra.mxu3 %vm577_vm2, %v1521_v15 }
  0x41   : > { %1475 = vmatmul.msk.bf16.gmra.mxu1 %vm577_vm2, %v1506_v16  ;;  %1483 = vmatmul.msk.bf16.gmra.mxu2 %vm577_vm2, %v1514_v17 }
  0x42   : > { %1468 = vmatmul.msk.bf16.gmra.mxu0 %vm577_vm2, %v1499_v18  ;;  %1491 = vmatmul.msk.bf16.gmra.mxu3 %vm577_vm2, %v1522_v19 }
  0x51   : > { %1476 = vmatmul.msk.bf16.gmra.mxu1 %vm577_vm2, %v1507_v20  ;;  %1484 = vmatmul.msk.bf16.gmra.mxu2 %vm577_vm2, %v1515_v21 }
  0x52   : > { %1469 = vmatmul.msk.bf16.gmra.mxu0 %vm577_vm2, %v1500_v22  ;;  %1492 = vmatmul.msk.bf16.gmra.mxu3 %vm577_vm2, %v1523_v23 }
  0x61   : > { %1477 = vmatmul.msk.bf16.gmra.mxu1 %vm577_vm2, %v1508_v24  ;;  %1485 = vmatmul.msk.bf16.gmra.mxu2 %vm577_vm2, %v1516_v25 }
  0x62   : > { %1470 = vmatmul.msk.bf16.gmra.mxu0 %vm577_vm2, %v1501_v26  ;;  %1493 = vmatmul.msk.bf16.gmra.mxu3 %vm577_vm2, %v1524_v27 }
  0x71   : > { %1478 = vmatmul.msk.bf16.gmra.mxu1 %vm577_vm2, %v1509_v28  ;;  %1486 = vmatmul.msk.bf16.gmra.mxu2 %vm577_vm2, %v1517_v29 }
  0x72   : > { %1471 = vmatmul.msk.bf16.gmra.mxu0 %vm577_vm2, %v1502_v30  ;;  %1494 = vmatmul.msk.bf16.gmra.mxu3 %vm577_vm2, %v1525_v31 }
  0x81   : > { %1479 = vmatmul.msk.bf16.gmra.mxu1 %vm577_vm2, %v1510_v32  ;;  %1487 = vmatmul.msk.bf16.gmra.mxu2 %vm577_vm2, %v1518_v33 }
  0x82   : > { %1472 = vmatmul.msk.bf16.gmra.mxu0 %vm577_vm2, %v1503_v34 }
  0x91   : > { %1480 = vmatmul.msk.bf16.gmra.mxu1 %vm577_vm2, %v1511_v35  ;;  %1488 = vmatmul.msk.bf16.gmra.mxu2 %vm577_vm2, %v1519_v36 }
  0x9e   : > { %v716_v37 = vpop.f32.mrf.mxu1 }
  0x9f   : > { %v681_v38 = vpop.f32.mrf.mxu0  ;;  %v1021_v42 = vadd.f32 %v1991_v39, %v716_v37 }
  0xa0   : > { %v1007_v41 = vadd.f32 %v1991_v39, %v681_v38 }
  0xa1   : > { %v1079_v49 = vmax.f32 %v1021_v42, 0.0 }
  0xa2   : > { %v1065_v47 = vmax.f32 %v1007_v41, 0.0 }
  0xa4   : > { %v756_v40 = vpop.f32.mrf.mxu2 }
  0xa5   : > { %v796_v43 = vpop.f32.mrf.mxu3  ;;  %v1037_v53 = vadd.f32 %v1991_v39, %v756_v40 }
  0xa6   : > { %v718_v44 = vpop.f32.mrf.mxu1  ;;  %v1053_v52 = vadd.f32 %v1991_v39, %v796_v43 }
  0xa7   : > { %v1022_v45 = vadd.f32 %v1991_v39, %v718_v44  ;;  %v683_v46 = vpop.f32.mrf.mxu0  ;;  %v1095_v62 = vmax.f32 %v1037_v53, 0.0 }
  0xa8   : > { %v1008_v48 = vadd.f32 %v1991_v39, %v683_v46  ;;  %v1111_v60 = vmax.f32 %v1053_v52, 0.0 }
  0xa9   : > { %v1080_v50 = vmax.f32 %v1022_v45, 0.0 }
  0xaa   : > { %v1066_v51 = vmax.f32 %v1008_v48, 0.0 }
  0xab   : > { %v1566_v54 = vpack.c.bf16 %v1080_v50, %v1079_v49 }
  0xac   : > { %v758_v55 = vpop.f32.mrf.mxu2  ;;  %v1531_v56 = vpack.c.bf16 %v1066_v51, %v1065_v47 }
  0xad   : > { %1679 = vst [vmem:[%s2002_s11 + $0x38] sm:$0xff] %v1566_v54   ;;  %v1038_v57 = vadd.f32 %v1991_v39, %v758_v55  ;;  %v798_v58 = vpop.f32.mrf.mxu3 }
  0xae   : > { %v721_v59 = vpop.f32.mrf.mxu1  ;;  %1532 = vst [vmem:[%s2002_s11] sm:$0xff] %v1531_v56   ;;  %v1054_v61 = vadd.f32 %v1991_v39, %v798_v58 }
  0xaf   : > { %v1096_v63 = vmax.f32 %v1038_v57, 0.0  ;;  %v686_v0 = vpop.f32.mrf.mxu0  ;;  %v1023_v6 = vadd.f32 %v1991_v39, %v721_v59 }
  0xb0   : > { %v1112_v1 = vmax.f32 %v1054_v61, 0.0  ;;  %v1009_v5 = vadd.f32 %v1991_v39, %v686_v0 }
  0xb1   : > { %v1606_v2 = vpack.c.bf16 %v1096_v63, %v1095_v62  ;;  %v1081_v13 = vmax.f32 %v1023_v6, 0.0 }
  0xb2   : > { %v1646_v3 = vpack.c.bf16 %v1112_v1, %v1111_v60  ;;  %v1067_v11 = vmax.f32 %v1009_v5, 0.0 }
  0xb3   : > { %1687 = vst [vmem:[%s2002_s11 + $0x78] sm:$0xff] %v1606_v2  }
  0xb4   : > { %v761_v4 = vpop.f32.mrf.mxu2  ;;  %1695 = vst [vmem:[%s2002_s11 + $0xb8] sm:$0xff] %v1646_v3  }
  0xb5   : > { %v801_v7 = vpop.f32.mrf.mxu3  ;;  %v1039_v17 = vadd.f32 %v1991_v39, %v761_v4 }
  0xb6   : > { %v723_v8 = vpop.f32.mrf.mxu1  ;;  %v1055_v16 = vadd.f32 %v1991_v39, %v801_v7 }
  0xb7   : > { %v1024_v9 = vadd.f32 %v1991_v39, %v723_v8  ;;  %v688_v10 = vpop.f32.mrf.mxu0  ;;  %v1097_v26 = vmax.f32 %v1039_v17, 0.0 }
  0xb8   : > { %v1010_v12 = vadd.f32 %v1991_v39, %v688_v10  ;;  %v1113_v24 = vmax.f32 %v1055_v16, 0.0 }
  0xb9   : > { %v1082_v14 = vmax.f32 %v1024_v9, 0.0 }
  0xba   : > { %v1068_v15 = vmax.f32 %v1010_v12, 0.0 }
  0xbb   : > { %v1571_v18 = vpack.c.bf16 %v1082_v14, %v1081_v13 }
  0xbc   : > { %v763_v19 = vpop.f32.mrf.mxu2  ;;  %v1536_v20 = vpack.c.bf16 %v1068_v15, %v1067_v11 }
  0xbd   : > { %1680 = vst [vmem:[%s2002_s11 + $0x40] sm:$0xff] %v1571_v18   ;;  %v1040_v21 = vadd.f32 %v1991_v39, %v763_v19  ;;  %v803_v22 = vpop.f32.mrf.mxu3 }
  0xbe   : > { %v726_v23 = vpop.f32.mrf.mxu1  ;;  %1673 = vst [vmem:[%s2002_s11 + $0x8] sm:$0xff] %v1536_v20   ;;  %v1056_v25 = vadd.f32 %v1991_v39, %v803_v22 }
  0xbf   : > { %v1098_v27 = vmax.f32 %v1040_v21, 0.0  ;;  %v691_v28 = vpop.f32.mrf.mxu0  ;;  %v1025_v34 = vadd.f32 %v1991_v39, %v726_v23 }
  0xc0   : > { %v1114_v29 = vmax.f32 %v1056_v25, 0.0  ;;  %v1011_v33 = vadd.f32 %v1991_v39, %v691_v28 }
  0xc1   : > { %v1611_v30 = vpack.c.bf16 %v1098_v27, %v1097_v26  ;;  %v1083_v42 = vmax.f32 %v1025_v34, 0.0 }
  0xc2   : > { %v1651_v31 = vpack.c.bf16 %v1114_v29, %v1113_v24  ;;  %v1069_v40 = vmax.f32 %v1011_v33, 0.0 }
  0xc3   : > { %1688 = vst [vmem:[%s2002_s11 + $0x80] sm:$0xff] %v1611_v30  }
  0xc4   : > { %v766_v32 = vpop.f32.mrf.mxu2  ;;  %1696 = vst [vmem:[%s2002_s11 + $0xc0] sm:$0xff] %v1651_v31  }
  0xc5   : > { %v806_v35 = vpop.f32.mrf.mxu3  ;;  %v1041_v46 = vadd.f32 %v1991_v39, %v766_v32 }
  0xc6   : > { %v728_v36 = vpop.f32.mrf.mxu1  ;;  %v1057_v45 = vadd.f32 %v1991_v39, %v806_v35 }
  0xc7   : > { %v1026_v37 = vadd.f32 %v1991_v39, %v728_v36  ;;  %v693_v38 = vpop.f32.mrf.mxu0  ;;  %v1099_v55 = vmax.f32 %v1041_v46, 0.0 }
  0xc8   : > { %v1012_v41 = vadd.f32 %v1991_v39, %v693_v38  ;;  %v1115_v53 = vmax.f32 %v1057_v45, 0.0 }
  0xc9   : > { %v1084_v43 = vmax.f32 %v1026_v37, 0.0 }
  0xca   : > { %v1070_v44 = vmax.f32 %v1012_v41, 0.0 }
  0xcb   : > { %v1576_v47 = vpack.c.bf16 %v1084_v43, %v1083_v42 }
  0xcc   : > { %v768_v48 = vpop.f32.mrf.mxu2  ;;  %v1541_v49 = vpack.c.bf16 %v1070_v44, %v1069_v40 }
  0xcd   : > { %1681 = vst [vmem:[%s2002_s11 + $0x48] sm:$0xff] %v1576_v47   ;;  %v1042_v50 = vadd.f32 %v1991_v39, %v768_v48  ;;  %v808_v51 = vpop.f32.mrf.mxu3 }
  0xce   : > { %v731_v52 = vpop.f32.mrf.mxu1  ;;  %1674 = vst [vmem:[%s2002_s11 + $0x10] sm:$0xff] %v1541_v49   ;;  %v1058_v54 = vadd.f32 %v1991_v39, %v808_v51 }
  0xcf   : > { %v1100_v56 = vmax.f32 %v1042_v50, 0.0  ;;  %v696_v57 = vpop.f32.mrf.mxu0  ;;  %v1027_v63 = vadd.f32 %v1991_v39, %v731_v52 }
  0xd0   : > { %v1116_v58 = vmax.f32 %v1058_v54, 0.0  ;;  %v1013_v62 = vadd.f32 %v1991_v39, %v696_v57 }
  0xd1   : > { %v1616_v59 = vpack.c.bf16 %v1100_v56, %v1099_v55  ;;  %v1085_v6 = vmax.f32 %v1027_v63, 0.0 }
  0xd2   : > { %v1656_v60 = vpack.c.bf16 %v1116_v58, %v1115_v53  ;;  %v1071_v4 = vmax.f32 %v1013_v62, 0.0 }
  0xd3   : > { %1689 = vst [vmem:[%s2002_s11 + $0x88] sm:$0xff] %v1616_v59  }
  0xd4   : > { %v771_v61 = vpop.f32.mrf.mxu2  ;;  %1697 = vst [vmem:[%s2002_s11 + $0xc8] sm:$0xff] %v1656_v60  }
  0xd5   : > { %v811_v0 = vpop.f32.mrf.mxu3  ;;  %v1043_v10 = vadd.f32 %v1991_v39, %v771_v61 }
  0xd6   : > { %v733_v1 = vpop.f32.mrf.mxu1  ;;  %v1059_v9 = vadd.f32 %v1991_v39, %v811_v0 }
  0xd7   : > { %v1028_v2 = vadd.f32 %v1991_v39, %v733_v1  ;;  %v698_v3 = vpop.f32.mrf.mxu0  ;;  %v1101_v19 = vmax.f32 %v1043_v10, 0.0 }
  0xd8   : > { %v1014_v5 = vadd.f32 %v1991_v39, %v698_v3  ;;  %v1117_v17 = vmax.f32 %v1059_v9, 0.0 }
  0xd9   : > { %v1086_v7 = vmax.f32 %v1028_v2, 0.0 }
  0xda   : > { %v1072_v8 = vmax.f32 %v1014_v5, 0.0 }
  0xdb   : > { %v1581_v11 = vpack.c.bf16 %v1086_v7, %v1085_v6 }
  0xdc   : > { %v773_v12 = vpop.f32.mrf.mxu2  ;;  %v1546_v13 = vpack.c.bf16 %v1072_v8, %v1071_v4 }
  0xdd   : > { %1682 = vst [vmem:[%s2002_s11 + $0x50] sm:$0xff] %v1581_v11   ;;  %v1044_v14 = vadd.f32 %v1991_v39, %v773_v12  ;;  %v813_v15 = vpop.f32.mrf.mxu3 }
  0xde   : > { %v736_v16 = vpop.f32.mrf.mxu1  ;;  %1675 = vst [vmem:[%s2002_s11 + $0x18] sm:$0xff] %v1546_v13   ;;  %v1060_v18 = vadd.f32 %v1991_v39, %v813_v15 }
  0xdf   : > { %v1102_v20 = vmax.f32 %v1044_v14, 0.0  ;;  %v701_v21 = vpop.f32.mrf.mxu0  ;;  %v1029_v27 = vadd.f32 %v1991_v39, %v736_v16 }
  0xe0   : > { %v1118_v22 = vmax.f32 %v1060_v18, 0.0  ;;  %v1015_v26 = vadd.f32 %v1991_v39, %v701_v21 }
  0xe1   : > { %v1621_v23 = vpack.c.bf16 %v1102_v20, %v1101_v19  ;;  %v1087_v34 = vmax.f32 %v1029_v27, 0.0 }
  0xe2   : > { %v1661_v24 = vpack.c.bf16 %v1118_v22, %v1117_v17  ;;  %v1073_v32 = vmax.f32 %v1015_v26, 0.0 }
  0xe3   : > { %1690 = vst [vmem:[%s2002_s11 + $0x90] sm:$0xff] %v1621_v23  }
  0xe4   : > { %v776_v25 = vpop.f32.mrf.mxu2  ;;  %1698 = vst [vmem:[%s2002_s11 + $0xd0] sm:$0xff] %v1661_v24  }
  0xe5   : > { %v816_v28 = vpop.f32.mrf.mxu3  ;;  %v1045_v38 = vadd.f32 %v1991_v39, %v776_v25 }
  0xe6   : > { %v738_v29 = vpop.f32.mrf.mxu1  ;;  %v1061_v37 = vadd.f32 %v1991_v39, %v816_v28 }
  0xe7   : > { %v1030_v30 = vadd.f32 %v1991_v39, %v738_v29  ;;  %v703_v31 = vpop.f32.mrf.mxu0  ;;  %v1103_v48 = vmax.f32 %v1045_v38, 0.0 }
  0xe8   : > { %v1016_v33 = vadd.f32 %v1991_v39, %v703_v31  ;;  %v1119_v46 = vmax.f32 %v1061_v37, 0.0 }
  0xe9   : > { %v1088_v35 = vmax.f32 %v1030_v30, 0.0 }
  0xea   : > { %v1074_v36 = vmax.f32 %v1016_v33, 0.0 }
  0xeb   : > { %v1586_v40 = vpack.c.bf16 %v1088_v35, %v1087_v34 }
  0xec   : > { %v778_v41 = vpop.f32.mrf.mxu2  ;;  %v1551_v42 = vpack.c.bf16 %v1074_v36, %v1073_v32 }
  0xed   : > { %1683 = vst [vmem:[%s2002_s11 + $0x58] sm:$0xff] %v1586_v40   ;;  %v1046_v43 = vadd.f32 %v1991_v39, %v778_v41  ;;  %v818_v44 = vpop.f32.mrf.mxu3 }
  0xee   : > { %v741_v45 = vpop.f32.mrf.mxu1  ;;  %1676 = vst [vmem:[%s2002_s11 + $0x20] sm:$0xff] %v1551_v42   ;;  %v1062_v47 = vadd.f32 %v1991_v39, %v818_v44 }
  0xef   : > { %v1104_v49 = vmax.f32 %v1046_v43, 0.0  ;;  %v706_v50 = vpop.f32.mrf.mxu0  ;;  %v1031_v56 = vadd.f32 %v1991_v39, %v741_v45 }
  0xf0   : > { %v1120_v51 = vmax.f32 %v1062_v47, 0.0  ;;  %v1017_v55 = vadd.f32 %v1991_v39, %v706_v50 }
  0xf1   : > { %v1626_v52 = vpack.c.bf16 %v1104_v49, %v1103_v48  ;;  %v1089_v63 = vmax.f32 %v1031_v56, 0.0 }
  0xf2   : > { %v1666_v53 = vpack.c.bf16 %v1120_v51, %v1119_v46  ;;  %v1075_v61 = vmax.f32 %v1017_v55, 0.0 }
  0xf3   : > { %1691 = vst [vmem:[%s2002_s11 + $0x98] sm:$0xff] %v1626_v52  }
  0xf4   : > { %v781_v54 = vpop.f32.mrf.mxu2  ;;  %1699 = vst [vmem:[%s2002_s11 + $0xd8] sm:$0xff] %v1666_v53  }
  0xf5   : > { %v821_v57 = vpop.f32.mrf.mxu3  ;;  %v1047_v3 = vadd.f32 %v1991_v39, %v781_v54 }
  0xf6   : > { %v743_v58 = vpop.f32.mrf.mxu1  ;;  %v1063_v2 = vadd.f32 %v1991_v39, %v821_v57 }
  0xf7   : > { %v1032_v59 = vadd.f32 %v1991_v39, %v743_v58  ;;  %v708_v60 = vpop.f32.mrf.mxu0  ;;  %v1105_v12 = vmax.f32 %v1047_v3, 0.0 }
  0xf8   : > { %v1018_v62 = vadd.f32 %v1991_v39, %v708_v60  ;;  %v1121_v10 = vmax.f32 %v1063_v2, 0.0 }
  0xf9   : > { %v1090_v0 = vmax.f32 %v1032_v59, 0.0 }
  0xfa   : > { %v1076_v1 = vmax.f32 %v1018_v62, 0.0 }
  0xfb   : > { %v1591_v4 = vpack.c.bf16 %v1090_v0, %v1089_v63 }
  0xfc   : > { %v783_v5 = vpop.f32.mrf.mxu2  ;;  %v1556_v6 = vpack.c.bf16 %v1076_v1, %v1075_v61 }
  0xfd   : > { %1684 = vst [vmem:[%s2002_s11 + $0x60] sm:$0xff] %v1591_v4   ;;  %v1048_v7 = vadd.f32 %v1991_v39, %v783_v5  ;;  %v823_v8 = vpop.f32.mrf.mxu3 }
  0xfe   : > { %v746_v9 = vpop.f32.mrf.mxu1  ;;  %1677 = vst [vmem:[%s2002_s11 + $0x28] sm:$0xff] %v1556_v6   ;;  %v1064_v11 = vadd.f32 %v1991_v39, %v823_v8 }
  0xff   : > { %v1106_v13 = vmax.f32 %v1048_v7, 0.0  ;;  %v711_v14 = vpop.f32.mrf.mxu0  ;;  %v1033_v20 = vadd.f32 %v1991_v39, %v746_v9 }
 0x100   : > { %v1122_v15 = vmax.f32 %v1064_v11, 0.0  ;;  %v1019_v19 = vadd.f32 %v1991_v39, %v711_v14 }
 0x101   : > { %v1631_v16 = vpack.c.bf16 %v1106_v13, %v1105_v12  ;;  %v1091_v26 = vmax.f32 %v1033_v20, 0.0 }
 0x102   : > { %v1671_v17 = vpack.c.bf16 %v1122_v15, %v1121_v10  ;;  %v1077_v24 = vmax.f32 %v1019_v19, 0.0 }
 0x103   : > { %1692 = vst [vmem:[%s2002_s11 + $0xa0] sm:$0xff] %v1631_v16  }
 0x104   : > { %v786_v18 = vpop.f32.mrf.mxu2  ;;  %1700 = vst [vmem:[%s2002_s11 + $0xe0] sm:$0xff] %v1671_v17  }
 0x105   : > { %v1049_v29 = vadd.f32 %v1991_v39, %v786_v18 }
 0x106   : > { %v748_v21 = vpop.f32.mrf.mxu1 }
 0x107   : > { %v1034_v22 = vadd.f32 %v1991_v39, %v748_v21  ;;  %v713_v23 = vpop.f32.mrf.mxu0  ;;  %v1107_v35 = vmax.f32 %v1049_v29, 0.0 }
 0x108   : > { %v1020_v25 = vadd.f32 %v1991_v39, %v713_v23 }
 0x109   : > { %v1092_v27 = vmax.f32 %v1034_v22, 0.0 }
 0x10a   : > { %v1078_v28 = vmax.f32 %v1020_v25, 0.0 }
 0x10b   : > { %v1596_v30 = vpack.c.bf16 %v1092_v27, %v1091_v26 }
 0x10c   : > { %v788_v31 = vpop.f32.mrf.mxu2  ;;  %v1561_v32 = vpack.c.bf16 %v1078_v28, %v1077_v24 }
 0x10d   : > { %1685 = vst [vmem:[%s2002_s11 + $0x68] sm:$0xff] %v1596_v30   ;;  %v1050_v33 = vadd.f32 %v1991_v39, %v788_v31 }
 0x10e   : > { %v751_v34 = vpop.f32.mrf.mxu1  ;;  %1678 = vst [vmem:[%s2002_s11 + $0x30] sm:$0xff] %v1561_v32  }
 0x10f   : > { %v1108_v36 = vmax.f32 %v1050_v33, 0.0  ;;  %v1035_v40 = vadd.f32 %v1991_v39, %v751_v34 }
 0x111   : > { %v1636_v37 = vpack.c.bf16 %v1108_v36, %v1107_v35  ;;  %v1093_v43 = vmax.f32 %v1035_v40, 0.0 }
 0x113   : > { %1693 = vst [vmem:[%s2002_s11 + $0xa8] sm:$0xff] %v1636_v37  }
 0x114   : > { %v791_v38 = vpop.f32.mrf.mxu2 }
 0x115   : > { %v1051_v45 = vadd.f32 %v1991_v39, %v791_v38 }
 0x116   : > { %v753_v41 = vpop.f32.mrf.mxu1 }
 0x117   : > { %v1036_v42 = vadd.f32 %v1991_v39, %v753_v41  ;;  %v1109_v49 = vmax.f32 %v1051_v45, 0.0 }
 0x119   : > { %v1094_v44 = vmax.f32 %v1036_v42, 0.0 }
 0x11b   : > { %v1601_v46 = vpack.c.bf16 %v1094_v44, %v1093_v43 }
 0x11c   : > { %v793_v47 = vpop.f32.mrf.mxu2 }
 0x11d   : > { %1686 = vst [vmem:[%s2002_s11 + $0x70] sm:$0xff] %v1601_v46   ;;  %v1052_v48 = vadd.f32 %v1991_v39, %v793_v47 }
 0x11f   : > { %v1110_v50 = vmax.f32 %v1052_v48, 0.0 }
 0x121   : > { %v1641_v51 = vpack.c.bf16 %v1110_v50, %v1109_v49 }
 0x123   : > { %1694 = vst [vmem:[%s2002_s11 + $0xb0] sm:$0xff] %v1641_v51  }
 0x124 PF: > { %s15_s14 = sadd.s32 1, %s1846_s14   ;;  %s2102_s12 = smov %s1842_s13 }
 0x125   : > { %p12_p8 = scmp.ge.s32.totalorder %s15_s14, 6   ;;  %s2103_s13 = smov %s2105_s16 }
 0x127   :  { %14 = sbr.rel (!%p12_p8) target bundleno = 3 (0x3), region = 80 }
 0x12c   :  { %1261 = vsyncpa [#allocation4], 1 }
 0x12d   :  { %1263 = vsyncpa [#allocation4 + $0x1], 1 }
 0x12e   :  { %1264 = vsyncpa [#allocation6], 1 }

// kernel: net3_forward.11
= control target key start
LH: loop header
LB: loop body
LE: loop exit
PB: predicated region body
PF: predicated region fallthrough
CT: control target
= control target key end

     0   :  { %s810_s6 = smov 0   ;;  %s918_s0 = inlined_call_operand.vmem [shape: bf16[56,14,256], index: 0, kind: input, shape index: {}]   ;;  %s919_s1 = inlined_call_operand.vmem [shape: bf16[28,14,128], index: 1, kind: output, shape index: {}]  }
   0x1 LB: > { %s771_s7 = sadd.s32 4294967295, %s798_s6   ;;  %p775_p0 = scmp.ge.s32.totalorder %s798_s6, 1  ;;  %s798_s6 = sphi %s810_s6, %s11_s6  }
   0x2   : > { %p89_p1 = scmp.lt.s32.totalorder %s798_s6, 3 }
   0x4   : > { %p90_p2 = pnand %p775_p0, %p89_p1 }
   0x5   : > { %s111_s8 = smul.u32 (!%p90_p2), 28, %s771_s7 }
   0x6   : > { %93 = sbr.rel (%p90_p2) target bundleno = 92 (0x5c), region = 24 }
   0x7   : > { %s118_s9 = smul.u32 (!%p90_p2), 14, %s771_s7  ;;  %p112_p3 = scmp.lt.s32.totalorder (!%p90_p2), %s111_s8, 55 }
   0x9   : > { %p119_p4 = scmp.lt.s32.totalorder (!%p90_p2), %s118_s9, 27 }
   0xb   : > { %s921_s8 = smov (!%p112_p3, %s111_s8), 55  ;;  %s923_s9 = smov (!%p119_p4, %s118_s9), 27 }
   0xc   : > { %s782_s10 = sshll.u32 %s921_s8, 4  ;;  %s783_s14 = sshll.u32 %s923_s9, 3 }
   0xd   : > { %s821_s13 = scalar_lea.vmem %s918_s0, %s782_s10  ;;  %s839_s17 = scalar_lea.vmem %s919_s1, %s783_s14 }
   0xe   : > { %v125_v0 = vld [vmem:[%s821_s13] sm:$0xff]  ;;  %v127_v1 = vld [vmem:[%s821_s13 + $0x10] sm:$0xff]  ;;  %v126_v2 = vld [vmem:[%s821_s13 + $0x8] sm:$0x77] }
   0xf   : > { %v181_v3 = vunpack.c.l.bf16 %v125_v0  ;;  %v183_v4 = vunpack.c.l.bf16 %v127_v1  ;;  %v293_v5 = vrot.slane %v125_v0, 4  ;;  %v295_v6 = vrot.slane %v127_v1, 4  ;;  %v128_v7 = vld [vmem:[%s821_s13 + $0x18] sm:$0x77]  ;;  %v129_v8 = vld [vmem:[%s821_s13 + $0x20] sm:$0xff]  ;;  %v131_v9 = vld [vmem:[%s821_s13 + $0x30] sm:$0xff] }
  0x10   : > { %v182_v10 = vunpack.c.l.bf16 %v126_v2  ;;  %v184_v11 = vunpack.c.l.bf16 %v128_v7  ;;  %v294_v12 = vrot.slane %v126_v2, 4  ;;  %v296_v13 = vrot.slane %v128_v7, 4  ;;  %v130_v22 = vld [vmem:[%s821_s13 + $0x28] sm:$0x77]  ;;  %v132_v23 = vld [vmem:[%s821_s13 + $0x38] sm:$0x77] }
  0x11   : > { %v405_v14 = vunpack.c.l.bf16 %v293_v5  ;;  %v407_v15 = vunpack.c.l.bf16 %v295_v6  ;;  %v185_v16 = vunpack.c.l.bf16 %v129_v8  ;;  %v187_v17 = vunpack.c.l.bf16 %v131_v9  ;;  %v133_v32 = vld [vmem:[%s821_s13 + $0x40] sm:$0xff]  ;;  %v135_v36 = vld [vmem:[%s821_s13 + $0x50] sm:$0xff]  ;;  %v134_v46 = vld [vmem:[%s821_s13 + $0x48] sm:$0x77] }
  0x12   : > { %v406_v18 = vunpack.c.l.bf16 %v294_v12  ;;  %v408_v19 = vunpack.c.l.bf16 %v296_v13  ;;  %v297_v20 = vrot.slane %v129_v8, 4  ;;  %v299_v21 = vrot.slane %v131_v9, 4  ;;  %v136_v47 = vld [vmem:[%s821_s13 + $0x58] sm:$0x77]  ;;  %v137_v56 = vld [vmem:[%s821_s13 + $0x60] sm:$0xff]  ;;  %v139_v61 = vld [vmem:[%s821_s13 + $0x70] sm:$0xff] }
  0x13   : > { %v461_v24 = vmax.f32 %v181_v3, %v405_v14  ;;  %v463_v25 = vmax.f32 %v183_v4, %v407_v15  ;;  %v186_v26 = vunpack.c.l.bf16 %v130_v22  ;;  %v188_v27 = vunpack.c.l.bf16 %v132_v23  ;;  %v138_v1 = vld [vmem:[%s821_s13 + $0x68] sm:$0x77]  ;;  %v140_v6 = vld [vmem:[%s821_s13 + $0x78] sm:$0x77]  ;;  %v141_v15 = vld [vmem:[%s821_s13 + $0x80] sm:$0xff] }
  0x14   : > { %v462_v28 = vmax.f32 %v182_v10, %v406_v18  ;;  %v464_v29 = vmax.f32 %v184_v11, %v408_v19  ;;  %v409_v30 = vunpack.c.l.bf16 %v297_v20  ;;  %v411_v31 = vunpack.c.l.bf16 %v299_v21  ;;  %v143_v20 = vld [vmem:[%s821_s13 + $0x90] sm:$0xff] }
  0x15   : > { %v629_v33 = vmax.f32 %v461_v24, %v463_v25  ;;  %v298_v34 = vrot.slane %v130_v22, 4  ;;  %v300_v35 = vrot.slane %v132_v23, 4  ;;  %v189_v37 = vunpack.c.l.bf16 %v133_v32 }
  0x16   : > { %v630_v38 = vmax.f32 %v462_v28, %v464_v29  ;;  %v465_v39 = vmax.f32 %v185_v16, %v409_v30  ;;  %v467_v40 = vmax.f32 %v187_v17, %v411_v31  ;;  %v191_v41 = vunpack.c.l.bf16 %v135_v36  ;;  %v142_v29 = vld [vmem:[%s821_s13 + $0x88] sm:$0x77]  ;;  %v144_v30 = vld [vmem:[%s821_s13 + $0x98] sm:$0x77] }
  0x17   : > { %v657_v42 = vpack.c.bf16 %v629_v33, %v629_v33  ;;  %v410_v43 = vunpack.c.l.bf16 %v298_v34  ;;  %v412_v44 = vunpack.c.l.bf16 %v300_v35  ;;  %v301_v45 = vrot.slane %v133_v32, 4 }
  0x18   : > { %v658_v48 = vpack.c.bf16 %v630_v38, %v630_v38  ;;  %v631_v49 = vmax.f32 %v465_v39, %v467_v40  ;;  %v303_v50 = vrot.slane %v135_v36, 4  ;;  %v190_v51 = vunpack.c.l.bf16 %v134_v46  ;;  %v145_v39 = vld [vmem:[%s821_s13 + $0xa0] sm:$0xff] }
  0x19   : > { %685 = vst [vmem:[%s839_s17] sm:$0xf] %v657_v42  ;;  %v466_v52 = vmax.f32 %v186_v26, %v410_v43  ;;  %v468_v53 = vmax.f32 %v188_v27, %v412_v44  ;;  %v413_v54 = vunpack.c.l.bf16 %v301_v45  ;;  %v192_v55 = vunpack.c.l.bf16 %v136_v47  ;;  %v147_v44 = vld [vmem:[%s821_s13 + $0xb0] sm:$0xff] }
  0x1a   : > { %686 = vst [vmem:[%s839_s17 + $0x4] sm:$0x7] %v658_v48  ;;  %v659_v57 = vpack.c.bf16 %v631_v49, %v631_v49  ;;  %v415_v58 = vunpack.c.l.bf16 %v303_v50  ;;  %v302_v59 = vrot.slane %v134_v46, 4  ;;  %v304_v60 = vrot.slane %v136_v47, 4 }
  0x1b   : > { %v632_v62 = vmax.f32 %v466_v52, %v468_v53  ;;  %v469_v63 = vmax.f32 %v189_v37, %v413_v54  ;;  %v193_v0 = vunpack.c.l.bf16 %v137_v56  ;;  %v305_v5 = vrot.slane %v137_v56, 4  ;;  %v146_v53 = vld [vmem:[%s821_s13 + $0xa8] sm:$0x77]  ;;  %v148_v54 = vld [vmem:[%s821_s13 + $0xb8] sm:$0x77] }
  0x1c   : > { %687 = vst [vmem:[%s839_s17 + $0x8] sm:$0xf] %v659_v57  ;;  %v471_v2 = vmax.f32 %v191_v41, %v415_v58  ;;  %v414_v3 = vunpack.c.l.bf16 %v302_v59  ;;  %v416_v4 = vunpack.c.l.bf16 %v304_v60  ;;  %v195_v8 = vunpack.c.l.bf16 %v139_v61 }
  0x1d   : > { %v660_v7 = vpack.c.bf16 %v632_v62, %v632_v62  ;;  %v307_v9 = vrot.slane %v139_v61, 4  ;;  %v194_v10 = vunpack.c.l.bf16 %v138_v1  ;;  %v417_v14 = vunpack.c.l.bf16 %v305_v5 }
  0x1e   : > { %v633_v11 = vmax.f32 %v469_v63, %v471_v2  ;;  %v470_v12 = vmax.f32 %v190_v51, %v414_v3  ;;  %v472_v13 = vmax.f32 %v192_v55, %v416_v4  ;;  %v196_v17 = vunpack.c.l.bf16 %v140_v6  ;;  %v149_v63 = vld [vmem:[%s821_s13 + $0xc0] sm:$0xff]  ;;  %v151_v4 = vld [vmem:[%s821_s13 + $0xd0] sm:$0xff] }
  0x1f   : > { %688 = vst [vmem:[%s839_s17 + $0xc] sm:$0x7] %v660_v7  ;;  %v419_v16 = vunpack.c.l.bf16 %v307_v9  ;;  %v306_v18 = vrot.slane %v138_v1, 4  ;;  %v308_v19 = vrot.slane %v140_v6, 4  ;;  %v473_v23 = vmax.f32 %v193_v0, %v417_v14  ;;  %v152_v14 = vld [vmem:[%s821_s13 + $0xd8] sm:$0x77] }
  0x20   : > { %v661_v21 = vpack.c.bf16 %v633_v11, %v633_v11  ;;  %v634_v22 = vmax.f32 %v470_v12, %v472_v13  ;;  %v197_v24 = vunpack.c.l.bf16 %v141_v15  ;;  %v309_v28 = vrot.slane %v141_v15, 4  ;;  %v150_v13 = vld [vmem:[%s821_s13 + $0xc8] sm:$0x77] }
  0x21   : > { %v475_v25 = vmax.f32 %v195_v8, %v419_v16  ;;  %v418_v26 = vunpack.c.l.bf16 %v306_v18  ;;  %v420_v27 = vunpack.c.l.bf16 %v308_v19  ;;  %v199_v32 = vunpack.c.l.bf16 %v143_v20 }
  0x22   : > { %689 = vst [vmem:[%s839_s17 + $0x10] sm:$0xf] %v661_v21  ;;  %v662_v31 = vpack.c.bf16 %v634_v22, %v634_v22  ;;  %v311_v33 = vrot.slane %v143_v20, 4  ;;  %v198_v34 = vunpack.c.l.bf16 %v142_v29  ;;  %v421_v38 = vunpack.c.l.bf16 %v309_v28  ;;  %v155_v28 = vld [vmem:[%s821_s13 + $0xf0] sm:$0xff] }
  0x23   : > { %v635_v35 = vmax.f32 %v473_v23, %v475_v25  ;;  %v474_v36 = vmax.f32 %v194_v10, %v418_v26  ;;  %v476_v37 = vmax.f32 %v196_v17, %v420_v27  ;;  %v200_v41 = vunpack.c.l.bf16 %v144_v30  ;;  %v153_v23 = vld [vmem:[%s821_s13 + $0xe0] sm:$0xff] }
  0x24   : > { %690 = vst [vmem:[%s839_s17 + $0x14] sm:$0x7] %v662_v31  ;;  %v423_v40 = vunpack.c.l.bf16 %v311_v33  ;;  %v310_v42 = vrot.slane %v142_v29, 4  ;;  %v312_v43 = vrot.slane %v144_v30, 4  ;;  %v477_v47 = vmax.f32 %v197_v24, %v421_v38  ;;  %v156_v38 = vld [vmem:[%s821_s13 + $0xf8] sm:$0x77] }
  0x25   : > { %v663_v45 = vpack.c.bf16 %v635_v35, %v635_v35  ;;  %v636_v46 = vmax.f32 %v474_v36, %v476_v37  ;;  %v201_v48 = vunpack.c.l.bf16 %v145_v39  ;;  %v313_v52 = vrot.slane %v145_v39, 4  ;;  %v154_v37 = vld [vmem:[%s821_s13 + $0xe8] sm:$0x77] }
  0x26   : > { %v479_v49 = vmax.f32 %v199_v32, %v423_v40  ;;  %v422_v50 = vunpack.c.l.bf16 %v310_v42  ;;  %v424_v51 = vunpack.c.l.bf16 %v312_v43  ;;  %v203_v56 = vunpack.c.l.bf16 %v147_v44 }
  0x27   : > { %691 = vst [vmem:[%s839_s17 + $0x18] sm:$0xf] %v663_v45  ;;  %v664_v55 = vpack.c.bf16 %v636_v46, %v636_v46  ;;  %v315_v57 = vrot.slane %v147_v44, 4  ;;  %v202_v58 = vunpack.c.l.bf16 %v146_v53  ;;  %v425_v62 = vunpack.c.l.bf16 %v313_v52  ;;  %v159_v52 = vld [vmem:[%s821_s13 + $0x110] sm:$0xff] }
  0x28   : > { %v637_v59 = vmax.f32 %v477_v47, %v479_v49  ;;  %v478_v60 = vmax.f32 %v198_v34, %v422_v50  ;;  %v480_v61 = vmax.f32 %v200_v41, %v424_v51  ;;  %v204_v1 = vunpack.c.l.bf16 %v148_v54  ;;  %v157_v47 = vld [vmem:[%s821_s13 + $0x100] sm:$0xff] }
  0x29   : > { %692 = vst [vmem:[%s839_s17 + $0x1c] sm:$0x7] %v664_v55  ;;  %v427_v0 = vunpack.c.l.bf16 %v315_v57  ;;  %v314_v2 = vrot.slane %v146_v53, 4  ;;  %v316_v3 = vrot.slane %v148_v54, 4  ;;  %v481_v7 = vmax.f32 %v201_v48, %v425_v62  ;;  %v160_v62 = vld [vmem:[%s821_s13 + $0x118] sm:$0x77] }
  0x2a   : > { %v665_v5 = vpack.c.bf16 %v637_v59, %v637_v59  ;;  %v638_v6 = vmax.f32 %v478_v60, %v480_v61  ;;  %v205_v8 = vunpack.c.l.bf16 %v149_v63  ;;  %v317_v12 = vrot.slane %v149_v63, 4  ;;  %v158_v61 = vld [vmem:[%s821_s13 + $0x108] sm:$0x77] }
  0x2b   : > { %v483_v9 = vmax.f32 %v203_v56, %v427_v0  ;;  %v426_v10 = vunpack.c.l.bf16 %v314_v2  ;;  %v428_v11 = vunpack.c.l.bf16 %v316_v3  ;;  %v207_v16 = vunpack.c.l.bf16 %v151_v4 }
  0x2c   : > { %693 = vst [vmem:[%s839_s17 + $0x20] sm:$0xf] %v665_v5  ;;  %v666_v15 = vpack.c.bf16 %v638_v6, %v638_v6  ;;  %v319_v17 = vrot.slane %v151_v4, 4  ;;  %v206_v18 = vunpack.c.l.bf16 %v150_v13  ;;  %v429_v22 = vunpack.c.l.bf16 %v317_v12  ;;  %v163_v12 = vld [vmem:[%s821_s13 + $0x130] sm:$0xff] }
  0x2d   : > { %v639_v19 = vmax.f32 %v481_v7, %v483_v9  ;;  %v482_v20 = vmax.f32 %v202_v58, %v426_v10  ;;  %v484_v21 = vmax.f32 %v204_v1, %v428_v11  ;;  %v208_v25 = vunpack.c.l.bf16 %v152_v14  ;;  %v161_v7 = vld [vmem:[%s821_s13 + $0x120] sm:$0xff] }
  0x2e   : > { %694 = vst [vmem:[%s839_s17 + $0x24] sm:$0x7] %v666_v15  ;;  %v431_v24 = vunpack.c.l.bf16 %v319_v17  ;;  %v318_v26 = vrot.slane %v150_v13, 4  ;;  %v320_v27 = vrot.slane %v152_v14, 4  ;;  %v485_v31 = vmax.f32 %v205_v8, %v429_v22  ;;  %v164_v22 = vld [vmem:[%s821_s13 + $0x138] sm:$0x77] }
  0x2f   : > { %v667_v29 = vpack.c.bf16 %v639_v19, %v639_v19  ;;  %v640_v30 = vmax.f32 %v482_v20, %v484_v21  ;;  %v209_v32 = vunpack.c.l.bf16 %v153_v23  ;;  %v321_v36 = vrot.slane %v153_v23, 4  ;;  %v162_v21 = vld [vmem:[%s821_s13 + $0x128] sm:$0x77] }
  0x30   : > { %v487_v33 = vmax.f32 %v207_v16, %v431_v24  ;;  %v430_v34 = vunpack.c.l.bf16 %v318_v26  ;;  %v432_v35 = vunpack.c.l.bf16 %v320_v27  ;;  %v211_v40 = vunpack.c.l.bf16 %v155_v28 }
  0x31   : > { %695 = vst [vmem:[%s839_s17 + $0x28] sm:$0xf] %v667_v29  ;;  %v668_v39 = vpack.c.bf16 %v640_v30, %v640_v30  ;;  %v323_v41 = vrot.slane %v155_v28, 4  ;;  %v210_v42 = vunpack.c.l.bf16 %v154_v37  ;;  %v433_v46 = vunpack.c.l.bf16 %v321_v36  ;;  %v167_v36 = vld [vmem:[%s821_s13 + $0x150] sm:$0xff] }
  0x32   : > { %v641_v43 = vmax.f32 %v485_v31, %v487_v33  ;;  %v486_v44 = vmax.f32 %v206_v18, %v430_v34  ;;  %v488_v45 = vmax.f32 %v208_v25, %v432_v35  ;;  %v212_v49 = vunpack.c.l.bf16 %v156_v38  ;;  %v165_v31 = vld [vmem:[%s821_s13 + $0x140] sm:$0xff] }
  0x33   : > { %696 = vst [vmem:[%s839_s17 + $0x2c] sm:$0x7] %v668_v39  ;;  %v435_v48 = vunpack.c.l.bf16 %v323_v41  ;;  %v322_v50 = vrot.slane %v154_v37, 4  ;;  %v324_v51 = vrot.slane %v156_v38, 4  ;;  %v489_v55 = vmax.f32 %v209_v32, %v433_v46  ;;  %v168_v46 = vld [vmem:[%s821_s13 + $0x158] sm:$0x77] }
  0x34   : > { %v669_v53 = vpack.c.bf16 %v641_v43, %v641_v43  ;;  %v642_v54 = vmax.f32 %v486_v44, %v488_v45  ;;  %v213_v56 = vunpack.c.l.bf16 %v157_v47  ;;  %v325_v60 = vrot.slane %v157_v47, 4  ;;  %v166_v45 = vld [vmem:[%s821_s13 + $0x148] sm:$0x77] }
  0x35   : > { %v491_v57 = vmax.f32 %v211_v40, %v435_v48  ;;  %v434_v58 = vunpack.c.l.bf16 %v322_v50  ;;  %v436_v59 = vunpack.c.l.bf16 %v324_v51  ;;  %v215_v0 = vunpack.c.l.bf16 %v159_v52 }
  0x36   : > { %697 = vst [vmem:[%s839_s17 + $0x30] sm:$0xf] %v669_v53  ;;  %v670_v63 = vpack.c.bf16 %v642_v54, %v642_v54  ;;  %v327_v1 = vrot.slane %v159_v52, 4  ;;  %v214_v2 = vunpack.c.l.bf16 %v158_v61  ;;  %v437_v6 = vunpack.c.l.bf16 %v325_v60  ;;  %v171_v60 = vld [vmem:[%s821_s13 + $0x170] sm:$0xff] }
  0x37   : > { %v643_v3 = vmax.f32 %v489_v55, %v491_v57  ;;  %v490_v4 = vmax.f32 %v210_v42, %v434_v58  ;;  %v492_v5 = vmax.f32 %v212_v49, %v436_v59  ;;  %v216_v9 = vunpack.c.l.bf16 %v160_v62  ;;  %v169_v55 = vld [vmem:[%s821_s13 + $0x160] sm:$0xff] }
  0x38   : > { %698 = vst [vmem:[%s839_s17 + $0x34] sm:$0x7] %v670_v63  ;;  %v439_v8 = vunpack.c.l.bf16 %v327_v1  ;;  %v326_v10 = vrot.slane %v158_v61, 4  ;;  %v328_v11 = vrot.slane %v160_v62, 4  ;;  %v493_v15 = vmax.f32 %v213_v56, %v437_v6  ;;  %v172_v6 = vld [vmem:[%s821_s13 + $0x178] sm:$0x77] }
  0x39   : > { %v671_v13 = vpack.c.bf16 %v643_v3, %v643_v3  ;;  %v644_v14 = vmax.f32 %v490_v4, %v492_v5  ;;  %v217_v16 = vunpack.c.l.bf16 %v161_v7  ;;  %v329_v20 = vrot.slane %v161_v7, 4  ;;  %v170_v5 = vld [vmem:[%s821_s13 + $0x168] sm:$0x77] }
  0x3a   : > { %v495_v17 = vmax.f32 %v215_v0, %v439_v8  ;;  %v438_v18 = vunpack.c.l.bf16 %v326_v10  ;;  %v440_v19 = vunpack.c.l.bf16 %v328_v11  ;;  %v219_v24 = vunpack.c.l.bf16 %v163_v12 }
  0x3b   : > { %699 = vst [vmem:[%s839_s17 + $0x38] sm:$0xf] %v671_v13  ;;  %v672_v23 = vpack.c.bf16 %v644_v14, %v644_v14  ;;  %v331_v25 = vrot.slane %v163_v12, 4  ;;  %v218_v26 = vunpack.c.l.bf16 %v162_v21  ;;  %v441_v30 = vunpack.c.l.bf16 %v329_v20  ;;  %v175_v20 = vld [vmem:[%s821_s13 + $0x190] sm:$0xff] }
  0x3c   : > { %v645_v27 = vmax.f32 %v493_v15, %v495_v17  ;;  %v494_v28 = vmax.f32 %v214_v2, %v438_v18  ;;  %v496_v29 = vmax.f32 %v216_v9, %v440_v19  ;;  %v220_v33 = vunpack.c.l.bf16 %v164_v22  ;;  %v173_v15 = vld [vmem:[%s821_s13 + $0x180] sm:$0xff] }
  0x3d   : > { %700 = vst [vmem:[%s839_s17 + $0x3c] sm:$0x7] %v672_v23  ;;  %v443_v32 = vunpack.c.l.bf16 %v331_v25  ;;  %v330_v34 = vrot.slane %v162_v21, 4  ;;  %v332_v35 = vrot.slane %v164_v22, 4  ;;  %v497_v39 = vmax.f32 %v217_v16, %v441_v30  ;;  %v176_v30 = vld [vmem:[%s821_s13 + $0x198] sm:$0x77] }
  0x3e   : > { %v673_v37 = vpack.c.bf16 %v645_v27, %v645_v27  ;;  %v646_v38 = vmax.f32 %v494_v28, %v496_v29  ;;  %v221_v40 = vunpack.c.l.bf16 %v165_v31  ;;  %v333_v44 = vrot.slane %v165_v31, 4  ;;  %v174_v29 = vld [vmem:[%s821_s13 + $0x188] sm:$0x77] }
  0x3f   : > { %v499_v41 = vmax.f32 %v219_v24, %v443_v32  ;;  %v442_v42 = vunpack.c.l.bf16 %v330_v34  ;;  %v444_v43 = vunpack.c.l.bf16 %v332_v35  ;;  %v223_v48 = vunpack.c.l.bf16 %v167_v36 }
  0x40   : > { %701 = vst [vmem:[%s839_s17 + $0x40] sm:$0xf] %v673_v37  ;;  %v674_v47 = vpack.c.bf16 %v646_v38, %v646_v38  ;;  %v335_v49 = vrot.slane %v167_v36, 4  ;;  %v222_v50 = vunpack.c.l.bf16 %v166_v45  ;;  %v445_v54 = vunpack.c.l.bf16 %v333_v44  ;;  %v179_v44 = vld [vmem:[%s821_s13 + $0x1b0] sm:$0xff] }
  0x41   : > { %v647_v51 = vmax.f32 %v497_v39, %v499_v41  ;;  %v498_v52 = vmax.f32 %v218_v26, %v442_v42  ;;  %v500_v53 = vmax.f32 %v220_v33, %v444_v43  ;;  %v224_v57 = vunpack.c.l.bf16 %v168_v46  ;;  %v177_v39 = vld [vmem:[%s821_s13 + $0x1a0] sm:$0xff] }
  0x42   : > { %702 = vst [vmem:[%s839_s17 + $0x44] sm:$0x7] %v674_v47  ;;  %v447_v56 = vunpack.c.l.bf16 %v335_v49  ;;  %v334_v58 = vrot.slane %v166_v45, 4  ;;  %v336_v59 = vrot.slane %v168_v46, 4  ;;  %v501_v63 = vmax.f32 %v221_v40, %v445_v54  ;;  %v180_v54 = vld [vmem:[%s821_s13 + $0x1b8] sm:$0x77] }
  0x43   : > { %v675_v61 = vpack.c.bf16 %v647_v51, %v647_v51  ;;  %v648_v62 = vmax.f32 %v498_v52, %v500_v53  ;;  %v225_v0 = vunpack.c.l.bf16 %v169_v55  ;;  %v337_v4 = vrot.slane %v169_v55, 4  ;;  %v178_v53 = vld [vmem:[%s821_s13 + $0x1a8] sm:$0x77] }
  0x44   : > { %v503_v1 = vmax.f32 %v223_v48, %v447_v56  ;;  %v446_v2 = vunpack.c.l.bf16 %v334_v58  ;;  %v448_v3 = vunpack.c.l.bf16 %v336_v59  ;;  %v227_v8 = vunpack.c.l.bf16 %v171_v60 }
  0x45   : > { %703 = vst [vmem:[%s839_s17 + $0x48] sm:$0xf] %v675_v61  ;;  %v676_v7 = vpack.c.bf16 %v648_v62, %v648_v62  ;;  %v339_v9 = vrot.slane %v171_v60, 4  ;;  %v226_v10 = vunpack.c.l.bf16 %v170_v5  ;;  %v449_v14 = vunpack.c.l.bf16 %v337_v4 }
  0x46   : > { %v649_v11 = vmax.f32 %v501_v63, %v503_v1  ;;  %v502_v12 = vmax.f32 %v222_v50, %v446_v2  ;;  %v504_v13 = vmax.f32 %v224_v57, %v448_v3  ;;  %v228_v17 = vunpack.c.l.bf16 %v172_v6 }
  0x47   : > { %704 = vst [vmem:[%s839_s17 + $0x4c] sm:$0x7] %v676_v7  ;;  %v451_v16 = vunpack.c.l.bf16 %v339_v9  ;;  %v338_v18 = vrot.slane %v170_v5, 4  ;;  %v340_v19 = vrot.slane %v172_v6, 4  ;;  %v505_v23 = vmax.f32 %v225_v0, %v449_v14 }
  0x48   : > { %v677_v21 = vpack.c.bf16 %v649_v11, %v649_v11  ;;  %v650_v22 = vmax.f32 %v502_v12, %v504_v13  ;;  %v229_v24 = vunpack.c.l.bf16 %v173_v15  ;;  %v341_v28 = vrot.slane %v173_v15, 4 }
  0x49   : > { %v507_v25 = vmax.f32 %v227_v8, %v451_v16  ;;  %v450_v26 = vunpack.c.l.bf16 %v338_v18  ;;  %v452_v27 = vunpack.c.l.bf16 %v340_v19  ;;  %v231_v32 = vunpack.c.l.bf16 %v175_v20 }
  0x4a   : > { %705 = vst [vmem:[%s839_s17 + $0x50] sm:$0xf] %v677_v21  ;;  %v678_v31 = vpack.c.bf16 %v650_v22, %v650_v22  ;;  %v343_v33 = vrot.slane %v175_v20, 4  ;;  %v230_v34 = vunpack.c.l.bf16 %v174_v29  ;;  %v453_v38 = vunpack.c.l.bf16 %v341_v28 }
  0x4b   : > { %v651_v35 = vmax.f32 %v505_v23, %v507_v25  ;;  %v506_v36 = vmax.f32 %v226_v10, %v450_v26  ;;  %v508_v37 = vmax.f32 %v228_v17, %v452_v27  ;;  %v232_v41 = vunpack.c.l.bf16 %v176_v30 }
  0x4c   : > { %706 = vst [vmem:[%s839_s17 + $0x54] sm:$0x7] %v678_v31  ;;  %v455_v40 = vunpack.c.l.bf16 %v343_v33  ;;  %v342_v42 = vrot.slane %v174_v29, 4  ;;  %v344_v43 = vrot.slane %v176_v30, 4  ;;  %v509_v47 = vmax.f32 %v229_v24, %v453_v38 }
  0x4d   : > { %v679_v45 = vpack.c.bf16 %v651_v35, %v651_v35  ;;  %v652_v46 = vmax.f32 %v506_v36, %v508_v37  ;;  %v233_v48 = vunpack.c.l.bf16 %v177_v39  ;;  %v345_v52 = vrot.slane %v177_v39, 4 }
  0x4e   : > { %v511_v49 = vmax.f32 %v231_v32, %v455_v40  ;;  %v454_v50 = vunpack.c.l.bf16 %v342_v42  ;;  %v456_v51 = vunpack.c.l.bf16 %v344_v43  ;;  %v235_v56 = vunpack.c.l.bf16 %v179_v44 }
  0x4f   : > { %707 = vst [vmem:[%s839_s17 + $0x58] sm:$0xf] %v679_v45  ;;  %v680_v55 = vpack.c.bf16 %v652_v46, %v652_v46  ;;  %v347_v57 = vrot.slane %v179_v44, 4  ;;  %v234_v58 = vunpack.c.l.bf16 %v178_v53  ;;  %v457_v62 = vunpack.c.l.bf16 %v345_v52 }
  0x50   : > { %v653_v59 = vmax.f32 %v509_v47, %v511_v49  ;;  %v510_v60 = vmax.f32 %v230_v34, %v454_v50  ;;  %v512_v61 = vmax.f32 %v232_v41, %v456_v51  ;;  %v236_v0 = vunpack.c.l.bf16 %v180_v54 }
  0x51   : > { %708 = vst [vmem:[%s839_s17 + $0x5c] sm:$0x7] %v680_v55  ;;  %v459_v63 = vunpack.c.l.bf16 %v347_v57  ;;  %v346_v1 = vrot.slane %v178_v53, 4  ;;  %v348_v2 = vrot.slane %v180_v54, 4  ;;  %v513_v5 = vmax.f32 %v233_v48, %v457_v62 }
  0x52   : > { %v681_v3 = vpack.c.bf16 %v653_v59, %v653_v59  ;;  %v654_v4 = vmax.f32 %v510_v60, %v512_v61 }
  0x53   : > { %v515_v6 = vmax.f32 %v235_v56, %v459_v63  ;;  %v458_v7 = vunpack.c.l.bf16 %v346_v1  ;;  %v460_v8 = vunpack.c.l.bf16 %v348_v2 }
  0x54   : > { %709 = vst [vmem:[%s839_s17 + $0x60] sm:$0xf] %v681_v3  ;;  %v682_v9 = vpack.c.bf16 %v654_v4, %v654_v4 }
  0x55   : > { %v655_v10 = vmax.f32 %v513_v5, %v515_v6  ;;  %v514_v11 = vmax.f32 %v234_v58, %v458_v7  ;;  %v516_v12 = vmax.f32 %v236_v0, %v460_v8 }
  0x56   : > { %710 = vst [vmem:[%s839_s17 + $0x64] sm:$0x7] %v682_v9 }
  0x57   : > { %v683_v13 = vpack.c.bf16 %v655_v10, %v655_v10  ;;  %v656_v14 = vmax.f32 %v514_v11, %v516_v12 }
  0x59   : > { %711 = vst [vmem:[%s839_s17 + $0x68] sm:$0xf] %v683_v13  ;;  %v684_v15 = vpack.c.bf16 %v656_v14, %v656_v14 }
  0x5b   : > { %712 = vst [vmem:[%s839_s17 + $0x6c] sm:$0x7] %v684_v15 }
  0x5c PF: > { %s11_s6 = sadd.s32 1, %s798_s6  }
  0x5d   : > { %p8_p5 = scmp.ge.s32.totalorder %s11_s6, 4  }
  0x5f   :  { %10 = sbr.rel (!%p8_p5) target bundleno = 1 (0x1), region = 54 }

// kernel: net3_forward.10
= control target key start
LH: loop header
LB: loop body
LE: loop exit
PB: predicated region body
PF: predicated region fallthrough
CT: control target
= control target key end

     0   :  { %s5695_s12 = smov 0   ;;  %s5697_s13 = smov 0   ;;  %s7039_s0 = inlined_call_operand.vmem [shape: bf16[1600,1152], index: 0, kind: input, shape index: {}]   ;;  %s7040_s1 = inlined_call_operand.vmem [shape: bf16[1152,128], index: 1, kind: input, shape index: {}]   ;;  %s7041_s2 = inlined_call_operand.vmem [shape: f32[1,128], index: 2, kind: input, shape index: {}]   ;;  %s7042_s3 = inlined_call_operand.vmem [shape: bf16[1600,128], index: 3, kind: output, shape index: {}]  }
   0x1   :  { %s5699_s14 = smov 0  }
   0x2 LB: > { %s25_s15 = sadd.s32 1, %s5669_s13  ;;  %p3961_p0 = scmp.ge.s32.totalorder %s5673_s14, 1  ;;  %s5673_s14 = sphi %s5699_s14, %s13_s14   ;;  %s5669_s13 = sphi %s5697_s13, %s7094_s13   ;;  %s5665_s12 = sphi %s5695_s12, %s7093_s12  }
   0x3   : > { %p27_p1 = scmp.ge.s32.totalorder %s25_s15, 4  ;;  %p169_p2 = scmp.lt.s32.totalorder %s5673_s14, 5 }
   0x5   : > { %s7096_s15 = smov (%p27_p1, %s25_s15), 0  ;;  %p170_p3 = pnand %p3961_p0, %p169_p2 }
   0x7   : > { %173 = sbr.rel (%p170_p3) target bundleno = 1093 (0x445), region = 32 }
   0xc   : > { %v5386_v0 = vld [vmem:[%s7040_s1 + $0x38] sm:$0xff]  ;;  %v5385_v1 = vld [vmem:[%s7040_s1 + $0x30] sm:$0xff]  ;;  %v5384_v2 = vld [vmem:[%s7040_s1 + $0x28] sm:$0xff]  ;;  %s203_s22 = smul.u32 50, %s5665_s12 }
   0xd   : > { %5600 = vmatpush.bf16.msra.mxu1 %v5386_v0  ;;  %5601 = vmatpush.bf16.msra.mxu2 %v5386_v0  ;;  %v5383_v3 = vld [vmem:[%s7040_s1 + $0x20] sm:$0xff]  ;;  %v5382_v4 = vld [vmem:[%s7040_s1 + $0x18] sm:$0xff]  ;;  %v5381_v5 = vld [vmem:[%s7040_s1 + $0x10] sm:$0xff] }
   0xe   : > { %2307 = vmatpush.bf16.msra.mxu0 %v5386_v0  ;;  %5602 = vmatpush.bf16.msra.mxu3 %v5386_v0  ;;  %p205_p4 = scmp.lt.s32.totalorder %s203_s22, 199  ;;  %v5380_v6 = vld [vmem:[%s7040_s1 + $0x8] sm:$0xff]  ;;  %v5379_v7 = vld [vmem:[%s7040_s1] sm:$0xff]  ;;  %v5402_v12 = vld [vmem:[%s7040_s1 + $0xb8] sm:$0xff] }
   0xf   : > { %v5394_v15 = vld [vmem:[%s7040_s1 + $0x78] sm:$0xff]  ;;  %v5401_v20 = vld [vmem:[%s7040_s1 + $0xb0] sm:$0xff]  ;;  %v5400_v25 = vld [vmem:[%s7040_s1 + $0xa8] sm:$0xff] }
  0x10   : > { %s7098_s22 = smov (!%p205_p4, %s203_s22), 199  ;;  %v5418_v16 = vld [vmem:[%s7040_s1 + $0x138] sm:$0xff]  ;;  %v5393_v21 = vld [vmem:[%s7040_s1 + $0x70] sm:$0xff]  ;;  %v5392_v27 = vld [vmem:[%s7040_s1 + $0x68] sm:$0xff] }
  0x11   : > { %5603 = vmatpush.bf16.msra.mxu1 %v5385_v1  ;;  %5604 = vmatpush.bf16.msra.mxu2 %v5385_v1  ;;  %s5624_s29 = smul.u32 36, %s7098_s22  ;;  %v5417_v22 = vld [vmem:[%s7040_s1 + $0x130] sm:$0xff]  ;;  %v5416_v28 = vld [vmem:[%s7040_s1 + $0x128] sm:$0xff]  ;;  %v5399_v29 = vld [vmem:[%s7040_s1 + $0xa0] sm:$0xff]  ;;  %s3963_s8 = sshll.u32 %s7098_s22, 2 }
  0x12   : > { %2308 = vmatpush.bf16.msra.mxu0 %v5385_v1  ;;  %5605 = vmatpush.bf16.msra.mxu3 %v5385_v1  ;;  %v5391_v30 = vld [vmem:[%s7040_s1 + $0x60] sm:$0xff]  ;;  %v5410_v40 = vld [vmem:[%s7040_s1 + $0xf8] sm:$0xff]  ;;  %v5409_v46 = vld [vmem:[%s7040_s1 + $0xf0] sm:$0xff]  ;;  %s6704_s11 = scalar_lea.vmem %s7042_s3, %s3963_s8 }
  0x13   : > { %s5743_s7 = scalar_lea.vmem %s7039_s0, %s5624_s29  ;;  %v5415_v41 = vld [vmem:[%s7040_s1 + $0x120] sm:$0xff]  ;;  %v5398_v42 = vld [vmem:[%s7040_s1 + $0x98] sm:$0xff]  ;;  %v5408_v57 = vld [vmem:[%s7040_s1 + $0xe8] sm:$0xff] }
  0x14   : > { %v4218_v8 = vld [vmem:[%s5743_s7 + $0x1f8] sm:$0xf]  ;;  %v5221_v9 = vld [vmem:[%s5743_s7 + $0x218] sm:$0xf0]  ;;  %v4470_v10 = vld [vmem:[%s5743_s7 + $0x3f0] sm:$0xf] }
  0x15   : > { %5606 = vmatpush.bf16.msra.mxu1 %v5384_v2  ;;  %5607 = vmatpush.bf16.msra.mxu2 %v5384_v2  ;;  %v5284_v11 = vld [vmem:[%s5743_s7 + $0x410] sm:$0xf0]  ;;  %v3966_v13 = vld [vmem:[%s5743_s7] sm:$0xf]  ;;  %v5158_v14 = vld [vmem:[%s5743_s7 + $0x20] sm:$0xf0]  ;;  %v4219_v17 = vor.u32 %v5221_v9, %v4218_v8 }
  0x16   : > { %2309 = vmatpush.bf16.msra.mxu0 %v5384_v2  ;;  %5608 = vmatpush.bf16.msra.mxu3 %v5384_v2  ;;  %v4471_v18 = vor.u32 %v5284_v11, %v4470_v10  ;;  %v3967_v19 = vor.u32 %v5158_v14, %v3966_v13  ;;  %v4722_v23 = vld [vmem:[%s5743_s7 + $0x5e8] sm:$0xf]  ;;  %v5347_v24 = vld [vmem:[%s5743_s7 + $0x608] sm:$0xf0]  ;;  %v4254_v31 = vld [vmem:[%s5743_s7 + $0x240] sm:$0xf] }
  0x17   : > { %v4723_v26 = vor.u32 %v5347_v24, %v4722_v23  ;;  %v5230_v32 = vld [vmem:[%s5743_s7 + $0x260] sm:$0xf0]  ;;  %v4506_v33 = vld [vmem:[%s5743_s7 + $0x438] sm:$0xf]  ;;  %v5293_v34 = vld [vmem:[%s5743_s7 + $0x458] sm:$0xf0] }
  0x18   : > { %v4002_v35 = vld [vmem:[%s5743_s7 + $0x48] sm:$0xf]  ;;  %v5167_v36 = vld [vmem:[%s5743_s7 + $0x68] sm:$0xf0]  ;;  %v4255_v37 = vor.u32 %v5230_v32, %v4254_v31  ;;  %v4507_v38 = vor.u32 %v5293_v34, %v4506_v33  ;;  %v4758_v43 = vld [vmem:[%s5743_s7 + $0x630] sm:$0xf] }
  0x19   : > { %5609 = vmatpush.bf16.msra.mxu1 %v5383_v3  ;;  %5610 = vmatpush.bf16.msra.mxu2 %v5383_v3  ;;  %v4003_v39 = vor.u32 %v5167_v36, %v4002_v35  ;;  %v5356_v44 = vld [vmem:[%s5743_s7 + $0x650] sm:$0xf0]  ;;  %v5390_v47 = vld [vmem:[%s7040_s1 + $0x58] sm:$0xff]  ;;  %v4290_v48 = vld [vmem:[%s5743_s7 + $0x288] sm:$0xf] }
  0x1a   : > { %2310 = vmatpush.bf16.msra.mxu0 %v5383_v3  ;;  %5611 = vmatpush.bf16.msra.mxu3 %v5383_v3  ;;  %v4759_v45 = vor.u32 %v5356_v44, %v4758_v43  ;;  %v5239_v49 = vld [vmem:[%s5743_s7 + $0x2a8] sm:$0xf0]  ;;  %v4542_v50 = vld [vmem:[%s5743_s7 + $0x480] sm:$0xf]  ;;  %v5302_v51 = vld [vmem:[%s5743_s7 + $0x4a0] sm:$0xf0] }
  0x1b   : > { %v4038_v52 = vld [vmem:[%s5743_s7 + $0x90] sm:$0xf]  ;;  %v5176_v53 = vld [vmem:[%s5743_s7 + $0xb0] sm:$0xf0]  ;;  %v4291_v54 = vor.u32 %v5239_v49, %v4290_v48  ;;  %v4543_v55 = vor.u32 %v5302_v51, %v4542_v50  ;;  %v5414_v58 = vld [vmem:[%s7040_s1 + $0x118] sm:$0xff] }
  0x1c   : > { %v4039_v56 = vor.u32 %v5176_v53, %v4038_v52  ;;  %v5397_v59 = vld [vmem:[%s7040_s1 + $0x90] sm:$0xff]  ;;  %v4794_v60 = vld [vmem:[%s5743_s7 + $0x678] sm:$0xf]  ;;  %v5365_v61 = vld [vmem:[%s5743_s7 + $0x698] sm:$0xf0] }
  0x1d   : > { %5612 = vmatpush.bf16.msra.mxu1 %v5382_v4  ;;  %5613 = vmatpush.bf16.msra.mxu2 %v5382_v4  ;;  %v5389_v62 = vld [vmem:[%s7040_s1 + $0x50] sm:$0xff]  ;;  %v4795_v63 = vor.u32 %v5365_v61, %v4794_v60  ;;  %v5407_v0 = vld [vmem:[%s7040_s1 + $0xe0] sm:$0xff]  ;;  %v4578_v3 = vld [vmem:[%s5743_s7 + $0x4c8] sm:$0xf] }
  0x1e   : > { %2311 = vmatpush.bf16.msra.mxu0 %v5382_v4  ;;  %5614 = vmatpush.bf16.msra.mxu3 %v5382_v4  ;;  %v4326_v1 = vld [vmem:[%s5743_s7 + $0x2d0] sm:$0xf]  ;;  %v5248_v2 = vld [vmem:[%s5743_s7 + $0x2f0] sm:$0xf0]  ;;  %v5311_v4 = vld [vmem:[%s5743_s7 + $0x4e8] sm:$0xf0] }
  0x1f   : > { %v4579_v8 = vor.u32 %v5311_v4, %v4578_v3  ;;  %v5413_v10 = vld [vmem:[%s7040_s1 + $0x110] sm:$0xff]  ;;  %v5406_v11 = vld [vmem:[%s7040_s1 + $0xd8] sm:$0xff]  ;;  %v5388_v13 = vld [vmem:[%s7040_s1 + $0x48] sm:$0xff] }
  0x20   : > { %v4830_v14 = vld [vmem:[%s5743_s7 + $0x6c0] sm:$0xf]  ;;  %v5194_v24 = vld [vmem:[%s5743_s7 + $0x140] sm:$0xf0]  ;;  %v5155_v32 = vld [vmem:[%s5743_s7 + $0xc] sm:$0xf] }
  0x21   : > { %5615 = vmatpush.bf16.msra.mxu1 %v5381_v5  ;;  %5616 = vmatpush.bf16.msra.mxu2 %v5381_v5  ;;  %v4110_v23 = vld [vmem:[%s5743_s7 + $0x120] sm:$0xf]  ;;  %v3976_v33 = vld [vmem:[%s5743_s7 + $0x2c] sm:$0xf0]  ;;  %v5450_v48 = vld [vmem:[%s7040_s1 + $0x238] sm:$0xff] }
  0x22   : > { %2312 = vmatpush.bf16.msra.mxu0 %v5381_v5  ;;  %5617 = vmatpush.bf16.msra.mxu3 %v5381_v5  ;;  %v4074_v5 = vld [vmem:[%s5743_s7 + $0xd8] sm:$0xf]  ;;  %v5403_v31 = vld [vmem:[%s7040_s1 + $0xc0] sm:$0xff]  ;;  %v3979_v35 = vor.u32 %v5155_v32, %v3976_v33  ;;  %v5164_v49 = vld [vmem:[%s5743_s7 + $0x54] sm:$0xf] }
  0x23   : > { %v5411_v34 = vld [vmem:[%s7040_s1 + $0x100] sm:$0xff]  ;;  %v4012_v50 = vld [vmem:[%s5743_s7 + $0x74] sm:$0xf0]  ;;  %v4434_v52 = vld [vmem:[%s5743_s7 + $0x3a8] sm:$0xf] }
  0x24   : > { %v4398_v36 = vld [vmem:[%s5743_s7 + $0x360] sm:$0xf]  ;;  %v4015_v51 = vor.u32 %v5164_v49, %v4012_v50  ;;  %v5275_v53 = vld [vmem:[%s5743_s7 + $0x3c8] sm:$0xf0]  ;;  %v5173_v61 = vld [vmem:[%s5743_s7 + $0x9c] sm:$0xf] }
  0x25   : > { %5618 = vmatpush.bf16.msra.mxu1 %v5380_v6  ;;  %5619 = vmatpush.bf16.msra.mxu2 %v5380_v6  ;;  %v5159_v3 = vld [vmem:[%s5743_s7 + $0x28] sm:$0xf0]  ;;  %v3982_v4 = vld [vmem:[%s5743_s7 + $0x10] sm:$0xf]  ;;  %v5172_v32 = vld [vmem:[%s5743_s7 + $0x94] sm:$0xf] }
  0x26   : > { %2313 = vmatpush.bf16.msra.mxu0 %v5380_v6  ;;  %5620 = vmatpush.bf16.msra.mxu3 %v5380_v6  ;;  %v5185_v6 = vld [vmem:[%s5743_s7 + $0xf8] sm:$0xf0]  ;;  %v4040_v33 = vld [vmem:[%s5743_s7 + $0xb4] sm:$0xf0]  ;;  %v5200_v50 = vld [vmem:[%s5743_s7 + $0x174] sm:$0xf] }
  0x27   : > { %v4075_v9 = vor.u32 %v5185_v6, %v4074_v5  ;;  %v5160_v5 = vld [vmem:[%s5743_s7 + $0x30] sm:$0xf0] }
  0x29   : > { %5621 = vmatpush.bf16.msra.mxu1 %v5379_v7  ;;  %5622 = vmatpush.bf16.msra.mxu2 %v5379_v7 }
  0x2a   : > { %2314 = vmatpush.bf16.msra.mxu0 %v5379_v7  ;;  %5623 = vmatpush.bf16.msra.mxu3 %v5379_v7  ;;  %v4327_v7 = vor.u32 %v5248_v2, %v4326_v1  ;;  %v3968_v1 = vld [vmem:[%s5743_s7 + $0x24] sm:$0xf0] }
  0x2b   : > { %v3974_v2 = vld [vmem:[%s5743_s7 + $0x8] sm:$0xf] }
  0x2c   : > { %2350 = vmatmul.bf16.vlgmr.msra.gmra.mxu1 %v4219_v17  ;;  %2385 = vmatmul.bf16.vlgmr.msra.gmra.mxu2 %v4471_v18  ;;  %v5405_v17 = vld [vmem:[%s7040_s1 + $0xd0] sm:$0xff]  ;;  %v5412_v18 = vld [vmem:[%s7040_s1 + $0x108] sm:$0xff] }
  0x2d   : > { %2575 = vmatpush.bf16.msrb.mxu2 %v5402_v12  ;;  %2441 = vmatpush.bf16.msrb.mxu1 %v5394_v15  ;;  %v5396_v12 = vld [vmem:[%s7040_s1 + $0x88] sm:$0xff]  ;;  %v5374_v15 = vld [vmem:[%s5743_s7 + $0x6e0] sm:$0xf0] }
  0x2e   : > { %2843 = vmatpush.bf16.msrb.mxu0 %v5418_v16  ;;  %2420 = vmatmul.bf16.vlgmr.msra.gmra.mxu3 %v4723_v26  ;;  %v4831_v16 = vor.u32 %v5374_v15, %v4830_v14  ;;  %v4010_v14 = vld [vmem:[%s5743_s7 + $0x50] sm:$0xf]  ;;  %v5168_v15 = vld [vmem:[%s5743_s7 + $0x70] sm:$0xf0] }
  0x2f   : > { %2315 = vmatmul.bf16.vlgmr.msra.gmra.mxu0 %v3967_v19  ;;  %2709 = vmatpush.bf16.msrb.mxu3 %v5410_v40  ;;  %v4362_v19 = vld [vmem:[%s5743_s7 + $0x318] sm:$0xf]  ;;  %v4146_v40 = vld [vmem:[%s5743_s7 + $0x168] sm:$0xf] }
  0x31   : > { %2576 = vmatpush.bf16.msrb.mxu2 %v5401_v20  ;;  %2442 = vmatpush.bf16.msrb.mxu1 %v5393_v21  ;;  %v5257_v20 = vld [vmem:[%s5743_s7 + $0x338] sm:$0xf0]  ;;  %v4614_v21 = vld [vmem:[%s5743_s7 + $0x510] sm:$0xf] }
  0x32   : > { %2844 = vmatpush.bf16.msrb.mxu0 %v5417_v22  ;;  %v5320_v22 = vld [vmem:[%s5743_s7 + $0x530] sm:$0xf0] }
  0x33   : > { %2710 = vmatpush.bf16.msrb.mxu3 %v5409_v46  ;;  %v4615_v26 = vor.u32 %v5320_v22, %v4614_v21  ;;  %v5442_v46 = vld [vmem:[%s7040_s1 + $0x1f8] sm:$0xff] }
  0x35   : > { %2577 = vmatpush.bf16.msrb.mxu2 %v5400_v25  ;;  %2443 = vmatpush.bf16.msrb.mxu1 %v5392_v27  ;;  %v4363_v25 = vor.u32 %v5257_v20, %v4362_v19  ;;  %v4111_v27 = vor.u32 %v5194_v24, %v4110_v23  ;;  %v4011_v19 = vor.u32 %v5168_v15, %v4010_v14  ;;  %v5433_v23 = vld [vmem:[%s7040_s1 + $0x1b0] sm:$0xff] }
  0x36   : > { %2845 = vmatpush.bf16.msrb.mxu0 %v5416_v28  ;;  %v5395_v28 = vld [vmem:[%s7040_s1 + $0x80] sm:$0xff]  ;;  %v5196_v14 = vld [vmem:[%s5743_s7 + $0x150] sm:$0xf0] }
  0x37   : > { %2711 = vmatpush.bf16.msrb.mxu3 %v5408_v57  ;;  %v5212_v57 = vld [vmem:[%s5743_s7 + $0x1d0] sm:$0xf0] }
  0x39   : > { %2578 = vmatpush.bf16.msrb.mxu2 %v5399_v29  ;;  %2444 = vmatpush.bf16.msrb.mxu1 %v5391_v30  ;;  %v5404_v29 = vld [vmem:[%s7040_s1 + $0xc8] sm:$0xff]  ;;  %v5387_v30 = vld [vmem:[%s7040_s1 + $0x40] sm:$0xff] }
  0x3a   : > { %2846 = vmatpush.bf16.msrb.mxu0 %v5415_v41  ;;  %v5203_v41 = vld [vmem:[%s5743_s7 + $0x188] sm:$0xf0] }
  0x3b   : > { %2712 = vmatpush.bf16.msrb.mxu3 %v5407_v0  ;;  %v4147_v44 = vor.u32 %v5203_v41, %v4146_v40  ;;  %v5154_v0 = vld [vmem:[%s5743_s7 + $0x4] sm:$0xf]  ;;  %v4043_v40 = vor.u32 %v5172_v32, %v4040_v33  ;;  %v5424_v33 = vld [vmem:[%s7040_s1 + $0x168] sm:$0xff] }
  0x3c   : > { %2355 = vmatmul.bf16.gmra.mxu1 %v4255_v37  ;;  %2390 = vmatmul.bf16.gmra.mxu2 %v4507_v38  ;;  %v5266_v37 = vld [vmem:[%s5743_s7 + $0x380] sm:$0xf0]  ;;  %v4650_v38 = vld [vmem:[%s5743_s7 + $0x558] sm:$0xf]  ;;  %v3971_v6 = vor.u32 %v5154_v0, %v3968_v1 }
  0x3d   : > { %2579 = vmatpush.bf16.msrb.mxu2 %v5398_v42  ;;  %2445 = vmatpush.bf16.msrb.mxu1 %v5390_v47  ;;  %v4399_v42 = vor.u32 %v5266_v37, %v4398_v36  ;;  %v5426_v47 = vld [vmem:[%s7040_s1 + $0x178] sm:$0xff]  ;;  %v4054_v36 = vld [vmem:[%s5743_s7 + $0xa0] sm:$0xf]  ;;  %v5178_v37 = vld [vmem:[%s5743_s7 + $0xc0] sm:$0xf0] }
  0x3e   : > { %2425 = vmatmul.bf16.gmra.mxu3 %v4759_v45  ;;  %2847 = vmatpush.bf16.msrb.mxu0 %v5414_v58  ;;  %v5434_v45 = vld [vmem:[%s7040_s1 + $0x1b8] sm:$0xff]  ;;  %v4435_v58 = vor.u32 %v5275_v53, %v4434_v52 }
  0x3f   : > { %2320 = vmatmul.bf16.gmra.mxu0 %v4003_v39  ;;  %2713 = vmatpush.bf16.msrb.mxu3 %v5406_v11  ;;  %v5329_v39 = vld [vmem:[%s5743_s7 + $0x578] sm:$0xf0] }
  0x40   : > { %v4651_v43 = vor.u32 %v5329_v39, %v4650_v38  ;;  %v5449_v39 = vld [vmem:[%s7040_s1 + $0x230] sm:$0xff]  ;;  %v5181_v53 = vld [vmem:[%s5743_s7 + $0xdc] sm:$0xf] }
  0x41   : > { %2580 = vmatpush.bf16.msrb.mxu2 %v5397_v59  ;;  %2446 = vmatpush.bf16.msrb.mxu1 %v5389_v62  ;;  %v4048_v62 = vld [vmem:[%s5743_s7 + $0xbc] sm:$0xf0] }
  0x42   : > { %2848 = vmatpush.bf16.msrb.mxu0 %v5413_v10  ;;  %v4084_v10 = vld [vmem:[%s5743_s7 + $0x104] sm:$0xf0] }
  0x43   : > { %2714 = vmatpush.bf16.msrb.mxu3 %v5405_v17  ;;  %v5169_v17 = vld [vmem:[%s5743_s7 + $0x78] sm:$0xf0] }
  0x45   : > { %2581 = vmatpush.bf16.msrb.mxu2 %v5396_v12  ;;  %2447 = vmatpush.bf16.msrb.mxu1 %v5388_v13  ;;  %v5163_v12 = vld [vmem:[%s5743_s7 + $0x4c] sm:$0xf]  ;;  %v4004_v13 = vld [vmem:[%s5743_s7 + $0x6c] sm:$0xf0] }
  0x46   : > { %2849 = vmatpush.bf16.msrb.mxu0 %v5412_v18  ;;  %v4007_v18 = vor.u32 %v5163_v12, %v4004_v13  ;;  %v5195_v12 = vld [vmem:[%s5743_s7 + $0x148] sm:$0xf0]  ;;  %v4126_v13 = vld [vmem:[%s5743_s7 + $0x130] sm:$0xf] }
  0x47   : > { %2715 = vmatpush.bf16.msrb.mxu3 %v5404_v29  ;;  %v5191_v29 = vld [vmem:[%s5743_s7 + $0x12c] sm:$0xf] }
  0x49   : > { %2582 = vmatpush.bf16.msrb.mxu2 %v5395_v28  ;;  %2448 = vmatpush.bf16.msrb.mxu1 %v5387_v30  ;;  %v4120_v30 = vld [vmem:[%s5743_s7 + $0x14c] sm:$0xf0] }
  0x4a   : > { %2850 = vmatpush.bf16.msrb.mxu0 %v5411_v34  ;;  %v4046_v34 = vld [vmem:[%s5743_s7 + $0x98] sm:$0xf] }
  0x4b   : > { %2716 = vmatpush.bf16.msrb.mxu3 %v5403_v31  ;;  %v4123_v31 = vor.u32 %v5191_v29, %v4120_v30 }
  0x4c   : > { %2360 = vmatmul.bf16.gmra.mxu1 %v4291_v54  ;;  %2395 = vmatmul.bf16.gmra.mxu2 %v4543_v55  ;;  %v4686_v54 = vld [vmem:[%s5743_s7 + $0x5a0] sm:$0xf]  ;;  %v5338_v55 = vld [vmem:[%s5743_s7 + $0x5c0] sm:$0xf0] }
  0x4d   : > { %3111 = vmatpush.bf16.msra.mxu2 %v5434_v45  ;;  %2977 = vmatpush.bf16.msra.mxu1 %v5426_v47  ;;  %v4687_v59 = vor.u32 %v5338_v55, %v4686_v54  ;;  %v4076_v54 = vld [vmem:[%s5743_s7 + $0xfc] sm:$0xf0] }
  0x4e   : > { %2430 = vmatmul.bf16.gmra.mxu3 %v4795_v63  ;;  %3379 = vmatpush.bf16.msra.mxu0 %v5450_v48  ;;  %v4051_v63 = vor.u32 %v5173_v61, %v4048_v62  ;;  %v4082_v55 = vld [vmem:[%s5743_s7 + $0xe0] sm:$0xf] }
  0x4f   : > { %2325 = vmatmul.bf16.gmra.mxu0 %v4039_v56  ;;  %3245 = vmatpush.bf16.msra.mxu3 %v5442_v46  ;;  %v4182_v56 = vld [vmem:[%s5743_s7 + $0x1b0] sm:$0xf] }
  0x50   : > { %v4183_v60 = vor.u32 %v5212_v57, %v4182_v56  ;;  %v5186_v56 = vld [vmem:[%s5743_s7 + $0x100] sm:$0xf0]  ;;  %v4090_v57 = vld [vmem:[%s5743_s7 + $0xe8] sm:$0xf] }
  0x51   : > { %3112 = vmatpush.bf16.msra.mxu2 %v5433_v23  ;;  %v4083_v61 = vor.u32 %v5186_v56, %v4082_v55 }
  0x52   : > { %3380 = vmatpush.bf16.msra.mxu0 %v5449_v39  ;;  %v4148_v39 = vld [vmem:[%s5743_s7 + $0x18c] sm:$0xf0] }
  0x5c   : > { %2365 = vmatmul.bf16.gmra.mxu1 %v4327_v7  ;;  %2400 = vmatmul.bf16.gmra.mxu2 %v4579_v8  ;;  %v3975_v7 = vor.u32 %v5159_v3, %v3974_v2  ;;  %v3983_v8 = vor.u32 %v5160_v5, %v3982_v4 }
  0x5e   : > { %2435 = vmatmul.bf16.gmra.mxu3 %v4831_v16  ;;  %v4018_v16 = vld [vmem:[%s5743_s7 + $0x58] sm:$0xf] }
  0x5f   : > { %2330 = vmatmul.bf16.gmra.mxu0 %v4075_v9  ;;  %v5182_v9 = vld [vmem:[%s5743_s7 + $0xe4] sm:$0xf]  ;;  %v4019_v21 = vor.u32 %v5169_v17, %v4018_v16 }
  0x60   : > { %v4087_v11 = vor.u32 %v5182_v9, %v4084_v10  ;;  %v5190_v9 = vld [vmem:[%s5743_s7 + $0x124] sm:$0xf]  ;;  %v4112_v10 = vld [vmem:[%s5743_s7 + $0x144] sm:$0xf0] }
  0x61   : > { %v4115_v16 = vor.u32 %v5190_v9, %v4112_v10  ;;  %v5208_v10 = vld [vmem:[%s5743_s7 + $0x1b4] sm:$0xf] }
  0x6c   : > { %2370 = vmatmul.bf16.gmra.mxu1 %v4363_v25  ;;  %2405 = vmatmul.bf16.gmra.mxu2 %v4615_v26  ;;  %v5441_v25 = vld [vmem:[%s7040_s1 + $0x1f0] sm:$0xff] }
  0x6d   : > { %3246 = vmatpush.bf16.msra.mxu3 %v5441_v25 }
  0x6e   : > { %2717 = vmatmul.bf16.vlgmr.msrb.gmra.mxu3 %v3979_v35  ;;  %v5177_v35 = vld [vmem:[%s5743_s7 + $0xb8] sm:$0xf0] }
  0x6f   : > { %2335 = vmatmul.bf16.gmra.mxu0 %v4111_v27  ;;  %v5425_v27 = vld [vmem:[%s7040_s1 + $0x170] sm:$0xff]  ;;  %v4047_v41 = vor.u32 %v5177_v35, %v4046_v34  ;;  %v5218_v34 = vld [vmem:[%s5743_s7 + $0x204] sm:$0xf]  ;;  %v4228_v35 = vld [vmem:[%s5743_s7 + $0x224] sm:$0xf0] }
  0x70   : > { %2978 = vmatpush.bf16.msra.mxu1 %v5425_v27  ;;  %v5432_v27 = vld [vmem:[%s7040_s1 + $0x1a8] sm:$0xff] }
  0x71   : > { %3113 = vmatpush.bf16.msra.mxu2 %v5432_v27 }
  0x74   : > { %2979 = vmatpush.bf16.msra.mxu1 %v5424_v33 }
  0x7c   : > { %2375 = vmatmul.bf16.gmra.mxu1 %v4399_v42  ;;  %2410 = vmatmul.bf16.gmra.mxu2 %v4651_v43  ;;  %v4055_v43 = vor.u32 %v5178_v37, %v4054_v36  ;;  %v4231_v36 = vor.u32 %v5218_v34, %v4228_v35  ;;  %v5199_v37 = vld [vmem:[%s5743_s7 + $0x16c] sm:$0xf] }
  0x7e   : > { %2722 = vmatmul.bf16.gmra.mxu3 %v4015_v51  ;;  %v4156_v51 = vld [vmem:[%s5743_s7 + $0x194] sm:$0xf0] }
  0x7f   : > { %2340 = vmatmul.bf16.gmra.mxu0 %v4147_v44  ;;  %v4159_v52 = vor.u32 %v5200_v50, %v4156_v51  ;;  %v5205_v50 = vld [vmem:[%s5743_s7 + $0x198] sm:$0xf0] }
  0x8c   : > { %2380 = vmatmul.bf16.gmra.mxu1 %v4435_v58  ;;  %2415 = vmatmul.bf16.gmra.mxu2 %v4687_v59  ;;  %v5187_v58 = vld [vmem:[%s5743_s7 + $0x108] sm:$0xf0] }
  0x8e   : > { %2727 = vmatmul.bf16.gmra.mxu3 %v4051_v63  ;;  %v4091_v63 = vor.u32 %v5187_v58, %v4090_v57  ;;  %v5448_v57 = vld [vmem:[%s7040_s1 + $0x228] sm:$0xff] }
  0x8f   : > { %2345 = vmatmul.bf16.gmra.mxu0 %v4183_v60  ;;  %v4079_v60 = vor.u32 %v5181_v53, %v4076_v54 }
  0x90   : > { %3381 = vmatpush.bf16.msra.mxu0 %v5448_v57  ;;  %v5222_v57 = vld [vmem:[%s5743_s7 + $0x220] sm:$0xf0] }
  0x9c   : > { %2449 = vmatmul.bf16.vlgmr.msrb.gmra.mxu1 %v3971_v6  ;;  %2583 = vmatmul.bf16.vlgmr.msrb.gmra.mxu2 %v3975_v7  ;;  %v5209_v6 = vld [vmem:[%s5743_s7 + $0x1bc] sm:$0xf]  ;;  %v4192_v7 = vld [vmem:[%s5743_s7 + $0x1dc] sm:$0xf0] }
  0x9e   : > { %2732 = vmatmul.bf16.gmra.mxu3 %v4087_v11  ;;  %v4118_v11 = vld [vmem:[%s5743_s7 + $0x128] sm:$0xf] }
  0x9f   : > { %2851 = vmatmul.bf16.vlgmr.msrb.gmra.mxu0 %v3983_v8  ;;  %v4195_v8 = vor.u32 %v5209_v6, %v4192_v7  ;;  %v4119_v17 = vor.u32 %v5195_v12, %v4118_v11  ;;  %v5227_v7 = vld [vmem:[%s5743_s7 + $0x24c] sm:$0xf]  ;;  %v4184_v11 = vld [vmem:[%s5743_s7 + $0x1d4] sm:$0xf0] }
  0xa0   : > { %v4190_v12 = vld [vmem:[%s5743_s7 + $0x1b8] sm:$0xf] }
  0xa9   : > { %v5926_v20 = vpop.f32.mrf.mxu1 }
  0xac   : > { %v5928_v22 = vpop.f32.mrf.mxu0  ;;  %2454 = vmatmul.bf16.gmra.mxu1 %v4007_v18  ;;  %2588 = vmatmul.bf16.gmra.mxu2 %v4011_v19  ;;  %v4127_v19 = vor.u32 %v5196_v14, %v4126_v13  ;;  %v5213_v13 = vld [vmem:[%s5743_s7 + $0x1d8] sm:$0xf0]  ;;  %v4198_v14 = vld [vmem:[%s5743_s7 + $0x1c0] sm:$0xf] }
  0xad   : > { %v4191_v27 = vor.u32 %v5213_v13, %v4190_v12 }
  0xae   : > { %2737 = vmatmul.bf16.gmra.mxu3 %v4123_v31  ;;  %v5440_v31 = vld [vmem:[%s7040_s1 + $0x1e8] sm:$0xff] }
  0xaf   : > { %2856 = vmatmul.bf16.gmra.mxu0 %v4019_v21  ;;  %v5933_v24 = vpop.f32.mrf.mxu2  ;;  %3247 = vmatpush.bf16.msra.mxu3 %v5440_v31 }
  0xb1   : > { %v5938_v26 = vpop.f32.mrf.mxu1  ;;  %v5960_v44 = vpop.f32.mrf.mxu3 }
  0xb2   : > { %7043 = vst [vmem:[#allocation3_spill] sm:$0xff] %v5960_v44  ;;  %v4298_v44 = vld [vmem:[%s5743_s7 + $0x290] sm:$0xf] }
  0xb4   : > { %v5943_v28 = vpop.f32.mrf.mxu0 }
  0xb7   : > { %v5953_v38 = vpop.f32.mrf.mxu2 }
  0xb9   : > { %v5958_v42 = vpop.f32.mrf.mxu1  ;;  %v5968_v48 = vpop.f32.mrf.mxu3 }
  0xba   : > { %7044 = vst [vmem:[#allocation4_spill] sm:$0xff] %v5968_v48 }
  0xbc   : > { %v5962_v45 = vpop.f32.mrf.mxu0  ;;  %2459 = vmatmul.bf16.gmra.mxu1 %v4043_v40  ;;  %2593 = vmatmul.bf16.gmra.mxu2 %v4047_v41  ;;  %v4154_v40 = vld [vmem:[%s5743_s7 + $0x170] sm:$0xf]  ;;  %v5204_v41 = vld [vmem:[%s5743_s7 + $0x190] sm:$0xf0] }
  0xbd   : > { %v4155_v53 = vor.u32 %v5204_v41, %v4154_v40  ;;  %v5236_v41 = vld [vmem:[%s5743_s7 + $0x294] sm:$0xf] }
  0xbe   : > { %2742 = vmatmul.bf16.gmra.mxu3 %v4159_v52  ;;  %v4151_v52 = vor.u32 %v5199_v37, %v4148_v39 }
  0xbf   : > { %2861 = vmatmul.bf16.gmra.mxu0 %v4055_v43  ;;  %v5964_v46 = vpop.f32.mrf.mxu2  ;;  %v4162_v43 = vld [vmem:[%s5743_s7 + $0x178] sm:$0xf] }
  0xc0   : > { %v4163_v55 = vor.u32 %v5205_v50, %v4162_v43  ;;  %v4300_v43 = vld [vmem:[%s5743_s7 + $0x2b4] sm:$0xf0] }
  0xc1   : > { %v5966_v47 = vpop.f32.mrf.mxu1  ;;  %v5984_v0 = vpop.f32.mrf.mxu3  ;;  %v4303_v50 = vor.u32 %v5236_v41, %v4300_v43  ;;  %v5431_v43 = vld [vmem:[%s7040_s1 + $0x1a0] sm:$0xff] }
  0xc2   : > { %7045 = vst [vmem:[#allocation5_spill] sm:$0xff] %v5984_v0  ;;  %3114 = vmatpush.bf16.msra.mxu2 %v5431_v43 }
  0xc4   : > { %v5970_v49 = vpop.f32.mrf.mxu0 }
  0xc7   : > { %v5980_v59 = vpop.f32.mrf.mxu2 }
  0xc9   : > { %v5982_v62 = vpop.f32.mrf.mxu1  ;;  %v5992_v4 = vpop.f32.mrf.mxu3 }
  0xca   : > { %7046 = vst [vmem:[#allocation6_spill] sm:$0xff] %v5992_v4 }
  0xcc   : > { %v5986_v1 = vpop.f32.mrf.mxu0  ;;  %2464 = vmatmul.bf16.gmra.mxu1 %v4079_v60  ;;  %2598 = vmatmul.bf16.gmra.mxu2 %v4083_v61 }
  0xce   : > { %2747 = vmatmul.bf16.gmra.mxu3 %v4195_v8  ;;  %v4264_v8 = vld [vmem:[%s5743_s7 + $0x26c] sm:$0xf0] }
  0xcf   : > { %2866 = vmatmul.bf16.gmra.mxu0 %v4091_v63  ;;  %v5988_v2 = vpop.f32.mrf.mxu2  ;;  %v4267_v9 = vor.u32 %v5227_v7, %v4264_v8  ;;  %v4234_v7 = vld [vmem:[%s5743_s7 + $0x208] sm:$0xf]  ;;  %v5223_v8 = vld [vmem:[%s5743_s7 + $0x228] sm:$0xf0] }
  0xd0   : > { %v4235_v13 = vor.u32 %v5223_v8, %v4234_v7  ;;  %v4256_v8 = vld [vmem:[%s5743_s7 + $0x264] sm:$0xf0] }
  0xd1   : > { %v5990_v3 = vpop.f32.mrf.mxu1  ;;  %v6008_v21 = vpop.f32.mrf.mxu3 }
  0xd2   : > { %7047 = vst [vmem:[#allocation7_spill] sm:$0xff] %v6008_v21 }
  0xd4   : > { %v5994_v5 = vpop.f32.mrf.mxu0 }
  0xd7   : > { %v6004_v15 = vpop.f32.mrf.mxu2 }
  0xd9   : > { %v6006_v18 = vpop.f32.mrf.mxu1  ;;  %v6019_v30 = vpop.f32.mrf.mxu3 }
  0xda   : > { %7048 = vst [vmem:[#allocation8_spill] sm:$0xff] %v6019_v30 }
  0xdc   : > { %v6010_v23 = vpop.f32.mrf.mxu0  ;;  %2469 = vmatmul.bf16.gmra.mxu1 %v4115_v16  ;;  %2603 = vmatmul.bf16.gmra.mxu2 %v4119_v17  ;;  %v5214_v16 = vld [vmem:[%s5743_s7 + $0x1e0] sm:$0xf0] }
  0xdd   : > { %v4199_v33 = vor.u32 %v5214_v16, %v4198_v14 }
  0xde   : > { %2752 = vmatmul.bf16.gmra.mxu3 %v4231_v36 }
  0xdf   : > { %2871 = vmatmul.bf16.gmra.mxu0 %v4127_v19  ;;  %v6012_v25 = vpop.f32.mrf.mxu2  ;;  %v4187_v19 = vor.u32 %v5208_v10, %v4184_v11 }
  0xe1   : > { %v6017_v29 = vpop.f32.mrf.mxu1  ;;  %v6041_v56 = vpop.f32.mrf.mxu3 }
  0xe2   : > { %7049 = vst [vmem:[#allocation9_spill] sm:$0xff] %v6041_v56 }
  0xe4   : > { %v6024_v32 = vpop.f32.mrf.mxu0 }
  0xe7   : > { %v6037_v51 = vpop.f32.mrf.mxu2 }
  0xe9   : > { %v6039_v54 = vpop.f32.mrf.mxu1  ;;  %v6052_v63 = vpop.f32.mrf.mxu3 }
  0xea   : > { %7050 = vst [vmem:[#allocation10_spill] sm:$0xff] %v6052_v63  ;;  %v5232_v63 = vld [vmem:[%s5743_s7 + $0x270] sm:$0xf0] }
  0xec   : > { %v6046_v58 = vpop.f32.mrf.mxu0  ;;  %2474 = vmatmul.bf16.gmra.mxu1 %v4151_v52  ;;  %2608 = vmatmul.bf16.gmra.mxu2 %v4155_v53  ;;  %v5217_v52 = vld [vmem:[%s5743_s7 + $0x1fc] sm:$0xf]  ;;  %v4220_v53 = vld [vmem:[%s5743_s7 + $0x21c] sm:$0xf0] }
  0xed   : > { %v4223_v10 = vor.u32 %v5217_v52, %v4220_v53  ;;  %v5245_v52 = vld [vmem:[%s5743_s7 + $0x2dc] sm:$0xf]  ;;  %v4336_v53 = vld [vmem:[%s5743_s7 + $0x2fc] sm:$0xf0] }
  0xee   : > { %2757 = vmatmul.bf16.gmra.mxu3 %v4267_v9  ;;  %v4339_v7 = vor.u32 %v5245_v52, %v4336_v53 }
  0xef   : > { %2876 = vmatmul.bf16.gmra.mxu0 %v4163_v55  ;;  %v6048_v60 = vpop.f32.mrf.mxu2  ;;  %v4226_v55 = vld [vmem:[%s5743_s7 + $0x200] sm:$0xf] }
  0xf0   : > { %v4227_v11 = vor.u32 %v5222_v57, %v4226_v55  ;;  %v5423_v55 = vld [vmem:[%s7040_s1 + $0x160] sm:$0xff] }
  0xf1   : > { %v6050_v61 = vpop.f32.mrf.mxu1  ;;  %v6068_v34 = vpop.f32.mrf.mxu3  ;;  %v5226_v57 = vld [vmem:[%s5743_s7 + $0x244] sm:$0xf]  ;;  %2980 = vmatpush.bf16.msra.mxu1 %v5423_v55 }
  0xf2   : > { %v4259_v30 = vor.u32 %v5226_v57, %v4256_v8  ;;  %v4372_v8 = vld [vmem:[%s5743_s7 + $0x344] sm:$0xf0] }
  0xf4   : > { %v6054_v6 = vpop.f32.mrf.mxu0 }
  0xf7   : > { %v6064_v17 = vpop.f32.mrf.mxu2 }
  0xf9   : > { %v6066_v31 = vpop.f32.mrf.mxu1  ;;  %v6076_v39 = vpop.f32.mrf.mxu3 }
  0xfc   : > { %v6070_v35 = vpop.f32.mrf.mxu0  ;;  %2479 = vmatmul.bf16.gmra.mxu1 %v4187_v19  ;;  %2613 = vmatmul.bf16.gmra.mxu2 %v4191_v27 }
  0xfe   : > { %2762 = vmatmul.bf16.gmra.mxu3 %v4303_v50  ;;  %v5439_v50 = vld [vmem:[%s7040_s1 + $0x1e0] sm:$0xff] }
  0xff   : > { %2881 = vmatmul.bf16.gmra.mxu0 %v4199_v33  ;;  %v6072_v36 = vpop.f32.mrf.mxu2  ;;  %3248 = vmatpush.bf16.msra.mxu3 %v5439_v50  ;;  %v5447_v50 = vld [vmem:[%s7040_s1 + $0x220] sm:$0xff] }
 0x100   : > { %3382 = vmatpush.bf16.msra.mxu0 %v5447_v50  ;;  %v4306_v50 = vld [vmem:[%s5743_s7 + $0x298] sm:$0xf] }
 0x101   : > { %v6074_v37 = vpop.f32.mrf.mxu1  ;;  %v6092_v14 = vpop.f32.mrf.mxu3 }
 0x104   : > { %v6078_v40 = vpop.f32.mrf.mxu0 }
 0x107   : > { %v6088_v9 = vpop.f32.mrf.mxu2 }
 0x108   : > { %7051 = vst [vmem:[#allocation11_spill] sm:$0xff] %v6088_v9 }
 0x109   : > { %v6090_v12 = vpop.f32.mrf.mxu1  ;;  %v6100_v33 = vpop.f32.mrf.mxu3 }
 0x10c   : > { %v6094_v16 = vpop.f32.mrf.mxu0  ;;  %2484 = vmatmul.bf16.gmra.mxu1 %v4223_v10  ;;  %2618 = vmatmul.bf16.gmra.mxu2 %v4227_v11  ;;  %v4262_v10 = vld [vmem:[%s5743_s7 + $0x248] sm:$0xf]  ;;  %v5231_v11 = vld [vmem:[%s5743_s7 + $0x268] sm:$0xf0] }
 0x10d   : > { %v4263_v21 = vor.u32 %v5231_v11, %v4262_v10  ;;  %v5235_v11 = vld [vmem:[%s5743_s7 + $0x28c] sm:$0xf] }
 0x10e   : > { %2767 = vmatmul.bf16.gmra.mxu3 %v4339_v7  ;;  %v5254_v7 = vld [vmem:[%s5743_s7 + $0x324] sm:$0xf] }
 0x10f   : > { %2886 = vmatmul.bf16.gmra.mxu0 %v4235_v13  ;;  %v6096_v19 = vpop.f32.mrf.mxu2  ;;  %v4270_v13 = vld [vmem:[%s5743_s7 + $0x250] sm:$0xf]  ;;  %v4375_v10 = vor.u32 %v5254_v7, %v4372_v8 }
 0x110   : > { %7052 = vst [vmem:[#allocation12_spill] sm:$0xff] %v6096_v19  ;;  %v4271_v0 = vor.u32 %v5232_v63, %v4270_v13 }
 0x111   : > { %v6098_v27 = vpop.f32.mrf.mxu1  ;;  %v6123_v48 = vpop.f32.mrf.mxu3 }
 0x114   : > { %v6102_v41 = vpop.f32.mrf.mxu0 }
 0x117   : > { %v6121_v56 = vpop.f32.mrf.mxu2 }
 0x118   : > { %7053 = vst [vmem:[#allocation13_spill] sm:$0xff] %v6121_v56  ;;  %v5241_v56 = vld [vmem:[%s5743_s7 + $0x2b8] sm:$0xf0] }
 0x119   : > { %v2450_v4 = vpop.f32.mrf.mxu1  ;;  %v6129_v57 = vpop.f32.mrf.mxu3 }
 0x11a   : > { %v2451_v52 = vadd.f32 %v2450_v4, %v5928_v22  ;;  %v5240_v22 = vld [vmem:[%s5743_s7 + $0x2b0] sm:$0xf0] }
 0x11b   : > { %v4299_v9 = vor.u32 %v5240_v22, %v4298_v44  ;;  %v5244_v22 = vld [vmem:[%s5743_s7 + $0x2d4] sm:$0xf] }
 0x11c   : > { %v2852_v43 = vpop.f32.mrf.mxu0  ;;  %2489 = vmatmul.bf16.gmra.mxu1 %v4259_v30  ;;  %2623 = vmatmul.bf16.gmra.mxu2 %v4263_v21 }
 0x11e   : > { %2772 = vmatmul.bf16.gmra.mxu3 %v4375_v10 }
 0x11f   : > { %2891 = vmatmul.bf16.gmra.mxu0 %v4271_v0  ;;  %v2584_v63 = vpop.f32.mrf.mxu2  ;;  %v4292_v0 = vld [vmem:[%s5743_s7 + $0x2ac] sm:$0xf0] }
 0x120   : > { %v2585_v53 = vadd.f32 %v2584_v63, %v2451_v52  ;;  %v4295_v19 = vor.u32 %v5235_v11, %v4292_v0  ;;  %v4408_v0 = vld [vmem:[%s5743_s7 + $0x38c] sm:$0xf0] }
 0x121   : > { %v2452_v55 = vpop.f32.mrf.mxu1  ;;  %v6143_v7 = vpop.f32.mrf.mxu3 }
 0x122   : > { %v2719_v21 = vadd.f32 %v6068_v34, %v2585_v53  ;;  %v2453_v4 = vadd.f32 %v2452_v55, %v5943_v28  ;;  %v4307_v53 = vor.u32 %v5241_v56, %v4306_v50  ;;  %v4334_v50 = vld [vmem:[%s5743_s7 + $0x2d8] sm:$0xf] }
 0x124   : > { %v2854_v30 = vpop.f32.mrf.mxu0  ;;  %v6135_v13 = vadd.f32 %v2852_v43, %v2719_v21 }
 0x127   : > { %v2586_v52 = vpop.f32.mrf.mxu2 }
 0x128   : > { %v2587_v63 = vadd.f32 %v2586_v52, %v2453_v4  ;;  %v4328_v4 = vld [vmem:[%s5743_s7 + $0x2f4] sm:$0xf0]  ;;  %v5249_v52 = vld [vmem:[%s5743_s7 + $0x2f8] sm:$0xf0] }
 0x129   : > { %v2455_v34 = vpop.f32.mrf.mxu1  ;;  %v6149_v10 = vpop.f32.mrf.mxu3 }
 0x12a   : > { %v2721_v43 = vadd.f32 %v6076_v39, %v2587_v63  ;;  %v2456_v44 = vadd.f32 %v2455_v34, %v5962_v45  ;;  %v4342_v63 = vld [vmem:[%s5743_s7 + $0x2e0] sm:$0xf]  ;;  %v5250_v34 = vld [vmem:[%s5743_s7 + $0x300] sm:$0xf0] }
 0x12c   : > { %v2857_v21 = vpop.f32.mrf.mxu0  ;;  %2494 = vmatmul.bf16.gmra.mxu1 %v4295_v19  ;;  %2628 = vmatmul.bf16.gmra.mxu2 %v4299_v9  ;;  %v6146_v28 = vadd.f32 %v2854_v30, %v2721_v43  ;;  %v5263_v19 = vld [vmem:[%s5743_s7 + $0x36c] sm:$0xf] }
 0x12d   : > { %v4411_v9 = vor.u32 %v5263_v19, %v4408_v0 }
 0x12e   : > { %7054 = vst [vmem:[#allocation14_spill] sm:$0xff] %v6146_v28 }
 0x12f   : > { %2896 = vmatmul.bf16.gmra.mxu0 %v4307_v53  ;;  %v2589_v55 = vpop.f32.mrf.mxu2  ;;  %2777 = vmatmul.bf16.gmra.mxu3 %v4411_v9 }
 0x130   : > { %v2590_v56 = vadd.f32 %v2589_v55, %v2456_v44  ;;  %v4331_v44 = vor.u32 %v5244_v22, %v4328_v4  ;;  %v4335_v55 = vor.u32 %v5249_v52, %v4334_v50  ;;  %v5272_v50 = vld [vmem:[%s5743_s7 + $0x3b4] sm:$0xf]  ;;  %v4444_v52 = vld [vmem:[%s5743_s7 + $0x3d4] sm:$0xf0] }
 0x131   : > { %v2457_v8 = vpop.f32.mrf.mxu1  ;;  %v6163_v28 = vpop.f32.mrf.mxu3 }
 0x132   : > { %v2724_v39 = vadd.f32 %v6092_v14, %v2590_v56  ;;  %v2458_v45 = vadd.f32 %v2457_v8, %v5970_v49  ;;  %v4343_v56 = vor.u32 %v5250_v34, %v4342_v63  ;;  %v5253_v63 = vld [vmem:[%s5743_s7 + $0x31c] sm:$0xf] }
 0x134   : > { %v2859_v11 = vpop.f32.mrf.mxu0  ;;  %v6155_v30 = vadd.f32 %v2857_v21, %v2724_v39 }
 0x137   : > { %v2591_v53 = vpop.f32.mrf.mxu2 }
 0x138   : > { %v2592_v43 = vadd.f32 %v2591_v53, %v2458_v45  ;;  %v4447_v45 = vor.u32 %v5272_v50, %v4444_v52  ;;  %v4364_v53 = vld [vmem:[%s5743_s7 + $0x33c] sm:$0xf0] }
 0x139   : > { %v2460_v14 = vpop.f32.mrf.mxu1  ;;  %v6169_v22 = vpop.f32.mrf.mxu3 }
 0x13a   : > { %v2726_v21 = vadd.f32 %v6100_v33, %v2592_v43  ;;  %v2461_v8 = vadd.f32 %v2460_v14, %v5986_v1  ;;  %v5438_v1 = vld [vmem:[%s7040_s1 + $0x1d8] sm:$0xff]  ;;  %v4370_v43 = vld [vmem:[%s5743_s7 + $0x320] sm:$0xf]  ;;  %v5259_v14 = vld [vmem:[%s5743_s7 + $0x348] sm:$0xf0] }
 0x13b   : > { %3249 = vmatpush.bf16.msra.mxu3 %v5438_v1 }
 0x13c   : > { %v2862_v39 = vpop.f32.mrf.mxu0  ;;  %2499 = vmatmul.bf16.gmra.mxu1 %v4331_v44  ;;  %2633 = vmatmul.bf16.gmra.mxu2 %v4335_v55  ;;  %v6166_v49 = vadd.f32 %v2859_v11, %v2726_v21  ;;  %v5430_v11 = vld [vmem:[%s7040_s1 + $0x198] sm:$0xff]  ;;  %v4378_v55 = vld [vmem:[%s5743_s7 + $0x328] sm:$0xf] }
 0x13d   : > { %3115 = vmatpush.bf16.msra.mxu2 %v5430_v11  ;;  %v4379_v50 = vor.u32 %v5259_v14, %v4378_v55  ;;  %v5422_v11 = vld [vmem:[%s7040_s1 + $0x158] sm:$0xff]  ;;  %v5262_v14 = vld [vmem:[%s5743_s7 + $0x364] sm:$0xf] }
 0x13e   : > { %2981 = vmatpush.bf16.msra.mxu1 %v5422_v11 }
 0x13f   : > { %2901 = vmatmul.bf16.gmra.mxu0 %v4343_v56  ;;  %v2594_v19 = vpop.f32.mrf.mxu2  ;;  %2782 = vmatmul.bf16.gmra.mxu3 %v4447_v45 }
 0x140   : > { %v2595_v0 = vadd.f32 %v2594_v19, %v2461_v8  ;;  %v4367_v8 = vor.u32 %v5253_v63, %v4364_v53 }
 0x141   : > { %v2462_v9 = vpop.f32.mrf.mxu1  ;;  %v6189_v52 = vpop.f32.mrf.mxu3 }
 0x142   : > { %v2729_v33 = vadd.f32 %v6123_v48, %v2595_v0  ;;  %v5258_v48 = vld [vmem:[%s5743_s7 + $0x340] sm:$0xf0]  ;;  %v2463_v44 = vadd.f32 %v2462_v9, %v5994_v5 }
 0x143   : > { %v4371_v19 = vor.u32 %v5258_v48, %v4370_v43  ;;  %v5281_v48 = vld [vmem:[%s5743_s7 + $0x3fc] sm:$0xf] }
 0x144   : > { %v2864_v4 = vpop.f32.mrf.mxu0  ;;  %v6181_v34 = vadd.f32 %v2862_v39, %v2729_v33 }
 0x147   : > { %v2596_v56 = vpop.f32.mrf.mxu2 }
 0x148   : > { %v2597_v21 = vadd.f32 %v2596_v56, %v2463_v44  ;;  %v4480_v44 = vld [vmem:[%s5743_s7 + $0x41c] sm:$0xf0] }
 0x149   : > { %v2465_v0 = vpop.f32.mrf.mxu1  ;;  %v6201_v53 = vpop.f32.mrf.mxu3  ;;  %v4483_v55 = vor.u32 %v5281_v48, %v4480_v44 }
 0x14a   : > { %v2731_v39 = vadd.f32 %v6129_v57, %v2597_v21  ;;  %v5446_v57 = vld [vmem:[%s7040_s1 + $0x218] sm:$0xff]  ;;  %v2466_v9 = vadd.f32 %v2465_v0, %v6010_v23  ;;  %v4400_v21 = vld [vmem:[%s5743_s7 + $0x384] sm:$0xf0]  ;;  %v5267_v23 = vld [vmem:[%s5743_s7 + $0x388] sm:$0xf0] }
 0x14b   : > { %3383 = vmatpush.bf16.msra.mxu0 %v5446_v57  ;;  %v4414_v0 = vld [vmem:[%s5743_s7 + $0x370] sm:$0xf]  ;;  %v4403_v57 = vor.u32 %v5262_v14, %v4400_v21 }
 0x14c   : > { %v2867_v33 = vpop.f32.mrf.mxu0  ;;  %2504 = vmatmul.bf16.gmra.mxu1 %v4367_v8  ;;  %2638 = vmatmul.bf16.gmra.mxu2 %v4371_v19  ;;  %v6195_v5 = vadd.f32 %v2864_v4, %v2731_v39  ;;  %v4406_v8 = vld [vmem:[%s5743_s7 + $0x368] sm:$0xf] }
 0x14f   : > { %2906 = vmatmul.bf16.gmra.mxu0 %v4379_v50  ;;  %v2599_v45 = vpop.f32.mrf.mxu2  ;;  %v5268_v50 = vld [vmem:[%s5743_s7 + $0x390] sm:$0xf0]  ;;  %2787 = vmatmul.bf16.gmra.mxu3 %v4483_v55 }
 0x150   : > { %v2600_v1 = vadd.f32 %v2599_v45, %v2466_v9  ;;  %v4407_v9 = vor.u32 %v5267_v23, %v4406_v8  ;;  %v4415_v45 = vor.u32 %v5268_v50, %v4414_v0  ;;  %v5290_v8 = vld [vmem:[%s5743_s7 + $0x444] sm:$0xf]  ;;  %v4516_v23 = vld [vmem:[%s5743_s7 + $0x464] sm:$0xf0]  ;;  %v5271_v0 = vld [vmem:[%s5743_s7 + $0x3ac] sm:$0xf] }
 0x151   : > { %v2467_v63 = vpop.f32.mrf.mxu1  ;;  %v4436_v50 = vld [vmem:[%s5743_s7 + $0x3cc] sm:$0xf0] }
 0x152   : > { %v2734_v4 = vadd.f32 %v6143_v7, %v2600_v1  ;;  %v2468_v19 = vadd.f32 %v2467_v63, %v6024_v32  ;;  %v6215_v1 = vpop.f32.mrf.mxu3 }
 0x154   : > { %v2869_v43 = vpop.f32.mrf.mxu0  ;;  %v6207_v56 = vadd.f32 %v2867_v33, %v2734_v4 }
 0x157   : > { %v2601_v39 = vpop.f32.mrf.mxu2 }
 0x158   : > { %v2602_v11 = vadd.f32 %v2601_v39, %v2468_v19  ;;  %v4519_v19 = vor.u32 %v5290_v8, %v4516_v23  ;;  %v4442_v39 = vld [vmem:[%s5743_s7 + $0x3b0] sm:$0xf] }
 0x159   : > { %v2470_v7 = vpop.f32.mrf.mxu1 }
 0x15a   : > { %v2736_v33 = vadd.f32 %v6149_v10, %v2602_v11  ;;  %v2471_v63 = vadd.f32 %v2470_v7, %v6046_v58  ;;  %v6221_v14 = vpop.f32.mrf.mxu3  ;;  %v5276_v11 = vld [vmem:[%s5743_s7 + $0x3d0] sm:$0xf0] }
 0x15c   : > { %v2872_v4 = vpop.f32.mrf.mxu0  ;;  %2509 = vmatmul.bf16.gmra.mxu1 %v4403_v57  ;;  %2643 = vmatmul.bf16.gmra.mxu2 %v4407_v9  ;;  %v6218_v32 = vadd.f32 %v2869_v43, %v2736_v33  ;;  %v4450_v57 = vld [vmem:[%s5743_s7 + $0x3b8] sm:$0xf]  ;;  %v5277_v9 = vld [vmem:[%s5743_s7 + $0x3d8] sm:$0xf0]  ;;  %v4439_v33 = vor.u32 %v5271_v0, %v4436_v50 }
 0x15f   : > { %2911 = vmatmul.bf16.gmra.mxu0 %v4415_v45  ;;  %v2604_v48 = vpop.f32.mrf.mxu2  ;;  %2792 = vmatmul.bf16.gmra.mxu3 %v4519_v19 }
 0x160   : > { %v2605_v44 = vadd.f32 %v2604_v48, %v2471_v63  ;;  %v4443_v63 = vor.u32 %v5276_v11, %v4442_v39  ;;  %v4451_v48 = vor.u32 %v5277_v9, %v4450_v57  ;;  %v5299_v39 = vld [vmem:[%s5743_s7 + $0x48c] sm:$0xf]  ;;  %v4552_v11 = vld [vmem:[%s5743_s7 + $0x4ac] sm:$0xf0]  ;;  %v5280_v57 = vld [vmem:[%s5743_s7 + $0x3f4] sm:$0xf] }
 0x161   : > { %v2472_v55 = vpop.f32.mrf.mxu1  ;;  %v4472_v9 = vld [vmem:[%s5743_s7 + $0x414] sm:$0xf0] }
 0x162   : > { %v2739_v10 = vadd.f32 %v6163_v28, %v2605_v44  ;;  %v2473_v58 = vadd.f32 %v2472_v55, %v6054_v6  ;;  %v6235_v44 = vpop.f32.mrf.mxu3 }
 0x164   : > { %v2874_v21 = vpop.f32.mrf.mxu0  ;;  %v6227_v43 = vadd.f32 %v2872_v4, %v2739_v10 }
 0x167   : > { %v2606_v7 = vpop.f32.mrf.mxu2 }
 0x168   : > { %v2607_v45 = vadd.f32 %v2606_v7, %v2473_v58  ;;  %v4555_v58 = vor.u32 %v5299_v39, %v4552_v11  ;;  %v4478_v7 = vld [vmem:[%s5743_s7 + $0x3f8] sm:$0xf] }
 0x169   : > { %v2475_v28 = vpop.f32.mrf.mxu1 }
 0x16a   : > { %v2741_v4 = vadd.f32 %v6169_v22, %v2607_v45  ;;  %v2476_v55 = vadd.f32 %v2475_v28, %v6070_v35  ;;  %v6241_v0 = vpop.f32.mrf.mxu3  ;;  %v5285_v45 = vld [vmem:[%s5743_s7 + $0x418] sm:$0xf0]  ;;  %v5286_v28 = vld [vmem:[%s5743_s7 + $0x420] sm:$0xf0] }
 0x16c   : > { %v2877_v10 = vpop.f32.mrf.mxu0  ;;  %2514 = vmatmul.bf16.gmra.mxu1 %v4439_v33  ;;  %2648 = vmatmul.bf16.gmra.mxu2 %v4443_v63  ;;  %v6238_v6 = vadd.f32 %v2874_v21, %v2741_v4  ;;  %v5429_v21 = vld [vmem:[%s7040_s1 + $0x190] sm:$0xff]  ;;  %v4486_v63 = vld [vmem:[%s5743_s7 + $0x400] sm:$0xf]  ;;  %v4475_v4 = vor.u32 %v5280_v57, %v4472_v9 }
 0x16d   : > { %3116 = vmatpush.bf16.msra.mxu2 %v5429_v21 }
 0x16e   : > { %7055 = vst [vmem:[#allocation15_spill] sm:$0xff] %v6238_v6 }
 0x16f   : > { %2916 = vmatmul.bf16.gmra.mxu0 %v4451_v48  ;;  %v2609_v8 = vpop.f32.mrf.mxu2  ;;  %2797 = vmatmul.bf16.gmra.mxu3 %v4555_v58 }
 0x170   : > { %v2610_v23 = vadd.f32 %v2609_v8, %v2476_v55  ;;  %v4479_v55 = vor.u32 %v5285_v45, %v4478_v7  ;;  %v5308_v45 = vld [vmem:[%s5743_s7 + $0x4d4] sm:$0xf] }
 0x171   : > { %v2477_v19 = vpop.f32.mrf.mxu1 }
 0x172   : > { %v2744_v22 = vadd.f32 %v6189_v52, %v2610_v23  ;;  %v2478_v33 = vadd.f32 %v2477_v19, %v6078_v40  ;;  %v4487_v23 = vor.u32 %v5286_v28, %v4486_v63  ;;  %v6258_v6 = vpop.f32.mrf.mxu3  ;;  %v5421_v40 = vld [vmem:[%s7040_s1 + $0x150] sm:$0xff]  ;;  %v5289_v63 = vld [vmem:[%s5743_s7 + $0x43c] sm:$0xf] }
 0x173   : > { %2982 = vmatpush.bf16.msra.mxu1 %v5421_v40 }
 0x174   : > { %v2879_v50 = vpop.f32.mrf.mxu0  ;;  %v6250_v35 = vadd.f32 %v2877_v10, %v2744_v22  ;;  %v5437_v22 = vld [vmem:[%s7040_s1 + $0x1d0] sm:$0xff] }
 0x175   : > { %3250 = vmatpush.bf16.msra.mxu3 %v5437_v22 }
 0x177   : > { %v2611_v52 = vpop.f32.mrf.mxu2 }
 0x178   : > { %v2612_v48 = vadd.f32 %v2611_v52, %v2478_v33  ;;  %v4588_v33 = vld [vmem:[%s5743_s7 + $0x4f4] sm:$0xf0]  ;;  %v4508_v52 = vld [vmem:[%s5743_s7 + $0x45c] sm:$0xf0] }
 0x179   : > { %v2480_v8 = vpop.f32.mrf.mxu1  ;;  %v4511_v22 = vor.u32 %v5289_v63, %v4508_v52  ;;  %v5317_v52 = vld [vmem:[%s5743_s7 + $0x51c] sm:$0xf] }
 0x17a   : > { %v2746_v39 = vadd.f32 %v6201_v53, %v2612_v48  ;;  %v2481_v53 = vadd.f32 %v2480_v8, %v6094_v16  ;;  %v6270_v57 = vpop.f32.mrf.mxu3  ;;  %v4591_v16 = vor.u32 %v5308_v45, %v4588_v33  ;;  %v4514_v48 = vld [vmem:[%s5743_s7 + $0x440] sm:$0xf]  ;;  %v4522_v8 = vld [vmem:[%s5743_s7 + $0x448] sm:$0xf] }
 0x17c   : > { %v2882_v10 = vpop.f32.mrf.mxu0  ;;  %2519 = vmatmul.bf16.gmra.mxu1 %v4475_v4  ;;  %2653 = vmatmul.bf16.gmra.mxu2 %v4479_v55  ;;  %v6267_v19 = vadd.f32 %v2879_v50, %v2746_v39  ;;  %v5445_v50 = vld [vmem:[%s7040_s1 + $0x210] sm:$0xff]  ;;  %v5294_v4 = vld [vmem:[%s5743_s7 + $0x460] sm:$0xf0] }
 0x17d   : > { %3384 = vmatpush.bf16.msra.mxu0 %v5445_v50  ;;  %v4515_v40 = vor.u32 %v5294_v4, %v4514_v48  ;;  %v4624_v48 = vld [vmem:[%s5743_s7 + $0x53c] sm:$0xf0] }
 0x17e   : > { %v4627_v4 = vor.u32 %v5317_v52, %v4624_v48 }
 0x17f   : > { %2921 = vmatmul.bf16.gmra.mxu0 %v4487_v23  ;;  %v2614_v11 = vpop.f32.mrf.mxu2  ;;  %v5295_v23 = vld [vmem:[%s5743_s7 + $0x468] sm:$0xf0]  ;;  %2802 = vmatmul.bf16.gmra.mxu3 %v4591_v16 }
 0x180   : > { %v2615_v21 = vadd.f32 %v2614_v11, %v2481_v53  ;;  %v4523_v11 = vor.u32 %v5295_v23, %v4522_v8  ;;  %v4544_v8 = vld [vmem:[%s5743_s7 + $0x4a4] sm:$0xf0] }
 0x181   : > { %v2482_v58 = vpop.f32.mrf.mxu1  ;;  %v4550_v23 = vld [vmem:[%s5743_s7 + $0x488] sm:$0xf] }
 0x182   : > { %v2749_v9 = vadd.f32 %v6215_v1, %v2615_v21  ;;  %v2483_v55 = vadd.f32 %v2482_v58, %v6102_v41  ;;  %v6287_v21 = vpop.f32.mrf.mxu3 }
 0x184   : > { %v2884_v7 = vpop.f32.mrf.mxu0  ;;  %v6279_v28 = vadd.f32 %v2882_v10, %v2749_v9 }
 0x187   : > { %v2616_v1 = vpop.f32.mrf.mxu2 }
 0x188   : > { %v2617_v39 = vadd.f32 %v2616_v1, %v2483_v55  ;;  %v5298_v55 = vld [vmem:[%s5743_s7 + $0x484] sm:$0xf]  ;;  %v5303_v1 = vld [vmem:[%s5743_s7 + $0x4a8] sm:$0xf0] }
 0x189   : > { %v2485_v53 = vpop.f32.mrf.mxu1 }
 0x18a   : > { %v2751_v10 = vadd.f32 %v6221_v14, %v2617_v39  ;;  %v2486_v58 = vadd.f32 %v2485_v53, %v5926_v20  ;;  %v6293_v16 = vpop.f32.mrf.mxu3  ;;  %v4558_v39 = vld [vmem:[%s5743_s7 + $0x490] sm:$0xf] }
 0x18c   : > { %v2887_v9 = vpop.f32.mrf.mxu0  ;;  %2524 = vmatmul.bf16.gmra.mxu1 %v4511_v22  ;;  %2658 = vmatmul.bf16.gmra.mxu2 %v4515_v40  ;;  %v6290_v41 = vadd.f32 %v2884_v7, %v2751_v10  ;;  %v5304_v22 = vld [vmem:[%s5743_s7 + $0x4b0] sm:$0xf0]  ;;  %v4551_v10 = vor.u32 %v5303_v1, %v4550_v23  ;;  %v4660_v23 = vld [vmem:[%s5743_s7 + $0x584] sm:$0xf0] }
 0x18f   : > { %2926 = vmatmul.bf16.gmra.mxu0 %v4523_v11  ;;  %v2619_v50 = vpop.f32.mrf.mxu2  ;;  %2807 = vmatmul.bf16.gmra.mxu3 %v4627_v4  ;;  %v4547_v11 = vor.u32 %v5298_v55, %v4544_v8  ;;  %v5326_v8 = vld [vmem:[%s5743_s7 + $0x564] sm:$0xf] }
 0x190   : > { %v2620_v45 = vadd.f32 %v2619_v50, %v2486_v58  ;;  %v4559_v58 = vor.u32 %v5304_v22, %v4558_v39  ;;  %v4663_v1 = vor.u32 %v5326_v8, %v4660_v23  ;;  %v4580_v39 = vld [vmem:[%s5743_s7 + $0x4ec] sm:$0xf0] }
 0x191   : > { %v2487_v33 = vpop.f32.mrf.mxu1  ;;  %v4586_v22 = vld [vmem:[%s5743_s7 + $0x4d0] sm:$0xf] }
 0x192   : > { %v2754_v14 = vadd.f32 %v6235_v44, %v2620_v45  ;;  %v2488_v20 = vadd.f32 %v2487_v33, %v5938_v26  ;;  %v6307_v50 = vpop.f32.mrf.mxu3 }
 0x194   : > { %v2889_v63 = vpop.f32.mrf.mxu0  ;;  %v6299_v7 = vadd.f32 %v2887_v9, %v2754_v14 }
 0x197   : > { %v2621_v40 = vpop.f32.mrf.mxu2 }
 0x198   : > { %v2622_v53 = vadd.f32 %v2621_v40, %v2488_v20  ;;  %v5307_v20 = vld [vmem:[%s5743_s7 + $0x4cc] sm:$0xf]  ;;  %v5312_v40 = vld [vmem:[%s5743_s7 + $0x4f0] sm:$0xf0] }
 0x199   : > { %v2490_v44 = vpop.f32.mrf.mxu1 }
 0x19a   : > { %v2756_v9 = vadd.f32 %v6241_v0, %v2622_v53  ;;  %v2491_v33 = vadd.f32 %v2490_v44, %v5958_v42  ;;  %v6313_v4 = vpop.f32.mrf.mxu3  ;;  %v4594_v53 = vld [vmem:[%s5743_s7 + $0x4d8] sm:$0xf] }
 0x19c   : > { %v2892_v45 = vpop.f32.mrf.mxu0  ;;  %2529 = vmatmul.bf16.gmra.mxu1 %v4547_v11  ;;  %2663 = vmatmul.bf16.gmra.mxu2 %v4551_v10  ;;  %v6310_v26 = vadd.f32 %v2889_v63, %v2756_v9  ;;  %v5313_v11 = vld [vmem:[%s5743_s7 + $0x4f8] sm:$0xf0]  ;;  %v4587_v9 = vor.u32 %v5312_v40, %v4586_v22  ;;  %v5444_v40 = vld [vmem:[%s7040_s1 + $0x208] sm:$0xff] }
 0x19d   : > { %3385 = vmatpush.bf16.msra.mxu0 %v5444_v40 }
 0x19f   : > { %2931 = vmatmul.bf16.gmra.mxu0 %v4559_v58  ;;  %v2624_v14 = vpop.f32.mrf.mxu2  ;;  %2812 = vmatmul.bf16.gmra.mxu3 %v4663_v1  ;;  %v4583_v58 = vor.u32 %v5307_v20, %v4580_v39 }
 0x1a0   : > { %v2625_v52 = vadd.f32 %v2624_v14, %v2491_v33  ;;  %v4595_v33 = vor.u32 %v5313_v11, %v4594_v53  ;;  %v5316_v11 = vld [vmem:[%s5743_s7 + $0x514] sm:$0xf] }
 0x1a1   : > { %v2492_v48 = vpop.f32.mrf.mxu1 }
 0x1a2   : > { %v2759_v0 = vadd.f32 %v6258_v6, %v2625_v52  ;;  %v2493_v42 = vadd.f32 %v2492_v48, %v5966_v47  ;;  %v6327_v14 = vpop.f32.mrf.mxu3  ;;  %v5436_v47 = vld [vmem:[%s7040_s1 + $0x1c8] sm:$0xff] }
 0x1a3   : > { %v5420_v48 = vld [vmem:[%s7040_s1 + $0x148] sm:$0xff]  ;;  %3251 = vmatpush.bf16.msra.mxu3 %v5436_v47 }
 0x1a4   : > { %v2894_v55 = vpop.f32.mrf.mxu0  ;;  %v6319_v63 = vadd.f32 %v2892_v45, %v2759_v0  ;;  %v5428_v0 = vld [vmem:[%s7040_s1 + $0x188] sm:$0xff]  ;;  %2983 = vmatpush.bf16.msra.mxu1 %v5420_v48 }
 0x1a5   : > { %3117 = vmatpush.bf16.msra.mxu2 %v5428_v0 }
 0x1a7   : > { %v2626_v10 = vpop.f32.mrf.mxu2 }
 0x1a8   : > { %v2627_v44 = vadd.f32 %v2626_v10, %v2493_v42  ;;  %v4696_v42 = vld [vmem:[%s5743_s7 + $0x5cc] sm:$0xf0] }
 0x1a9   : > { %v2495_v6 = vpop.f32.mrf.mxu1 }
 0x1aa   : > { %v2761_v52 = vadd.f32 %v6270_v57, %v2627_v44  ;;  %v2496_v57 = vadd.f32 %v2495_v6, %v5982_v62  ;;  %v6342_v39 = vpop.f32.mrf.mxu3  ;;  %v5335_v62 = vld [vmem:[%s5743_s7 + $0x5ac] sm:$0xf]  ;;  %v4616_v44 = vld [vmem:[%s5743_s7 + $0x534] sm:$0xf0] }
 0x1ab   : > { %v4699_v53 = vor.u32 %v5335_v62, %v4696_v42  ;;  %v4619_v47 = vor.u32 %v5316_v11, %v4616_v44  ;;  %v5344_v44 = vld [vmem:[%s5743_s7 + $0x5f4] sm:$0xf] }
 0x1ac   : > { %v2897_v45 = vpop.f32.mrf.mxu0  ;;  %2534 = vmatmul.bf16.gmra.mxu1 %v4583_v58  ;;  %2668 = vmatmul.bf16.gmra.mxu2 %v4587_v9  ;;  %v6339_v8 = vadd.f32 %v2894_v55, %v2761_v52  ;;  %v4622_v58 = vld [vmem:[%s5743_s7 + $0x518] sm:$0xf]  ;;  %v5321_v9 = vld [vmem:[%s5743_s7 + $0x538] sm:$0xf0]  ;;  %v5322_v52 = vld [vmem:[%s5743_s7 + $0x540] sm:$0xf0] }
 0x1ad   : > { %v4623_v48 = vor.u32 %v5321_v9, %v4622_v58  ;;  %v4732_v58 = vld [vmem:[%s5743_s7 + $0x614] sm:$0xf0] }
 0x1ae   : > { %v4735_v9 = vor.u32 %v5344_v44, %v4732_v58 }
 0x1af   : > { %2936 = vmatmul.bf16.gmra.mxu0 %v4595_v33  ;;  %v2629_v23 = vpop.f32.mrf.mxu2  ;;  %v4630_v33 = vld [vmem:[%s5743_s7 + $0x520] sm:$0xf]  ;;  %2817 = vmatmul.bf16.gmra.mxu3 %v4699_v53 }
 0x1b0   : > { %v2630_v1 = vadd.f32 %v2629_v23, %v2496_v57  ;;  %v4631_v23 = vor.u32 %v5322_v52, %v4630_v33  ;;  %v4652_v33 = vld [vmem:[%s5743_s7 + $0x57c] sm:$0xf0] }
 0x1b1   : > { %v2497_v20 = vpop.f32.mrf.mxu1  ;;  %v4658_v52 = vld [vmem:[%s5743_s7 + $0x560] sm:$0xf] }
 0x1b2   : > { %v2764_v55 = vadd.f32 %v6287_v21, %v2630_v1  ;;  %v2498_v6 = vadd.f32 %v2497_v20, %v5990_v3  ;;  %v6359_v1 = vpop.f32.mrf.mxu3 }
 0x1b4   : > { %v2899_v22 = vpop.f32.mrf.mxu0  ;;  %v6351_v10 = vadd.f32 %v2897_v45, %v2764_v55 }
 0x1b7   : > { %v2631_v21 = vpop.f32.mrf.mxu2 }
 0x1b8   : > { %v2632_v0 = vadd.f32 %v2631_v21, %v2498_v6  ;;  %v5325_v6 = vld [vmem:[%s5743_s7 + $0x55c] sm:$0xf]  ;;  %v5330_v21 = vld [vmem:[%s5743_s7 + $0x580] sm:$0xf0] }
 0x1b9   : > { %v2500_v57 = vpop.f32.mrf.mxu1 }
 0x1ba   : > { %v2766_v45 = vadd.f32 %v6293_v16, %v2632_v0  ;;  %v2501_v20 = vadd.f32 %v2500_v57, %v6006_v18  ;;  %v6365_v53 = vpop.f32.mrf.mxu3  ;;  %v4666_v0 = vld [vmem:[%s5743_s7 + $0x568] sm:$0xf] }
 0x1bc   : > { %v2902_v55 = vpop.f32.mrf.mxu0  ;;  %2539 = vmatmul.bf16.gmra.mxu1 %v4619_v47  ;;  %2673 = vmatmul.bf16.gmra.mxu2 %v4623_v48  ;;  %v6362_v3 = vadd.f32 %v2899_v22, %v2766_v45  ;;  %v5331_v47 = vld [vmem:[%s5743_s7 + $0x588] sm:$0xf0]  ;;  %v4659_v45 = vor.u32 %v5330_v21, %v4658_v52  ;;  %v4768_v52 = vld [vmem:[%s5743_s7 + $0x65c] sm:$0xf0] }
 0x1bf   : > { %2941 = vmatmul.bf16.gmra.mxu0 %v4631_v23  ;;  %v2634_v40 = vpop.f32.mrf.mxu2  ;;  %2822 = vmatmul.bf16.gmra.mxu3 %v4735_v9  ;;  %v4655_v23 = vor.u32 %v5325_v6, %v4652_v33  ;;  %v5353_v33 = vld [vmem:[%s5743_s7 + $0x63c] sm:$0xf] }
 0x1c0   : > { %v2635_v62 = vadd.f32 %v2634_v40, %v2501_v20  ;;  %v4667_v20 = vor.u32 %v5331_v47, %v4666_v0  ;;  %v4771_v21 = vor.u32 %v5353_v33, %v4768_v52  ;;  %v4688_v0 = vld [vmem:[%s5743_s7 + $0x5c4] sm:$0xf0] }
 0x1c1   : > { %v2502_v42 = vpop.f32.mrf.mxu1  ;;  %v4694_v47 = vld [vmem:[%s5743_s7 + $0x5a8] sm:$0xf] }
 0x1c2   : > { %v2769_v16 = vadd.f32 %v6307_v50, %v2635_v62  ;;  %v2503_v18 = vadd.f32 %v2502_v42, %v6017_v29  ;;  %v6379_v40 = vpop.f32.mrf.mxu3 }
 0x1c4   : > { %v2904_v11 = vpop.f32.mrf.mxu0  ;;  %v6371_v22 = vadd.f32 %v2902_v55, %v2769_v16 }
 0x1c7   : > { %v2636_v48 = vpop.f32.mrf.mxu2 }
 0x1c8   : > { %v2637_v57 = vadd.f32 %v2636_v48, %v2503_v18  ;;  %v5334_v18 = vld [vmem:[%s5743_s7 + $0x5a4] sm:$0xf]  ;;  %v5339_v48 = vld [vmem:[%s5743_s7 + $0x5c8] sm:$0xf0] }
 0x1c9   : > { %v2505_v50 = vpop.f32.mrf.mxu1 }
 0x1ca   : > { %v2771_v55 = vadd.f32 %v6313_v4, %v2637_v57  ;;  %v2506_v42 = vadd.f32 %v2505_v50, %v6039_v54  ;;  %v6385_v9 = vpop.f32.mrf.mxu3  ;;  %v4702_v57 = vld [vmem:[%s5743_s7 + $0x5b0] sm:$0xf] }
 0x1cc   : > { %v2907_v62 = vpop.f32.mrf.mxu0  ;;  %2544 = vmatmul.bf16.gmra.mxu1 %v4655_v23  ;;  %2678 = vmatmul.bf16.gmra.mxu2 %v4659_v45  ;;  %v6382_v29 = vadd.f32 %v2904_v11, %v2771_v55  ;;  %v5340_v23 = vld [vmem:[%s5743_s7 + $0x5d0] sm:$0xf0]  ;;  %v4695_v55 = vor.u32 %v5339_v48, %v4694_v47  ;;  %v5443_v48 = vld [vmem:[%s7040_s1 + $0x200] sm:$0xff] }
 0x1cd   : > { %3386 = vmatpush.bf16.msra.mxu0 %v5443_v48 }
 0x1cf   : > { %2946 = vmatmul.bf16.gmra.mxu0 %v4667_v20  ;;  %v2639_v16 = vpop.f32.mrf.mxu2  ;;  %2827 = vmatmul.bf16.gmra.mxu3 %v4771_v21  ;;  %v4691_v20 = vor.u32 %v5334_v18, %v4688_v0 }
 0x1d0   : > { %v2640_v44 = vadd.f32 %v2639_v16, %v2506_v42  ;;  %v4703_v42 = vor.u32 %v5340_v23, %v4702_v57  ;;  %v5343_v23 = vld [vmem:[%s5743_s7 + $0x5ec] sm:$0xf] }
 0x1d1   : > { %v2507_v58 = vpop.f32.mrf.mxu1 }
 0x1d2   : > { %v2774_v4 = vadd.f32 %v6327_v14, %v2640_v44  ;;  %v2508_v54 = vadd.f32 %v2507_v58, %v6050_v61  ;;  %v6399_v16 = vpop.f32.mrf.mxu3  ;;  %v5435_v61 = vld [vmem:[%s7040_s1 + $0x1c0] sm:$0xff] }
 0x1d3   : > { %3252 = vmatpush.bf16.msra.mxu3 %v5435_v61 }
 0x1d4   : > { %v2909_v6 = vpop.f32.mrf.mxu0  ;;  %v6391_v11 = vadd.f32 %v2907_v62, %v2774_v4  ;;  %v5427_v4 = vld [vmem:[%s7040_s1 + $0x180] sm:$0xff] }
 0x1d5   : > { %3118 = vmatpush.bf16.msra.mxu2 %v5427_v4 }
 0x1d7   : > { %v2641_v45 = vpop.f32.mrf.mxu2 }
 0x1d8   : > { %v2642_v50 = vadd.f32 %v2641_v45, %v2508_v54  ;;  %v4804_v54 = vld [vmem:[%s5743_s7 + $0x6a4] sm:$0xf0] }
 0x1d9   : > { %v2510_v14 = vpop.f32.mrf.mxu1 }
 0x1da   : > { %v2776_v44 = vadd.f32 %v6342_v39, %v2642_v50  ;;  %v5419_v39 = vld [vmem:[%s7040_s1 + $0x140] sm:$0xff]  ;;  %v2511_v33 = vadd.f32 %v2510_v14, %v6066_v31  ;;  %v4724_v50 = vld [vmem:[%s5743_s7 + $0x60c] sm:$0xf0] }
 0x1db   : > { %2984 = vmatpush.bf16.msra.mxu1 %v5419_v39  ;;  %v5362_v31 = vld [vmem:[%s5743_s7 + $0x684] sm:$0xf]  ;;  %v4727_v61 = vor.u32 %v5343_v23, %v4724_v50  ;;  %v5371_v50 = vld [vmem:[%s5743_s7 + $0x6cc] sm:$0xf] }
 0x1dc   : > { %v2912_v62 = vpop.f32.mrf.mxu0  ;;  %2549 = vmatmul.bf16.gmra.mxu1 %v4691_v20  ;;  %2683 = vmatmul.bf16.gmra.mxu2 %v4695_v55  ;;  %v6408_v58 = vadd.f32 %v2909_v6, %v2776_v44  ;;  %v6414_v6 = vpop.f32.mrf.mxu3  ;;  %v4807_v57 = vor.u32 %v5362_v31, %v4804_v54  ;;  %v4730_v20 = vld [vmem:[%s5743_s7 + $0x5f0] sm:$0xf]  ;;  %v5348_v55 = vld [vmem:[%s5743_s7 + $0x610] sm:$0xf0]  ;;  %v5349_v44 = vld [vmem:[%s5743_s7 + $0x618] sm:$0xf0] }
 0x1dd   : > { %v4731_v39 = vor.u32 %v5348_v55, %v4730_v20  ;;  %v4840_v20 = vld [vmem:[%s5743_s7 + $0x6ec] sm:$0xf0] }
 0x1de   : > { %v4843_v55 = vor.u32 %v5371_v50, %v4840_v20 }
 0x1df   : > { %2951 = vmatmul.bf16.gmra.mxu0 %v4703_v42  ;;  %v2644_v52 = vpop.f32.mrf.mxu2  ;;  %v4738_v42 = vld [vmem:[%s5743_s7 + $0x5f8] sm:$0xf]  ;;  %2832 = vmatmul.bf16.gmra.mxu3 %v4807_v57 }
 0x1e0   : > { %v2645_v21 = vadd.f32 %v2644_v52, %v2511_v33  ;;  %v4739_v52 = vor.u32 %v5349_v44, %v4738_v42  ;;  %v4760_v42 = vld [vmem:[%s5743_s7 + $0x654] sm:$0xf0] }
 0x1e1   : > { %v2512_v18 = vpop.f32.mrf.mxu1  ;;  %v4766_v44 = vld [vmem:[%s5743_s7 + $0x638] sm:$0xf] }
 0x1e2   : > { %v2779_v0 = vadd.f32 %v6359_v1, %v2645_v21  ;;  %v2513_v14 = vadd.f32 %v2512_v18, %v6074_v37 }
 0x1e4   : > { %v2914_v47 = vpop.f32.mrf.mxu0  ;;  %v6423_v45 = vadd.f32 %v2912_v62, %v2779_v0  ;;  %v6431_v21 = vpop.f32.mrf.mxu3 }
 0x1e7   : > { %v2646_v1 = vpop.f32.mrf.mxu2 }
 0x1e8   : > { %v2647_v4 = vadd.f32 %v2646_v1, %v2513_v14  ;;  %v5352_v14 = vld [vmem:[%s5743_s7 + $0x634] sm:$0xf]  ;;  %v5357_v1 = vld [vmem:[%s5743_s7 + $0x658] sm:$0xf0] }
 0x1e9   : > { %v2515_v33 = vpop.f32.mrf.mxu1 }
 0x1ea   : > { %v2781_v62 = vadd.f32 %v6365_v53, %v2647_v4  ;;  %v2516_v18 = vadd.f32 %v2515_v33, %v6090_v12  ;;  %v4774_v4 = vld [vmem:[%s5743_s7 + $0x640] sm:$0xf] }
 0x1ec   : > { %v2917_v0 = vpop.f32.mrf.mxu0  ;;  %2554 = vmatmul.bf16.gmra.mxu1 %v4727_v61  ;;  %2688 = vmatmul.bf16.gmra.mxu2 %v4731_v39  ;;  %v6434_v37 = vadd.f32 %v2914_v47, %v2781_v62  ;;  %v6437_v57 = vpop.f32.mrf.mxu3  ;;  %v5358_v61 = vld [vmem:[%s5743_s7 + $0x660] sm:$0xf0]  ;;  %v4767_v62 = vor.u32 %v5357_v1, %v4766_v44  ;;  %v3992_v44 = vld [vmem:[%s5743_s7 + $0x3c] sm:$0xf0] }
 0x1ef   : > { %2956 = vmatmul.bf16.gmra.mxu0 %v4739_v52  ;;  %v2649_v48 = vpop.f32.mrf.mxu2  ;;  %2837 = vmatmul.bf16.gmra.mxu3 %v4843_v55  ;;  %v4763_v52 = vor.u32 %v5352_v14, %v4760_v42  ;;  %v5157_v42 = vld [vmem:[%s5743_s7 + $0x1c] sm:$0xf] }
 0x1f0   : > { %v2650_v31 = vadd.f32 %v2649_v48, %v2516_v18  ;;  %v4775_v18 = vor.u32 %v5358_v61, %v4774_v4  ;;  %v3995_v1 = vor.u32 %v5157_v42, %v3992_v44  ;;  %v4796_v4 = vld [vmem:[%s5743_s7 + $0x69c] sm:$0xf0] }
 0x1f1   : > { %v2517_v54 = vpop.f32.mrf.mxu1  ;;  %v4802_v61 = vld [vmem:[%s5743_s7 + $0x680] sm:$0xf] }
 0x1f2   : > { %v2784_v53 = vadd.f32 %v6379_v40, %v2650_v31  ;;  %v2518_v12 = vadd.f32 %v2517_v54, %v6098_v27 }
 0x1f4   : > { %v2919_v23 = vpop.f32.mrf.mxu0  ;;  %v6443_v47 = vadd.f32 %v2917_v0, %v2784_v53  ;;  %v6451_v48 = vpop.f32.mrf.mxu3 }
 0x1f7   : > { %v2651_v39 = vpop.f32.mrf.mxu2 }
 0x1f8   : > { %v2652_v33 = vadd.f32 %v2651_v39, %v2518_v12  ;;  %v5361_v12 = vld [vmem:[%s5743_s7 + $0x67c] sm:$0xf]  ;;  %v5366_v39 = vld [vmem:[%s5743_s7 + $0x6a0] sm:$0xf0] }
 0x1f9   : > { %v2520_v40 = vpop.f32.mrf.mxu1 }
 0x1fa   : > { %v2786_v0 = vadd.f32 %v6385_v9, %v2652_v33  ;;  %v2521_v54 = vadd.f32 %v2520_v40, %v5933_v24  ;;  %v4810_v33 = vld [vmem:[%s5743_s7 + $0x688] sm:$0xf] }
 0x1fc   : > { %v2922_v31 = vpop.f32.mrf.mxu0  ;;  %2559 = vmatmul.bf16.gmra.mxu1 %v4763_v52  ;;  %2693 = vmatmul.bf16.gmra.mxu2 %v4767_v62  ;;  %v6454_v27 = vadd.f32 %v2919_v23, %v2786_v0  ;;  %v6457_v55 = vpop.f32.mrf.mxu3  ;;  %v5367_v52 = vld [vmem:[%s5743_s7 + $0x6a8] sm:$0xf0]  ;;  %v4803_v0 = vor.u32 %v5366_v39, %v4802_v61  ;;  %v4028_v61 = vld [vmem:[%s5743_s7 + $0x84] sm:$0xf0] }
 0x1ff   : > { %2961 = vmatmul.bf16.gmra.mxu0 %v4775_v18  ;;  %v2654_v53 = vpop.f32.mrf.mxu2  ;;  %3253 = vmatmul.bf16.vlgmr.msra.gmra.mxu3 %v3995_v1  ;;  %v4799_v18 = vor.u32 %v5361_v12, %v4796_v4  ;;  %v5166_v4 = vld [vmem:[%s5743_s7 + $0x64] sm:$0xf] }
 0x200   : > { %v2655_v50 = vadd.f32 %v2654_v53, %v2521_v54  ;;  %v4811_v54 = vor.u32 %v5367_v52, %v4810_v33  ;;  %v4031_v39 = vor.u32 %v5166_v4, %v4028_v61  ;;  %v4832_v33 = vld [vmem:[%s5743_s7 + $0x6e4] sm:$0xf0] }
 0x201   : > { %v2522_v20 = vpop.f32.mrf.mxu1  ;;  %v4838_v52 = vld [vmem:[%s5743_s7 + $0x6c8] sm:$0xf] }
 0x202   : > { %v2789_v9 = vadd.f32 %v6399_v16, %v2655_v50  ;;  %v2523_v24 = vadd.f32 %v2522_v20, %v5953_v38 }
 0x204   : > { %v2924_v14 = vpop.f32.mrf.mxu0  ;;  %v6463_v23 = vadd.f32 %v2922_v31, %v2789_v9  ;;  %v6471_v53 = vpop.f32.mrf.mxu3 }
 0x207   : > { %v2656_v62 = vpop.f32.mrf.mxu2 }
 0x208   : > { %v2657_v40 = vadd.f32 %v2656_v62, %v2523_v24  ;;  %v5370_v24 = vld [vmem:[%s5743_s7 + $0x6c4] sm:$0xf]  ;;  %v5375_v62 = vld [vmem:[%s5743_s7 + $0x6e8] sm:$0xf0] }
 0x209   : > { %v2525_v16 = vpop.f32.mrf.mxu1 }
 0x20a   : > { %v2791_v31 = vadd.f32 %v6414_v6, %v2657_v40  ;;  %v2526_v20 = vadd.f32 %v2525_v16, %v5964_v46  ;;  %v4846_v40 = vld [vmem:[%s5743_s7 + $0x6d0] sm:$0xf] }
 0x20c   : > { %v2927_v50 = vpop.f32.mrf.mxu0  ;;  %2564 = vmatmul.bf16.gmra.mxu1 %v4799_v18  ;;  %2698 = vmatmul.bf16.gmra.mxu2 %v4803_v0  ;;  %v6474_v38 = vadd.f32 %v2924_v14, %v2791_v31  ;;  %v6477_v1 = vpop.f32.mrf.mxu3  ;;  %v5376_v18 = vld [vmem:[%s5743_s7 + $0x6f0] sm:$0xf0]  ;;  %v4839_v31 = vor.u32 %v5375_v62, %v4838_v52  ;;  %v4064_v52 = vld [vmem:[%s5743_s7 + $0xcc] sm:$0xf0] }
 0x20f   : > { %2966 = vmatmul.bf16.gmra.mxu0 %v4811_v54  ;;  %v2659_v9 = vpop.f32.mrf.mxu2  ;;  %3258 = vmatmul.bf16.gmra.mxu3 %v4031_v39  ;;  %v4835_v54 = vor.u32 %v5370_v24, %v4832_v33  ;;  %v5175_v33 = vld [vmem:[%s5743_s7 + $0xac] sm:$0xf] }
 0x210   : > { %v2660_v42 = vadd.f32 %v2659_v9, %v2526_v20  ;;  %v4847_v20 = vor.u32 %v5376_v18, %v4846_v40  ;;  %v4067_v62 = vor.u32 %v5175_v33, %v4064_v52  ;;  %v3984_v40 = vld [vmem:[%s5743_s7 + $0x34] sm:$0xf0] }
 0x211   : > { %v2527_v44 = vpop.f32.mrf.mxu1  ;;  %v3990_v18 = vld [vmem:[%s5743_s7 + $0x18] sm:$0xf] }
 0x212   : > { %v2794_v6 = vadd.f32 %v6431_v21, %v2660_v42  ;;  %v2528_v46 = vadd.f32 %v2527_v44, %v5980_v59 }
 0x214   : > { %v2929_v12 = vpop.f32.mrf.mxu0  ;;  %v6483_v14 = vadd.f32 %v2927_v50, %v2794_v6  ;;  %v6491_v9 = vpop.f32.mrf.mxu3 }
 0x217   : > { %v2661_v0 = vpop.f32.mrf.mxu2 }
 0x218   : > { %v2662_v16 = vadd.f32 %v2661_v0, %v2528_v46  ;;  %v5156_v46 = vld [vmem:[%s5743_s7 + $0x14] sm:$0xf]  ;;  %v5161_v0 = vld [vmem:[%s5743_s7 + $0x38] sm:$0xf0] }
 0x219   : > { %v2530_v21 = vpop.f32.mrf.mxu1 }
 0x21a   : > { %v2796_v50 = vadd.f32 %v6437_v57, %v2662_v16  ;;  %v2531_v44 = vadd.f32 %v2530_v21, %v5988_v2  ;;  %v3998_v16 = vld [vmem:[%s5743_s7 + $0x20] sm:$0xf] }
 0x21c   : > { %v2932_v42 = vpop.f32.mrf.mxu0  ;;  %2569 = vmatmul.bf16.gmra.mxu1 %v4835_v54  ;;  %2703 = vmatmul.bf16.gmra.mxu2 %v4839_v31  ;;  %v6494_v59 = vadd.f32 %v2929_v12, %v2796_v50  ;;  %v6497_v39 = vpop.f32.mrf.mxu3  ;;  %v5162_v54 = vld [vmem:[%s5743_s7 + $0x40] sm:$0xf0]  ;;  %v3991_v50 = vor.u32 %v5161_v0, %v3990_v18  ;;  %v4100_v18 = vld [vmem:[%s5743_s7 + $0x114] sm:$0xf0] }
 0x21f   : > { %2971 = vmatmul.bf16.gmra.mxu0 %v4847_v20  ;;  %v2664_v6 = vpop.f32.mrf.mxu2  ;;  %3263 = vmatmul.bf16.gmra.mxu3 %v4067_v62  ;;  %v3987_v20 = vor.u32 %v5156_v46, %v3984_v40  ;;  %v5184_v40 = vld [vmem:[%s5743_s7 + $0xf4] sm:$0xf] }
 0x220   : > { %v2665_v4 = vadd.f32 %v2664_v6, %v2531_v44  ;;  %v3999_v44 = vor.u32 %v5162_v54, %v3998_v16  ;;  %v4103_v0 = vor.u32 %v5184_v40, %v4100_v18  ;;  %v4020_v16 = vld [vmem:[%s5743_s7 + $0x7c] sm:$0xf0] }
 0x221   : > { %v2532_v61 = vpop.f32.mrf.mxu1  ;;  %v4026_v54 = vld [vmem:[%s5743_s7 + $0x60] sm:$0xf] }
 0x222   : > { %v2799_v57 = vadd.f32 %v6451_v48, %v2665_v4  ;;  %v2533_v2 = vadd.f32 %v2532_v61, %v6004_v15 }
 0x224   : > { %v2934_v24 = vpop.f32.mrf.mxu0  ;;  %v6503_v12 = vadd.f32 %v2932_v42, %v2799_v57  ;;  %v6511_v6 = vpop.f32.mrf.mxu3 }
 0x227   : > { %v2666_v31 = vpop.f32.mrf.mxu2 }
 0x228   : > { %v2667_v21 = vadd.f32 %v2666_v31, %v2533_v2  ;;  %v5165_v2 = vld [vmem:[%s5743_s7 + $0x5c] sm:$0xf]  ;;  %v5170_v31 = vld [vmem:[%s5743_s7 + $0x80] sm:$0xf0] }
 0x229   : > { %v2535_v48 = vpop.f32.mrf.mxu1 }
 0x22a   : > { %v2801_v42 = vadd.f32 %v6457_v55, %v2667_v21  ;;  %v2536_v61 = vadd.f32 %v2535_v48, %v6012_v25  ;;  %v4034_v21 = vld [vmem:[%s5743_s7 + $0x68] sm:$0xf] }
 0x22c   : > { %v2937_v4 = vpop.f32.mrf.mxu0  ;;  %2985 = vmatmul.bf16.vlgmr.msra.gmra.mxu1 %v3987_v20  ;;  %3119 = vmatmul.bf16.vlgmr.msra.gmra.mxu2 %v3991_v50  ;;  %v6514_v15 = vadd.f32 %v2934_v24, %v2801_v42  ;;  %v6517_v62 = vpop.f32.mrf.mxu3  ;;  %v5171_v20 = vld [vmem:[%s5743_s7 + $0x88] sm:$0xf0]  ;;  %v4027_v42 = vor.u32 %v5170_v31, %v4026_v54  ;;  %v4136_v54 = vld [vmem:[%s5743_s7 + $0x15c] sm:$0xf0] }
 0x22f   : > { %3387 = vmatmul.bf16.vlgmr.msra.gmra.mxu0 %v3999_v44  ;;  %v2669_v57 = vpop.f32.mrf.mxu2  ;;  %3268 = vmatmul.bf16.gmra.mxu3 %v4103_v0  ;;  %v4023_v44 = vor.u32 %v5165_v2, %v4020_v16  ;;  %v5193_v16 = vld [vmem:[%s5743_s7 + $0x13c] sm:$0xf] }
 0x230   : > { %v2670_v33 = vadd.f32 %v2669_v57, %v2536_v61  ;;  %v4035_v61 = vor.u32 %v5171_v20, %v4034_v21  ;;  %v4139_v31 = vor.u32 %v5193_v16, %v4136_v54  ;;  %v4056_v21 = vld [vmem:[%s5743_s7 + $0xc4] sm:$0xf0] }
 0x231   : > { %v2537_v52 = vpop.f32.mrf.mxu1  ;;  %v4062_v20 = vld [vmem:[%s5743_s7 + $0xa8] sm:$0xf] }
 0x232   : > { %v2804_v55 = vadd.f32 %v6471_v53, %v2670_v33  ;;  %v2538_v25 = vadd.f32 %v2537_v52, %v6037_v51 }
 0x234   : > { %v2939_v46 = vpop.f32.mrf.mxu0  ;;  %v6523_v24 = vadd.f32 %v2937_v4, %v2804_v55  ;;  %v6531_v57 = vpop.f32.mrf.mxu3 }
 0x237   : > { %v2671_v50 = vpop.f32.mrf.mxu2 }
 0x238   : > { %v2672_v48 = vadd.f32 %v2671_v50, %v2538_v25  ;;  %v5174_v25 = vld [vmem:[%s5743_s7 + $0xa4] sm:$0xf]  ;;  %v5179_v50 = vld [vmem:[%s5743_s7 + $0xc8] sm:$0xf0] }
 0x239   : > { %v2540_v53 = vpop.f32.mrf.mxu1 }
 0x23a   : > { %v2806_v4 = vadd.f32 %v6477_v1, %v2672_v48  ;;  %v2541_v52 = vadd.f32 %v2540_v53, %v6048_v60  ;;  %v4070_v48 = vld [vmem:[%s5743_s7 + $0xb0] sm:$0xf] }
 0x23c   : > { %v2942_v33 = vpop.f32.mrf.mxu0  ;;  %2990 = vmatmul.bf16.gmra.mxu1 %v4023_v44  ;;  %3124 = vmatmul.bf16.gmra.mxu2 %v4027_v42  ;;  %v6534_v51 = vadd.f32 %v2939_v46, %v2806_v4  ;;  %v6537_v0 = vpop.f32.mrf.mxu3  ;;  %v5180_v44 = vld [vmem:[%s5743_s7 + $0xd0] sm:$0xf0]  ;;  %v4063_v4 = vor.u32 %v5179_v50, %v4062_v20  ;;  %v4172_v20 = vld [vmem:[%s5743_s7 + $0x1a4] sm:$0xf0] }
 0x23f   : > { %3392 = vmatmul.bf16.gmra.mxu0 %v4035_v61  ;;  %v2674_v55 = vpop.f32.mrf.mxu2  ;;  %3273 = vmatmul.bf16.gmra.mxu3 %v4139_v31  ;;  %v4059_v61 = vor.u32 %v5174_v25, %v4056_v21  ;;  %v5202_v21 = vld [vmem:[%s5743_s7 + $0x184] sm:$0xf] }
 0x240   : > { %v2675_v40 = vadd.f32 %v2674_v55, %v2541_v52  ;;  %v4071_v52 = vor.u32 %v5180_v44, %v4070_v48  ;;  %v4175_v50 = vor.u32 %v5202_v21, %v4172_v20  ;;  %v4092_v48 = vld [vmem:[%s5743_s7 + $0x10c] sm:$0xf0]  ;;  %v7059_v21 = vld [vmem:[#allocation12_spill] sm:$0xff] }
 0x241   : > { %v2542_v18 = vpop.f32.mrf.mxu1  ;;  %v4098_v44 = vld [vmem:[%s5743_s7 + $0xf0] sm:$0xf] }
 0x242   : > { %v2809_v1 = vadd.f32 %v6491_v9, %v2675_v40  ;;  %v2543_v60 = vadd.f32 %v2542_v18, %v6064_v17 }
 0x244   : > { %v2944_v2 = vpop.f32.mrf.mxu0  ;;  %v6543_v46 = vadd.f32 %v2942_v33, %v2809_v1  ;;  %v6551_v55 = vpop.f32.mrf.mxu3 }
 0x247   : > { %v2676_v42 = vpop.f32.mrf.mxu2 }
 0x248   : > { %v2677_v53 = vadd.f32 %v2676_v42, %v2543_v60  ;;  %v5183_v60 = vld [vmem:[%s5743_s7 + $0xec] sm:$0xf]  ;;  %v5188_v42 = vld [vmem:[%s5743_s7 + $0x110] sm:$0xf0] }
 0x249   : > { %v2545_v9 = vpop.f32.mrf.mxu1 }
 0x24a   : > { %v2811_v33 = vadd.f32 %v6497_v39, %v2677_v53  ;;  %v2546_v18 = vadd.f32 %v2545_v9, %v6072_v36  ;;  %v7057_v36 = vld [vmem:[#allocation11_spill] sm:$0xff] }
 0x24c   : > { %v2947_v40 = vpop.f32.mrf.mxu0  ;;  %2995 = vmatmul.bf16.gmra.mxu1 %v4059_v61  ;;  %3129 = vmatmul.bf16.gmra.mxu2 %v4063_v4  ;;  %v6554_v17 = vadd.f32 %v2944_v2, %v2811_v33  ;;  %v6557_v31 = vpop.f32.mrf.mxu3  ;;  %v4106_v61 = vld [vmem:[%s5743_s7 + $0xf8] sm:$0xf]  ;;  %v5189_v4 = vld [vmem:[%s5743_s7 + $0x118] sm:$0xf0]  ;;  %v4095_v33 = vor.u32 %v5183_v60, %v4092_v48 }
 0x24f   : > { %3397 = vmatmul.bf16.gmra.mxu0 %v4071_v52  ;;  %v2679_v1 = vpop.f32.mrf.mxu2  ;;  %3278 = vmatmul.bf16.gmra.mxu3 %v4175_v50 }
 0x250   : > { %v2680_v16 = vadd.f32 %v2679_v1, %v2546_v18  ;;  %v4099_v18 = vor.u32 %v5188_v42, %v4098_v44  ;;  %v4107_v1 = vor.u32 %v5189_v4, %v4106_v61  ;;  %v5192_v4 = vld [vmem:[%s5743_s7 + $0x134] sm:$0xf] }
 0x251   : > { %v2547_v54 = vpop.f32.mrf.mxu1 }
 0x252   : > { %v2814_v39 = vadd.f32 %v6511_v6, %v2680_v16  ;;  %v2548_v53 = vadd.f32 %v2547_v54, %v7057_v36  ;;  %v5211_v36 = vld [vmem:[%s5743_s7 + $0x1cc] sm:$0xf] }
 0x254   : > { %v2949_v25 = vpop.f32.mrf.mxu0  ;;  %v6563_v2 = vadd.f32 %v2947_v40, %v2814_v39  ;;  %v6571_v16 = vpop.f32.mrf.mxu3 }
 0x256   : > { %7056 = vst [vmem:[#allocation16_spill] sm:$0xff] %v6563_v2 }
 0x257   : > { %v2681_v9 = vpop.f32.mrf.mxu2 }
 0x258   : > { %v2682_v52 = vadd.f32 %v2681_v9, %v2548_v53  ;;  %v4208_v53 = vld [vmem:[%s5743_s7 + $0x1ec] sm:$0xf0]  ;;  %v4128_v9 = vld [vmem:[%s5743_s7 + $0x154] sm:$0xf0] }
 0x259   : > { %v2550_v6 = vpop.f32.mrf.mxu1  ;;  %v4211_v61 = vor.u32 %v5211_v36, %v4208_v53  ;;  %v7063_v53 = vld [vmem:[#allocation3_spill] sm:$0xff] }
 0x25a   : > { %v2816_v40 = vadd.f32 %v6517_v62, %v2682_v52  ;;  %v2551_v20 = vadd.f32 %v2550_v6, %v7059_v21  ;;  %v4134_v52 = vld [vmem:[%s5743_s7 + $0x138] sm:$0xf] }
 0x25c   : > { %v2952_v39 = vpop.f32.mrf.mxu0  ;;  %3000 = vmatmul.bf16.gmra.mxu1 %v4095_v33  ;;  %3134 = vmatmul.bf16.gmra.mxu2 %v4099_v18  ;;  %v6574_v54 = vadd.f32 %v2949_v25, %v2816_v40  ;;  %v6577_v44 = vpop.f32.mrf.mxu3  ;;  %v5197_v33 = vld [vmem:[%s5743_s7 + $0x158] sm:$0xf0]  ;;  %v7061_v18 = vld [vmem:[#allocation13_spill] sm:$0xff]  ;;  %v5198_v40 = vld [vmem:[%s5743_s7 + $0x160] sm:$0xf0] }
 0x25e   : > { %7058 = vst [vmem:[#allocation11_spill] sm:$0xff] %v6574_v54  ;;  %v4135_v54 = vor.u32 %v5197_v33, %v4134_v52 }
 0x25f   : > { %3402 = vmatmul.bf16.gmra.mxu0 %v4107_v1  ;;  %v2684_v50 = vpop.f32.mrf.mxu2  ;;  %v4142_v1 = vld [vmem:[%s5743_s7 + $0x140] sm:$0xf]  ;;  %3283 = vmatmul.bf16.gmra.mxu3 %v4211_v61 }
 0x260   : > { %v2685_v60 = vadd.f32 %v2684_v50, %v2551_v20  ;;  %v4131_v50 = vor.u32 %v5192_v4, %v4128_v9 }
 0x261   : > { %v2552_v48 = vpop.f32.mrf.mxu1 }
 0x262   : > { %v2819_v62 = vadd.f32 %v6531_v57, %v2685_v60  ;;  %v2553_v6 = vadd.f32 %v2552_v48, %v7061_v18  ;;  %v4143_v60 = vor.u32 %v5198_v40, %v4142_v1  ;;  %v4244_v1 = vld [vmem:[%s5743_s7 + $0x234] sm:$0xf0]  ;;  %v5201_v40 = vld [vmem:[%s5743_s7 + $0x17c] sm:$0xf] }
 0x264   : > { %v2954_v42 = vpop.f32.mrf.mxu0  ;;  %v6583_v25 = vadd.f32 %v2952_v39, %v2819_v62  ;;  %v6591_v36 = vpop.f32.mrf.mxu3 }
 0x266   : > { %7060 = vst [vmem:[#allocation12_spill] sm:$0xff] %v6583_v25 }
 0x267   : > { %v2686_v21 = vpop.f32.mrf.mxu2 }
 0x268   : > { %v2687_v20 = vadd.f32 %v2686_v21, %v2553_v6  ;;  %v5220_v6 = vld [vmem:[%s5743_s7 + $0x214] sm:$0xf]  ;;  %v4164_v21 = vld [vmem:[%s5743_s7 + $0x19c] sm:$0xf0] }
 0x269   : > { %v2555_v57 = vpop.f32.mrf.mxu1 }
 0x26a   : > { %v2821_v39 = vadd.f32 %v6537_v0, %v2687_v20  ;;  %v2556_v61 = vadd.f32 %v2555_v57, %v7063_v53  ;;  %v4170_v20 = vld [vmem:[%s5743_s7 + $0x180] sm:$0xf]  ;;  %v7065_v57 = vld [vmem:[#allocation4_spill] sm:$0xff] }
 0x26b   : > { %v5207_v53 = vld [vmem:[%s5743_s7 + $0x1a8] sm:$0xf0] }
 0x26c   : > { %v2957_v62 = vpop.f32.mrf.mxu0  ;;  %3005 = vmatmul.bf16.gmra.mxu1 %v4131_v50  ;;  %3139 = vmatmul.bf16.gmra.mxu2 %v4135_v54  ;;  %v6594_v48 = vadd.f32 %v2954_v42, %v2821_v39  ;;  %v6597_v33 = vpop.f32.mrf.mxu3  ;;  %v4247_v54 = vor.u32 %v5220_v6, %v4244_v1  ;;  %v5206_v50 = vld [vmem:[%s5743_s7 + $0x1a0] sm:$0xf0]  ;;  %v4178_v39 = vld [vmem:[%s5743_s7 + $0x188] sm:$0xf]  ;;  %v7067_v1 = vld [vmem:[#allocation5_spill] sm:$0xff] }
 0x26d   : > { %v4171_v25 = vor.u32 %v5206_v50, %v4170_v20 }
 0x26e   : > { %7062 = vst [vmem:[#allocation13_spill] sm:$0xff] %v6594_v48  ;;  %v4167_v48 = vor.u32 %v5201_v40, %v4164_v21 }
 0x26f   : > { %3407 = vmatmul.bf16.gmra.mxu0 %v4143_v60  ;;  %v2689_v4 = vpop.f32.mrf.mxu2  ;;  %3288 = vmatmul.bf16.gmra.mxu3 %v4247_v54 }
 0x270   : > { %v2690_v9 = vadd.f32 %v2689_v4, %v2556_v61 }
 0x271   : > { %v2557_v52 = vpop.f32.mrf.mxu1 }
 0x272   : > { %v2824_v0 = vadd.f32 %v6551_v55, %v2690_v9  ;;  %v2558_v60 = vadd.f32 %v2557_v52, %v7065_v57  ;;  %v4179_v9 = vor.u32 %v5207_v53, %v4178_v39  ;;  %v5210_v39 = vld [vmem:[%s5743_s7 + $0x1c4] sm:$0xf]  ;;  %v4200_v53 = vld [vmem:[%s5743_s7 + $0x1e4] sm:$0xf0] }
 0x274   : > { %v2959_v18 = vpop.f32.mrf.mxu0  ;;  %v6603_v42 = vadd.f32 %v2957_v62, %v2824_v0  ;;  %v6611_v6 = vpop.f32.mrf.mxu3 }
 0x276   : > { %7064 = vst [vmem:[#allocation3_spill] sm:$0xff] %v6603_v42 }
 0x277   : > { %v2691_v61 = vpop.f32.mrf.mxu2 }
 0x278   : > { %v2692_v4 = vadd.f32 %v2691_v61, %v2558_v60  ;;  %v4280_v60 = vld [vmem:[%s5743_s7 + $0x27c] sm:$0xf0]  ;;  %v4206_v61 = vld [vmem:[%s5743_s7 + $0x1c8] sm:$0xf] }
 0x279   : > { %v2560_v55 = vpop.f32.mrf.mxu1 }
 0x27a   : > { %v2826_v62 = vadd.f32 %v6557_v31, %v2692_v4  ;;  %v2561_v54 = vadd.f32 %v2560_v55, %v7067_v1  ;;  %v5215_v4 = vld [vmem:[%s5743_s7 + $0x1e8] sm:$0xf0]  ;;  %v7069_v55 = vld [vmem:[#allocation6_spill] sm:$0xff]  ;;  %v5216_v1 = vld [vmem:[%s5743_s7 + $0x1f0] sm:$0xf0] }
 0x27b   : > { %v4207_v42 = vor.u32 %v5215_v4, %v4206_v61 }
 0x27c   : > { %v2962_v0 = vpop.f32.mrf.mxu0  ;;  %3010 = vmatmul.bf16.gmra.mxu1 %v4167_v48  ;;  %3144 = vmatmul.bf16.gmra.mxu2 %v4171_v25  ;;  %v6614_v52 = vadd.f32 %v2959_v18, %v2826_v62  ;;  %v6617_v50 = vpop.f32.mrf.mxu3  ;;  %v5229_v48 = vld [vmem:[%s5743_s7 + $0x25c] sm:$0xf]  ;;  %v4214_v62 = vld [vmem:[%s5743_s7 + $0x1d0] sm:$0xf] }
 0x27d   : > { %v4283_v25 = vor.u32 %v5229_v48, %v4280_v60  ;;  %v7071_v60 = vld [vmem:[#allocation7_spill] sm:$0xff] }
 0x27e   : > { %7066 = vst [vmem:[#allocation4_spill] sm:$0xff] %v6614_v52  ;;  %v4203_v52 = vor.u32 %v5210_v39, %v4200_v53 }
 0x27f   : > { %3412 = vmatmul.bf16.gmra.mxu0 %v4179_v9  ;;  %v2694_v40 = vpop.f32.mrf.mxu2  ;;  %3293 = vmatmul.bf16.gmra.mxu3 %v4283_v25 }
 0x280   : > { %v2695_v21 = vadd.f32 %v2694_v40, %v2561_v54 }
 0x281   : > { %v2562_v20 = vpop.f32.mrf.mxu1 }
 0x282   : > { %v2829_v31 = vadd.f32 %v6571_v16, %v2695_v21  ;;  %v2563_v9 = vadd.f32 %v2562_v20, %v7069_v55  ;;  %v4215_v21 = vor.u32 %v5216_v1, %v4214_v62  ;;  %v4236_v1 = vld [vmem:[%s5743_s7 + $0x22c] sm:$0xf0] }
 0x284   : > { %v2964_v57 = vpop.f32.mrf.mxu0  ;;  %v6623_v18 = vadd.f32 %v2962_v0, %v2829_v31  ;;  %v6631_v48 = vpop.f32.mrf.mxu3 }
 0x286   : > { %7068 = vst [vmem:[#allocation5_spill] sm:$0xff] %v6623_v18 }
 0x287   : > { %v2696_v54 = vpop.f32.mrf.mxu2 }
 0x288   : > { %v2697_v40 = vadd.f32 %v2696_v54, %v2563_v9  ;;  %v4316_v9 = vld [vmem:[%s5743_s7 + $0x2c4] sm:$0xf0]  ;;  %v4242_v54 = vld [vmem:[%s5743_s7 + $0x210] sm:$0xf] }
 0x289   : > { %v2565_v16 = vpop.f32.mrf.mxu1 }
 0x28a   : > { %v2831_v0 = vadd.f32 %v6577_v44, %v2697_v40  ;;  %v2566_v25 = vadd.f32 %v2565_v16, %v7071_v60  ;;  %v5224_v40 = vld [vmem:[%s5743_s7 + $0x230] sm:$0xf0]  ;;  %v7073_v16 = vld [vmem:[#allocation8_spill] sm:$0xff]  ;;  %v5225_v60 = vld [vmem:[%s5743_s7 + $0x238] sm:$0xf0] }
 0x28b   : > { %v4243_v18 = vor.u32 %v5224_v40, %v4242_v54 }
 0x28c   : > { %v2967_v31 = vpop.f32.mrf.mxu0  ;;  %3015 = vmatmul.bf16.gmra.mxu1 %v4203_v52  ;;  %3149 = vmatmul.bf16.gmra.mxu2 %v4207_v42  ;;  %v6634_v20 = vadd.f32 %v2964_v57, %v2831_v0  ;;  %v6637_v4 = vpop.f32.mrf.mxu3  ;;  %v5238_v52 = vld [vmem:[%s5743_s7 + $0x2a4] sm:$0xf]  ;;  %v5219_v42 = vld [vmem:[%s5743_s7 + $0x20c] sm:$0xf]  ;;  %v4250_v0 = vld [vmem:[%s5743_s7 + $0x218] sm:$0xf] }
 0x28d   : > { %v4319_v62 = vor.u32 %v5238_v52, %v4316_v9  ;;  %v7075_v52 = vld [vmem:[#allocation9_spill] sm:$0xff] }
 0x28e   : > { %7070 = vst [vmem:[#allocation6_spill] sm:$0xff] %v6634_v20  ;;  %v4239_v20 = vor.u32 %v5219_v42, %v4236_v1 }
 0x28f   : > { %3417 = vmatmul.bf16.gmra.mxu0 %v4215_v21  ;;  %v2699_v39 = vpop.f32.mrf.mxu2  ;;  %3298 = vmatmul.bf16.gmra.mxu3 %v4319_v62 }
 0x290   : > { %v2700_v53 = vadd.f32 %v2699_v39, %v2566_v25 }
 0x291   : > { %v2567_v61 = vpop.f32.mrf.mxu1 }
 0x292   : > { %v2834_v44 = vadd.f32 %v6591_v36, %v2700_v53  ;;  %v2568_v21 = vadd.f32 %v2567_v61, %v7073_v16  ;;  %v4251_v53 = vor.u32 %v5225_v60, %v4250_v0  ;;  %v4352_v16 = vld [vmem:[%s5743_s7 + $0x30c] sm:$0xf0]  ;;  %v4272_v0 = vld [vmem:[%s5743_s7 + $0x274] sm:$0xf0] }
 0x293   : > { %v4278_v60 = vld [vmem:[%s5743_s7 + $0x258] sm:$0xf] }
 0x294   : > { %v2969_v55 = vpop.f32.mrf.mxu0  ;;  %v6643_v57 = vadd.f32 %v2967_v31, %v2834_v44  ;;  %v6651_v2 = vpop.f32.mrf.mxu3 }
 0x296   : > { %7072 = vst [vmem:[#allocation7_spill] sm:$0xff] %v6643_v57 }
 0x297   : > { %v2701_v25 = vpop.f32.mrf.mxu2 }
 0x298   : > { %v2702_v39 = vadd.f32 %v2701_v25, %v2568_v21  ;;  %v5233_v25 = vld [vmem:[%s5743_s7 + $0x278] sm:$0xf0] }
 0x299   : > { %v2570_v36 = vpop.f32.mrf.mxu1 }
 0x29a   : > { %v2836_v31 = vadd.f32 %v6597_v33, %v2702_v39  ;;  %v2571_v9 = vadd.f32 %v2570_v36, %v7075_v52  ;;  %v7077_v39 = vld [vmem:[#allocation10_spill] sm:$0xff] }
 0x29c   : > { %v2972_v44 = vpop.f32.mrf.mxu0  ;;  %3020 = vmatmul.bf16.gmra.mxu1 %v4239_v20  ;;  %3154 = vmatmul.bf16.gmra.mxu2 %v4243_v18  ;;  %v6654_v61 = vadd.f32 %v2969_v55, %v2836_v31  ;;  %v6657_v54 = vpop.f32.mrf.mxu3  ;;  %v5247_v20 = vld [vmem:[%s5743_s7 + $0x2ec] sm:$0xf]  ;;  %v5228_v18 = vld [vmem:[%s5743_s7 + $0x254] sm:$0xf]  ;;  %v5234_v31 = vld [vmem:[%s5743_s7 + $0x280] sm:$0xf0] }
 0x29d   : > { %v4355_v21 = vor.u32 %v5247_v20, %v4352_v16 }
 0x29e   : > { %7074 = vst [vmem:[#allocation8_spill] sm:$0xff] %v6654_v61  ;;  %v4279_v61 = vor.u32 %v5233_v25, %v4278_v60  ;;  %v4388_v25 = vld [vmem:[%s5743_s7 + $0x354] sm:$0xf0] }
 0x29f   : > { %3422 = vmatmul.bf16.gmra.mxu0 %v4251_v53  ;;  %v2704_v42 = vpop.f32.mrf.mxu2  ;;  %v4286_v53 = vld [vmem:[%s5743_s7 + $0x260] sm:$0xf]  ;;  %3303 = vmatmul.bf16.gmra.mxu3 %v4355_v21 }
 0x2a0   : > { %v2705_v62 = vadd.f32 %v2704_v42, %v2571_v9  ;;  %v4275_v42 = vor.u32 %v5228_v18, %v4272_v0 }
 0x2a1   : > { %v2572_v1 = vpop.f32.mrf.mxu1 }
 0x2a2   : > { %v2839_v33 = vadd.f32 %v6611_v6, %v2705_v62  ;;  %v2573_v36 = vadd.f32 %v2572_v1, %v7077_v39  ;;  %v4287_v62 = vor.u32 %v5234_v31, %v4286_v53  ;;  %v4308_v53 = vld [vmem:[%s5743_s7 + $0x2bc] sm:$0xf0]  ;;  %v5242_v31 = vld [vmem:[%s5743_s7 + $0x2c0] sm:$0xf0] }
 0x2a4   : > { %v2974_v40 = vpop.f32.mrf.mxu0  ;;  %v6663_v55 = vadd.f32 %v2972_v44, %v2839_v33  ;;  %v6671_v57 = vpop.f32.mrf.mxu3 }
 0x2a6   : > { %7076 = vst [vmem:[#allocation9_spill] sm:$0xff] %v6663_v55 }
 0x2a7   : > { %v2706_v52 = vpop.f32.mrf.mxu2 }
 0x2a8   : > { %v2707_v9 = vadd.f32 %v2706_v52, %v2573_v36  ;;  %v5237_v36 = vld [vmem:[%s5743_s7 + $0x29c] sm:$0xf] }
 0x2a9   : > { %v2986_v6 = vpop.f32.mrf.mxu1  ;;  %v7079_v52 = vld [vmem:[#allocation14_spill] sm:$0xff] }
 0x2aa   : > { %v2841_v44 = vadd.f32 %v6617_v50, %v2707_v9  ;;  %v2987_v20 = vadd.f32 %v2986_v6, %v6135_v13  ;;  %v5256_v50 = vld [vmem:[%s5743_s7 + $0x334] sm:$0xf]  ;;  %v5243_v13 = vld [vmem:[%s5743_s7 + $0x2c8] sm:$0xf0] }
 0x2ac   : > { %v3388_v33 = vpop.f32.mrf.mxu0  ;;  %3025 = vmatmul.bf16.gmra.mxu1 %v4275_v42  ;;  %3159 = vmatmul.bf16.gmra.mxu2 %v4279_v61  ;;  %v6674_v1 = vadd.f32 %v2974_v40, %v2841_v44  ;;  %v6677_v0 = vpop.f32.mrf.mxu3  ;;  %v4391_v61 = vor.u32 %v5256_v50, %v4388_v25  ;;  %v4314_v40 = vld [vmem:[%s5743_s7 + $0x2a0] sm:$0xf]  ;;  %v4322_v42 = vld [vmem:[%s5743_s7 + $0x2a8] sm:$0xf] }
 0x2ad   : > { %v6692_v44 = vld [vmem:[%s7041_s2] ss:$0 sm:$0xff]  ;;  %v4323_v50 = vor.u32 %v5243_v13, %v4322_v42 }
 0x2ae   : > { %7078 = vst [vmem:[#allocation10_spill] sm:$0xff] %v6674_v1  ;;  %v4424_v42 = vld [vmem:[%s5743_s7 + $0x39c] sm:$0xf0] }
 0x2af   : > { %3427 = vmatmul.bf16.gmra.mxu0 %v4287_v62  ;;  %v3120_v16 = vpop.f32.mrf.mxu2  ;;  %3308 = vmatmul.bf16.gmra.mxu3 %v4391_v61 }
 0x2b0   : > { %v3121_v18 = vadd.f32 %v3120_v16, %v2987_v20  ;;  %v4315_v16 = vor.u32 %v5242_v31, %v4314_v40 }
 0x2b1   : > { %v2988_v21 = vpop.f32.mrf.mxu1 }
 0x2b2   : > { %v3255_v39 = vadd.f32 %v6631_v48, %v3121_v18  ;;  %v2989_v9 = vadd.f32 %v2988_v21, %v7079_v52  ;;  %v4311_v48 = vor.u32 %v5237_v36, %v4308_v53 }
 0x2b4   : > { %v3390_v60 = vpop.f32.mrf.mxu0  ;;  %v3389_v62 = vadd.f32 %v3388_v33, %v3255_v39  ;;  %v6694_v25 = vpop.f32.mrf.mxu3 }
 0x2b6   : > { %v3670_v61 = vadd.f32 %v6692_v44, %v3389_v62 }
 0x2b7   : > { %v3122_v6 = vpop.f32.mrf.mxu2 }
 0x2b8   : > { %v3123_v20 = vadd.f32 %v3122_v6, %v2989_v9  ;;  %v3720_v53 = vmax.f32 %v3670_v61, 0.0  ;;  %v5265_v9 = vld [vmem:[%s5743_s7 + $0x37c] sm:$0xf]  ;;  %v5246_v6 = vld [vmem:[%s5743_s7 + $0x2e4] sm:$0xf] }
 0x2b9   : > { %v2991_v18 = vpop.f32.mrf.mxu1  ;;  %v4427_v62 = vor.u32 %v5265_v9, %v4424_v42 }
 0x2ba   : > { %v3257_v21 = vadd.f32 %v6637_v4, %v3123_v20  ;;  %v2992_v39 = vadd.f32 %v2991_v18, %v6155_v30  ;;  %v4344_v20 = vld [vmem:[%s5743_s7 + $0x304] sm:$0xf0] }
 0x2bc   : > { %v3393_v52 = vpop.f32.mrf.mxu0  ;;  %v3391_v1 = vadd.f32 %v3390_v60, %v3257_v21  ;;  %3030 = vmatmul.bf16.gmra.mxu1 %v4311_v48  ;;  %3164 = vmatmul.bf16.gmra.mxu2 %v4315_v16  ;;  %v6706_v31 = vpop.f32.mrf.mxu3  ;;  %v4350_v48 = vld [vmem:[%s5743_s7 + $0x2e8] sm:$0xf]  ;;  %v5251_v16 = vld [vmem:[%s5743_s7 + $0x308] sm:$0xf0]  ;;  %v5252_v21 = vld [vmem:[%s5743_s7 + $0x310] sm:$0xf0] }
 0x2be   : > { %v3671_v33 = vadd.f32 %v6692_v44, %v3391_v1 }
 0x2bf   : > { %3432 = vmatmul.bf16.gmra.mxu0 %v4323_v50  ;;  %v3125_v36 = vpop.f32.mrf.mxu2  ;;  %v4358_v50 = vld [vmem:[%s5743_s7 + $0x2f0] sm:$0xf]  ;;  %3313 = vmatmul.bf16.gmra.mxu3 %v4427_v62 }
 0x2c0   : > { %v3721_v4 = vmax.f32 %v3671_v33, 0.0  ;;  %v3126_v40 = vadd.f32 %v3125_v36, %v2992_v39  ;;  %v4347_v36 = vor.u32 %v5246_v6, %v4344_v20  ;;  %v4359_v55 = vor.u32 %v5252_v21, %v4358_v50  ;;  %v5255_v50 = vld [vmem:[%s5743_s7 + $0x32c] sm:$0xf]  ;;  %v4380_v21 = vld [vmem:[%s5743_s7 + $0x34c] sm:$0xf0] }
 0x2c1   : > { %v2993_v60 = vpop.f32.mrf.mxu1 }
 0x2c2   : > { %v5454_v1 = vpack.c.bf16 %v3721_v4, %v3720_v53  ;;  %v3260_v13 = vadd.f32 %v6651_v2, %v3126_v40  ;;  %v2994_v18 = vadd.f32 %v2993_v60, %v6166_v49  ;;  %v4351_v53 = vor.u32 %v5251_v16, %v4350_v48  ;;  %v5274_v16 = vld [vmem:[%s5743_s7 + $0x3c4] sm:$0xf] }
 0x2c4   : > { %v3395_v30 = vpop.f32.mrf.mxu0  ;;  %5455 = vst [vmem:[%s6704_s11] sm:$0xff] %v5454_v1   ;;  %v3394_v33 = vadd.f32 %v3393_v52, %v3260_v13  ;;  %v6719_v1 = vpop.f32.mrf.mxu3 }
 0x2c6   : > { %v3672_v9 = vadd.f32 %v6692_v44, %v3394_v33  ;;  %v5260_v33 = vld [vmem:[%s5743_s7 + $0x350] sm:$0xf0] }
 0x2c7   : > { %v3127_v61 = vpop.f32.mrf.mxu2 }
 0x2c8   : > { %v3128_v39 = vadd.f32 %v3127_v61, %v2994_v18  ;;  %v4386_v61 = vld [vmem:[%s5743_s7 + $0x330] sm:$0xf] }
 0x2c9   : > { %v2996_v4 = vpop.f32.mrf.mxu1 }
 0x2ca   : > { %v3262_v2 = vadd.f32 %v6657_v54, %v3128_v39  ;;  %v2997_v60 = vadd.f32 %v2996_v4, %v6181_v34  ;;  %v3722_v54 = vmax.f32 %v3672_v9, 0.0 }
 0x2cc   : > { %v3398_v40 = vpop.f32.mrf.mxu0  ;;  %v3396_v49 = vadd.f32 %v3395_v30, %v3262_v2  ;;  %3035 = vmatmul.bf16.gmra.mxu1 %v4347_v36  ;;  %3169 = vmatmul.bf16.gmra.mxu2 %v4351_v53  ;;  %v6725_v30 = vpop.f32.mrf.mxu3  ;;  %v4394_v36 = vld [vmem:[%s5743_s7 + $0x338] sm:$0xf]  ;;  %v5261_v53 = vld [vmem:[%s5743_s7 + $0x358] sm:$0xf0] }
 0x2ce   : > { %v3673_v52 = vadd.f32 %v6692_v44, %v3396_v49  ;;  %v4383_v49 = vor.u32 %v5255_v50, %v4380_v21  ;;  %v5283_v21 = vld [vmem:[%s5743_s7 + $0x40c] sm:$0xf] }
 0x2cf   : > { %3437 = vmatmul.bf16.gmra.mxu0 %v4359_v55  ;;  %v3130_v42 = vpop.f32.mrf.mxu2  ;;  %v4460_v55 = vld [vmem:[%s5743_s7 + $0x3e4] sm:$0xf0] }
 0x2d0   : > { %v3723_v13 = vmax.f32 %v3673_v52, 0.0  ;;  %v3131_v6 = vadd.f32 %v3130_v42, %v2997_v60  ;;  %v4463_v34 = vor.u32 %v5274_v16, %v4460_v55  ;;  %v4387_v52 = vor.u32 %v5260_v33, %v4386_v61  ;;  %v4496_v61 = vld [vmem:[%s5743_s7 + $0x42c] sm:$0xf0] }
 0x2d1   : > { %v2998_v62 = vpop.f32.mrf.mxu1  ;;  %v4395_v42 = vor.u32 %v5261_v53, %v4394_v36  ;;  %v4416_v36 = vld [vmem:[%s5743_s7 + $0x394] sm:$0xf0] }
 0x2d2   : > { %v5459_v20 = vpack.c.bf16 %v3723_v13, %v3722_v54  ;;  %v3265_v18 = vadd.f32 %v6671_v57, %v3131_v6  ;;  %v2999_v39 = vadd.f32 %v2998_v62, %v6195_v5  ;;  %3318 = vmatmul.bf16.gmra.mxu3 %v4463_v34  ;;  %v4422_v53 = vld [vmem:[%s5743_s7 + $0x378] sm:$0xf] }
 0x2d4   : > { %v3400_v48 = vpop.f32.mrf.mxu0  ;;  %5576 = vst [vmem:[%s6704_s11 + $0x8] sm:$0xff] %v5459_v20   ;;  %v3399_v2 = vadd.f32 %v3398_v40, %v3265_v18  ;;  %v6738_v54 = vpop.f32.mrf.mxu3 }
 0x2d6   : > { %v3674_v6 = vadd.f32 %v6692_v44, %v3399_v2 }
 0x2d7   : > { %v3132_v4 = vpop.f32.mrf.mxu2 }
 0x2d8   : > { %v3133_v9 = vadd.f32 %v3132_v4, %v2999_v39  ;;  %v5264_v39 = vld [vmem:[%s5743_s7 + $0x374] sm:$0xf]  ;;  %v5269_v4 = vld [vmem:[%s5743_s7 + $0x398] sm:$0xf0] }
 0x2d9   : > { %v3001_v60 = vpop.f32.mrf.mxu1 }
 0x2da   : > { %v3267_v57 = vadd.f32 %v6677_v0, %v3133_v9  ;;  %v3002_v62 = vadd.f32 %v3001_v60, %v6207_v56  ;;  %v3724_v0 = vmax.f32 %v3674_v6, 0.0  ;;  %v4499_v56 = vor.u32 %v5283_v21, %v4496_v61  ;;  %v4430_v9 = vld [vmem:[%s5743_s7 + $0x380] sm:$0xf] }
 0x2db   : > { %v4423_v6 = vor.u32 %v5269_v4, %v4422_v53  ;;  %v5273_v53 = vld [vmem:[%s5743_s7 + $0x3bc] sm:$0xf]  ;;  %v4452_v4 = vld [vmem:[%s5743_s7 + $0x3dc] sm:$0xf0] }
 0x2dc   : > { %v3403_v13 = vpop.f32.mrf.mxu0  ;;  %v3401_v5 = vadd.f32 %v3400_v48, %v3267_v57  ;;  %3040 = vmatmul.bf16.gmra.mxu1 %v4383_v49  ;;  %3174 = vmatmul.bf16.gmra.mxu2 %v4387_v52  ;;  %v6744_v48 = vpop.f32.mrf.mxu3  ;;  %v5270_v49 = vld [vmem:[%s5743_s7 + $0x3a0] sm:$0xf0]  ;;  %v4419_v57 = vor.u32 %v5264_v39, %v4416_v36  ;;  %v5292_v39 = vld [vmem:[%s5743_s7 + $0x454] sm:$0xf] }
 0x2de   : > { %v3675_v40 = vadd.f32 %v6692_v44, %v3401_v5 }
 0x2df   : > { %3442 = vmatmul.bf16.gmra.mxu0 %v4395_v42  ;;  %v3135_v20 = vpop.f32.mrf.mxu2 }
 0x2e0   : > { %v3725_v16 = vmax.f32 %v3675_v40, 0.0  ;;  %v3136_v55 = vadd.f32 %v3135_v20, %v3002_v62  ;;  %v4431_v40 = vor.u32 %v5270_v49, %v4430_v9  ;;  %v5278_v9 = vld [vmem:[%s5743_s7 + $0x3e0] sm:$0xf0] }
 0x2e1   : > { %v3003_v18 = vpop.f32.mrf.mxu1  ;;  %v7080_v49 = vld [vmem:[#allocation15_spill] sm:$0xff] }
 0x2e2   : > { %v5464_v50 = vpack.c.bf16 %v3725_v16, %v3724_v0  ;;  %v3270_v33 = vadd.f32 %v6694_v25, %v3136_v55  ;;  %v3004_v2 = vadd.f32 %v3003_v18, %v6218_v32  ;;  %3323 = vmatmul.bf16.gmra.mxu3 %v4499_v56  ;;  %v4532_v56 = vld [vmem:[%s5743_s7 + $0x474] sm:$0xf0] }
 0x2e4   : > { %v3405_v34 = vpop.f32.mrf.mxu0  ;;  %5577 = vst [vmem:[%s6704_s11 + $0x10] sm:$0xff] %v5464_v50   ;;  %v3404_v60 = vadd.f32 %v3403_v13, %v3270_v33  ;;  %v6757_v62 = vpop.f32.mrf.mxu3 }
 0x2e6   : > { %v3676_v0 = vadd.f32 %v6692_v44, %v3404_v60  ;;  %v4466_v60 = vld [vmem:[%s5743_s7 + $0x3c8] sm:$0xf] }
 0x2e7   : > { %v3137_v52 = vpop.f32.mrf.mxu2 }
 0x2e8   : > { %v3138_v42 = vadd.f32 %v3137_v52, %v3004_v2  ;;  %v4458_v2 = vld [vmem:[%s5743_s7 + $0x3c0] sm:$0xf] }
 0x2e9   : > { %v3006_v5 = vpop.f32.mrf.mxu1 }
 0x2ea   : > { %v3272_v25 = vadd.f32 %v6706_v31, %v3138_v42  ;;  %v3007_v16 = vadd.f32 %v3006_v5, %v6227_v43  ;;  %v3726_v31 = vmax.f32 %v3676_v0, 0.0  ;;  %v4535_v43 = vor.u32 %v5292_v39, %v4532_v56  ;;  %v5279_v42 = vld [vmem:[%s5743_s7 + $0x3e8] sm:$0xf0] }
 0x2ec   : > { %v3408_v20 = vpop.f32.mrf.mxu0  ;;  %v3406_v32 = vadd.f32 %v3405_v34, %v3272_v25  ;;  %3045 = vmatmul.bf16.gmra.mxu1 %v4419_v57  ;;  %3179 = vmatmul.bf16.gmra.mxu2 %v4423_v6  ;;  %v6763_v34 = vpop.f32.mrf.mxu3  ;;  %v4459_v25 = vor.u32 %v5278_v9, %v4458_v2  ;;  %v5282_v2 = vld [vmem:[%s5743_s7 + $0x404] sm:$0xf]  ;;  %v4488_v9 = vld [vmem:[%s5743_s7 + $0x424] sm:$0xf0] }
 0x2ee   : > { %v3677_v13 = vadd.f32 %v6692_v44, %v3406_v32  ;;  %v4467_v32 = vor.u32 %v5279_v42, %v4466_v60  ;;  %v4502_v42 = vld [vmem:[%s5743_s7 + $0x410] sm:$0xf] }
 0x2ef   : > { %3447 = vmatmul.bf16.gmra.mxu0 %v4431_v40  ;;  %v3140_v55 = vpop.f32.mrf.mxu2  ;;  %v4455_v40 = vor.u32 %v5273_v53, %v4452_v4  ;;  %v5301_v53 = vld [vmem:[%s5743_s7 + $0x49c] sm:$0xf] }
 0x2f0   : > { %v3727_v18 = vmax.f32 %v3677_v13, 0.0  ;;  %v3141_v50 = vadd.f32 %v3140_v55, %v3007_v16 }
 0x2f1   : > { %v3008_v21 = vpop.f32.mrf.mxu1 }
 0x2f2   : > { %v5469_v61 = vpack.c.bf16 %v3727_v18, %v3726_v31  ;;  %v3275_v36 = vadd.f32 %v6719_v1, %v3141_v50  ;;  %v3009_v52 = vadd.f32 %v3008_v21, %v7080_v49  ;;  %3328 = vmatmul.bf16.gmra.mxu3 %v4535_v43  ;;  %v4568_v43 = vld [vmem:[%s5743_s7 + $0x4bc] sm:$0xf0]  ;;  %v4494_v49 = vld [vmem:[%s5743_s7 + $0x408] sm:$0xf] }
 0x2f4   : > { %v3410_v33 = vpop.f32.mrf.mxu0  ;;  %5578 = vst [vmem:[%s6704_s11 + $0x18] sm:$0xff] %v5469_v61   ;;  %v3409_v6 = vadd.f32 %v3408_v20, %v3275_v36  ;;  %v6776_v13 = vpop.f32.mrf.mxu3 }
 0x2f6   : > { %v3678_v55 = vadd.f32 %v6692_v44, %v3409_v6 }
 0x2f7   : > { %v3142_v57 = vpop.f32.mrf.mxu2 }
 0x2f8   : > { %v3143_v5 = vadd.f32 %v3142_v57, %v3009_v52  ;;  %v5287_v52 = vld [vmem:[%s5743_s7 + $0x428] sm:$0xf0]  ;;  %v5288_v57 = vld [vmem:[%s5743_s7 + $0x430] sm:$0xf0] }
 0x2f9   : > { %v3011_v0 = vpop.f32.mrf.mxu1 }
 0x2fa   : > { %v3277_v1 = vadd.f32 %v6725_v30, %v3143_v5  ;;  %v3012_v18 = vadd.f32 %v3011_v0, %v6250_v35  ;;  %v3728_v30 = vmax.f32 %v3678_v55, 0.0  ;;  %v4571_v35 = vor.u32 %v5301_v53, %v4568_v43  ;;  %v5310_v53 = vld [vmem:[%s5743_s7 + $0x4e4] sm:$0xf]  ;;  %v4604_v43 = vld [vmem:[%s5743_s7 + $0x504] sm:$0xf0] }
 0x2fb   : > { %v4495_v0 = vor.u32 %v5287_v52, %v4494_v49  ;;  %v5296_v49 = vld [vmem:[%s5743_s7 + $0x470] sm:$0xf0] }
 0x2fc   : > { %v3413_v16 = vpop.f32.mrf.mxu0  ;;  %v3411_v31 = vadd.f32 %v3410_v33, %v3277_v1  ;;  %3050 = vmatmul.bf16.gmra.mxu1 %v4455_v40  ;;  %3184 = vmatmul.bf16.gmra.mxu2 %v4459_v25  ;;  %v6782_v33 = vpop.f32.mrf.mxu3  ;;  %v4491_v25 = vor.u32 %v5282_v2, %v4488_v9  ;;  %v4503_v1 = vor.u32 %v5288_v57, %v4502_v42  ;;  %v5291_v2 = vld [vmem:[%s5743_s7 + $0x44c] sm:$0xf]  ;;  %v4530_v9 = vld [vmem:[%s5743_s7 + $0x450] sm:$0xf]  ;;  %v5297_v42 = vld [vmem:[%s5743_s7 + $0x478] sm:$0xf0] }
 0x2fe   : > { %v3679_v20 = vadd.f32 %v6692_v44, %v3411_v31 }
 0x2ff   : > { %3452 = vmatmul.bf16.gmra.mxu0 %v4467_v32  ;;  %v3145_v50 = vpop.f32.mrf.mxu2 }
 0x300   : > { %v3729_v21 = vmax.f32 %v3679_v20, 0.0  ;;  %v3146_v61 = vadd.f32 %v3145_v50, %v3012_v18 }
 0x301   : > { %v3013_v39 = vpop.f32.mrf.mxu1 }
 0x302   : > { %v5474_v56 = vpack.c.bf16 %v3729_v21, %v3728_v30  ;;  %v3280_v4 = vadd.f32 %v6738_v54, %v3146_v61  ;;  %v3014_v60 = vadd.f32 %v3013_v39, %v6267_v19  ;;  %3333 = vmatmul.bf16.gmra.mxu3 %v4571_v35  ;;  %v4524_v35 = vld [vmem:[%s5743_s7 + $0x46c] sm:$0xf0] }
 0x304   : > { %v3415_v36 = vpop.f32.mrf.mxu0  ;;  %5579 = vst [vmem:[%s6704_s11 + $0x20] sm:$0xff] %v5474_v56   ;;  %v3414_v5 = vadd.f32 %v3413_v16, %v3280_v4  ;;  %v6795_v55 = vpop.f32.mrf.mxu3 }
 0x306   : > { %v3680_v20 = vadd.f32 %v6692_v44, %v3414_v5 }
 0x307   : > { %v3147_v6 = vpop.f32.mrf.mxu2 }
 0x308   : > { %v3148_v40 = vadd.f32 %v3147_v6, %v3014_v60  ;;  %v4538_v60 = vld [vmem:[%s5743_s7 + $0x458] sm:$0xf] }
 0x309   : > { %v3016_v32 = vpop.f32.mrf.mxu1 }
 0x30a   : > { %v3282_v54 = vadd.f32 %v6744_v48, %v3148_v40  ;;  %v3017_v18 = vadd.f32 %v3016_v32, %v6279_v28  ;;  %v3730_v48 = vmax.f32 %v3680_v20, 0.0  ;;  %v4607_v28 = vor.u32 %v5310_v53, %v4604_v43  ;;  %v5300_v43 = vld [vmem:[%s5743_s7 + $0x494] sm:$0xf] }
 0x30b   : > { %v4527_v40 = vor.u32 %v5291_v2, %v4524_v35  ;;  %v4539_v32 = vor.u32 %v5297_v42, %v4538_v60  ;;  %v4566_v2 = vld [vmem:[%s5743_s7 + $0x498] sm:$0xf] }
 0x30c   : > { %v3418_v31 = vpop.f32.mrf.mxu0  ;;  %v3416_v19 = vadd.f32 %v3415_v36, %v3282_v54  ;;  %3055 = vmatmul.bf16.gmra.mxu1 %v4491_v25  ;;  %3189 = vmatmul.bf16.gmra.mxu2 %v4495_v0  ;;  %v6801_v39 = vpop.f32.mrf.mxu3  ;;  %v4531_v25 = vor.u32 %v5296_v49, %v4530_v9  ;;  %v4574_v9 = vld [vmem:[%s5743_s7 + $0x4a0] sm:$0xf]  ;;  %v5306_v49 = vld [vmem:[%s5743_s7 + $0x4c0] sm:$0xf0] }
 0x30e   : > { %v3681_v16 = vadd.f32 %v6692_v44, %v3416_v19 }
 0x30f   : > { %3457 = vmatmul.bf16.gmra.mxu0 %v4503_v1  ;;  %v3150_v50 = vpop.f32.mrf.mxu2 }
 0x310   : > { %v3731_v30 = vmax.f32 %v3681_v16, 0.0  ;;  %v3151_v21 = vadd.f32 %v3150_v50, %v3017_v18 }
 0x311   : > { %v3018_v61 = vpop.f32.mrf.mxu1 }
 0x312   : > { %v5479_v56 = vpack.c.bf16 %v3731_v30, %v3730_v48  ;;  %v3285_v4 = vadd.f32 %v6757_v62, %v3151_v21  ;;  %v3019_v52 = vadd.f32 %v3018_v61, %v6290_v41  ;;  %3338 = vmatmul.bf16.gmra.mxu3 %v4607_v28  ;;  %v5305_v28 = vld [vmem:[%s5743_s7 + $0x4b8] sm:$0xf0] }
 0x314   : > { %v3420_v36 = vpop.f32.mrf.mxu0  ;;  %5580 = vst [vmem:[%s6704_s11 + $0x28] sm:$0xff] %v5479_v56   ;;  %v3419_v6 = vadd.f32 %v3418_v31, %v3285_v4  ;;  %v6814_v1 = vpop.f32.mrf.mxu3  ;;  %v5319_v56 = vld [vmem:[%s5743_s7 + $0x52c] sm:$0xf]  ;;  %v4560_v4 = vld [vmem:[%s5743_s7 + $0x4b4] sm:$0xf0] }
 0x316   : > { %v3682_v20 = vadd.f32 %v6692_v44, %v3419_v6  ;;  %v4567_v6 = vor.u32 %v5305_v28, %v4566_v2 }
 0x317   : > { %v3152_v57 = vpop.f32.mrf.mxu2 }
 0x318   : > { %v3153_v5 = vadd.f32 %v3152_v57, %v3019_v52  ;;  %v4563_v57 = vor.u32 %v5300_v43, %v4560_v4  ;;  %v5315_v4 = vld [vmem:[%s5743_s7 + $0x508] sm:$0xf0] }
 0x319   : > { %v3021_v0 = vpop.f32.mrf.mxu1 }
 0x31a   : > { %v3287_v62 = vadd.f32 %v6763_v34, %v3153_v5  ;;  %v3022_v19 = vadd.f32 %v3021_v0, %v6299_v7  ;;  %v3732_v34 = vmax.f32 %v3682_v20, 0.0 }
 0x31c   : > { %v3423_v54 = vpop.f32.mrf.mxu0  ;;  %v3421_v41 = vadd.f32 %v3420_v36, %v3287_v62  ;;  %3060 = vmatmul.bf16.gmra.mxu1 %v4527_v40  ;;  %3194 = vmatmul.bf16.gmra.mxu2 %v4531_v25  ;;  %v6820_v30 = vpop.f32.mrf.mxu3  ;;  %v4640_v36 = vld [vmem:[%s5743_s7 + $0x54c] sm:$0xf0]  ;;  %v4575_v40 = vor.u32 %v5306_v49, %v4574_v9 }
 0x31d   : > { %v4643_v7 = vor.u32 %v5319_v56, %v4640_v36  ;;  %v4596_v56 = vld [vmem:[%s5743_s7 + $0x4fc] sm:$0xf0] }
 0x31e   : > { %v3683_v31 = vadd.f32 %v6692_v44, %v3421_v41  ;;  %v4602_v36 = vld [vmem:[%s5743_s7 + $0x4e0] sm:$0xf] }
 0x31f   : > { %3462 = vmatmul.bf16.gmra.mxu0 %v4539_v32  ;;  %v3155_v16 = vpop.f32.mrf.mxu2 }
 0x320   : > { %v3733_v18 = vmax.f32 %v3683_v31, 0.0  ;;  %v3156_v50 = vadd.f32 %v3155_v16, %v3022_v19 }
 0x321   : > { %v3023_v48 = vpop.f32.mrf.mxu1 }
 0x322   : > { %v5484_v21 = vpack.c.bf16 %v3733_v18, %v3732_v34  ;;  %v3290_v53 = vadd.f32 %v6776_v13, %v3156_v50  ;;  %v3024_v35 = vadd.f32 %v3023_v48, %v6310_v26  ;;  %3343 = vmatmul.bf16.gmra.mxu3 %v4643_v7  ;;  %v5328_v50 = vld [vmem:[%s5743_s7 + $0x574] sm:$0xf]  ;;  %v4676_v48 = vld [vmem:[%s5743_s7 + $0x594] sm:$0xf0]  ;;  %v4610_v7 = vld [vmem:[%s5743_s7 + $0x4e8] sm:$0xf] }
 0x324   : > { %v3425_v61 = vpop.f32.mrf.mxu0  ;;  %5581 = vst [vmem:[%s6704_s11 + $0x30] sm:$0xff] %v5484_v21   ;;  %v3424_v60 = vadd.f32 %v3423_v54, %v3290_v53  ;;  %v6833_v25 = vpop.f32.mrf.mxu3  ;;  %v5314_v53 = vld [vmem:[%s5743_s7 + $0x500] sm:$0xf0] }
 0x325   : > { %v4603_v49 = vor.u32 %v5314_v53, %v4602_v36 }
 0x326   : > { %v3684_v32 = vadd.f32 %v6692_v44, %v3424_v60  ;;  %v4611_v60 = vor.u32 %v5315_v4, %v4610_v7 }
 0x327   : > { %v3157_v52 = vpop.f32.mrf.mxu2 }
 0x328   : > { %v3158_v42 = vadd.f32 %v3157_v52, %v3024_v35 }
 0x329   : > { %v3026_v5 = vpop.f32.mrf.mxu1 }
 0x32a   : > { %v3292_v13 = vadd.f32 %v6782_v33, %v3158_v42  ;;  %v3027_v54 = vadd.f32 %v3026_v5, %v6319_v63  ;;  %v3734_v33 = vmax.f32 %v3684_v32, 0.0  ;;  %v4679_v63 = vor.u32 %v5328_v50, %v4676_v48  ;;  %v5323_v50 = vld [vmem:[%s5743_s7 + $0x548] sm:$0xf0] }
 0x32c   : > { %v3428_v0 = vpop.f32.mrf.mxu0  ;;  %v3426_v26 = vadd.f32 %v3425_v61, %v3292_v13  ;;  %3065 = vmatmul.bf16.gmra.mxu1 %v4563_v57  ;;  %3199 = vmatmul.bf16.gmra.mxu2 %v4567_v6  ;;  %v6839_v16 = vpop.f32.mrf.mxu3  ;;  %v5309_v61 = vld [vmem:[%s5743_s7 + $0x4dc] sm:$0xf] }
 0x32d   : > { %v4599_v9 = vor.u32 %v5309_v61, %v4596_v56  ;;  %v5324_v61 = vld [vmem:[%s5743_s7 + $0x550] sm:$0xf0] }
 0x32e   : > { %v3685_v62 = vadd.f32 %v6692_v44, %v3426_v26 }
 0x32f   : > { %3467 = vmatmul.bf16.gmra.mxu0 %v4575_v40  ;;  %v3160_v20 = vpop.f32.mrf.mxu2 }
 0x330   : > { %v3735_v41 = vmax.f32 %v3685_v62, 0.0  ;;  %v3161_v31 = vadd.f32 %v3160_v20, %v3027_v54 }
 0x331   : > { %v3028_v19 = vpop.f32.mrf.mxu1 }
 0x332   : > { %v5489_v34 = vpack.c.bf16 %v3735_v41, %v3734_v33  ;;  %v3295_v21 = vadd.f32 %v6795_v55, %v3161_v31  ;;  %v3029_v43 = vadd.f32 %v3028_v19, %v6339_v8  ;;  %3348 = vmatmul.bf16.gmra.mxu3 %v4679_v63  ;;  %v5337_v33 = vld [vmem:[%s5743_s7 + $0x5bc] sm:$0xf]  ;;  %v4712_v41 = vld [vmem:[%s5743_s7 + $0x5dc] sm:$0xf0]  ;;  %v5318_v19 = vld [vmem:[%s5743_s7 + $0x524] sm:$0xf] }
 0x334   : > { %v3430_v18 = vpop.f32.mrf.mxu0  ;;  %5582 = vst [vmem:[%s6704_s11 + $0x38] sm:$0xff] %v5489_v34   ;;  %v3429_v28 = vadd.f32 %v3428_v0, %v3295_v21  ;;  %v6852_v42 = vpop.f32.mrf.mxu3  ;;  %v4632_v34 = vld [vmem:[%s5743_s7 + $0x544] sm:$0xf0]  ;;  %v4646_v21 = vld [vmem:[%s5743_s7 + $0x530] sm:$0xf] }
 0x335   : > { %v4635_v53 = vor.u32 %v5318_v19, %v4632_v34  ;;  %v4647_v4 = vor.u32 %v5324_v61, %v4646_v21 }
 0x336   : > { %v3686_v6 = vadd.f32 %v6692_v44, %v3429_v28 }
 0x337   : > { %v3162_v2 = vpop.f32.mrf.mxu2 }
 0x338   : > { %v3163_v35 = vadd.f32 %v3162_v2, %v3029_v43 }
 0x339   : > { %v3031_v52 = vpop.f32.mrf.mxu1 }
 0x33a   : > { %v3297_v55 = vadd.f32 %v6801_v39, %v3163_v35  ;;  %v3032_v40 = vadd.f32 %v3031_v52, %v6351_v10  ;;  %v3736_v39 = vmax.f32 %v3686_v6, 0.0  ;;  %v4715_v10 = vor.u32 %v5337_v33, %v4712_v41  ;;  %v4682_v33 = vld [vmem:[%s5743_s7 + $0x578] sm:$0xf]  ;;  %v5333_v41 = vld [vmem:[%s5743_s7 + $0x598] sm:$0xf0] }
 0x33c   : > { %v3433_v57 = vpop.f32.mrf.mxu0  ;;  %v3431_v8 = vadd.f32 %v3430_v18, %v3297_v55  ;;  %3070 = vmatmul.bf16.gmra.mxu1 %v4599_v9  ;;  %3204 = vmatmul.bf16.gmra.mxu2 %v4603_v49  ;;  %v6858_v62 = vpop.f32.mrf.mxu3  ;;  %v4638_v18 = vld [vmem:[%s5743_s7 + $0x528] sm:$0xf] }
 0x33d   : > { %v4639_v43 = vor.u32 %v5323_v50, %v4638_v18 }
 0x33e   : > { %v3687_v5 = vadd.f32 %v6692_v44, %v3431_v8 }
 0x33f   : > { %3472 = vmatmul.bf16.gmra.mxu0 %v4611_v60  ;;  %v3165_v13 = vpop.f32.mrf.mxu2 }
 0x340   : > { %v3737_v0 = vmax.f32 %v3687_v5, 0.0  ;;  %v3166_v32 = vadd.f32 %v3165_v13, %v3032_v40  ;;  %v5346_v40 = vld [vmem:[%s5743_s7 + $0x604] sm:$0xf]  ;;  %v4748_v13 = vld [vmem:[%s5743_s7 + $0x624] sm:$0xf0] }
 0x341   : > { %v3033_v26 = vpop.f32.mrf.mxu1 }
 0x342   : > { %v5494_v54 = vpack.c.bf16 %v3737_v0, %v3736_v39  ;;  %v3300_v31 = vadd.f32 %v6814_v1, %v3166_v32  ;;  %v3034_v48 = vadd.f32 %v3033_v26, %v6362_v3  ;;  %3353 = vmatmul.bf16.gmra.mxu3 %v4715_v10  ;;  %v5327_v0 = vld [vmem:[%s5743_s7 + $0x56c] sm:$0xf]  ;;  %v4668_v32 = vld [vmem:[%s5743_s7 + $0x58c] sm:$0xf0] }
 0x343   : > { %v4674_v26 = vld [vmem:[%s5743_s7 + $0x570] sm:$0xf]  ;;  %v4671_v34 = vor.u32 %v5327_v0, %v4668_v32 }
 0x344   : > { %v3435_v20 = vpop.f32.mrf.mxu0  ;;  %5583 = vst [vmem:[%s6704_s11 + $0x40] sm:$0xff] %v5494_v54   ;;  %v3434_v56 = vadd.f32 %v3433_v57, %v3300_v31  ;;  %v6871_v2 = vpop.f32.mrf.mxu3  ;;  %v5332_v54 = vld [vmem:[%s5743_s7 + $0x590] sm:$0xf0] }
 0x345   : > { %v4675_v18 = vor.u32 %v5332_v54, %v4674_v26 }
 0x346   : > { %v3688_v35 = vadd.f32 %v6692_v44, %v3434_v56 }
 0x347   : > { %v3167_v63 = vpop.f32.mrf.mxu2 }
 0x348   : > { %v3168_v36 = vadd.f32 %v3167_v63, %v3034_v48  ;;  %v4683_v48 = vor.u32 %v5333_v41, %v4682_v33 }
 0x349   : > { %v3036_v7 = vpop.f32.mrf.mxu1 }
 0x34a   : > { %v3302_v1 = vadd.f32 %v6820_v30, %v3168_v36  ;;  %v3037_v49 = vadd.f32 %v3036_v7, %v6371_v22  ;;  %v3738_v30 = vmax.f32 %v3688_v35, 0.0  ;;  %v4751_v22 = vor.u32 %v5346_v40, %v4748_v13 }
 0x34c   : > { %v3438_v28 = vpop.f32.mrf.mxu0  ;;  %v3436_v3 = vadd.f32 %v3435_v20, %v3302_v1  ;;  %3075 = vmatmul.bf16.gmra.mxu1 %v4635_v53  ;;  %3209 = vmatmul.bf16.gmra.mxu2 %v4639_v43  ;;  %v6877_v6 = vpop.f32.mrf.mxu3 }
 0x34e   : > { %v3689_v9 = vadd.f32 %v6692_v44, %v3436_v3  ;;  %v5355_v3 = vld [vmem:[%s5743_s7 + $0x64c] sm:$0xf] }
 0x34f   : > { %3477 = vmatmul.bf16.gmra.mxu0 %v4647_v4  ;;  %v3170_v52 = vpop.f32.mrf.mxu2 }
 0x350   : > { %v3739_v60 = vmax.f32 %v3689_v9, 0.0  ;;  %v3171_v55 = vadd.f32 %v3170_v52, %v3037_v49  ;;  %v4784_v9 = vld [vmem:[%s5743_s7 + $0x66c] sm:$0xf0]  ;;  %v5336_v52 = vld [vmem:[%s5743_s7 + $0x5b4] sm:$0xf] }
 0x351   : > { %v3038_v57 = vpop.f32.mrf.mxu1 }
 0x352   : > { %v5499_v8 = vpack.c.bf16 %v3739_v60, %v3738_v30  ;;  %v3305_v39 = vadd.f32 %v6833_v25, %v3171_v55  ;;  %v3039_v20 = vadd.f32 %v3038_v57, %v6382_v29  ;;  %3358 = vmatmul.bf16.gmra.mxu3 %v4751_v22  ;;  %v4704_v30 = vld [vmem:[%s5743_s7 + $0x5d4] sm:$0xf0]  ;;  %v5341_v55 = vld [vmem:[%s5743_s7 + $0x5d8] sm:$0xf0] }
 0x353   : > { %v4710_v60 = vld [vmem:[%s5743_s7 + $0x5b8] sm:$0xf]  ;;  %v4707_v0 = vor.u32 %v5336_v52, %v4704_v30 }
 0x354   : > { %v3440_v5 = vpop.f32.mrf.mxu0  ;;  %5584 = vst [vmem:[%s6704_s11 + $0x48] sm:$0xff] %v5499_v8   ;;  %v3439_v19 = vadd.f32 %v3438_v28, %v3305_v39  ;;  %v4718_v8 = vld [vmem:[%s5743_s7 + $0x5c0] sm:$0xf]  ;;  %v4711_v22 = vor.u32 %v5341_v55, %v4710_v60 }
 0x355   : > { %v6890_v21 = vpop.f32.mrf.mxu3 }
 0x356   : > { %v3690_v63 = vadd.f32 %v6692_v44, %v3439_v19 }
 0x357   : > { %v3172_v31 = vpop.f32.mrf.mxu2 }
 0x358   : > { %v3173_v10 = vadd.f32 %v3172_v31, %v3039_v20 }
 0x359   : > { %v3041_v50 = vpop.f32.mrf.mxu1 }
 0x35a   : > { %v3307_v25 = vadd.f32 %v6839_v16, %v3173_v10  ;;  %v3042_v36 = vadd.f32 %v3041_v50, %v6391_v11  ;;  %v3740_v16 = vmax.f32 %v3690_v63, 0.0  ;;  %v4787_v11 = vor.u32 %v5355_v3, %v4784_v9  ;;  %v4820_v63 = vld [vmem:[%s5743_s7 + $0x6b4] sm:$0xf0] }
 0x35c   : > { %v3443_v61 = vpop.f32.mrf.mxu0  ;;  %v3441_v29 = vadd.f32 %v3440_v5, %v3307_v25  ;;  %3080 = vmatmul.bf16.gmra.mxu1 %v4671_v34  ;;  %3214 = vmatmul.bf16.gmra.mxu2 %v4675_v18  ;;  %v5342_v5 = vld [vmem:[%s5743_s7 + $0x5e0] sm:$0xf0] }
 0x35d   : > { %v6896_v1 = vpop.f32.mrf.mxu3  ;;  %v4719_v26 = vor.u32 %v5342_v5, %v4718_v8 }
 0x35e   : > { %v3691_v56 = vadd.f32 %v6692_v44, %v3441_v29 }
 0x35f   : > { %3482 = vmatmul.bf16.gmra.mxu0 %v4683_v48  ;;  %v3175_v53 = vpop.f32.mrf.mxu2 }
 0x360   : > { %v3741_v43 = vmax.f32 %v3691_v56, 0.0  ;;  %v3176_v7 = vadd.f32 %v3175_v53, %v3042_v36  ;;  %v5345_v56 = vld [vmem:[%s5743_s7 + $0x5fc] sm:$0xf]  ;;  %v4740_v36 = vld [vmem:[%s5743_s7 + $0x61c] sm:$0xf0] }
 0x361   : > { %v3043_v4 = vpop.f32.mrf.mxu1  ;;  %v4746_v53 = vld [vmem:[%s5743_s7 + $0x600] sm:$0xf]  ;;  %v4743_v9 = vor.u32 %v5345_v56, %v4740_v36 }
 0x362   : > { %v5504_v28 = vpack.c.bf16 %v3741_v43, %v3740_v16  ;;  %v3310_v49 = vadd.f32 %v6852_v42, %v3176_v7  ;;  %v3044_v57 = vadd.f32 %v3043_v4, %v6408_v58  ;;  %3363 = vmatmul.bf16.gmra.mxu3 %v4787_v11  ;;  %v5350_v16 = vld [vmem:[%s5743_s7 + $0x620] sm:$0xf0]  ;;  %v4754_v7 = vld [vmem:[%s5743_s7 + $0x608] sm:$0xf]  ;;  %v5351_v4 = vld [vmem:[%s5743_s7 + $0x628] sm:$0xf0] }
 0x363   : > { %v4755_v11 = vor.u32 %v5351_v4, %v4754_v7 }
 0x364   : > { %v3445_v35 = vpop.f32.mrf.mxu0  ;;  %5585 = vst [vmem:[%s6704_s11 + $0x50] sm:$0xff] %v5504_v28   ;;  %v3444_v13 = vadd.f32 %v3443_v61, %v3310_v49  ;;  %v5364_v61 = vld [vmem:[%s5743_s7 + $0x694] sm:$0xf]  ;;  %v4747_v49 = vor.u32 %v5350_v16, %v4746_v53 }
 0x365   : > { %v6909_v54 = vpop.f32.mrf.mxu3 }
 0x366   : > { %v3692_v33 = vadd.f32 %v6692_v44, %v3444_v13 }
 0x367   : > { %v3177_v40 = vpop.f32.mrf.mxu2 }
 0x368   : > { %v3178_v39 = vadd.f32 %v3177_v40, %v3044_v57 }
 0x369   : > { %v3046_v32 = vpop.f32.mrf.mxu1 }
 0x36a   : > { %v3312_v42 = vadd.f32 %v6858_v62, %v3178_v39  ;;  %v3047_v31 = vadd.f32 %v3046_v32, %v6423_v45  ;;  %v3742_v62 = vmax.f32 %v3692_v33, 0.0  ;;  %v4823_v45 = vor.u32 %v5364_v61, %v4820_v63  ;;  %v5373_v32 = vld [vmem:[%s5743_s7 + $0x6dc] sm:$0xf] }
 0x36c   : > { %v3448_v20 = vpop.f32.mrf.mxu0  ;;  %v3446_v58 = vadd.f32 %v3445_v35, %v3312_v42  ;;  %3085 = vmatmul.bf16.gmra.mxu1 %v4707_v0  ;;  %3219 = vmatmul.bf16.gmra.mxu2 %v4711_v22 }
 0x36d   : > { %v6915_v50 = vpop.f32.mrf.mxu3 }
 0x36e   : > { %v3693_v41 = vadd.f32 %v6692_v44, %v3446_v58  ;;  %v4776_v58 = vld [vmem:[%s5743_s7 + $0x664] sm:$0xf0] }
 0x36f   : > { %3487 = vmatmul.bf16.gmra.mxu0 %v4719_v26  ;;  %v3180_v19 = vpop.f32.mrf.mxu2  ;;  %v4856_v26 = vld [vmem:[%s5743_s7 + $0x6fc] sm:$0xf0] }
 0x370   : > { %v3743_v10 = vmax.f32 %v3693_v41, 0.0  ;;  %v3181_v34 = vadd.f32 %v3180_v19, %v3047_v31  ;;  %v4859_v33 = vor.u32 %v5373_v32, %v4856_v26  ;;  %v4782_v41 = vld [vmem:[%s5743_s7 + $0x648] sm:$0xf] }
 0x371   : > { %v3048_v18 = vpop.f32.mrf.mxu1 }
 0x372   : > { %v5509_v48 = vpack.c.bf16 %v3743_v10, %v3742_v62  ;;  %v3315_v29 = vadd.f32 %v6871_v2, %v3181_v34  ;;  %v3049_v43 = vadd.f32 %v3048_v18, %v6434_v37  ;;  %3368 = vmatmul.bf16.gmra.mxu3 %v4823_v45  ;;  %v4790_v62 = vld [vmem:[%s5743_s7 + $0x650] sm:$0xf]  ;;  %v5360_v10 = vld [vmem:[%s5743_s7 + $0x670] sm:$0xf0] }
 0x374   : > { %v3450_v25 = vpop.f32.mrf.mxu0  ;;  %5586 = vst [vmem:[%s6704_s11 + $0x58] sm:$0xff] %v5509_v48   ;;  %v3449_v35 = vadd.f32 %v3448_v20, %v3315_v29  ;;  %v5354_v20 = vld [vmem:[%s5743_s7 + $0x644] sm:$0xf]  ;;  %v4791_v29 = vor.u32 %v5360_v10, %v4790_v62  ;;  %v5372_v10 = vld [vmem:[%s5743_s7 + $0x6d4] sm:$0xf] }
 0x375   : > { %v6929_v60 = vpop.f32.mrf.mxu3 }
 0x376   : > { %v3694_v55 = vadd.f32 %v6692_v44, %v3449_v35 }
 0x377   : > { %v3182_v28 = vpop.f32.mrf.mxu2 }
 0x378   : > { %v3183_v3 = vadd.f32 %v3182_v28, %v3049_v43  ;;  %v3744_v5 = vmax.f32 %v3694_v55, 0.0 }
 0x379   : > { %v3051_v52 = vpop.f32.mrf.mxu1 }
 0x37a   : > { %v3317_v30 = vadd.f32 %v6877_v6, %v3183_v3  ;;  %v3052_v8 = vadd.f32 %v3051_v52, %v6443_v47  ;;  %v5359_v47 = vld [vmem:[%s5743_s7 + $0x668] sm:$0xf0]  ;;  %v4812_v52 = vld [vmem:[%s5743_s7 + $0x6ac] sm:$0xf0] }
 0x37b   : > { %v4783_v61 = vor.u32 %v5359_v47, %v4782_v41 }
 0x37c   : > { %v3453_v2 = vpop.f32.mrf.mxu0  ;;  %v3451_v37 = vadd.f32 %v3450_v25, %v3317_v30  ;;  %3090 = vmatmul.bf16.gmra.mxu1 %v4743_v9  ;;  %3224 = vmatmul.bf16.gmra.mxu2 %v4747_v49  ;;  %v4779_v25 = vor.u32 %v5354_v20, %v4776_v58  ;;  %v5363_v49 = vld [vmem:[%s5743_s7 + $0x68c] sm:$0xf]  ;;  %v4826_v30 = vld [vmem:[%s5743_s7 + $0x698] sm:$0xf] }
 0x37d   : > { %v6942_v31 = vpop.f32.mrf.mxu3 }
 0x37e   : > { %v3695_v57 = vadd.f32 %v6692_v44, %v3451_v37 }
 0x37f   : > { %3492 = vmatmul.bf16.gmra.mxu0 %v4755_v11  ;;  %v3185_v6 = vpop.f32.mrf.mxu2  ;;  %v4818_v11 = vld [vmem:[%s5743_s7 + $0x690] sm:$0xf] }
 0x380   : > { %v3745_v40 = vmax.f32 %v3695_v57, 0.0  ;;  %v3186_v13 = vadd.f32 %v3185_v6, %v3052_v8  ;;  %v4815_v8 = vor.u32 %v5363_v49, %v4812_v52 }
 0x381   : > { %v3053_v39 = vpop.f32.mrf.mxu1 }
 0x382   : > { %v5514_v0 = vpack.c.bf16 %v3745_v40, %v3744_v5  ;;  %v3320_v42 = vadd.f32 %v6890_v21, %v3186_v13  ;;  %v3054_v19 = vadd.f32 %v3053_v39, %v6454_v27  ;;  %3373 = vmatmul.bf16.gmra.mxu3 %v4859_v33 }
 0x384   : > { %v3455_v22 = vpop.f32.mrf.mxu0  ;;  %5587 = vst [vmem:[%s6704_s11 + $0x60] sm:$0xff] %v5514_v0   ;;  %v3454_v18 = vadd.f32 %v3453_v2, %v3320_v42  ;;  %v5369_v2 = vld [vmem:[%s5743_s7 + $0x6b8] sm:$0xf0] }
 0x385   : > { %v4827_v40 = vor.u32 %v5369_v2, %v4826_v30 }
 0x386   : > { %v3696_v45 = vadd.f32 %v6692_v44, %v3454_v18  ;;  %v4854_v18 = vld [vmem:[%s5743_s7 + $0x6d8] sm:$0xf] }
 0x387   : > { %v3187_v34 = vpop.f32.mrf.mxu2 }
 0x388   : > { %v3188_v48 = vadd.f32 %v3187_v34, %v3054_v19  ;;  %v3746_v43 = vmax.f32 %v3696_v45, 0.0  ;;  %v4848_v34 = vld [vmem:[%s5743_s7 + $0x6f4] sm:$0xf0] }
 0x389   : > { %v3056_v63 = vpop.f32.mrf.mxu1 }
 0x38a   : > { %v3322_v21 = vadd.f32 %v6896_v1, %v3188_v48  ;;  %v3057_v53 = vadd.f32 %v3056_v63, %v6463_v23  ;;  %v6951_v1 = vpop.f32.mrf.mxu3  ;;  %v5377_v48 = vld [vmem:[%s5743_s7 + $0x6f8] sm:$0xf0] }
 0x38b   : > { %v4855_v45 = vor.u32 %v5377_v48, %v4854_v18 }
 0x38c   : > { %v3458_v56 = vpop.f32.mrf.mxu0  ;;  %v3456_v36 = vadd.f32 %v3455_v22, %v3322_v21  ;;  %3095 = vmatmul.bf16.gmra.mxu1 %v4779_v25  ;;  %3229 = vmatmul.bf16.gmra.mxu2 %v4783_v61  ;;  %v5378_v61 = vld [vmem:[%s5743_s7 + $0x700] sm:$0xf0] }
 0x38e   : > { %v3697_v27 = vadd.f32 %v6692_v44, %v3456_v36  ;;  %v5368_v44 = vld [vmem:[%s5743_s7 + $0x6b0] sm:$0xf0] }
 0x38f   : > { %3497 = vmatmul.bf16.gmra.mxu0 %v4791_v29  ;;  %v3190_v16 = vpop.f32.mrf.mxu2  ;;  %v4819_v6 = vor.u32 %v5368_v44, %v4818_v11 }
 0x390   : > { %v3747_v7 = vmax.f32 %v3697_v27, 0.0  ;;  %v3191_v4 = vadd.f32 %v3190_v16, %v3057_v53 }
 0x391   : > { %v3058_v28 = vpop.f32.mrf.mxu1 }
 0x392   : > { %v5519_v35 = vpack.c.bf16 %v3747_v7, %v3746_v43  ;;  %v3325_v9 = vadd.f32 %v6909_v54, %v3191_v4  ;;  %v3059_v23 = vadd.f32 %v3058_v28, %v6474_v38  ;;  %v3336_v13 = vpop.f32.mrf.mxu3  ;;  %v6966_v54 = vld [vmem:[%s7041_s2] ss:$0 sm:$0xff] }
 0x394   : > { %v3460_v3 = vpop.f32.mrf.mxu0  ;;  %5588 = vst [vmem:[%s6704_s11 + $0x68] sm:$0xff] %v5519_v35   ;;  %v3459_v37 = vadd.f32 %v3458_v56, %v3325_v9  ;;  %v4851_v56 = vor.u32 %v5372_v10, %v4848_v34 }
 0x396   : > { %v3698_v38 = vadd.f32 %v6966_v54, %v3459_v37 }
 0x397   : > { %v3192_v55 = vpop.f32.mrf.mxu2 }
 0x398   : > { %v3193_v57 = vadd.f32 %v3192_v55, %v3059_v23  ;;  %v3748_v42 = vmax.f32 %v3698_v38, 0.0 }
 0x399   : > { %v3061_v5 = vpop.f32.mrf.mxu1 }
 0x39a   : > { %v3327_v39 = vadd.f32 %v6915_v50, %v3193_v57  ;;  %v3062_v50 = vadd.f32 %v3061_v5, %v6483_v14  ;;  %v3339_v19 = vpop.f32.mrf.mxu3  ;;  %v4862_v14 = vld [vmem:[%s5743_s7 + $0x6e0] sm:$0xf] }
 0x39b   : > { %v4863_v27 = vor.u32 %v5378_v61, %v4862_v14 }
 0x39c   : > { %v3463_v0 = vpop.f32.mrf.mxu0  ;;  %v3461_v22 = vadd.f32 %v3460_v3, %v3327_v39  ;;  %3100 = vmatmul.bf16.gmra.mxu1 %v4815_v8  ;;  %3234 = vmatmul.bf16.gmra.mxu2 %v4819_v6 }
 0x39e   : > { %v3699_v32 = vadd.f32 %v6966_v54, %v3461_v22 }
 0x39f   : > { %3502 = vmatmul.bf16.gmra.mxu0 %v4827_v40  ;;  %v3195_v26 = vpop.f32.mrf.mxu2 }
 0x3a0   : > { %v3749_v20 = vmax.f32 %v3699_v32, 0.0  ;;  %v3196_v33 = vadd.f32 %v3195_v26, %v3062_v50 }
 0x3a1   : > { %v3063_v58 = vpop.f32.mrf.mxu1 }
 0x3a2   : > { %v5524_v41 = vpack.c.bf16 %v3749_v20, %v3748_v42  ;;  %v3330_v62 = vadd.f32 %v6929_v60, %v3196_v33  ;;  %v3064_v25 = vadd.f32 %v3063_v58, %v6494_v59  ;;  %v3341_v59 = vpop.f32.mrf.mxu3 }
 0x3a4   : > { %v3465_v47 = vpop.f32.mrf.mxu0  ;;  %5589 = vst [vmem:[%s6704_s11 + $0x70] sm:$0xff] %v5524_v41   ;;  %v3464_v29 = vadd.f32 %v3463_v0, %v3330_v62 }
 0x3a6   : > { %v3700_v60 = vadd.f32 %v6966_v54, %v3464_v29 }
 0x3a7   : > { %v3197_v63 = vpop.f32.mrf.mxu2 }
 0x3a8   : > { %v3198_v21 = vadd.f32 %v3197_v63, %v3064_v25  ;;  %v3750_v35 = vmax.f32 %v3700_v60, 0.0 }
 0x3a9   : > { %v3066_v36 = vpop.f32.mrf.mxu1 }
 0x3aa   : > { %v3332_v53 = vadd.f32 %v6942_v31, %v3198_v21  ;;  %v3067_v4 = vadd.f32 %v3066_v36, %v6503_v12  ;;  %v3344_v30 = vpop.f32.mrf.mxu3 }
 0x3ac   : > { %v3468_v16 = vpop.f32.mrf.mxu0  ;;  %v3466_v43 = vadd.f32 %v3465_v47, %v3332_v53  ;;  %3105 = vmatmul.bf16.gmra.mxu1 %v4851_v56  ;;  %3239 = vmatmul.bf16.gmra.mxu2 %v4855_v45 }
 0x3ae   : > { %v3701_v7 = vadd.f32 %v6966_v54, %v3466_v43 }
 0x3af   : > { %3507 = vmatmul.bf16.gmra.mxu0 %v4863_v27  ;;  %v3200_v28 = vpop.f32.mrf.mxu2 }
 0x3b0   : > { %v3751_v3 = vmax.f32 %v3701_v7, 0.0  ;;  %v3201_v9 = vadd.f32 %v3200_v28, %v3067_v4  ;;  %v7081_v7 = vld [vmem:[#allocation16_spill] sm:$0xff] }
 0x3b1   : > { %v3068_v49 = vpop.f32.mrf.mxu1 }
 0x3b2   : > { %v5529_v52 = vpack.c.bf16 %v3751_v3, %v3750_v35  ;;  %v3335_v11 = vadd.f32 %v6951_v1, %v3201_v9  ;;  %v3069_v44 = vadd.f32 %v3068_v49, %v6514_v15  ;;  %v3346_v22 = vpop.f32.mrf.mxu3 }
 0x3b4   : > { %v3470_v31 = vpop.f32.mrf.mxu0  ;;  %5590 = vst [vmem:[%s6704_s11 + $0x78] sm:$0xff] %v5529_v52   ;;  %v3469_v2 = vadd.f32 %v3468_v16, %v3335_v11 }
 0x3b6   : > { %v3702_v8 = vadd.f32 %v6966_v54, %v3469_v2 }
 0x3b7   : > { %v3202_v23 = vpop.f32.mrf.mxu2 }
 0x3b8   : > { %v3203_v55 = vadd.f32 %v3202_v23, %v3069_v44  ;;  %v3752_v0 = vmax.f32 %v3702_v8, 0.0  ;;  %v7082_v44 = vld [vmem:[#allocation11_spill] sm:$0xff] }
 0x3b9   : > { %v3071_v37 = vpop.f32.mrf.mxu1 }
 0x3ba   : > { %v3337_v57 = vadd.f32 %v3336_v13, %v3203_v55  ;;  %v3072_v40 = vadd.f32 %v3071_v37, %v6523_v24  ;;  %v3349_v24 = vpop.f32.mrf.mxu3 }
 0x3bc   : > { %v3473_v12 = vpop.f32.mrf.mxu0  ;;  %v3471_v6 = vadd.f32 %v3470_v31, %v3337_v57 }
 0x3be   : > { %v3703_v5 = vadd.f32 %v6966_v54, %v3471_v6 }
 0x3bf   : > { %v3205_v39 = vpop.f32.mrf.mxu2 }
 0x3c0   : > { %v3753_v1 = vmax.f32 %v3703_v5, 0.0  ;;  %v3206_v38 = vadd.f32 %v3205_v39, %v3072_v40  ;;  %v7083_v39 = vld [vmem:[#allocation12_spill] sm:$0xff] }
 0x3c1   : > { %v3073_v15 = vpop.f32.mrf.mxu1 }
 0x3c2   : > { %v5534_v32 = vpack.c.bf16 %v3753_v1, %v3752_v0  ;;  %v3340_v26 = vadd.f32 %v3339_v19, %v3206_v38  ;;  %v3074_v13 = vadd.f32 %v3073_v15, %v6534_v51  ;;  %v3351_v21 = vpop.f32.mrf.mxu3 }
 0x3c4   : > { %v3475_v50 = vpop.f32.mrf.mxu0  ;;  %5591 = vst [vmem:[%s6704_s11 + $0x80] sm:$0xff] %v5534_v32   ;;  %v3474_v20 = vadd.f32 %v3473_v12, %v3340_v26 }
 0x3c6   : > { %v3704_v62 = vadd.f32 %v6966_v54, %v3474_v20  ;;  %v7084_v20 = vld [vmem:[#allocation13_spill] sm:$0xff] }
 0x3c7   : > { %v3207_v42 = vpop.f32.mrf.mxu2 }
 0x3c8   : > { %v3208_v33 = vadd.f32 %v3207_v42, %v3074_v13  ;;  %v3754_v25 = vmax.f32 %v3704_v62, 0.0 }
 0x3c9   : > { %v3076_v58 = vpop.f32.mrf.mxu1 }
 0x3ca   : > { %v3342_v41 = vadd.f32 %v3341_v59, %v3208_v33  ;;  %v3077_v18 = vadd.f32 %v3076_v58, %v6543_v46  ;;  %v3354_v35 = vpop.f32.mrf.mxu3 }
 0x3cc   : > { %v3478_v47 = vpop.f32.mrf.mxu0  ;;  %v3476_v10 = vadd.f32 %v3475_v50, %v3342_v41 }
 0x3ce   : > { %v3705_v34 = vadd.f32 %v6966_v54, %v3476_v10 }
 0x3cf   : > { %v3210_v48 = vpop.f32.mrf.mxu2 }
 0x3d0   : > { %v3755_v19 = vmax.f32 %v3705_v34, 0.0  ;;  %v3211_v14 = vadd.f32 %v3210_v48, %v3077_v18 }
 0x3d1   : > { %v3078_v51 = vpop.f32.mrf.mxu1 }
 0x3d2   : > { %v5539_v61 = vpack.c.bf16 %v3755_v19, %v3754_v25  ;;  %v3345_v29 = vadd.f32 %v3344_v30, %v3211_v14  ;;  %v3079_v56 = vadd.f32 %v3078_v51, %v6554_v17  ;;  %v3356_v57 = vpop.f32.mrf.mxu3  ;;  %v7085_v19 = vld [vmem:[#allocation3_spill] sm:$0xff] }
 0x3d4   : > { %v3480_v63 = vpop.f32.mrf.mxu0  ;;  %5592 = vst [vmem:[%s6704_s11 + $0x88] sm:$0xff] %v5539_v61   ;;  %v3479_v36 = vadd.f32 %v3478_v47, %v3345_v29 }
 0x3d6   : > { %v3706_v46 = vadd.f32 %v6966_v54, %v3479_v36 }
 0x3d7   : > { %v3212_v45 = vpop.f32.mrf.mxu2 }
 0x3d8   : > { %v3213_v27 = vadd.f32 %v3212_v45, %v3079_v56  ;;  %v3756_v3 = vmax.f32 %v3706_v46, 0.0 }
 0x3d9   : > { %v3081_v53 = vpop.f32.mrf.mxu1 }
 0x3da   : > { %v3347_v16 = vadd.f32 %v3346_v22, %v3213_v27  ;;  %v3082_v4 = vadd.f32 %v3081_v53, %v7081_v7  ;;  %v3359_v13 = vpop.f32.mrf.mxu3  ;;  %v7086_v27 = vld [vmem:[#allocation4_spill] sm:$0xff] }
 0x3dc   : > { %v3483_v60 = vpop.f32.mrf.mxu0  ;;  %v3481_v43 = vadd.f32 %v3480_v63, %v3347_v16 }
 0x3de   : > { %v3707_v59 = vadd.f32 %v6966_v54, %v3481_v43 }
 0x3df   : > { %v3215_v28 = vpop.f32.mrf.mxu2 }
 0x3e0   : > { %v3757_v9 = vmax.f32 %v3707_v59, 0.0  ;;  %v3216_v49 = vadd.f32 %v3215_v28, %v3082_v4 }
 0x3e1   : > { %v3083_v17 = vpop.f32.mrf.mxu1 }
 0x3e2   : > { %v5544_v52 = vpack.c.bf16 %v3757_v9, %v3756_v3  ;;  %v3350_v11 = vadd.f32 %v3349_v24, %v3216_v49  ;;  %v3084_v23 = vadd.f32 %v3083_v17, %v7082_v44  ;;  %v3361_v48 = vpop.f32.mrf.mxu3  ;;  %v7087_v9 = vld [vmem:[#allocation5_spill] sm:$0xff] }
 0x3e4   : > { %v3485_v31 = vpop.f32.mrf.mxu0  ;;  %5593 = vst [vmem:[%s6704_s11 + $0x90] sm:$0xff] %v5544_v52   ;;  %v3484_v2 = vadd.f32 %v3483_v60, %v3350_v11 }
 0x3e6   : > { %v3708_v6 = vadd.f32 %v6966_v54, %v3484_v2 }
 0x3e7   : > { %v3217_v30 = vpop.f32.mrf.mxu2 }
 0x3e8   : > { %v3218_v55 = vadd.f32 %v3217_v30, %v3084_v23  ;;  %v3758_v38 = vmax.f32 %v3708_v6, 0.0 }
 0x3e9   : > { %v3086_v37 = vpop.f32.mrf.mxu1 }
 0x3ea   : > { %v3352_v12 = vadd.f32 %v3351_v21, %v3218_v55  ;;  %v3087_v0 = vadd.f32 %v3086_v37, %v7083_v39  ;;  %v3364_v60 = vpop.f32.mrf.mxu3  ;;  %v7088_v37 = vld [vmem:[#allocation6_spill] sm:$0xff] }
 0x3ec   : > { %v3488_v8 = vpop.f32.mrf.mxu0  ;;  %v3486_v5 = vadd.f32 %v3485_v31, %v3352_v12 }
 0x3ee   : > { %v3709_v40 = vadd.f32 %v6966_v54, %v3486_v5 }
 0x3ef   : > { %v3220_v1 = vpop.f32.mrf.mxu2 }
 0x3f0   : > { %v3759_v15 = vmax.f32 %v3709_v40, 0.0  ;;  %v3221_v22 = vadd.f32 %v3220_v1, %v3087_v0 }
 0x3f1   : > { %v3088_v32 = vpop.f32.mrf.mxu1 }
 0x3f2   : > { %v5549_v50 = vpack.c.bf16 %v3759_v15, %v3758_v38  ;;  %v3355_v42 = vadd.f32 %v3354_v35, %v3221_v22  ;;  %v3089_v33 = vadd.f32 %v3088_v32, %v7084_v20  ;;  %v3366_v23 = vpop.f32.mrf.mxu3  ;;  %v7089_v22 = vld [vmem:[#allocation7_spill] sm:$0xff] }
 0x3f4   : > { %v3490_v26 = vpop.f32.mrf.mxu0  ;;  %5594 = vst [vmem:[%s6704_s11 + $0x98] sm:$0xff] %v5549_v50   ;;  %v3489_v41 = vadd.f32 %v3488_v8, %v3355_v42 }
 0x3f6   : > { %v3710_v34 = vadd.f32 %v6966_v54, %v3489_v41 }
 0x3f7   : > { %v3222_v58 = vpop.f32.mrf.mxu2 }
 0x3f8   : > { %v3223_v47 = vadd.f32 %v3222_v58, %v3089_v33  ;;  %v3760_v61 = vmax.f32 %v3710_v34, 0.0 }
 0x3f9   : > { %v3091_v24 = vpop.f32.mrf.mxu1 }
 0x3fa   : > { %v3357_v62 = vadd.f32 %v3356_v57, %v3223_v47  ;;  %v3092_v14 = vadd.f32 %v3091_v24, %v7085_v19  ;;  %v3369_v39 = vpop.f32.mrf.mxu3  ;;  %v7090_v47 = vld [vmem:[#allocation8_spill] sm:$0xff] }
 0x3fc   : > { %v3493_v10 = vpop.f32.mrf.mxu0  ;;  %v3491_v18 = vadd.f32 %v3490_v26, %v3357_v62 }
 0x3fe   : > { %v3711_v25 = vadd.f32 %v6966_v54, %v3491_v18 }
 0x3ff   : > { %v3225_v51 = vpop.f32.mrf.mxu2 }
 0x400   : > { %v3761_v63 = vmax.f32 %v3711_v25, 0.0  ;;  %v3226_v29 = vadd.f32 %v3225_v51, %v3092_v14 }
 0x401   : > { %v3093_v21 = vpop.f32.mrf.mxu1 }
 0x402   : > { %v5554_v56 = vpack.c.bf16 %v3761_v63, %v3760_v61  ;;  %v3360_v36 = vadd.f32 %v3359_v13, %v3226_v29  ;;  %v3094_v53 = vadd.f32 %v3093_v21, %v7086_v27  ;;  %v3371_v41 = vpop.f32.mrf.mxu3  ;;  %v7091_v61 = vld [vmem:[#allocation9_spill] sm:$0xff] }
 0x404   : > { %v3495_v45 = vpop.f32.mrf.mxu0  ;;  %5595 = vst [vmem:[%s6704_s11 + $0xa0] sm:$0xff] %v5554_v56   ;;  %v3494_v46 = vadd.f32 %v3493_v10, %v3360_v36 }
 0x406   : > { %v3712_v28 = vadd.f32 %v6966_v54, %v3494_v46  ;;  %v7092_v46 = vld [vmem:[#allocation10_spill] sm:$0xff] }
 0x407   : > { %v3227_v16 = vpop.f32.mrf.mxu2 }
 0x408   : > { %v3228_v43 = vadd.f32 %v3227_v16, %v3094_v53  ;;  %v3762_v52 = vmax.f32 %v3712_v28, 0.0 }
 0x409   : > { %v3096_v59 = vpop.f32.mrf.mxu1 }
 0x40a   : > { %v3362_v7 = vadd.f32 %v3361_v48, %v3228_v43  ;;  %v3097_v49 = vadd.f32 %v3096_v59, %v7087_v9  ;;  %v3374_v29 = vpop.f32.mrf.mxu3 }
 0x40c   : > { %v3498_v4 = vpop.f32.mrf.mxu0  ;;  %v3496_v35 = vadd.f32 %v3495_v45, %v3362_v7 }
 0x40e   : > { %v3713_v3 = vadd.f32 %v6966_v54, %v3496_v35 }
 0x40f   : > { %v3230_v17 = vpop.f32.mrf.mxu2 }
 0x410   : > { %v3763_v31 = vmax.f32 %v3713_v3, 0.0  ;;  %v3231_v11 = vadd.f32 %v3230_v17, %v3097_v49 }
 0x411   : > { %v3098_v44 = vpop.f32.mrf.mxu1 }
 0x412   : > { %v5559_v30 = vpack.c.bf16 %v3763_v31, %v3762_v52  ;;  %v3365_v55 = vadd.f32 %v3364_v60, %v3231_v11  ;;  %v3099_v57 = vadd.f32 %v3098_v44, %v7088_v37  ;;  %v3376_v28 = vpop.f32.mrf.mxu3 }
 0x414   : > { %v3500_v2 = vpop.f32.mrf.mxu0  ;;  %5596 = vst [vmem:[%s6704_s11 + $0xa8] sm:$0xff] %v5559_v30   ;;  %v3499_v8 = vadd.f32 %v3498_v4, %v3365_v55 }
 0x416   : > { %v3714_v0 = vadd.f32 %v6966_v54, %v3499_v8 }
 0x417   : > { %v3232_v12 = vpop.f32.mrf.mxu2 }
 0x418   : > { %v3233_v6 = vadd.f32 %v3232_v12, %v3099_v57  ;;  %v3764_v26 = vmax.f32 %v3714_v0, 0.0 }
 0x419   : > { %v3101_v5 = vpop.f32.mrf.mxu1 }
 0x41a   : > { %v3367_v40 = vadd.f32 %v3366_v23, %v3233_v6  ;;  %v3102_v32 = vadd.f32 %v3101_v5, %v7089_v22 }
 0x41c   : > { %v3501_v1 = vadd.f32 %v3500_v2, %v3367_v40  ;;  %v3503_v38 = vpop.f32.mrf.mxu0 }
 0x41e   : > { %v3715_v15 = vadd.f32 %v6966_v54, %v3501_v1 }
 0x41f   : > { %v3235_v50 = vpop.f32.mrf.mxu2 }
 0x420   : > { %v3765_v13 = vmax.f32 %v3715_v15, 0.0  ;;  %v3236_v42 = vadd.f32 %v3235_v50, %v3102_v32 }
 0x421   : > { %v3103_v20 = vpop.f32.mrf.mxu1 }
 0x422   : > { %v5564_v33 = vpack.c.bf16 %v3765_v13, %v3764_v26  ;;  %v3370_v58 = vadd.f32 %v3369_v39, %v3236_v42  ;;  %v3104_v24 = vadd.f32 %v3103_v20, %v7090_v47 }
 0x424   : > { %5597 = vst [vmem:[%s6704_s11 + $0xb0] sm:$0xff] %v5564_v33   ;;  %v3505_v62 = vpop.f32.mrf.mxu0  ;;  %v3504_v34 = vadd.f32 %v3503_v38, %v3370_v58 }
 0x426   : > { %v3716_v19 = vadd.f32 %v6966_v54, %v3504_v34 }
 0x427   : > { %v3237_v10 = vpop.f32.mrf.mxu2 }
 0x428   : > { %v3238_v18 = vadd.f32 %v3237_v10, %v3104_v24  ;;  %v3766_v56 = vmax.f32 %v3716_v19, 0.0 }
 0x429   : > { %v3106_v48 = vpop.f32.mrf.mxu1 }
 0x42a   : > { %v3372_v25 = vadd.f32 %v3371_v41, %v3238_v18  ;;  %v3107_v63 = vadd.f32 %v3106_v48, %v7091_v61 }
 0x42c   : > { %v3506_v14 = vadd.f32 %v3505_v62, %v3372_v25  ;;  %v3508_v27 = vpop.f32.mrf.mxu0 }
 0x42e   : > { %v3717_v51 = vadd.f32 %v6966_v54, %v3506_v14 }
 0x42f   : > { %v3240_v21 = vpop.f32.mrf.mxu2 }
 0x430   : > { %v3767_v45 = vmax.f32 %v3717_v51, 0.0  ;;  %v3241_v36 = vadd.f32 %v3240_v21, %v3107_v63 }
 0x431   : > { %v3108_v16 = vpop.f32.mrf.mxu1 }
 0x432   : > { %v5569_v53 = vpack.c.bf16 %v3767_v45, %v3766_v56  ;;  %v3375_v60 = vadd.f32 %v3374_v29, %v3241_v36  ;;  %v3109_v43 = vadd.f32 %v3108_v16, %v7092_v46 }
 0x434   : > { %5598 = vst [vmem:[%s6704_s11 + $0xb8] sm:$0xff] %v5569_v53   ;;  %v3509_v7 = vadd.f32 %v3508_v27, %v3375_v60  ;;  %v3510_v3 = vpop.f32.mrf.mxu0 }
 0x436   : > { %v3718_v9 = vadd.f32 %v6966_v54, %v3509_v7 }
 0x437   : > { %v3242_v59 = vpop.f32.mrf.mxu2 }
 0x438   : > { %v3243_v4 = vadd.f32 %v3242_v59, %v3109_v43  ;;  %v3768_v52 = vmax.f32 %v3718_v9, 0.0 }
 0x43a   : > { %v3377_v35 = vadd.f32 %v3376_v28, %v3243_v4 }
 0x43c   : > { %v3511_v49 = vadd.f32 %v3510_v3, %v3377_v35 }
 0x43e   : > { %v3719_v17 = vadd.f32 %v6966_v54, %v3511_v49 }
 0x440   : > { %v3769_v31 = vmax.f32 %v3719_v17, 0.0 }
 0x442   : > { %v5574_v11 = vpack.c.bf16 %v3769_v31, %v3768_v52 }
 0x444   : > { %5599 = vst [vmem:[%s6704_s11 + $0xc0] sm:$0xff] %v5574_v11  }
 0x445 PF: > { %s13_s14 = sadd.s32 1, %s5673_s14   ;;  %s7093_s12 = smov %s5669_s13 }
 0x446   : > { %p10_p5 = scmp.ge.s32.totalorder %s13_s14, 6   ;;  %s7094_s13 = smov %s7096_s15 }
 0x448   :  { %12 = sbr.rel (!%p10_p5) target bundleno = 2 (0x2), region = 73 }

// kernel: net3_forward.12
= control target key start
LH: loop header
LB: loop body
LE: loop exit
PB: predicated region body
PF: predicated region fallthrough
CT: control target
= control target key end

     0   :  { %s5760_s1 = inlined_call_operand.vmem [shape: bf16[1152,128], index: 1, kind: input, shape index: {}]   ;;  %s5761_s0 = inlined_call_operand.vmem [shape: bf16[288,1152], index: 0, kind: input, shape index: {}]   ;;  %s5762_s2 = inlined_call_operand.vmem [shape: f32[1,128], index: 2, kind: input, shape index: {}]   ;;  %s5763_s3 = inlined_call_operand.vmem [shape: bf16[288,128], index: 3, kind: output, shape index: {}]  }
   0x1   :  { %v3933_v0 = vld [vmem:[%s5760_s1 + $0x38] sm:$0xff]  ;;  %v3932_v1 = vld [vmem:[%s5760_s1 + $0x30] sm:$0xff]  ;;  %v3931_v2 = vld [vmem:[%s5760_s1 + $0x28] sm:$0xff] }
   0x2   :  { %4105 = vmatpush.bf16.msra.mxu1 %v3933_v0  ;;  %4106 = vmatpush.bf16.msra.mxu2 %v3933_v0  ;;  %v3930_v3 = vld [vmem:[%s5760_s1 + $0x20] sm:$0xff]  ;;  %v3929_v4 = vld [vmem:[%s5760_s1 + $0x18] sm:$0xff]  ;;  %v3928_v5 = vld [vmem:[%s5760_s1 + $0x10] sm:$0xff] }
   0x3   :  { %1674 = vmatpush.bf16.msra.mxu0 %v3933_v0  ;;  %4107 = vmatpush.bf16.msra.mxu3 %v3933_v0  ;;  %v3927_v6 = vld [vmem:[%s5760_s1 + $0x8] sm:$0xff]  ;;  %v3926_v7 = vld [vmem:[%s5760_s1] sm:$0xff]  ;;  %v3190_v10 = vld [vmem:[%s5761_s0 + $0x2d0] sm:$0xf] }
   0x4   :  { %v3010_v8 = vld [vmem:[%s5761_s0 + $0x168] sm:$0xf]  ;;  %v3813_v9 = vld [vmem:[%s5761_s0 + $0x188] sm:$0xf0]  ;;  %v3858_v11 = vld [vmem:[%s5761_s0 + $0x2f0] sm:$0xf0] }
   0x5   :  { %v3949_v12 = vld [vmem:[%s5760_s1 + $0xb8] sm:$0xff]  ;;  %v2830_v13 = vld [vmem:[%s5761_s0] sm:$0xf]  ;;  %v3768_v14 = vld [vmem:[%s5761_s0 + $0x20] sm:$0xf0]  ;;  %v3011_v17 = vor.u32 %v3813_v9, %v3010_v8  ;;  %v3191_v18 = vor.u32 %v3858_v11, %v3190_v10 }
   0x6   :  { %4108 = vmatpush.bf16.msra.mxu1 %v3932_v1  ;;  %4109 = vmatpush.bf16.msra.mxu2 %v3932_v1  ;;  %v3941_v15 = vld [vmem:[%s5760_s1 + $0x78] sm:$0xff]  ;;  %v2831_v19 = vor.u32 %v3768_v14, %v2830_v13  ;;  %v3948_v22 = vld [vmem:[%s5760_s1 + $0xb0] sm:$0xff]  ;;  %v3947_v27 = vld [vmem:[%s5760_s1 + $0xa8] sm:$0xff] }
   0x7   :  { %1675 = vmatpush.bf16.msra.mxu0 %v3932_v1  ;;  %4110 = vmatpush.bf16.msra.mxu3 %v3932_v1  ;;  %v3965_v16 = vld [vmem:[%s5760_s1 + $0x138] sm:$0xff]  ;;  %v3940_v23 = vld [vmem:[%s5760_s1 + $0x70] sm:$0xff]  ;;  %v3939_v28 = vld [vmem:[%s5760_s1 + $0x68] sm:$0xff] }
   0x8   :  { %v3370_v20 = vld [vmem:[%s5761_s0 + $0x438] sm:$0xf]  ;;  %v3903_v21 = vld [vmem:[%s5761_s0 + $0x458] sm:$0xf0]  ;;  %v3964_v24 = vld [vmem:[%s5760_s1 + $0x130] sm:$0xff] }
   0x9   :  { %v3371_v25 = vor.u32 %v3903_v21, %v3370_v20  ;;  %v3957_v26 = vld [vmem:[%s5760_s1 + $0xf8] sm:$0xff]  ;;  %v3963_v29 = vld [vmem:[%s5760_s1 + $0x128] sm:$0xff]  ;;  %v3956_v30 = vld [vmem:[%s5760_s1 + $0xf0] sm:$0xff] }
   0xa   :  { %4111 = vmatpush.bf16.msra.mxu1 %v3931_v2  ;;  %4112 = vmatpush.bf16.msra.mxu2 %v3931_v2  ;;  %v3946_v31 = vld [vmem:[%s5760_s1 + $0xa0] sm:$0xff]  ;;  %v3046_v34 = vld [vmem:[%s5761_s0 + $0x1b0] sm:$0xf]  ;;  %v3822_v35 = vld [vmem:[%s5761_s0 + $0x1d0] sm:$0xf0] }
   0xb   :  { %1676 = vmatpush.bf16.msra.mxu0 %v3931_v2  ;;  %4113 = vmatpush.bf16.msra.mxu3 %v3931_v2  ;;  %v3938_v32 = vld [vmem:[%s5760_s1 + $0x60] sm:$0xff]  ;;  %v3226_v36 = vld [vmem:[%s5761_s0 + $0x318] sm:$0xf]  ;;  %v3867_v37 = vld [vmem:[%s5761_s0 + $0x338] sm:$0xf0]  ;;  %v3047_v43 = vor.u32 %v3822_v35, %v3046_v34 }
   0xc   :  { %v3962_v33 = vld [vmem:[%s5760_s1 + $0x120] sm:$0xff]  ;;  %v3955_v38 = vld [vmem:[%s5760_s1 + $0xe8] sm:$0xff]  ;;  %v3945_v41 = vld [vmem:[%s5760_s1 + $0x98] sm:$0xff]  ;;  %v3227_v44 = vor.u32 %v3867_v37, %v3226_v36 }
   0xd   :  { %v2866_v39 = vld [vmem:[%s5761_s0 + $0x48] sm:$0xf]  ;;  %v3777_v40 = vld [vmem:[%s5761_s0 + $0x68] sm:$0xf0]  ;;  %v3937_v42 = vld [vmem:[%s5760_s1 + $0x58] sm:$0xff] }
   0xe   :  { %4114 = vmatpush.bf16.msra.mxu1 %v3930_v3  ;;  %4115 = vmatpush.bf16.msra.mxu2 %v3930_v3  ;;  %v2867_v45 = vor.u32 %v3777_v40, %v2866_v39  ;;  %v3406_v46 = vld [vmem:[%s5761_s0 + $0x480] sm:$0xf]  ;;  %v3912_v47 = vld [vmem:[%s5761_s0 + $0x4a0] sm:$0xf0]  ;;  %v3944_v49 = vld [vmem:[%s5760_s1 + $0x90] sm:$0xff] }
   0xf   :  { %1677 = vmatpush.bf16.msra.mxu0 %v3930_v3  ;;  %4116 = vmatpush.bf16.msra.mxu3 %v3930_v3  ;;  %v3407_v48 = vor.u32 %v3912_v47, %v3406_v46  ;;  %v3961_v50 = vld [vmem:[%s5760_s1 + $0x118] sm:$0xff]  ;;  %v3954_v51 = vld [vmem:[%s5760_s1 + $0xe0] sm:$0xff]  ;;  %v3936_v52 = vld [vmem:[%s5760_s1 + $0x50] sm:$0xff] }
  0x10   :  { %v3943_v53 = vld [vmem:[%s5760_s1 + $0x88] sm:$0xff]  ;;  %v3960_v54 = vld [vmem:[%s5760_s1 + $0x110] sm:$0xff]  ;;  %v3953_v55 = vld [vmem:[%s5760_s1 + $0xd8] sm:$0xff] }
  0x11   :  { %v3082_v56 = vld [vmem:[%s5761_s0 + $0x1f8] sm:$0xf]  ;;  %v3831_v57 = vld [vmem:[%s5761_s0 + $0x218] sm:$0xf0]  ;;  %v3262_v58 = vld [vmem:[%s5761_s0 + $0x360] sm:$0xf] }
  0x12   :  { %4117 = vmatpush.bf16.msra.mxu1 %v3929_v4  ;;  %4118 = vmatpush.bf16.msra.mxu2 %v3929_v4  ;;  %v3876_v59 = vld [vmem:[%s5761_s0 + $0x380] sm:$0xf0]  ;;  %v3952_v60 = vld [vmem:[%s5760_s1 + $0xd0] sm:$0xff]  ;;  %v3083_v63 = vor.u32 %v3831_v57, %v3082_v56  ;;  %v3442_v2 = vld [vmem:[%s5761_s0 + $0x4c8] sm:$0xf] }
  0x13   :  { %1678 = vmatpush.bf16.msra.mxu0 %v3929_v4  ;;  %4119 = vmatpush.bf16.msra.mxu3 %v3929_v4  ;;  %v2902_v61 = vld [vmem:[%s5761_s0 + $0x90] sm:$0xf]  ;;  %v3786_v62 = vld [vmem:[%s5761_s0 + $0xb0] sm:$0xf0]  ;;  %v3263_v0 = vor.u32 %v3876_v59, %v3262_v58  ;;  %v3921_v3 = vld [vmem:[%s5761_s0 + $0x4e8] sm:$0xf0] }
  0x14   :  { %v2903_v1 = vor.u32 %v3786_v62, %v2902_v61  ;;  %v3443_v4 = vor.u32 %v3921_v3, %v3442_v2  ;;  %v3959_v8 = vld [vmem:[%s5760_s1 + $0x108] sm:$0xff]  ;;  %v3934_v9 = vld [vmem:[%s5760_s1 + $0x40] sm:$0xff]  ;;  %v3774_v37 = vld [vmem:[%s5761_s0 + $0x54] sm:$0xf] }
  0x15   :  { %v3950_v10 = vld [vmem:[%s5760_s1 + $0xc0] sm:$0xff]  ;;  %v3298_v14 = vld [vmem:[%s5761_s0 + $0x3a8] sm:$0xf]  ;;  %v3765_v21 = vld [vmem:[%s5761_s0 + $0xc] sm:$0xf] }
  0x16   :  { %4120 = vmatpush.bf16.msra.mxu1 %v3928_v5  ;;  %4121 = vmatpush.bf16.msra.mxu2 %v3928_v5  ;;  %v3958_v11 = vld [vmem:[%s5760_s1 + $0x100] sm:$0xff]  ;;  %v2868_v56 = vld [vmem:[%s5761_s0 + $0x6c] sm:$0xf0]  ;;  %v3778_v58 = vld [vmem:[%s5761_s0 + $0x70] sm:$0xf0] }
  0x17   :  { %1679 = vmatpush.bf16.msra.mxu0 %v3928_v5  ;;  %4122 = vmatpush.bf16.msra.mxu3 %v3928_v5  ;;  %v3935_v5 = vld [vmem:[%s5760_s1 + $0x48] sm:$0xff]  ;;  %v3840_v13 = vld [vmem:[%s5761_s0 + $0x260] sm:$0xf0]  ;;  %v2874_v57 = vld [vmem:[%s5761_s0 + $0x50] sm:$0xf] }
  0x18   :  { %v3764_v40 = vld [vmem:[%s5761_s0 + $0x4] sm:$0xf]  ;;  %v2882_v59 = vld [vmem:[%s5761_s0 + $0x58] sm:$0xf]  ;;  %v2875_v62 = vor.u32 %v3778_v58, %v2874_v57  ;;  %v3996_v2 = vld [vmem:[%s5760_s1 + $0x230] sm:$0xff] }
  0x19   :  { %v3809_v58 = vld [vmem:[%s5761_s0 + $0x16c] sm:$0xf] }
  0x1a   :  { %4123 = vmatpush.bf16.msra.mxu1 %v3927_v6  ;;  %4124 = vmatpush.bf16.msra.mxu2 %v3927_v6 }
  0x1b   :  { %1680 = vmatpush.bf16.msra.mxu0 %v3927_v6  ;;  %4125 = vmatpush.bf16.msra.mxu3 %v3927_v6  ;;  %v3951_v6 = vld [vmem:[%s5760_s1 + $0xc8] sm:$0xff] }
  0x1e   :  { %4126 = vmatpush.bf16.msra.mxu1 %v3926_v7  ;;  %4127 = vmatpush.bf16.msra.mxu2 %v3926_v7 }
  0x1f   :  { %1681 = vmatpush.bf16.msra.mxu0 %v3926_v7  ;;  %4128 = vmatpush.bf16.msra.mxu3 %v3926_v7  ;;  %v3942_v7 = vld [vmem:[%s5760_s1 + $0x80] sm:$0xff] }
  0x21   :  { %1707 = vmatmul.bf16.vlgmr.msra.gmra.mxu1 %v3011_v17  ;;  %1732 = vmatmul.bf16.vlgmr.msra.gmra.mxu2 %v3191_v18  ;;  %v3795_v17 = vld [vmem:[%s5761_s0 + $0xf8] sm:$0xf0] }
  0x22   :  { %1872 = vmatpush.bf16.msrb.mxu2 %v3949_v12  ;;  %1773 = vmatpush.bf16.msrb.mxu1 %v3941_v15  ;;  %v3118_v12 = vld [vmem:[%s5761_s0 + $0x240] sm:$0xf]  ;;  %v3885_v15 = vld [vmem:[%s5761_s0 + $0x3c8] sm:$0xf0] }
  0x23   :  { %2070 = vmatpush.bf16.msrb.mxu0 %v3965_v16  ;;  %1757 = vmatmul.bf16.vlgmr.msra.gmra.mxu3 %v3371_v25  ;;  %v2938_v16 = vld [vmem:[%s5761_s0 + $0xd8] sm:$0xf]  ;;  %v3119_v18 = vor.u32 %v3840_v13, %v3118_v12  ;;  %v3801_v13 = vld [vmem:[%s5761_s0 + $0x12c] sm:$0xf] }
  0x24   :  { %1682 = vmatmul.bf16.vlgmr.msra.gmra.mxu0 %v2831_v19  ;;  %1971 = vmatpush.bf16.msrb.mxu3 %v3957_v26  ;;  %v3299_v19 = vor.u32 %v3885_v15, %v3298_v14  ;;  %v2939_v20 = vor.u32 %v3795_v17, %v2938_v16  ;;  %v3989_v25 = vld [vmem:[%s5760_s1 + $0x1f8] sm:$0xff]  ;;  %v2984_v14 = vld [vmem:[%s5761_s0 + $0x14c] sm:$0xf0]  ;;  %v3979_v16 = vld [vmem:[%s5760_s1 + $0x1a8] sm:$0xff] }
  0x25   :  { %v3973_v26 = vld [vmem:[%s5760_s1 + $0x178] sm:$0xff]  ;;  %v2987_v15 = vor.u32 %v3801_v13, %v2984_v14  ;;  %v3987_v17 = vld [vmem:[%s5760_s1 + $0x1e8] sm:$0xff] }
  0x26   :  { %1873 = vmatpush.bf16.msrb.mxu2 %v3948_v22  ;;  %1774 = vmatpush.bf16.msrb.mxu1 %v3940_v23  ;;  %v2840_v22 = vld [vmem:[%s5761_s0 + $0x2c] sm:$0xf0] }
  0x27   :  { %2071 = vmatpush.bf16.msrb.mxu0 %v3964_v24  ;;  %v2843_v23 = vor.u32 %v3765_v21, %v2840_v22  ;;  %v3981_v24 = vld [vmem:[%s5760_s1 + $0x1b8] sm:$0xff]  ;;  %v3796_v21 = vld [vmem:[%s5761_s0 + $0x100] sm:$0xf0]  ;;  %v2954_v22 = vld [vmem:[%s5761_s0 + $0xe8] sm:$0xf] }
  0x28   :  { %1972 = vmatpush.bf16.msrb.mxu3 %v3956_v30  ;;  %v3334_v30 = vld [vmem:[%s5761_s0 + $0x3f0] sm:$0xf] }
  0x2a   :  { %1874 = vmatpush.bf16.msrb.mxu2 %v3947_v27  ;;  %1775 = vmatpush.bf16.msrb.mxu1 %v3939_v28  ;;  %v3997_v27 = vld [vmem:[%s5760_s1 + $0x238] sm:$0xff]  ;;  %v3154_v28 = vld [vmem:[%s5761_s0 + $0x288] sm:$0xf] }
  0x2b   :  { %2072 = vmatpush.bf16.msrb.mxu0 %v3963_v29  ;;  %v3849_v29 = vld [vmem:[%s5761_s0 + $0x2a8] sm:$0xf0] }
  0x2c   :  { %1973 = vmatpush.bf16.msrb.mxu3 %v3955_v38  ;;  %v3155_v34 = vor.u32 %v3849_v29, %v3154_v28  ;;  %v2876_v38 = vld [vmem:[%s5761_s0 + $0x74] sm:$0xf0]  ;;  %v3810_v29 = vld [vmem:[%s5761_s0 + $0x174] sm:$0xf] }
  0x2d   :  { %v2879_v39 = vor.u32 %v3774_v37, %v2876_v38  ;;  %v3800_v38 = vld [vmem:[%s5761_s0 + $0x124] sm:$0xf] }
  0x2e   :  { %1875 = vmatpush.bf16.msrb.mxu2 %v3946_v31  ;;  %1776 = vmatpush.bf16.msrb.mxu1 %v3938_v32  ;;  %v3894_v31 = vld [vmem:[%s5761_s0 + $0x410] sm:$0xf0]  ;;  %v2974_v32 = vld [vmem:[%s5761_s0 + $0x120] sm:$0xf] }
  0x2f   :  { %2073 = vmatpush.bf16.msrb.mxu0 %v3962_v33  ;;  %v3804_v33 = vld [vmem:[%s5761_s0 + $0x140] sm:$0xf0]  ;;  %v3335_v35 = vor.u32 %v3894_v31, %v3334_v30  ;;  %v3020_v30 = vld [vmem:[%s5761_s0 + $0x194] sm:$0xf0] }
  0x30   :  { %1974 = vmatpush.bf16.msrb.mxu3 %v3954_v51  ;;  %v2975_v36 = vor.u32 %v3804_v33, %v2974_v32  ;;  %v3023_v32 = vor.u32 %v3810_v29, %v3020_v30  ;;  %v3995_v33 = vld [vmem:[%s5760_s1 + $0x228] sm:$0xff] }
  0x31   :  { %1712 = vmatmul.bf16.gmra.mxu1 %v3047_v43  ;;  %1737 = vmatmul.bf16.gmra.mxu2 %v3227_v44  ;;  %v3769_v43 = vld [vmem:[%s5761_s0 + $0x28] sm:$0xf0]  ;;  %v2846_v44 = vld [vmem:[%s5761_s0 + $0x10] sm:$0xf] }
  0x32   :  { %1876 = vmatpush.bf16.msrb.mxu2 %v3945_v41  ;;  %1777 = vmatpush.bf16.msrb.mxu1 %v3937_v42  ;;  %v2832_v41 = vld [vmem:[%s5761_s0 + $0x24] sm:$0xf0]  ;;  %v3837_v30 = vld [vmem:[%s5761_s0 + $0x24c] sm:$0xf] }
  0x33   :  { %2074 = vmatpush.bf16.msrb.mxu0 %v3961_v50  ;;  %1762 = vmatmul.bf16.gmra.mxu3 %v3407_v48  ;;  %v2838_v42 = vld [vmem:[%s5761_s0 + $0x8] sm:$0xf]  ;;  %v2835_v46 = vor.u32 %v3764_v40, %v2832_v41  ;;  %v2912_v50 = vld [vmem:[%s5761_s0 + $0xbc] sm:$0xf0]  ;;  %v3805_v41 = vld [vmem:[%s5761_s0 + $0x148] sm:$0xf0] }
  0x34   :  { %1687 = vmatmul.bf16.gmra.mxu0 %v2867_v45  ;;  %1975 = vmatpush.bf16.msrb.mxu3 %v3953_v55  ;;  %v3770_v45 = vld [vmem:[%s5761_s0 + $0x30] sm:$0xf0]  ;;  %v2839_v47 = vor.u32 %v3769_v43, %v2838_v42  ;;  %v3773_v55 = vld [vmem:[%s5761_s0 + $0x4c] sm:$0xf]  ;;  %v2982_v40 = vld [vmem:[%s5761_s0 + $0x128] sm:$0xf] }
  0x35   :  { %v2847_v48 = vor.u32 %v3770_v45, %v2846_v44  ;;  %v2871_v61 = vor.u32 %v3773_v55, %v2868_v56  ;;  %v2990_v42 = vld [vmem:[%s5761_s0 + $0x130] sm:$0xf]  ;;  %v3806_v43 = vld [vmem:[%s5761_s0 + $0x150] sm:$0xf0] }
  0x36   :  { %1877 = vmatpush.bf16.msrb.mxu2 %v3944_v49  ;;  %1778 = vmatpush.bf16.msrb.mxu1 %v3936_v52  ;;  %v3783_v49 = vld [vmem:[%s5761_s0 + $0x9c] sm:$0xf]  ;;  %v3980_v52 = vld [vmem:[%s5760_s1 + $0x1b0] sm:$0xff] }
  0x37   :  { %2075 = vmatpush.bf16.msrb.mxu0 %v3960_v54  ;;  %v2915_v51 = vor.u32 %v3783_v49, %v2912_v50  ;;  %v3972_v54 = vld [vmem:[%s5760_s1 + $0x170] sm:$0xff]  ;;  %v3819_v49 = vld [vmem:[%s5761_s0 + $0x1bc] sm:$0xf]  ;;  %v3056_v50 = vld [vmem:[%s5761_s0 + $0x1dc] sm:$0xf0] }
  0x38   :  { %1976 = vmatpush.bf16.msrb.mxu3 %v3952_v60  ;;  %v3779_v60 = vld [vmem:[%s5761_s0 + $0x78] sm:$0xf0] }
  0x3a   :  { %1878 = vmatpush.bf16.msrb.mxu2 %v3943_v53  ;;  %1779 = vmatpush.bf16.msrb.mxu1 %v3935_v5  ;;  %v3988_v53 = vld [vmem:[%s5760_s1 + $0x1f0] sm:$0xff]  ;;  %v2904_v5 = vld [vmem:[%s5761_s0 + $0xb4] sm:$0xf0] }
  0x3b   :  { %2076 = vmatpush.bf16.msrb.mxu0 %v3959_v8  ;;  %v2918_v8 = vld [vmem:[%s5761_s0 + $0xa0] sm:$0xf] }
  0x3c   :  { %1977 = vmatpush.bf16.msrb.mxu3 %v3951_v6  ;;  %v2910_v6 = vld [vmem:[%s5761_s0 + $0x98] sm:$0xf] }
  0x3e   :  { %1879 = vmatpush.bf16.msrb.mxu2 %v3942_v7  ;;  %1780 = vmatpush.bf16.msrb.mxu1 %v3934_v9  ;;  %v3787_v7 = vld [vmem:[%s5761_s0 + $0xb8] sm:$0xf0]  ;;  %v3788_v9 = vld [vmem:[%s5761_s0 + $0xc0] sm:$0xf0] }
  0x3f   :  { %2077 = vmatpush.bf16.msrb.mxu0 %v3958_v11  ;;  %v2911_v11 = vor.u32 %v3787_v7, %v2910_v6  ;;  %v2919_v12 = vor.u32 %v3788_v9, %v2918_v8  ;;  %v3828_v6 = vld [vmem:[%s5761_s0 + $0x204] sm:$0xf]  ;;  %v3092_v7 = vld [vmem:[%s5761_s0 + $0x224] sm:$0xf0] }
  0x40   :  { %1978 = vmatpush.bf16.msrb.mxu3 %v3950_v10  ;;  %v3986_v8 = vld [vmem:[%s5760_s1 + $0x1e0] sm:$0xff] }
  0x41   :  { %1717 = vmatmul.bf16.gmra.mxu1 %v3083_v63  ;;  %1742 = vmatmul.bf16.gmra.mxu2 %v3263_v0  ;;  %v2883_v63 = vor.u32 %v3779_v60, %v2882_v59  ;;  %v3792_v0 = vld [vmem:[%s5761_s0 + $0xe4] sm:$0xf]  ;;  %v3012_v59 = vld [vmem:[%s5761_s0 + $0x18c] sm:$0xf0] }
  0x42   :  { %2268 = vmatpush.bf16.msra.mxu2 %v3981_v24  ;;  %2169 = vmatpush.bf16.msra.mxu1 %v3973_v26  ;;  %v3971_v24 = vld [vmem:[%s5760_s1 + $0x168] sm:$0xff]  ;;  %v3018_v60 = vld [vmem:[%s5761_s0 + $0x170] sm:$0xf] }
  0x43   :  { %1767 = vmatmul.bf16.gmra.mxu3 %v3443_v4  ;;  %2466 = vmatpush.bf16.msra.mxu0 %v3997_v27  ;;  %v3782_v4 = vld [vmem:[%s5761_s0 + $0x94] sm:$0xf] }
  0x44   :  { %1692 = vmatmul.bf16.gmra.mxu0 %v2903_v1  ;;  %2367 = vmatpush.bf16.msra.mxu3 %v3989_v25  ;;  %v2948_v1 = vld [vmem:[%s5761_s0 + $0x104] sm:$0xf0]  ;;  %v2907_v10 = vor.u32 %v3782_v4, %v2904_v5 }
  0x45   :  { %v2951_v3 = vor.u32 %v3792_v0, %v2948_v1  ;;  %v3978_v1 = vld [vmem:[%s5760_s1 + $0x1a0] sm:$0xff] }
  0x46   :  { %2269 = vmatpush.bf16.msra.mxu2 %v3980_v52  ;;  %2170 = vmatpush.bf16.msra.mxu1 %v3972_v54 }
  0x47   :  { %2467 = vmatpush.bf16.msra.mxu0 %v3996_v2  ;;  %v3015_v2 = vor.u32 %v3809_v58, %v3012_v59 }
  0x48   :  { %2368 = vmatpush.bf16.msra.mxu3 %v3988_v53  ;;  %v3059_v53 = vor.u32 %v3819_v49, %v3056_v50  ;;  %v3832_v49 = vld [vmem:[%s5761_s0 + $0x220] sm:$0xf0]  ;;  %v3098_v50 = vld [vmem:[%s5761_s0 + $0x208] sm:$0xf] }
  0x4a   :  { %2270 = vmatpush.bf16.msra.mxu2 %v3979_v16  ;;  %2171 = vmatpush.bf16.msra.mxu1 %v3971_v24 }
  0x4b   :  { %2468 = vmatpush.bf16.msra.mxu0 %v3995_v33 }
  0x4c   :  { %2369 = vmatpush.bf16.msra.mxu3 %v3987_v17 }
  0x4e   :  { %2271 = vmatpush.bf16.msra.mxu2 %v3978_v1  ;;  %v3164_v1 = vld [vmem:[%s5761_s0 + $0x2b4] sm:$0xf0] }
  0x50   :  { %2370 = vmatpush.bf16.msra.mxu3 %v3986_v8 }
  0x51   :  { %1722 = vmatmul.bf16.gmra.mxu1 %v3119_v18  ;;  %1747 = vmatmul.bf16.gmra.mxu2 %v3299_v19  ;;  %v3791_v18 = vld [vmem:[%s5761_s0 + $0xdc] sm:$0xf]  ;;  %v2940_v19 = vld [vmem:[%s5761_s0 + $0xfc] sm:$0xf0] }
  0x52   :  { %v2943_v25 = vor.u32 %v3791_v18, %v2940_v19  ;;  %v3818_v18 = vld [vmem:[%s5761_s0 + $0x1b4] sm:$0xf]  ;;  %v3048_v19 = vld [vmem:[%s5761_s0 + $0x1d4] sm:$0xf0] }
  0x53   :  { %1979 = vmatmul.bf16.vlgmr.msrb.gmra.mxu3 %v2843_v23  ;;  %v3797_v23 = vld [vmem:[%s5761_s0 + $0x108] sm:$0xf0] }
  0x54   :  { %1697 = vmatmul.bf16.gmra.mxu0 %v2939_v20  ;;  %v2946_v20 = vld [vmem:[%s5761_s0 + $0xe0] sm:$0xf]  ;;  %v2955_v28 = vor.u32 %v3797_v23, %v2954_v22  ;;  %v3824_v23 = vld [vmem:[%s5761_s0 + $0x1e0] sm:$0xf0] }
  0x55   :  { %v2947_v26 = vor.u32 %v3796_v21, %v2946_v20  ;;  %v3054_v20 = vld [vmem:[%s5761_s0 + $0x1b8] sm:$0xf]  ;;  %v3823_v21 = vld [vmem:[%s5761_s0 + $0x1d8] sm:$0xf0]  ;;  %v3062_v22 = vld [vmem:[%s5761_s0 + $0x1c0] sm:$0xf] }
  0x56   :  { %v3063_v29 = vor.u32 %v3824_v23, %v3062_v22  ;;  %v3126_v22 = vld [vmem:[%s5761_s0 + $0x248] sm:$0xf]  ;;  %v3841_v23 = vld [vmem:[%s5761_s0 + $0x268] sm:$0xf0] }
  0x61   :  { %1727 = vmatmul.bf16.gmra.mxu1 %v3155_v34  ;;  %1752 = vmatmul.bf16.gmra.mxu2 %v3335_v35 }
  0x63   :  { %1984 = vmatmul.bf16.gmra.mxu3 %v2879_v39  ;;  %v2976_v39 = vld [vmem:[%s5761_s0 + $0x144] sm:$0xf0] }
  0x64   :  { %1702 = vmatmul.bf16.gmra.mxu0 %v2975_v36  ;;  %v2979_v45 = vor.u32 %v3800_v38, %v2976_v39 }
  0x71   :  { %1781 = vmatmul.bf16.vlgmr.msrb.gmra.mxu1 %v2835_v46  ;;  %1880 = vmatmul.bf16.vlgmr.msrb.gmra.mxu2 %v2839_v47  ;;  %v2983_v46 = vor.u32 %v3805_v41, %v2982_v40 }
  0x73   :  { %1989 = vmatmul.bf16.gmra.mxu3 %v2915_v51 }
  0x74   :  { %2078 = vmatmul.bf16.vlgmr.msrb.gmra.mxu0 %v2847_v48  ;;  %v2991_v48 = vor.u32 %v3806_v43, %v2990_v42 }
  0x81   :  { %1786 = vmatmul.bf16.gmra.mxu1 %v2871_v61  ;;  %1885 = vmatmul.bf16.gmra.mxu2 %v2875_v62  ;;  %v3814_v61 = vld [vmem:[%s5761_s0 + $0x190] sm:$0xf0]  ;;  %v3026_v62 = vld [vmem:[%s5761_s0 + $0x178] sm:$0xf] }
  0x83   :  { %1994 = vmatmul.bf16.gmra.mxu3 %v2951_v3  ;;  %v3019_v3 = vor.u32 %v3814_v61, %v3018_v60 }
  0x84   :  { %2083 = vmatmul.bf16.gmra.mxu0 %v2883_v63  ;;  %v3815_v63 = vld [vmem:[%s5761_s0 + $0x198] sm:$0xf0] }
  0x85   :  { %v3027_v5 = vor.u32 %v3815_v63, %v3026_v62  ;;  %v3846_v63 = vld [vmem:[%s5761_s0 + $0x294] sm:$0xf] }
  0x91   :  { %1791 = vmatmul.bf16.gmra.mxu1 %v2907_v10  ;;  %1890 = vmatmul.bf16.gmra.mxu2 %v2911_v11  ;;  %v3095_v11 = vor.u32 %v3828_v6, %v3092_v7  ;;  %v3977_v6 = vld [vmem:[%s5760_s1 + $0x198] sm:$0xff] }
  0x92   :  { %v3985_v7 = vld [vmem:[%s5760_s1 + $0x1d8] sm:$0xff]  ;;  %2272 = vmatpush.bf16.msra.mxu2 %v3977_v6 }
  0x93   :  { %1999 = vmatmul.bf16.gmra.mxu3 %v2987_v15  ;;  %v3994_v15 = vld [vmem:[%s5760_s1 + $0x220] sm:$0xff] }
  0x94   :  { %2088 = vmatmul.bf16.gmra.mxu0 %v2919_v12  ;;  %v3970_v12 = vld [vmem:[%s5760_s1 + $0x160] sm:$0xff]  ;;  %2371 = vmatpush.bf16.msra.mxu3 %v3985_v7  ;;  %v3845_v7 = vld [vmem:[%s5761_s0 + $0x28c] sm:$0xf] }
  0x95   :  { %2172 = vmatpush.bf16.msra.mxu1 %v3970_v12  ;;  %2469 = vmatpush.bf16.msra.mxu0 %v3994_v15  ;;  %v3969_v15 = vld [vmem:[%s5760_s1 + $0x158] sm:$0xff] }
  0x99   :  { %2173 = vmatpush.bf16.msra.mxu1 %v3969_v15 }
  0x9e   :  { %v4513_v27 = vpop.f32.mrf.mxu1 }
  0xa1   :  { %v4521_v31 = vpop.f32.mrf.mxu0  ;;  %1796 = vmatmul.bf16.gmra.mxu1 %v2943_v25  ;;  %1895 = vmatmul.bf16.gmra.mxu2 %v2947_v26  ;;  %v3051_v25 = vor.u32 %v3818_v18, %v3048_v19  ;;  %v3055_v26 = vor.u32 %v3823_v21, %v3054_v20  ;;  %v3993_v19 = vld [vmem:[%s5760_s1 + $0x218] sm:$0xff]  ;;  %v3836_v20 = vld [vmem:[%s5761_s0 + $0x244] sm:$0xf]  ;;  %v3120_v21 = vld [vmem:[%s5761_s0 + $0x264] sm:$0xf0] }
  0xa2   :  { %2470 = vmatpush.bf16.msra.mxu0 %v3993_v19  ;;  %v3156_v19 = vld [vmem:[%s5761_s0 + $0x2ac] sm:$0xf0] }
  0xa3   :  { %2004 = vmatmul.bf16.gmra.mxu3 %v3023_v32  ;;  %v3128_v32 = vld [vmem:[%s5761_s0 + $0x26c] sm:$0xf0] }
  0xa4   :  { %2093 = vmatmul.bf16.gmra.mxu0 %v2955_v28  ;;  %v4526_v34 = vpop.f32.mrf.mxu2  ;;  %v3131_v39 = vor.u32 %v3837_v30, %v3128_v32  ;;  %v3123_v30 = vor.u32 %v3836_v20, %v3120_v21  ;;  %v3127_v32 = vor.u32 %v3841_v23, %v3126_v22  ;;  %v3170_v21 = vld [vmem:[%s5761_s0 + $0x298] sm:$0xf]  ;;  %v3851_v22 = vld [vmem:[%s5761_s0 + $0x2b8] sm:$0xf0] }
  0xa6   :  { %v4528_v35 = vpop.f32.mrf.mxu1  ;;  %v4532_v37 = vpop.f32.mrf.mxu3 }
  0xa9   :  { %v4530_v36 = vpop.f32.mrf.mxu0 }
  0xac   :  { %v4552_v44 = vpop.f32.mrf.mxu2 }
  0xae   :  { %v4554_v47 = vpop.f32.mrf.mxu1  ;;  %v4564_v52 = vpop.f32.mrf.mxu3 }
  0xb1   :  { %v4562_v51 = vpop.f32.mrf.mxu0  ;;  %1801 = vmatmul.bf16.gmra.mxu1 %v2979_v45  ;;  %1900 = vmatmul.bf16.gmra.mxu2 %v2983_v46  ;;  %v3827_v45 = vld [vmem:[%s5761_s0 + $0x1fc] sm:$0xf]  ;;  %v3084_v46 = vld [vmem:[%s5761_s0 + $0x21c] sm:$0xf0] }
  0xb2   :  { %v3087_v59 = vor.u32 %v3827_v45, %v3084_v46  ;;  %v3855_v46 = vld [vmem:[%s5761_s0 + $0x2dc] sm:$0xf] }
  0xb3   :  { %2009 = vmatmul.bf16.gmra.mxu3 %v3059_v53  ;;  %v3833_v53 = vld [vmem:[%s5761_s0 + $0x228] sm:$0xf0] }
  0xb4   :  { %2098 = vmatmul.bf16.gmra.mxu0 %v2991_v48  ;;  %v4566_v54 = vpop.f32.mrf.mxu2  ;;  %v3090_v48 = vld [vmem:[%s5761_s0 + $0x200] sm:$0xf]  ;;  %v3099_v62 = vor.u32 %v3833_v53, %v3098_v50 }
  0xb5   :  { %v3091_v60 = vor.u32 %v3832_v49, %v3090_v48  ;;  %v3200_v48 = vld [vmem:[%s5761_s0 + $0x2fc] sm:$0xf0] }
  0xb6   :  { %v4568_v55 = vpop.f32.mrf.mxu1  ;;  %v4572_v57 = vpop.f32.mrf.mxu3  ;;  %v3203_v53 = vor.u32 %v3855_v46, %v3200_v48 }
  0xb9   :  { %v4570_v56 = vpop.f32.mrf.mxu0 }
  0xbc   :  { %v4592_v0 = vpop.f32.mrf.mxu2 }
  0xbe   :  { %v4597_v4 = vpop.f32.mrf.mxu1  ;;  %v4610_v10 = vpop.f32.mrf.mxu3 }
  0xc1   :  { %v4608_v9 = vpop.f32.mrf.mxu0  ;;  %1806 = vmatmul.bf16.gmra.mxu1 %v3015_v2  ;;  %1905 = vmatmul.bf16.gmra.mxu2 %v3019_v3 }
  0xc3   :  { %2014 = vmatmul.bf16.gmra.mxu3 %v3095_v11 }
  0xc4   :  { %2103 = vmatmul.bf16.gmra.mxu0 %v3027_v5  ;;  %v4615_v13 = vpop.f32.mrf.mxu2  ;;  %v3167_v5 = vor.u32 %v3846_v63, %v3164_v1 }
  0xc6   :  { %v4617_v14 = vpop.f32.mrf.mxu1  ;;  %v4624_v17 = vpop.f32.mrf.mxu3 }
  0xc9   :  { %v4622_v16 = vpop.f32.mrf.mxu0 }
  0xcc   :  { %v4644_v24 = vpop.f32.mrf.mxu2 }
  0xce   :  { %v4646_v28 = vpop.f32.mrf.mxu1  ;;  %v4656_v38 = vpop.f32.mrf.mxu3 }
  0xd1   :  { %v4654_v33 = vpop.f32.mrf.mxu0  ;;  %1811 = vmatmul.bf16.gmra.mxu1 %v3051_v25  ;;  %1910 = vmatmul.bf16.gmra.mxu2 %v3055_v26  ;;  %v3134_v25 = vld [vmem:[%s5761_s0 + $0x250] sm:$0xf]  ;;  %v3842_v26 = vld [vmem:[%s5761_s0 + $0x270] sm:$0xf0] }
  0xd2   :  { %v3135_v45 = vor.u32 %v3842_v26, %v3134_v25  ;;  %v3159_v26 = vor.u32 %v3845_v7, %v3156_v19 }
  0xd3   :  { %2019 = vmatmul.bf16.gmra.mxu3 %v3131_v39 }
  0xd4   :  { %2108 = vmatmul.bf16.gmra.mxu0 %v3063_v29  ;;  %v4658_v40 = vpop.f32.mrf.mxu2 }
  0xd6   :  { %v4660_v41 = vpop.f32.mrf.mxu1  ;;  %v1980_v43 = vpop.f32.mrf.mxu3 }
  0xd9   :  { %v4662_v42 = vpop.f32.mrf.mxu0 }
  0xdc   :  { %v4682_v58 = vpop.f32.mrf.mxu2 }
  0xde   :  { %v4684_v61 = vpop.f32.mrf.mxu1  ;;  %v1982_v3 = vpop.f32.mrf.mxu3 }
  0xe1   :  { %v4692_v2 = vpop.f32.mrf.mxu0  ;;  %1816 = vmatmul.bf16.gmra.mxu1 %v3087_v59  ;;  %1915 = vmatmul.bf16.gmra.mxu2 %v3091_v60 }
  0xe3   :  { %2024 = vmatmul.bf16.gmra.mxu3 %v3167_v5 }
  0xe4   :  { %2113 = vmatmul.bf16.gmra.mxu0 %v3099_v62  ;;  %v4700_v8 = vpop.f32.mrf.mxu2 }
  0xe6   :  { %v4702_v11 = vpop.f32.mrf.mxu1  ;;  %v1985_v18 = vpop.f32.mrf.mxu3 }
  0xe9   :  { %v4704_v12 = vpop.f32.mrf.mxu0 }
  0xec   :  { %v4730_v29 = vpop.f32.mrf.mxu2 }
  0xee   :  { %v1782_v39 = vpop.f32.mrf.mxu1  ;;  %v4738_v50 = vpop.f32.mrf.mxu3 }
  0xef   :  { %v1783_v59 = vadd.f32 %v1782_v39, %v4521_v31  ;;  %v3162_v31 = vld [vmem:[%s5761_s0 + $0x290] sm:$0xf]  ;;  %v3171_v39 = vor.u32 %v3851_v22, %v3170_v21  ;;  %v3198_v21 = vld [vmem:[%s5761_s0 + $0x2d8] sm:$0xf]  ;;  %v3859_v22 = vld [vmem:[%s5761_s0 + $0x2f8] sm:$0xf0] }
  0xf1   :  { %v2079_v49 = vpop.f32.mrf.mxu0  ;;  %1821 = vmatmul.bf16.gmra.mxu1 %v3123_v30  ;;  %1920 = vmatmul.bf16.gmra.mxu2 %v3127_v32 }
  0xf3   :  { %2029 = vmatmul.bf16.gmra.mxu3 %v3203_v53 }
  0xf4   :  { %2118 = vmatmul.bf16.gmra.mxu0 %v3135_v45  ;;  %v1881_v60 = vpop.f32.mrf.mxu2  ;;  %v3864_v45 = vld [vmem:[%s5761_s0 + $0x324] sm:$0xf] }
  0xf5   :  { %v1882_v62 = vadd.f32 %v1881_v60, %v1783_v59 }
  0xf6   :  { %v1784_v63 = vpop.f32.mrf.mxu1  ;;  %v4741_v6 = vpop.f32.mrf.mxu3 }
  0xf7   :  { %v1981_v1 = vadd.f32 %v1980_v43, %v1882_v62  ;;  %v3850_v43 = vld [vmem:[%s5761_s0 + $0x2b0] sm:$0xf0]  ;;  %v1785_v20 = vadd.f32 %v1784_v63, %v4530_v36  ;;  %v3236_v36 = vld [vmem:[%s5761_s0 + $0x344] sm:$0xf0] }
  0xf8   :  { %v3163_v30 = vor.u32 %v3850_v43, %v3162_v31  ;;  %v3239_v53 = vor.u32 %v3864_v45, %v3236_v36  ;;  %v3984_v31 = vld [vmem:[%s5760_s1 + $0x1d0] sm:$0xff]  ;;  %v3199_v45 = vor.u32 %v3859_v22, %v3198_v21  ;;  %v3863_v22 = vld [vmem:[%s5761_s0 + $0x31c] sm:$0xf] }
  0xf9   :  { %v2081_v5 = vpop.f32.mrf.mxu0  ;;  %v4746_v15 = vadd.f32 %v2079_v49, %v1981_v1  ;;  %2372 = vmatpush.bf16.msra.mxu3 %v3984_v31 }
  0xfc   :  { %v1883_v23 = vpop.f32.mrf.mxu2 }
  0xfd   :  { %v1884_v25 = vadd.f32 %v1883_v23, %v1785_v20  ;;  %v3192_v20 = vld [vmem:[%s5761_s0 + $0x2f4] sm:$0xf0] }
  0xfe   :  { %v1787_v32 = vpop.f32.mrf.mxu1  ;;  %v4770_v49 = vpop.f32.mrf.mxu3 }
  0xff   :  { %v1983_v46 = vadd.f32 %v1982_v3, %v1884_v25  ;;  %v1788_v60 = vadd.f32 %v1787_v32, %v4562_v51  ;;  %v3976_v3 = vld [vmem:[%s5760_s1 + $0x190] sm:$0xff]  ;;  %v3206_v25 = vld [vmem:[%s5761_s0 + $0x2e0] sm:$0xf] }
 0x100   :  { %v3854_v51 = vld [vmem:[%s5761_s0 + $0x2d4] sm:$0xf]  ;;  %2273 = vmatpush.bf16.msra.mxu2 %v3976_v3 }
 0x101   :  { %v2084_v48 = vpop.f32.mrf.mxu0  ;;  %1826 = vmatmul.bf16.gmra.mxu1 %v3159_v26  ;;  %1925 = vmatmul.bf16.gmra.mxu2 %v3163_v30  ;;  %v4772_v59 = vadd.f32 %v2081_v5, %v1983_v46  ;;  %v3968_v5 = vld [vmem:[%s5760_s1 + $0x150] sm:$0xff]  ;;  %v3860_v26 = vld [vmem:[%s5761_s0 + $0x300] sm:$0xf0] }
 0x102   :  { %2174 = vmatpush.bf16.msra.mxu1 %v3968_v5  ;;  %v3207_v46 = vor.u32 %v3860_v26, %v3206_v25  ;;  %v3242_v26 = vld [vmem:[%s5761_s0 + $0x328] sm:$0xf] }
 0x103   :  { %2034 = vmatmul.bf16.gmra.mxu3 %v3239_v53 }
 0x104   :  { %2123 = vmatmul.bf16.gmra.mxu0 %v3171_v39  ;;  %v1886_v62 = vpop.f32.mrf.mxu2  ;;  %v3195_v39 = vor.u32 %v3854_v51, %v3192_v20 }
 0x105   :  { %v1887_v63 = vadd.f32 %v1886_v62, %v1788_v60  ;;  %v3992_v62 = vld [vmem:[%s5760_s1 + $0x210] sm:$0xff] }
 0x106   :  { %v1789_v1 = vpop.f32.mrf.mxu1  ;;  %v4784_v43 = vpop.f32.mrf.mxu3  ;;  %2471 = vmatpush.bf16.msra.mxu0 %v3992_v62 }
 0x107   :  { %v1986_v7 = vadd.f32 %v1985_v18, %v1887_v63  ;;  %v1790_v23 = vadd.f32 %v1789_v1, %v4570_v56  ;;  %v3272_v56 = vld [vmem:[%s5761_s0 + $0x38c] sm:$0xf0] }
 0x109   :  { %v2086_v19 = vpop.f32.mrf.mxu0  ;;  %v4789_v18 = vadd.f32 %v2084_v48, %v1986_v7  ;;  %v3873_v48 = vld [vmem:[%s5761_s0 + $0x36c] sm:$0xf] }
 0x10a   :  { %v3275_v1 = vor.u32 %v3873_v48, %v3272_v56  ;;  %v3882_v56 = vld [vmem:[%s5761_s0 + $0x3b4] sm:$0xf] }
 0x10c   :  { %v1888_v30 = vpop.f32.mrf.mxu2 }
 0x10d   :  { %v1889_v32 = vadd.f32 %v1888_v30, %v1790_v23  ;;  %v3869_v30 = vld [vmem:[%s5761_s0 + $0x348] sm:$0xf0] }
 0x10e   :  { %v1792_v36 = vpop.f32.mrf.mxu1  ;;  %v4817_v63 = vpop.f32.mrf.mxu3  ;;  %v3243_v48 = vor.u32 %v3869_v30, %v3242_v26  ;;  %v3877_v26 = vld [vmem:[%s5761_s0 + $0x388] sm:$0xf0] }
 0x10f   :  { %v1988_v53 = vadd.f32 %v4738_v50, %v1889_v32  ;;  %v1793_v3 = vadd.f32 %v1792_v36, %v4608_v9  ;;  %v3228_v9 = vld [vmem:[%s5761_s0 + $0x33c] sm:$0xf0] }
 0x111   :  { %v2089_v60 = vpop.f32.mrf.mxu0  ;;  %1831 = vmatmul.bf16.gmra.mxu1 %v3195_v39  ;;  %1930 = vmatmul.bf16.gmra.mxu2 %v3199_v45  ;;  %v4819_v7 = vadd.f32 %v2086_v19, %v1988_v53  ;;  %v3234_v19 = vld [vmem:[%s5761_s0 + $0x320] sm:$0xf]  ;;  %v3231_v45 = vor.u32 %v3863_v22, %v3228_v9 }
 0x113   :  { %2039 = vmatmul.bf16.gmra.mxu3 %v3275_v1 }
 0x114   :  { %2128 = vmatmul.bf16.gmra.mxu0 %v3207_v46  ;;  %v1891_v31 = vpop.f32.mrf.mxu2 }
 0x115   :  { %v1892_v5 = vadd.f32 %v1891_v31, %v1793_v3 }
 0x116   :  { %v1794_v50 = vpop.f32.mrf.mxu1  ;;  %v4823_v21 = vpop.f32.mrf.mxu3 }
 0x117   :  { %v1991_v51 = vadd.f32 %v4741_v6, %v1892_v5  ;;  %v3868_v6 = vld [vmem:[%s5761_s0 + $0x340] sm:$0xf0]  ;;  %v1795_v25 = vadd.f32 %v1794_v50, %v4622_v16  ;;  %v3308_v16 = vld [vmem:[%s5761_s0 + $0x3d4] sm:$0xf0] }
 0x118   :  { %v3235_v36 = vor.u32 %v3868_v6, %v3234_v19  ;;  %v3311_v1 = vor.u32 %v3882_v56, %v3308_v16 }
 0x119   :  { %v2091_v20 = vpop.f32.mrf.mxu0  ;;  %v4828_v23 = vadd.f32 %v2089_v60, %v1991_v51 }
 0x11c   :  { %v1893_v32 = vpop.f32.mrf.mxu2 }
 0x11d   :  { %v1894_v39 = vadd.f32 %v1893_v32, %v1795_v25  ;;  %v3270_v25 = vld [vmem:[%s5761_s0 + $0x368] sm:$0xf]  ;;  %v3278_v32 = vld [vmem:[%s5761_s0 + $0x370] sm:$0xf] }
 0x11e   :  { %v1797_v46 = vpop.f32.mrf.mxu1  ;;  %v4853_v62 = vpop.f32.mrf.mxu3 }
 0x11f   :  { %v1993_v53 = vadd.f32 %v4770_v49, %v1894_v39  ;;  %v1798_v31 = vadd.f32 %v1797_v46, %v4654_v33  ;;  %v3975_v49 = vld [vmem:[%s5760_s1 + $0x188] sm:$0xff]  ;;  %v3872_v33 = vld [vmem:[%s5761_s0 + $0x364] sm:$0xf]  ;;  %v3878_v39 = vld [vmem:[%s5761_s0 + $0x390] sm:$0xf0] }
 0x120   :  { %2274 = vmatpush.bf16.msra.mxu2 %v3975_v49  ;;  %v3279_v16 = vor.u32 %v3878_v39, %v3278_v32  ;;  %v3306_v32 = vld [vmem:[%s5761_s0 + $0x3b0] sm:$0xf] }
 0x121   :  { %v2094_v60 = vpop.f32.mrf.mxu0  ;;  %1836 = vmatmul.bf16.gmra.mxu1 %v3231_v45  ;;  %1935 = vmatmul.bf16.gmra.mxu2 %v3235_v36  ;;  %v4855_v3 = vadd.f32 %v2091_v20, %v1993_v53  ;;  %v3983_v20 = vld [vmem:[%s5760_s1 + $0x1c8] sm:$0xff]  ;;  %v3891_v53 = vld [vmem:[%s5761_s0 + $0x3fc] sm:$0xf] }
 0x122   :  { %2373 = vmatpush.bf16.msra.mxu3 %v3983_v20 }
 0x123   :  { %2044 = vmatmul.bf16.gmra.mxu3 %v3311_v1 }
 0x124   :  { %2133 = vmatmul.bf16.gmra.mxu0 %v3243_v48  ;;  %v1896_v5 = vpop.f32.mrf.mxu2  ;;  %v3271_v48 = vor.u32 %v3877_v26, %v3270_v25 }
 0x125   :  { %v1897_v50 = vadd.f32 %v1896_v5, %v1798_v31  ;;  %v3967_v31 = vld [vmem:[%s5760_s1 + $0x148] sm:$0xff] }
 0x126   :  { %v1799_v51 = vpop.f32.mrf.mxu1  ;;  %v4862_v19 = vpop.f32.mrf.mxu3  ;;  %2175 = vmatpush.bf16.msra.mxu1 %v3967_v31 }
 0x127   :  { %v1996_v22 = vadd.f32 %v4784_v43, %v1897_v50  ;;  %v3264_v43 = vld [vmem:[%s5761_s0 + $0x384] sm:$0xf0]  ;;  %v1800_v30 = vadd.f32 %v1799_v51, %v4662_v42  ;;  %v3344_v42 = vld [vmem:[%s5761_s0 + $0x41c] sm:$0xf0] }
 0x128   :  { %v3267_v46 = vor.u32 %v3872_v33, %v3264_v43  ;;  %v3347_v50 = vor.u32 %v3891_v53, %v3344_v42 }
 0x129   :  { %v2096_v9 = vpop.f32.mrf.mxu0  ;;  %v4870_v6 = vadd.f32 %v2094_v60, %v1996_v22  ;;  %v3991_v22 = vld [vmem:[%s5760_s1 + $0x208] sm:$0xff] }
 0x12a   :  { %2472 = vmatpush.bf16.msra.mxu0 %v3991_v22 }
 0x12c   :  { %v1898_v45 = vpop.f32.mrf.mxu2 }
 0x12d   :  { %v1899_v36 = vadd.f32 %v1898_v45, %v1800_v30  ;;  %v3314_v45 = vld [vmem:[%s5761_s0 + $0x3b8] sm:$0xf] }
 0x12e   :  { %v1802_v56 = vpop.f32.mrf.mxu1  ;;  %v4898_v5 = vpop.f32.mrf.mxu3 }
 0x12f   :  { %v1998_v60 = vadd.f32 %v4817_v63, %v1899_v36  ;;  %v1803_v63 = vadd.f32 %v1802_v56, %v4692_v2  ;;  %v3300_v2 = vld [vmem:[%s5761_s0 + $0x3cc] sm:$0xf0]  ;;  %v3887_v36 = vld [vmem:[%s5761_s0 + $0x3d8] sm:$0xf0] }
 0x130   :  { %v3315_v42 = vor.u32 %v3887_v36, %v3314_v45  ;;  %v3350_v45 = vld [vmem:[%s5761_s0 + $0x400] sm:$0xf]  ;;  %v3896_v36 = vld [vmem:[%s5761_s0 + $0x420] sm:$0xf0] }
 0x131   :  { %v2099_v1 = vpop.f32.mrf.mxu0  ;;  %1841 = vmatmul.bf16.gmra.mxu1 %v3267_v46  ;;  %1940 = vmatmul.bf16.gmra.mxu2 %v3271_v48  ;;  %v4900_v51 = vadd.f32 %v2096_v9, %v1998_v60  ;;  %v3881_v9 = vld [vmem:[%s5761_s0 + $0x3ac] sm:$0xf]  ;;  %v3900_v60 = vld [vmem:[%s5761_s0 + $0x444] sm:$0xf] }
 0x132   :  { %v3303_v56 = vor.u32 %v3881_v9, %v3300_v2 }
 0x133   :  { %2049 = vmatmul.bf16.gmra.mxu3 %v3347_v50 }
 0x134   :  { %2138 = vmatmul.bf16.gmra.mxu0 %v3279_v16  ;;  %v1901_v49 = vpop.f32.mrf.mxu2 }
 0x135   :  { %v1902_v20 = vadd.f32 %v1901_v49, %v1803_v63 }
 0x136   :  { %v1804_v33 = vpop.f32.mrf.mxu1  ;;  %v4907_v26 = vpop.f32.mrf.mxu3 }
 0x137   :  { %v2001_v43 = vadd.f32 %v4823_v21, %v1902_v20  ;;  %v3886_v21 = vld [vmem:[%s5761_s0 + $0x3d0] sm:$0xf0]  ;;  %v1805_v39 = vadd.f32 %v1804_v33, %v4704_v12  ;;  %v3380_v12 = vld [vmem:[%s5761_s0 + $0x464] sm:$0xf0] }
 0x138   :  { %v3307_v16 = vor.u32 %v3886_v21, %v3306_v32  ;;  %v3383_v22 = vor.u32 %v3900_v60, %v3380_v12  ;;  %v3909_v60 = vld [vmem:[%s5761_s0 + $0x48c] sm:$0xf] }
 0x139   :  { %v2101_v25 = vpop.f32.mrf.mxu0  ;;  %v4912_v30 = vadd.f32 %v2099_v1, %v2001_v43 }
 0x13c   :  { %v1903_v46 = vpop.f32.mrf.mxu2 }
 0x13d   :  { %v1904_v48 = vadd.f32 %v1903_v46, %v1805_v39 }
 0x13e   :  { %v1807_v53 = vpop.f32.mrf.mxu1  ;;  %v4937_v50 = vpop.f32.mrf.mxu3 }
 0x13f   :  { %v2003_v1 = vadd.f32 %v4853_v62, %v1904_v48  ;;  %v1808_v49 = vadd.f32 %v1807_v53, %v4513_v27  ;;  %v3890_v62 = vld [vmem:[%s5761_s0 + $0x3f4] sm:$0xf]  ;;  %v3342_v27 = vld [vmem:[%s5761_s0 + $0x3f8] sm:$0xf] }
 0x141   :  { %v2104_v31 = vpop.f32.mrf.mxu0  ;;  %1846 = vmatmul.bf16.gmra.mxu1 %v3303_v56  ;;  %1945 = vmatmul.bf16.gmra.mxu2 %v3307_v16  ;;  %v4939_v63 = vadd.f32 %v2101_v25, %v2003_v1  ;;  %v3336_v25 = vld [vmem:[%s5761_s0 + $0x414] sm:$0xf0] }
 0x142   :  { %v3339_v56 = vor.u32 %v3890_v62, %v3336_v25 }
 0x143   :  { %2054 = vmatmul.bf16.gmra.mxu3 %v3383_v22  ;;  %v3982_v22 = vld [vmem:[%s5760_s1 + $0x1c0] sm:$0xff] }
 0x144   :  { %2143 = vmatmul.bf16.gmra.mxu0 %v3315_v42  ;;  %v1906_v20 = vpop.f32.mrf.mxu2  ;;  %v3351_v42 = vor.u32 %v3896_v36, %v3350_v45  ;;  %2374 = vmatpush.bf16.msra.mxu3 %v3982_v22  ;;  %v3372_v36 = vld [vmem:[%s5761_s0 + $0x45c] sm:$0xf0] }
 0x145   :  { %v1907_v33 = vadd.f32 %v1906_v20, %v1808_v49 }
 0x146   :  { %v1809_v43 = vpop.f32.mrf.mxu1  ;;  %v4943_v32 = vpop.f32.mrf.mxu3 }
 0x147   :  { %v2006_v9 = vadd.f32 %v4862_v19, %v1907_v33  ;;  %v3895_v19 = vld [vmem:[%s5761_s0 + $0x418] sm:$0xf0]  ;;  %v1810_v39 = vadd.f32 %v1809_v43, %v4528_v35  ;;  %v3416_v35 = vld [vmem:[%s5761_s0 + $0x4ac] sm:$0xf0]  ;;  %v3966_v33 = vld [vmem:[%s5760_s1 + $0x140] sm:$0xff] }
 0x148   :  { %v3343_v16 = vor.u32 %v3895_v19, %v3342_v27  ;;  %v3419_v20 = vor.u32 %v3909_v60, %v3416_v35  ;;  %2176 = vmatpush.bf16.msra.mxu1 %v3966_v33 }
 0x149   :  { %v2106_v2 = vpop.f32.mrf.mxu0  ;;  %v4948_v21 = vadd.f32 %v2104_v31, %v2006_v9  ;;  %v3974_v31 = vld [vmem:[%s5760_s1 + $0x180] sm:$0xff] }
 0x14a   :  { %2275 = vmatpush.bf16.msra.mxu2 %v3974_v31  ;;  %v3918_v31 = vld [vmem:[%s5761_s0 + $0x4d4] sm:$0xf] }
 0x14c   :  { %v1908_v46 = vpop.f32.mrf.mxu2 }
 0x14d   :  { %v1909_v48 = vadd.f32 %v1908_v46, %v1810_v39  ;;  %v3990_v39 = vld [vmem:[%s5760_s1 + $0x200] sm:$0xff] }
 0x14e   :  { %v1812_v53 = vpop.f32.mrf.mxu1  ;;  %v4979_v49 = vpop.f32.mrf.mxu3  ;;  %2473 = vmatpush.bf16.msra.mxu0 %v3990_v39  ;;  %v3904_v46 = vld [vmem:[%s5761_s0 + $0x460] sm:$0xf0] }
 0x14f   :  { %v2008_v12 = vadd.f32 %v4898_v5, %v1909_v48  ;;  %v1813_v5 = vadd.f32 %v1812_v53, %v4554_v47 }
 0x151   :  { %v2109_v1 = vpop.f32.mrf.mxu0  ;;  %1851 = vmatmul.bf16.gmra.mxu1 %v3339_v56  ;;  %1950 = vmatmul.bf16.gmra.mxu2 %v3343_v16  ;;  %v4984_v43 = vadd.f32 %v2106_v2, %v2008_v12  ;;  %v3899_v2 = vld [vmem:[%s5761_s0 + $0x43c] sm:$0xf]  ;;  %v3386_v56 = vld [vmem:[%s5761_s0 + $0x448] sm:$0xf]  ;;  %v3905_v16 = vld [vmem:[%s5761_s0 + $0x468] sm:$0xf0] }
 0x152   :  { %v3375_v60 = vor.u32 %v3899_v2, %v3372_v36 }
 0x153   :  { %2059 = vmatmul.bf16.gmra.mxu3 %v3419_v20 }
 0x154   :  { %2148 = vmatmul.bf16.gmra.mxu0 %v3351_v42  ;;  %v1911_v9 = vpop.f32.mrf.mxu2 }
 0x155   :  { %v1912_v62 = vadd.f32 %v1911_v9, %v1813_v5 }
 0x156   :  { %v1814_v25 = vpop.f32.mrf.mxu1  ;;  %v4991_v45 = vpop.f32.mrf.mxu3 }
 0x157   :  { %v2011_v27 = vadd.f32 %v4907_v26, %v1912_v62  ;;  %v3378_v26 = vld [vmem:[%s5761_s0 + $0x440] sm:$0xf]  ;;  %v1815_v48 = vadd.f32 %v1814_v25, %v4568_v55  ;;  %v3452_v55 = vld [vmem:[%s5761_s0 + $0x4f4] sm:$0xf0] }
 0x158   :  { %v3379_v35 = vor.u32 %v3904_v46, %v3378_v26  ;;  %v3455_v5 = vor.u32 %v3918_v31, %v3452_v55  ;;  %v3767_v31 = vld [vmem:[%s5761_s0 + $0x1c] sm:$0xf] }
 0x159   :  { %v2111_v19 = vpop.f32.mrf.mxu0  ;;  %v4996_v47 = vadd.f32 %v2109_v1, %v2011_v27  ;;  %v3387_v1 = vor.u32 %v3905_v16, %v3386_v56  ;;  %v3422_v56 = vld [vmem:[%s5761_s0 + $0x490] sm:$0xf]  ;;  %v3914_v16 = vld [vmem:[%s5761_s0 + $0x4b0] sm:$0xf0] }
 0x15c   :  { %v1913_v53 = vpop.f32.mrf.mxu2 }
 0x15d   :  { %v1914_v42 = vadd.f32 %v1913_v53, %v1815_v48 }
 0x15e   :  { %v1817_v12 = vpop.f32.mrf.mxu1  ;;  %v2022_v33 = vpop.f32.mrf.mxu3 }
 0x15f   :  { %v2013_v22 = vadd.f32 %v4937_v50, %v1914_v42  ;;  %v1818_v62 = vadd.f32 %v1817_v12, %v4597_v4  ;;  %v3908_v50 = vld [vmem:[%s5761_s0 + $0x484] sm:$0xf]  ;;  %v3414_v4 = vld [vmem:[%s5761_s0 + $0x488] sm:$0xf] }
 0x161   :  { %v2114_v20 = vpop.f32.mrf.mxu0  ;;  %1856 = vmatmul.bf16.gmra.mxu1 %v3375_v60  ;;  %1955 = vmatmul.bf16.gmra.mxu2 %v3379_v35  ;;  %v5021_v9 = vadd.f32 %v2111_v19, %v2013_v22  ;;  %v3408_v19 = vld [vmem:[%s5761_s0 + $0x4a4] sm:$0xf0] }
 0x162   :  { %v3411_v60 = vor.u32 %v3908_v50, %v3408_v19 }
 0x163   :  { %2064 = vmatmul.bf16.gmra.mxu3 %v3455_v5 }
 0x164   :  { %2153 = vmatmul.bf16.gmra.mxu0 %v3387_v1  ;;  %v1916_v25 = vpop.f32.mrf.mxu2  ;;  %v3423_v1 = vor.u32 %v3914_v16, %v3422_v56  ;;  %v3458_v56 = vld [vmem:[%s5761_s0 + $0x4d8] sm:$0xf]  ;;  %v3923_v16 = vld [vmem:[%s5761_s0 + $0x4f8] sm:$0xf0] }
 0x165   :  { %v1917_v27 = vadd.f32 %v1916_v25, %v1818_v62 }
 0x166   :  { %v1819_v39 = vpop.f32.mrf.mxu1  ;;  %v2025_v26 = vpop.f32.mrf.mxu3 }
 0x167   :  { %v2016_v2 = vadd.f32 %v4943_v32, %v1917_v27  ;;  %v3913_v32 = vld [vmem:[%s5761_s0 + $0x4a8] sm:$0xf0]  ;;  %v1820_v48 = vadd.f32 %v1819_v39, %v4617_v14  ;;  %v2856_v14 = vld [vmem:[%s5761_s0 + $0x3c] sm:$0xf0] }
 0x168   :  { %v3415_v35 = vor.u32 %v3913_v32, %v3414_v4  ;;  %v2859_v5 = vor.u32 %v3767_v31, %v2856_v14  ;;  %v3776_v31 = vld [vmem:[%s5761_s0 + $0x64] sm:$0xf] }
 0x169   :  { %v2116_v36 = vpop.f32.mrf.mxu0  ;;  %v5028_v46 = vadd.f32 %v2114_v20, %v2016_v2 }
 0x16c   :  { %v1918_v53 = vpop.f32.mrf.mxu2 }
 0x16d   :  { %v1919_v42 = vadd.f32 %v1918_v53, %v1820_v48 }
 0x16e   :  { %v1822_v12 = vpop.f32.mrf.mxu1  ;;  %v2027_v20 = vpop.f32.mrf.mxu3 }
 0x16f   :  { %v2018_v55 = vadd.f32 %v4979_v49, %v1919_v42  ;;  %v1823_v25 = vadd.f32 %v1822_v12, %v4646_v28  ;;  %v3917_v49 = vld [vmem:[%s5761_s0 + $0x4cc] sm:$0xf]  ;;  %v3450_v28 = vld [vmem:[%s5761_s0 + $0x4d0] sm:$0xf] }
 0x171   :  { %v2119_v22 = vpop.f32.mrf.mxu0  ;;  %1861 = vmatmul.bf16.gmra.mxu1 %v3411_v60  ;;  %1960 = vmatmul.bf16.gmra.mxu2 %v3415_v35  ;;  %v5053_v62 = vadd.f32 %v2116_v36, %v2018_v55  ;;  %v3444_v36 = vld [vmem:[%s5761_s0 + $0x4ec] sm:$0xf0] }
 0x172   :  { %v3447_v60 = vor.u32 %v3917_v49, %v3444_v36 }
 0x173   :  { %2375 = vmatmul.bf16.vlgmr.msra.gmra.mxu3 %v2859_v5 }
 0x174   :  { %2158 = vmatmul.bf16.gmra.mxu0 %v3423_v1  ;;  %v1921_v27 = vpop.f32.mrf.mxu2  ;;  %v3459_v1 = vor.u32 %v3923_v16, %v3458_v56  ;;  %v2862_v56 = vld [vmem:[%s5761_s0 + $0x20] sm:$0xf]  ;;  %v3772_v16 = vld [vmem:[%s5761_s0 + $0x40] sm:$0xf0] }
 0x175   :  { %v1922_v39 = vadd.f32 %v1921_v27, %v1823_v25 }
 0x176   :  { %v1824_v2 = vpop.f32.mrf.mxu1  ;;  %v5057_v4 = vpop.f32.mrf.mxu3 }
 0x177   :  { %v2021_v50 = vadd.f32 %v4991_v45, %v1922_v39  ;;  %v3922_v45 = vld [vmem:[%s5761_s0 + $0x4f0] sm:$0xf0]  ;;  %v1825_v48 = vadd.f32 %v1824_v2, %v4660_v41  ;;  %v2892_v41 = vld [vmem:[%s5761_s0 + $0x84] sm:$0xf0] }
 0x178   :  { %v3451_v35 = vor.u32 %v3922_v45, %v3450_v28  ;;  %v2895_v5 = vor.u32 %v3776_v31, %v2892_v41  ;;  %v3785_v31 = vld [vmem:[%s5761_s0 + $0xac] sm:$0xf] }
 0x179   :  { %v2121_v19 = vpop.f32.mrf.mxu0  ;;  %v5062_v32 = vadd.f32 %v2119_v22, %v2021_v50 }
 0x17c   :  { %v1923_v53 = vpop.f32.mrf.mxu2 }
 0x17d   :  { %v1924_v42 = vadd.f32 %v1923_v53, %v1825_v48 }
 0x17e   :  { %v1827_v12 = vpop.f32.mrf.mxu1  ;;  %v5086_v22 = vpop.f32.mrf.mxu3 }
 0x17f   :  { %v2023_v14 = vadd.f32 %v2022_v33, %v1924_v42  ;;  %v1828_v27 = vadd.f32 %v1827_v12, %v4684_v61  ;;  %v3766_v33 = vld [vmem:[%s5761_s0 + $0x14] sm:$0xf]  ;;  %v2854_v61 = vld [vmem:[%s5761_s0 + $0x18] sm:$0xf] }
 0x181   :  { %v2124_v55 = vpop.f32.mrf.mxu0  ;;  %1866 = vmatmul.bf16.gmra.mxu1 %v3447_v60  ;;  %1965 = vmatmul.bf16.gmra.mxu2 %v3451_v35  ;;  %v5088_v25 = vadd.f32 %v2121_v19, %v2023_v14  ;;  %v2848_v19 = vld [vmem:[%s5761_s0 + $0x34] sm:$0xf0] }
 0x182   :  { %v2851_v60 = vor.u32 %v3766_v33, %v2848_v19 }
 0x183   :  { %2380 = vmatmul.bf16.gmra.mxu3 %v2895_v5 }
 0x184   :  { %2163 = vmatmul.bf16.gmra.mxu0 %v3459_v1  ;;  %v1926_v39 = vpop.f32.mrf.mxu2  ;;  %v2863_v1 = vor.u32 %v3772_v16, %v2862_v56  ;;  %v2898_v56 = vld [vmem:[%s5761_s0 + $0x68] sm:$0xf]  ;;  %v3781_v16 = vld [vmem:[%s5761_s0 + $0x88] sm:$0xf0] }
 0x185   :  { %v1927_v2 = vadd.f32 %v1926_v39, %v1828_v27 }
 0x186   :  { %v1829_v50 = vpop.f32.mrf.mxu1  ;;  %v5091_v28 = vpop.f32.mrf.mxu3 }
 0x187   :  { %v2026_v49 = vadd.f32 %v2025_v26, %v1927_v2  ;;  %v3771_v26 = vld [vmem:[%s5761_s0 + $0x38] sm:$0xf0]  ;;  %v1830_v48 = vadd.f32 %v1829_v50, %v4702_v11  ;;  %v2928_v11 = vld [vmem:[%s5761_s0 + $0xcc] sm:$0xf0] }
 0x188   :  { %v2855_v35 = vor.u32 %v3771_v26, %v2854_v61  ;;  %v2931_v5 = vor.u32 %v3785_v31, %v2928_v11  ;;  %v3794_v31 = vld [vmem:[%s5761_s0 + $0xf4] sm:$0xf] }
 0x189   :  { %v2126_v36 = vpop.f32.mrf.mxu0  ;;  %v5096_v45 = vadd.f32 %v2124_v55, %v2026_v49 }
 0x18c   :  { %v1928_v53 = vpop.f32.mrf.mxu2 }
 0x18d   :  { %v1929_v42 = vadd.f32 %v1928_v53, %v1830_v48 }
 0x18e   :  { %v1832_v12 = vpop.f32.mrf.mxu1  ;;  %v5120_v55 = vpop.f32.mrf.mxu3 }
 0x18f   :  { %v2028_v41 = vadd.f32 %v2027_v20, %v1929_v42  ;;  %v1833_v39 = vadd.f32 %v1832_v12, %v4526_v34  ;;  %v3775_v20 = vld [vmem:[%s5761_s0 + $0x5c] sm:$0xf]  ;;  %v2890_v34 = vld [vmem:[%s5761_s0 + $0x60] sm:$0xf] }
 0x191   :  { %v2129_v14 = vpop.f32.mrf.mxu0  ;;  %2177 = vmatmul.bf16.vlgmr.msra.gmra.mxu1 %v2851_v60  ;;  %2276 = vmatmul.bf16.vlgmr.msra.gmra.mxu2 %v2855_v35  ;;  %v5122_v27 = vadd.f32 %v2126_v36, %v2028_v41  ;;  %v2884_v36 = vld [vmem:[%s5761_s0 + $0x7c] sm:$0xf0] }
 0x192   :  { %v2887_v60 = vor.u32 %v3775_v20, %v2884_v36 }
 0x193   :  { %2385 = vmatmul.bf16.gmra.mxu3 %v2931_v5 }
 0x194   :  { %2474 = vmatmul.bf16.vlgmr.msra.gmra.mxu0 %v2863_v1  ;;  %v1931_v2 = vpop.f32.mrf.mxu2  ;;  %v2899_v1 = vor.u32 %v3781_v16, %v2898_v56  ;;  %v2934_v56 = vld [vmem:[%s5761_s0 + $0xb0] sm:$0xf]  ;;  %v3790_v16 = vld [vmem:[%s5761_s0 + $0xd0] sm:$0xf0] }
 0x195   :  { %v1932_v50 = vadd.f32 %v1931_v2, %v1833_v39 }
 0x196   :  { %v1834_v49 = vpop.f32.mrf.mxu1  ;;  %v2040_v61 = vpop.f32.mrf.mxu3 }
 0x197   :  { %v2031_v33 = vadd.f32 %v5057_v4, %v1932_v50  ;;  %v3780_v4 = vld [vmem:[%s5761_s0 + $0x80] sm:$0xf0]  ;;  %v1835_v48 = vadd.f32 %v1834_v49, %v4552_v44  ;;  %v2964_v44 = vld [vmem:[%s5761_s0 + $0x114] sm:$0xf0] }
 0x198   :  { %v2891_v35 = vor.u32 %v3780_v4, %v2890_v34  ;;  %v2967_v5 = vor.u32 %v3794_v31, %v2964_v44  ;;  %v3803_v31 = vld [vmem:[%s5761_s0 + $0x13c] sm:$0xf] }
 0x199   :  { %v2131_v19 = vpop.f32.mrf.mxu0  ;;  %v5129_v26 = vadd.f32 %v2129_v14, %v2031_v33 }
 0x19c   :  { %v1933_v53 = vpop.f32.mrf.mxu2 }
 0x19d   :  { %v1934_v42 = vadd.f32 %v1933_v53, %v1835_v48 }
 0x19e   :  { %v1837_v12 = vpop.f32.mrf.mxu1  ;;  %v2042_v14 = vpop.f32.mrf.mxu3 }
 0x19f   :  { %v2033_v11 = vadd.f32 %v5086_v22, %v1934_v42  ;;  %v1838_v2 = vadd.f32 %v1837_v12, %v4566_v54  ;;  %v3784_v22 = vld [vmem:[%s5761_s0 + $0xa4] sm:$0xf]  ;;  %v2926_v54 = vld [vmem:[%s5761_s0 + $0xa8] sm:$0xf] }
 0x1a1   :  { %v2134_v41 = vpop.f32.mrf.mxu0  ;;  %2182 = vmatmul.bf16.gmra.mxu1 %v2887_v60  ;;  %2281 = vmatmul.bf16.gmra.mxu2 %v2891_v35  ;;  %v5154_v39 = vadd.f32 %v2131_v19, %v2033_v11  ;;  %v2920_v19 = vld [vmem:[%s5761_s0 + $0xc4] sm:$0xf0] }
 0x1a2   :  { %v2923_v60 = vor.u32 %v3784_v22, %v2920_v19 }
 0x1a3   :  { %2390 = vmatmul.bf16.gmra.mxu3 %v2967_v5 }
 0x1a4   :  { %2479 = vmatmul.bf16.gmra.mxu0 %v2899_v1  ;;  %v1936_v50 = vpop.f32.mrf.mxu2  ;;  %v2935_v1 = vor.u32 %v3790_v16, %v2934_v56  ;;  %v2970_v56 = vld [vmem:[%s5761_s0 + $0xf8] sm:$0xf]  ;;  %v3799_v16 = vld [vmem:[%s5761_s0 + $0x118] sm:$0xf0] }
 0x1a5   :  { %v1937_v49 = vadd.f32 %v1936_v50, %v1838_v2 }
 0x1a6   :  { %v1839_v33 = vpop.f32.mrf.mxu1  ;;  %v2045_v34 = vpop.f32.mrf.mxu3 }
 0x1a7   :  { %v2036_v20 = vadd.f32 %v5091_v28, %v1937_v49  ;;  %v3789_v28 = vld [vmem:[%s5761_s0 + $0xc8] sm:$0xf0]  ;;  %v1840_v48 = vadd.f32 %v1839_v33, %v4592_v0  ;;  %v3000_v0 = vld [vmem:[%s5761_s0 + $0x15c] sm:$0xf0] }
 0x1a8   :  { %v2927_v35 = vor.u32 %v3789_v28, %v2926_v54  ;;  %v3003_v5 = vor.u32 %v3803_v31, %v3000_v0  ;;  %v3812_v31 = vld [vmem:[%s5761_s0 + $0x184] sm:$0xf] }
 0x1a9   :  { %v2136_v36 = vpop.f32.mrf.mxu0  ;;  %v5161_v4 = vadd.f32 %v2134_v41, %v2036_v20 }
 0x1ac   :  { %v1938_v53 = vpop.f32.mrf.mxu2 }
 0x1ad   :  { %v1939_v42 = vadd.f32 %v1938_v53, %v1840_v48 }
 0x1ae   :  { %v1842_v12 = vpop.f32.mrf.mxu1  ;;  %v2047_v41 = vpop.f32.mrf.mxu3 }
 0x1af   :  { %v2038_v44 = vadd.f32 %v5120_v55, %v1939_v42  ;;  %v1843_v50 = vadd.f32 %v1842_v12, %v4615_v13  ;;  %v3793_v55 = vld [vmem:[%s5761_s0 + $0xec] sm:$0xf]  ;;  %v2962_v13 = vld [vmem:[%s5761_s0 + $0xf0] sm:$0xf] }
 0x1b1   :  { %v2139_v11 = vpop.f32.mrf.mxu0  ;;  %2187 = vmatmul.bf16.gmra.mxu1 %v2923_v60  ;;  %2286 = vmatmul.bf16.gmra.mxu2 %v2927_v35  ;;  %v5186_v2 = vadd.f32 %v2136_v36, %v2038_v44  ;;  %v2956_v36 = vld [vmem:[%s5761_s0 + $0x10c] sm:$0xf0] }
 0x1b2   :  { %v2959_v60 = vor.u32 %v3793_v55, %v2956_v36 }
 0x1b3   :  { %2395 = vmatmul.bf16.gmra.mxu3 %v3003_v5 }
 0x1b4   :  { %2484 = vmatmul.bf16.gmra.mxu0 %v2935_v1  ;;  %v1941_v49 = vpop.f32.mrf.mxu2  ;;  %v2971_v1 = vor.u32 %v3799_v16, %v2970_v56  ;;  %v3006_v56 = vld [vmem:[%s5761_s0 + $0x140] sm:$0xf]  ;;  %v3808_v16 = vld [vmem:[%s5761_s0 + $0x160] sm:$0xf0] }
 0x1b5   :  { %v1942_v33 = vadd.f32 %v1941_v49, %v1843_v50 }
 0x1b6   :  { %v1844_v20 = vpop.f32.mrf.mxu1  ;;  %v2050_v54 = vpop.f32.mrf.mxu3 }
 0x1b7   :  { %v2041_v22 = vadd.f32 %v2040_v61, %v1942_v33  ;;  %v3798_v61 = vld [vmem:[%s5761_s0 + $0x110] sm:$0xf0]  ;;  %v1845_v48 = vadd.f32 %v1844_v20, %v4644_v24  ;;  %v3036_v24 = vld [vmem:[%s5761_s0 + $0x1a4] sm:$0xf0] }
 0x1b8   :  { %v2963_v35 = vor.u32 %v3798_v61, %v2962_v13  ;;  %v3039_v5 = vor.u32 %v3812_v31, %v3036_v24  ;;  %v3821_v31 = vld [vmem:[%s5761_s0 + $0x1cc] sm:$0xf] }
 0x1b9   :  { %v2141_v19 = vpop.f32.mrf.mxu0  ;;  %v5192_v28 = vadd.f32 %v2139_v11, %v2041_v22 }
 0x1bc   :  { %v1943_v53 = vpop.f32.mrf.mxu2 }
 0x1bd   :  { %v1944_v42 = vadd.f32 %v1943_v53, %v1845_v48 }
 0x1be   :  { %v1847_v12 = vpop.f32.mrf.mxu1  ;;  %v2052_v11 = vpop.f32.mrf.mxu3 }
 0x1bf   :  { %v2043_v0 = vadd.f32 %v2042_v14, %v1944_v42  ;;  %v1848_v49 = vadd.f32 %v1847_v12, %v4658_v40  ;;  %v3802_v14 = vld [vmem:[%s5761_s0 + $0x134] sm:$0xf]  ;;  %v2998_v40 = vld [vmem:[%s5761_s0 + $0x138] sm:$0xf] }
 0x1c1   :  { %v2144_v44 = vpop.f32.mrf.mxu0  ;;  %2192 = vmatmul.bf16.gmra.mxu1 %v2959_v60  ;;  %2291 = vmatmul.bf16.gmra.mxu2 %v2963_v35  ;;  %v5216_v50 = vadd.f32 %v2141_v19, %v2043_v0  ;;  %v2992_v19 = vld [vmem:[%s5761_s0 + $0x154] sm:$0xf0] }
 0x1c2   :  { %v2995_v60 = vor.u32 %v3802_v14, %v2992_v19 }
 0x1c3   :  { %2400 = vmatmul.bf16.gmra.mxu3 %v3039_v5 }
 0x1c4   :  { %2489 = vmatmul.bf16.gmra.mxu0 %v2971_v1  ;;  %v1946_v33 = vpop.f32.mrf.mxu2  ;;  %v3007_v1 = vor.u32 %v3808_v16, %v3006_v56  ;;  %v3042_v56 = vld [vmem:[%s5761_s0 + $0x188] sm:$0xf]  ;;  %v3817_v16 = vld [vmem:[%s5761_s0 + $0x1a8] sm:$0xf0] }
 0x1c5   :  { %v1947_v20 = vadd.f32 %v1946_v33, %v1848_v49 }
 0x1c6   :  { %v1849_v22 = vpop.f32.mrf.mxu1  ;;  %v2055_v13 = vpop.f32.mrf.mxu3 }
 0x1c7   :  { %v2046_v55 = vadd.f32 %v2045_v34, %v1947_v20  ;;  %v3807_v34 = vld [vmem:[%s5761_s0 + $0x158] sm:$0xf0]  ;;  %v1850_v48 = vadd.f32 %v1849_v22, %v4682_v58  ;;  %v3072_v58 = vld [vmem:[%s5761_s0 + $0x1ec] sm:$0xf0] }
 0x1c8   :  { %v2999_v35 = vor.u32 %v3807_v34, %v2998_v40  ;;  %v3075_v5 = vor.u32 %v3821_v31, %v3072_v58  ;;  %v3830_v31 = vld [vmem:[%s5761_s0 + $0x214] sm:$0xf] }
 0x1c9   :  { %v2146_v36 = vpop.f32.mrf.mxu0  ;;  %v5222_v61 = vadd.f32 %v2144_v44, %v2046_v55 }
 0x1cc   :  { %v1948_v53 = vpop.f32.mrf.mxu2 }
 0x1cd   :  { %v1949_v42 = vadd.f32 %v1948_v53, %v1850_v48 }
 0x1ce   :  { %v1852_v12 = vpop.f32.mrf.mxu1  ;;  %v2057_v44 = vpop.f32.mrf.mxu3 }
 0x1cf   :  { %v2048_v24 = vadd.f32 %v2047_v41, %v1949_v42  ;;  %v1853_v33 = vadd.f32 %v1852_v12, %v4700_v8  ;;  %v3811_v41 = vld [vmem:[%s5761_s0 + $0x17c] sm:$0xf]  ;;  %v3034_v8 = vld [vmem:[%s5761_s0 + $0x180] sm:$0xf] }
 0x1d1   :  { %v2149_v0 = vpop.f32.mrf.mxu0  ;;  %2197 = vmatmul.bf16.gmra.mxu1 %v2995_v60  ;;  %2296 = vmatmul.bf16.gmra.mxu2 %v2999_v35  ;;  %v5246_v49 = vadd.f32 %v2146_v36, %v2048_v24  ;;  %v3028_v36 = vld [vmem:[%s5761_s0 + $0x19c] sm:$0xf0] }
 0x1d2   :  { %v3031_v60 = vor.u32 %v3811_v41, %v3028_v36 }
 0x1d3   :  { %2405 = vmatmul.bf16.gmra.mxu3 %v3075_v5 }
 0x1d4   :  { %2494 = vmatmul.bf16.gmra.mxu0 %v3007_v1  ;;  %v1951_v20 = vpop.f32.mrf.mxu2  ;;  %v3043_v1 = vor.u32 %v3817_v16, %v3042_v56  ;;  %v3078_v56 = vld [vmem:[%s5761_s0 + $0x1d0] sm:$0xf]  ;;  %v3826_v16 = vld [vmem:[%s5761_s0 + $0x1f0] sm:$0xf0] }
 0x1d5   :  { %v1952_v22 = vadd.f32 %v1951_v20, %v1853_v33 }
 0x1d6   :  { %v1854_v55 = vpop.f32.mrf.mxu1  ;;  %v2060_v40 = vpop.f32.mrf.mxu3 }
 0x1d7   :  { %v2051_v14 = vadd.f32 %v2050_v54, %v1952_v22  ;;  %v3816_v54 = vld [vmem:[%s5761_s0 + $0x1a0] sm:$0xf0]  ;;  %v1855_v48 = vadd.f32 %v1854_v55, %v4730_v29  ;;  %v3108_v29 = vld [vmem:[%s5761_s0 + $0x234] sm:$0xf0] }
 0x1d8   :  { %v3035_v35 = vor.u32 %v3816_v54, %v3034_v8  ;;  %v3111_v5 = vor.u32 %v3830_v31, %v3108_v29  ;;  %v3839_v31 = vld [vmem:[%s5761_s0 + $0x25c] sm:$0xf] }
 0x1d9   :  { %v2151_v19 = vpop.f32.mrf.mxu0  ;;  %v5252_v34 = vadd.f32 %v2149_v0, %v2051_v14 }
 0x1dc   :  { %v1953_v53 = vpop.f32.mrf.mxu2 }
 0x1dd   :  { %v1954_v42 = vadd.f32 %v1953_v53, %v1855_v48 }
 0x1de   :  { %v1857_v12 = vpop.f32.mrf.mxu1  ;;  %v2062_v0 = vpop.f32.mrf.mxu3 }
 0x1df   :  { %v2053_v58 = vadd.f32 %v2052_v11, %v1954_v42  ;;  %v1858_v20 = vadd.f32 %v1857_v12, %v4532_v37  ;;  %v3820_v11 = vld [vmem:[%s5761_s0 + $0x1c4] sm:$0xf]  ;;  %v3070_v37 = vld [vmem:[%s5761_s0 + $0x1c8] sm:$0xf] }
 0x1e1   :  { %v2154_v24 = vpop.f32.mrf.mxu0  ;;  %2202 = vmatmul.bf16.gmra.mxu1 %v3031_v60  ;;  %2301 = vmatmul.bf16.gmra.mxu2 %v3035_v35  ;;  %v5276_v33 = vadd.f32 %v2151_v19, %v2053_v58  ;;  %v3064_v19 = vld [vmem:[%s5761_s0 + $0x1e4] sm:$0xf0] }
 0x1e2   :  { %v3067_v60 = vor.u32 %v3820_v11, %v3064_v19 }
 0x1e3   :  { %2410 = vmatmul.bf16.gmra.mxu3 %v3111_v5 }
 0x1e4   :  { %2499 = vmatmul.bf16.gmra.mxu0 %v3043_v1  ;;  %v1956_v22 = vpop.f32.mrf.mxu2  ;;  %v3079_v1 = vor.u32 %v3826_v16, %v3078_v56  ;;  %v3114_v56 = vld [vmem:[%s5761_s0 + $0x218] sm:$0xf]  ;;  %v3835_v16 = vld [vmem:[%s5761_s0 + $0x238] sm:$0xf0] }
 0x1e5   :  { %v1957_v55 = vadd.f32 %v1956_v22, %v1858_v20 }
 0x1e6   :  { %v1859_v14 = vpop.f32.mrf.mxu1  ;;  %v2065_v8 = vpop.f32.mrf.mxu3 }
 0x1e7   :  { %v2056_v41 = vadd.f32 %v2055_v13, %v1957_v55  ;;  %v3825_v13 = vld [vmem:[%s5761_s0 + $0x1e8] sm:$0xf0]  ;;  %v1860_v48 = vadd.f32 %v1859_v14, %v4564_v52  ;;  %v3144_v52 = vld [vmem:[%s5761_s0 + $0x27c] sm:$0xf0] }
 0x1e8   :  { %v3071_v35 = vor.u32 %v3825_v13, %v3070_v37  ;;  %v3147_v5 = vor.u32 %v3839_v31, %v3144_v52  ;;  %v3848_v31 = vld [vmem:[%s5761_s0 + $0x2a4] sm:$0xf] }
 0x1e9   :  { %v2156_v36 = vpop.f32.mrf.mxu0  ;;  %v5282_v54 = vadd.f32 %v2154_v24, %v2056_v41 }
 0x1ec   :  { %v1958_v53 = vpop.f32.mrf.mxu2 }
 0x1ed   :  { %v1959_v42 = vadd.f32 %v1958_v53, %v1860_v48 }
 0x1ee   :  { %v1862_v12 = vpop.f32.mrf.mxu1  ;;  %v2067_v24 = vpop.f32.mrf.mxu3 }
 0x1ef   :  { %v2058_v29 = vadd.f32 %v2057_v44, %v1959_v42  ;;  %v1863_v22 = vadd.f32 %v1862_v12, %v4572_v57  ;;  %v3829_v44 = vld [vmem:[%s5761_s0 + $0x20c] sm:$0xf]  ;;  %v3106_v57 = vld [vmem:[%s5761_s0 + $0x210] sm:$0xf] }
 0x1f1   :  { %v2159_v58 = vpop.f32.mrf.mxu0  ;;  %2207 = vmatmul.bf16.gmra.mxu1 %v3067_v60  ;;  %2306 = vmatmul.bf16.gmra.mxu2 %v3071_v35  ;;  %v5306_v20 = vadd.f32 %v2156_v36, %v2058_v29  ;;  %v3100_v36 = vld [vmem:[%s5761_s0 + $0x22c] sm:$0xf0] }
 0x1f2   :  { %v3103_v60 = vor.u32 %v3829_v44, %v3100_v36 }
 0x1f3   :  { %2415 = vmatmul.bf16.gmra.mxu3 %v3147_v5 }
 0x1f4   :  { %2504 = vmatmul.bf16.gmra.mxu0 %v3079_v1  ;;  %v1961_v55 = vpop.f32.mrf.mxu2  ;;  %v3115_v1 = vor.u32 %v3835_v16, %v3114_v56  ;;  %v3150_v56 = vld [vmem:[%s5761_s0 + $0x260] sm:$0xf]  ;;  %v3844_v16 = vld [vmem:[%s5761_s0 + $0x280] sm:$0xf0] }
 0x1f5   :  { %v1962_v14 = vadd.f32 %v1961_v55, %v1863_v22 }
 0x1f6   :  { %v1864_v41 = vpop.f32.mrf.mxu1  ;;  %v5309_v37 = vpop.f32.mrf.mxu3 }
 0x1f7   :  { %v2061_v11 = vadd.f32 %v2060_v40, %v1962_v14  ;;  %v3834_v40 = vld [vmem:[%s5761_s0 + $0x230] sm:$0xf0]  ;;  %v1865_v48 = vadd.f32 %v1864_v41, %v4610_v10  ;;  %v3180_v10 = vld [vmem:[%s5761_s0 + $0x2c4] sm:$0xf0] }
 0x1f8   :  { %v3107_v35 = vor.u32 %v3834_v40, %v3106_v57  ;;  %v3183_v5 = vor.u32 %v3848_v31, %v3180_v10  ;;  %v3857_v31 = vld [vmem:[%s5761_s0 + $0x2ec] sm:$0xf] }
 0x1f9   :  { %v2161_v19 = vpop.f32.mrf.mxu0  ;;  %v5314_v13 = vadd.f32 %v2159_v58, %v2061_v11 }
 0x1fc   :  { %v1963_v53 = vpop.f32.mrf.mxu2 }
 0x1fd   :  { %v1964_v42 = vadd.f32 %v1963_v53, %v1865_v48 }
 0x1fe   :  { %v1867_v12 = vpop.f32.mrf.mxu1  ;;  %v5338_v58 = vpop.f32.mrf.mxu3 }
 0x1ff   :  { %v2063_v52 = vadd.f32 %v2062_v0, %v1964_v42  ;;  %v1868_v55 = vadd.f32 %v1867_v12, %v4624_v17  ;;  %v3838_v0 = vld [vmem:[%s5761_s0 + $0x254] sm:$0xf]  ;;  %v3142_v17 = vld [vmem:[%s5761_s0 + $0x258] sm:$0xf] }
 0x201   :  { %v2164_v29 = vpop.f32.mrf.mxu0  ;;  %2212 = vmatmul.bf16.gmra.mxu1 %v3103_v60  ;;  %2311 = vmatmul.bf16.gmra.mxu2 %v3107_v35  ;;  %v5340_v22 = vadd.f32 %v2161_v19, %v2063_v52  ;;  %v3136_v19 = vld [vmem:[%s5761_s0 + $0x274] sm:$0xf0] }
 0x202   :  { %v3139_v60 = vor.u32 %v3838_v0, %v3136_v19 }
 0x203   :  { %2420 = vmatmul.bf16.gmra.mxu3 %v3183_v5 }
 0x204   :  { %2509 = vmatmul.bf16.gmra.mxu0 %v3115_v1  ;;  %v1966_v14 = vpop.f32.mrf.mxu2  ;;  %v3151_v1 = vor.u32 %v3844_v16, %v3150_v56  ;;  %v3853_v56 = vld [vmem:[%s5761_s0 + $0x2c8] sm:$0xf0] }
 0x205   :  { %v1967_v41 = vadd.f32 %v1966_v14, %v1868_v55 }
 0x206   :  { %v1869_v11 = vpop.f32.mrf.mxu1  ;;  %v5343_v57 = vpop.f32.mrf.mxu3 }
 0x207   :  { %v2066_v44 = vadd.f32 %v2065_v8, %v1967_v41  ;;  %v3843_v8 = vld [vmem:[%s5761_s0 + $0x278] sm:$0xf0]  ;;  %v1870_v48 = vadd.f32 %v1869_v11, %v4656_v38  ;;  %v3216_v38 = vld [vmem:[%s5761_s0 + $0x30c] sm:$0xf0] }
 0x208   :  { %v3143_v35 = vor.u32 %v3843_v8, %v3142_v17  ;;  %v3219_v5 = vor.u32 %v3857_v31, %v3216_v38  ;;  %v3847_v17 = vld [vmem:[%s5761_s0 + $0x29c] sm:$0xf]  ;;  %v3852_v8 = vld [vmem:[%s5761_s0 + $0x2c0] sm:$0xf0]  ;;  %v3866_v31 = vld [vmem:[%s5761_s0 + $0x334] sm:$0xf] }
 0x209   :  { %v2166_v36 = vpop.f32.mrf.mxu0  ;;  %v5348_v40 = vadd.f32 %v2164_v29, %v2066_v44  ;;  %v3252_v38 = vld [vmem:[%s5761_s0 + $0x354] sm:$0xf0] }
 0x20c   :  { %v1968_v53 = vpop.f32.mrf.mxu2 }
 0x20d   :  { %v1969_v42 = vadd.f32 %v1968_v53, %v1870_v48 }
 0x20e   :  { %v2178_v12 = vpop.f32.mrf.mxu1  ;;  %v5372_v29 = vpop.f32.mrf.mxu3 }
 0x20f   :  { %v2068_v10 = vadd.f32 %v2067_v24, %v1969_v42  ;;  %v2179_v14 = vadd.f32 %v2178_v12, %v4746_v15  ;;  %v3178_v15 = vld [vmem:[%s5761_s0 + $0x2a0] sm:$0xf] }
 0x210   :  { %v5402_v42 = vld [vmem:[%s5762_s2] ss:$0 sm:$0xff]  ;;  %v3179_v12 = vor.u32 %v3852_v8, %v3178_v15 }
 0x211   :  { %v2475_v52 = vpop.f32.mrf.mxu0  ;;  %2217 = vmatmul.bf16.gmra.mxu1 %v3139_v60  ;;  %2316 = vmatmul.bf16.gmra.mxu2 %v3143_v35  ;;  %v5374_v55 = vadd.f32 %v2166_v36, %v2068_v10  ;;  %v3172_v36 = vld [vmem:[%s5761_s0 + $0x2bc] sm:$0xf0] }
 0x212   :  { %v3175_v35 = vor.u32 %v3847_v17, %v3172_v36 }
 0x213   :  { %2425 = vmatmul.bf16.gmra.mxu3 %v3219_v5 }
 0x214   :  { %2514 = vmatmul.bf16.gmra.mxu0 %v3151_v1  ;;  %v2277_v41 = vpop.f32.mrf.mxu2 }
 0x215   :  { %v2278_v11 = vadd.f32 %v2277_v41, %v2179_v14 }
 0x216   :  { %v2180_v44 = vpop.f32.mrf.mxu1  ;;  %v5377_v19 = vpop.f32.mrf.mxu3 }
 0x217   :  { %v2377_v24 = vadd.f32 %v5309_v37, %v2278_v11  ;;  %v2181_v48 = vadd.f32 %v2180_v44, %v4772_v59  ;;  %v3186_v37 = vld [vmem:[%s5761_s0 + $0x2a8] sm:$0xf]  ;;  %v3255_v11 = vor.u32 %v3866_v31, %v3252_v38 }
 0x218   :  { %v3187_v59 = vor.u32 %v3853_v56, %v3186_v37 }
 0x219   :  { %v2477_v0 = vpop.f32.mrf.mxu0  ;;  %v2476_v53 = vadd.f32 %v2475_v52, %v2377_v24 }
 0x21b   :  { %v2680_v14 = vadd.f32 %v5402_v42, %v2476_v53  ;;  %v3214_v53 = vld [vmem:[%s5761_s0 + $0x2e8] sm:$0xf] }
 0x21c   :  { %v2279_v16 = vpop.f32.mrf.mxu2 }
 0x21d   :  { %v2280_v60 = vadd.f32 %v2279_v16, %v2181_v48  ;;  %v2716_v36 = vmax.f32 %v2680_v14, 0.0  ;;  %v3208_v16 = vld [vmem:[%s5761_s0 + $0x304] sm:$0xf0] }
 0x21e   :  { %v2183_v1 = vpop.f32.mrf.mxu1  ;;  %v5411_v5 = vpop.f32.mrf.mxu3 }
 0x21f   :  { %v2379_v10 = vadd.f32 %v5338_v58, %v2280_v60  ;;  %v2184_v24 = vadd.f32 %v2183_v1, %v4789_v18  ;;  %v3856_v18 = vld [vmem:[%s5761_s0 + $0x2e4] sm:$0xf]  ;;  %v3861_v60 = vld [vmem:[%s5761_s0 + $0x308] sm:$0xf0] }
 0x220   :  { %v3211_v38 = vor.u32 %v3856_v18, %v3208_v16 }
 0x221   :  { %v2480_v52 = vpop.f32.mrf.mxu0  ;;  %v2478_v41 = vadd.f32 %v2477_v0, %v2379_v10  ;;  %2222 = vmatmul.bf16.gmra.mxu1 %v3175_v35  ;;  %2321 = vmatmul.bf16.gmra.mxu2 %v3179_v12  ;;  %v3862_v12 = vld [vmem:[%s5761_s0 + $0x310] sm:$0xf0]  ;;  %v3215_v10 = vor.u32 %v3861_v60, %v3214_v53 }
 0x223   :  { %v2681_v44 = vadd.f32 %v5402_v42, %v2478_v41  ;;  %2430 = vmatmul.bf16.gmra.mxu3 %v3255_v11  ;;  %v3875_v11 = vld [vmem:[%s5761_s0 + $0x37c] sm:$0xf] }
 0x224   :  { %2519 = vmatmul.bf16.gmra.mxu0 %v3187_v59  ;;  %v2282_v17 = vpop.f32.mrf.mxu2 }
 0x225   :  { %v2717_v15 = vmax.f32 %v2681_v44, 0.0  ;;  %v2283_v8 = vadd.f32 %v2282_v17, %v2184_v24 }
 0x226   :  { %v2185_v58 = vpop.f32.mrf.mxu1  ;;  %v5416_v56 = vpop.f32.mrf.mxu3 }
 0x227   :  { %v4001_v48 = vpack.c.bf16 %v2717_v15, %v2716_v36  ;;  %v2382_v0 = vadd.f32 %v5343_v57, %v2283_v8  ;;  %v2186_v35 = vadd.f32 %v2185_v58, %v4819_v7  ;;  %v3222_v57 = vld [vmem:[%s5761_s0 + $0x2f0] sm:$0xf]  ;;  %v3288_v7 = vld [vmem:[%s5761_s0 + $0x39c] sm:$0xf0] }
 0x228   :  { %v3223_v41 = vor.u32 %v3862_v12, %v3222_v57  ;;  %v3291_v15 = vor.u32 %v3875_v11, %v3288_v7  ;;  %v3244_v57 = vld [vmem:[%s5761_s0 + $0x34c] sm:$0xf0] }
 0x229   :  { %v2482_v37 = vpop.f32.mrf.mxu0  ;;  %4002 = vst [vmem:[%s5763_s3] sm:$0xff] %v4001_v48   ;;  %v2481_v59 = vadd.f32 %v2480_v52, %v2382_v0  ;;  %v3250_v12 = vld [vmem:[%s5761_s0 + $0x330] sm:$0xf] }
 0x22b   :  { %v2682_v52 = vadd.f32 %v5402_v42, %v2481_v59 }
 0x22c   :  { %v2284_v1 = vpop.f32.mrf.mxu2 }
 0x22d   :  { %v2285_v31 = vadd.f32 %v2284_v1, %v2186_v35  ;;  %v2718_v0 = vmax.f32 %v2682_v52, 0.0  ;;  %v3870_v1 = vld [vmem:[%s5761_s0 + $0x350] sm:$0xf0]  ;;  %v3884_v52 = vld [vmem:[%s5761_s0 + $0x3c4] sm:$0xf] }
 0x22e   :  { %v2188_v14 = vpop.f32.mrf.mxu1  ;;  %v5448_v17 = vpop.f32.mrf.mxu3  ;;  %v3251_v11 = vor.u32 %v3870_v1, %v3250_v12  ;;  %v3280_v1 = vld [vmem:[%s5761_s0 + $0x394] sm:$0xf0] }
 0x22f   :  { %v2384_v44 = vadd.f32 %v5372_v29, %v2285_v31  ;;  %v2189_v58 = vadd.f32 %v2188_v14, %v4828_v23  ;;  %v3865_v23 = vld [vmem:[%s5761_s0 + $0x32c] sm:$0xf]  ;;  %v3871_v31 = vld [vmem:[%s5761_s0 + $0x358] sm:$0xf0] }
 0x231   :  { %v2485_v24 = vpop.f32.mrf.mxu0  ;;  %v2483_v36 = vadd.f32 %v2482_v37, %v2384_v44  ;;  %2227 = vmatmul.bf16.gmra.mxu1 %v3211_v38  ;;  %2326 = vmatmul.bf16.gmra.mxu2 %v3215_v10 }
 0x233   :  { %v2683_v8 = vadd.f32 %v5402_v42, %v2483_v36  ;;  %2435 = vmatmul.bf16.gmra.mxu3 %v3291_v15 }
 0x234   :  { %2524 = vmatmul.bf16.gmra.mxu0 %v3223_v41  ;;  %v2287_v48 = vpop.f32.mrf.mxu2  ;;  %v3247_v41 = vor.u32 %v3865_v23, %v3244_v57 }
 0x235   :  { %v2719_v18 = vmax.f32 %v2683_v8, 0.0  ;;  %v2288_v16 = vadd.f32 %v2287_v48, %v2189_v58 }
 0x236   :  { %v2190_v29 = vpop.f32.mrf.mxu1  ;;  %v5453_v35 = vpop.f32.mrf.mxu3 }
 0x237   :  { %v4006_v53 = vpack.c.bf16 %v2719_v18, %v2718_v0  ;;  %v2387_v37 = vadd.f32 %v5377_v19, %v2288_v16  ;;  %v2191_v59 = vadd.f32 %v2190_v29, %v4855_v3  ;;  %v3258_v19 = vld [vmem:[%s5761_s0 + $0x338] sm:$0xf]  ;;  %v3324_v3 = vld [vmem:[%s5761_s0 + $0x3e4] sm:$0xf0] }
 0x238   :  { %v3259_v44 = vor.u32 %v3871_v31, %v3258_v19  ;;  %v3327_v48 = vor.u32 %v3884_v52, %v3324_v3  ;;  %v3879_v19 = vld [vmem:[%s5761_s0 + $0x398] sm:$0xf0]  ;;  %v3893_v3 = vld [vmem:[%s5761_s0 + $0x40c] sm:$0xf] }
 0x239   :  { %v2487_v60 = vpop.f32.mrf.mxu0  ;;  %4088 = vst [vmem:[%s5763_s3 + $0x8] sm:$0xff] %v4006_v53   ;;  %v2486_v10 = vadd.f32 %v2485_v24, %v2387_v37 }
 0x23b   :  { %v2684_v24 = vadd.f32 %v5402_v42, %v2486_v10 }
 0x23c   :  { %v2289_v38 = vpop.f32.mrf.mxu2 }
 0x23d   :  { %v2290_v14 = vadd.f32 %v2289_v38, %v2191_v59  ;;  %v2720_v29 = vmax.f32 %v2684_v24, 0.0  ;;  %v3286_v59 = vld [vmem:[%s5761_s0 + $0x378] sm:$0xf]  ;;  %v3880_v38 = vld [vmem:[%s5761_s0 + $0x3a0] sm:$0xf0] }
 0x23e   :  { %v2193_v7 = vpop.f32.mrf.mxu1  ;;  %v5485_v8 = vpop.f32.mrf.mxu3 }
 0x23f   :  { %v2389_v36 = vadd.f32 %v5411_v5, %v2290_v14  ;;  %v2194_v18 = vadd.f32 %v2193_v7, %v4870_v6  ;;  %v3874_v6 = vld [vmem:[%s5761_s0 + $0x374] sm:$0xf]  ;;  %v3287_v7 = vor.u32 %v3879_v19, %v3286_v59  ;;  %v3322_v59 = vld [vmem:[%s5761_s0 + $0x3c0] sm:$0xf]  ;;  %v3888_v19 = vld [vmem:[%s5761_s0 + $0x3e0] sm:$0xf0] }
 0x241   :  { %v2490_v15 = vpop.f32.mrf.mxu0  ;;  %v2488_v58 = vadd.f32 %v2487_v60, %v2389_v36  ;;  %2232 = vmatmul.bf16.gmra.mxu1 %v3247_v41  ;;  %2331 = vmatmul.bf16.gmra.mxu2 %v3251_v11  ;;  %v3283_v11 = vor.u32 %v3874_v6, %v3280_v1  ;;  %v3316_v1 = vld [vmem:[%s5761_s0 + $0x3dc] sm:$0xf0] }
 0x243   :  { %v2685_v0 = vadd.f32 %v5402_v42, %v2488_v58  ;;  %2440 = vmatmul.bf16.gmra.mxu3 %v3327_v48 }
 0x244   :  { %2529 = vmatmul.bf16.gmra.mxu0 %v3259_v44  ;;  %v2292_v16 = vpop.f32.mrf.mxu2 }
 0x245   :  { %v2721_v53 = vmax.f32 %v2685_v0, 0.0  ;;  %v2293_v37 = vadd.f32 %v2292_v16, %v2194_v18 }
 0x246   :  { %v2195_v5 = vpop.f32.mrf.mxu1  ;;  %v5490_v12 = vpop.f32.mrf.mxu3 }
 0x247   :  { %v4011_v23 = vpack.c.bf16 %v2721_v53, %v2720_v29  ;;  %v2392_v60 = vadd.f32 %v5416_v56, %v2293_v37  ;;  %v2196_v31 = vadd.f32 %v2195_v5, %v4900_v51  ;;  %v3294_v56 = vld [vmem:[%s5761_s0 + $0x380] sm:$0xf]  ;;  %v3360_v51 = vld [vmem:[%s5761_s0 + $0x42c] sm:$0xf0] }
 0x248   :  { %v3295_v52 = vor.u32 %v3880_v38, %v3294_v56  ;;  %v3363_v0 = vor.u32 %v3893_v3, %v3360_v51  ;;  %v3889_v56 = vld [vmem:[%s5761_s0 + $0x3e8] sm:$0xf0] }
 0x249   :  { %v2492_v57 = vpop.f32.mrf.mxu0  ;;  %4089 = vst [vmem:[%s5763_s3 + $0x10] sm:$0xff] %v4011_v23   ;;  %v2491_v14 = vadd.f32 %v2490_v15, %v2392_v60 }
 0x24b   :  { %v2686_v15 = vadd.f32 %v5402_v42, %v2491_v14 }
 0x24c   :  { %v2294_v10 = vpop.f32.mrf.mxu2 }
 0x24d   :  { %v2295_v41 = vadd.f32 %v2294_v10, %v2196_v31  ;;  %v2722_v53 = vmax.f32 %v2686_v15, 0.0 }
 0x24e   :  { %v2198_v44 = vpop.f32.mrf.mxu1  ;;  %v5522_v58 = vpop.f32.mrf.mxu3 }
 0x24f   :  { %v2394_v36 = vadd.f32 %v5448_v17, %v2295_v41  ;;  %v2199_v16 = vadd.f32 %v2198_v44, %v4912_v30  ;;  %v3883_v30 = vld [vmem:[%s5761_s0 + $0x3bc] sm:$0xf] }
 0x250   :  { %v3319_v41 = vor.u32 %v3883_v30, %v3316_v1  ;;  %v3358_v30 = vld [vmem:[%s5761_s0 + $0x408] sm:$0xf]  ;;  %v3897_v1 = vld [vmem:[%s5761_s0 + $0x428] sm:$0xf0] }
 0x251   :  { %v2495_v24 = vpop.f32.mrf.mxu0  ;;  %v2493_v48 = vadd.f32 %v2492_v57, %v2394_v36  ;;  %2237 = vmatmul.bf16.gmra.mxu1 %v3283_v11  ;;  %2336 = vmatmul.bf16.gmra.mxu2 %v3287_v7  ;;  %v3323_v11 = vor.u32 %v3888_v19, %v3322_v59  ;;  %v3898_v19 = vld [vmem:[%s5761_s0 + $0x430] sm:$0xf0] }
 0x253   :  { %v2687_v18 = vadd.f32 %v5402_v42, %v2493_v48  ;;  %2445 = vmatmul.bf16.gmra.mxu3 %v3363_v0 }
 0x254   :  { %2534 = vmatmul.bf16.gmra.mxu0 %v3295_v52  ;;  %v2297_v29 = vpop.f32.mrf.mxu2  ;;  %v3902_v52 = vld [vmem:[%s5761_s0 + $0x454] sm:$0xf] }
 0x255   :  { %v2723_v37 = vmax.f32 %v2687_v18, 0.0  ;;  %v2298_v5 = vadd.f32 %v2297_v29, %v2199_v16 }
 0x256   :  { %v2200_v17 = vpop.f32.mrf.mxu1  ;;  %v5527_v6 = vpop.f32.mrf.mxu3 }
 0x257   :  { %v4016_v23 = vpack.c.bf16 %v2723_v37, %v2722_v53  ;;  %v2397_v57 = vadd.f32 %v5453_v35, %v2298_v5  ;;  %v2201_v31 = vadd.f32 %v2200_v17, %v4939_v63  ;;  %v3330_v35 = vld [vmem:[%s5761_s0 + $0x3c8] sm:$0xf]  ;;  %v3396_v63 = vld [vmem:[%s5761_s0 + $0x474] sm:$0xf0] }
 0x258   :  { %v3331_v44 = vor.u32 %v3889_v56, %v3330_v35  ;;  %v3399_v48 = vor.u32 %v3902_v52, %v3396_v63 }
 0x259   :  { %v2497_v60 = vpop.f32.mrf.mxu0  ;;  %4090 = vst [vmem:[%s5763_s3 + $0x18] sm:$0xff] %v4016_v23   ;;  %v2496_v10 = vadd.f32 %v2495_v24, %v2397_v57  ;;  %v3352_v57 = vld [vmem:[%s5761_s0 + $0x424] sm:$0xf0] }
 0x25b   :  { %v2688_v24 = vadd.f32 %v5402_v42, %v2496_v10  ;;  %v3359_v10 = vor.u32 %v3897_v1, %v3358_v30 }
 0x25c   :  { %v2299_v38 = vpop.f32.mrf.mxu2 }
 0x25d   :  { %v2300_v14 = vadd.f32 %v2299_v38, %v2201_v31  ;;  %v2724_v29 = vmax.f32 %v2688_v24, 0.0 }
 0x25e   :  { %v2203_v7 = vpop.f32.mrf.mxu1  ;;  %v5559_v36 = vpop.f32.mrf.mxu3 }
 0x25f   :  { %v2399_v3 = vadd.f32 %v5485_v8, %v2300_v14  ;;  %v2204_v18 = vadd.f32 %v2203_v7, %v4948_v21  ;;  %v3892_v21 = vld [vmem:[%s5761_s0 + $0x404] sm:$0xf] }
 0x260   :  { %v3355_v38 = vor.u32 %v3892_v21, %v3352_v57  ;;  %v3907_v57 = vld [vmem:[%s5761_s0 + $0x478] sm:$0xf0] }
 0x261   :  { %v2500_v51 = vpop.f32.mrf.mxu0  ;;  %v2498_v15 = vadd.f32 %v2497_v60, %v2399_v3  ;;  %2242 = vmatmul.bf16.gmra.mxu1 %v3319_v41  ;;  %2341 = vmatmul.bf16.gmra.mxu2 %v3323_v11  ;;  %v3911_v11 = vld [vmem:[%s5761_s0 + $0x49c] sm:$0xf] }
 0x263   :  { %v2689_v0 = vadd.f32 %v5402_v42, %v2498_v15  ;;  %2450 = vmatmul.bf16.gmra.mxu3 %v3399_v48 }
 0x264   :  { %2539 = vmatmul.bf16.gmra.mxu0 %v3331_v44  ;;  %v2302_v16 = vpop.f32.mrf.mxu2 }
 0x265   :  { %v2725_v53 = vmax.f32 %v2689_v0, 0.0  ;;  %v2303_v37 = vadd.f32 %v2302_v16, %v2204_v18 }
 0x266   :  { %v2205_v8 = vpop.f32.mrf.mxu1  ;;  %v5564_v23 = vpop.f32.mrf.mxu3 }
 0x267   :  { %v4021_v5 = vpack.c.bf16 %v2725_v53, %v2724_v29  ;;  %v2402_v60 = vadd.f32 %v5490_v12, %v2303_v37  ;;  %v2206_v59 = vadd.f32 %v2205_v8, %v4984_v43  ;;  %v3366_v12 = vld [vmem:[%s5761_s0 + $0x410] sm:$0xf]  ;;  %v3432_v43 = vld [vmem:[%s5761_s0 + $0x4bc] sm:$0xf0] }
 0x268   :  { %v3367_v41 = vor.u32 %v3898_v19, %v3366_v12 }
 0x269   :  { %v2502_v17 = vpop.f32.mrf.mxu0  ;;  %4091 = vst [vmem:[%s5763_s3 + $0x20] sm:$0xff] %v4021_v5   ;;  %v2501_v35 = vadd.f32 %v2500_v51, %v2402_v60  ;;  %v3435_v51 = vor.u32 %v3911_v11, %v3432_v43  ;;  %v3388_v5 = vld [vmem:[%s5761_s0 + $0x46c] sm:$0xf0]  ;;  %v3906_v60 = vld [vmem:[%s5761_s0 + $0x470] sm:$0xf0] }
 0x26b   :  { %v2690_v63 = vadd.f32 %v5402_v42, %v2501_v35 }
 0x26c   :  { %v2304_v31 = vpop.f32.mrf.mxu2 }
 0x26d   :  { %v2305_v56 = vadd.f32 %v2304_v31, %v2206_v59  ;;  %v2726_v0 = vmax.f32 %v2690_v63, 0.0 }
 0x26e   :  { %v2208_v14 = vpop.f32.mrf.mxu1  ;;  %v5596_v52 = vpop.f32.mrf.mxu3 }
 0x26f   :  { %v2404_v7 = vadd.f32 %v5522_v58, %v2305_v56  ;;  %v2209_v15 = vadd.f32 %v2208_v14, %v4996_v47  ;;  %v3901_v47 = vld [vmem:[%s5761_s0 + $0x44c] sm:$0xf]  ;;  %v3920_v56 = vld [vmem:[%s5761_s0 + $0x4e4] sm:$0xf] }
 0x270   :  { %v3391_v12 = vor.u32 %v3901_v47, %v3388_v5 }
 0x271   :  { %v2505_v44 = vpop.f32.mrf.mxu0  ;;  %v2503_v3 = vadd.f32 %v2502_v17, %v2404_v7  ;;  %2247 = vmatmul.bf16.gmra.mxu1 %v3355_v38  ;;  %2346 = vmatmul.bf16.gmra.mxu2 %v3359_v10  ;;  %v3394_v17 = vld [vmem:[%s5761_s0 + $0x450] sm:$0xf] }
 0x272   :  { %v3395_v19 = vor.u32 %v3906_v60, %v3394_v17 }
 0x273   :  { %v2691_v24 = vadd.f32 %v5402_v42, %v2503_v3  ;;  %2455 = vmatmul.bf16.gmra.mxu3 %v3435_v51 }
 0x274   :  { %2544 = vmatmul.bf16.gmra.mxu0 %v3367_v41  ;;  %v2307_v48 = vpop.f32.mrf.mxu2 }
 0x275   :  { %v2727_v18 = vmax.f32 %v2691_v24, 0.0  ;;  %v2308_v16 = vadd.f32 %v2307_v48, %v2209_v15 }
 0x276   :  { %v2210_v58 = vpop.f32.mrf.mxu1  ;;  %v5601_v37 = vpop.f32.mrf.mxu3 }
 0x277   :  { %v4026_v29 = vpack.c.bf16 %v2727_v18, %v2726_v0  ;;  %v2407_v8 = vadd.f32 %v5527_v6, %v2308_v16  ;;  %v2211_v21 = vadd.f32 %v2210_v58, %v5021_v9  ;;  %v3402_v6 = vld [vmem:[%s5761_s0 + $0x458] sm:$0xf]  ;;  %v3468_v9 = vld [vmem:[%s5761_s0 + $0x504] sm:$0xf0] }
 0x278   :  { %v3403_v35 = vor.u32 %v3907_v57, %v3402_v6  ;;  %v3471_v43 = vor.u32 %v3920_v56, %v3468_v9  ;;  %v3424_v16 = vld [vmem:[%s5761_s0 + $0x4b4] sm:$0xf0] }
 0x279   :  { %v2507_v53 = vpop.f32.mrf.mxu0  ;;  %4092 = vst [vmem:[%s5763_s3 + $0x28] sm:$0xff] %v4026_v29   ;;  %v2506_v1 = vadd.f32 %v2505_v44, %v2407_v8  ;;  %v3430_v58 = vld [vmem:[%s5761_s0 + $0x498] sm:$0xf]  ;;  %v3915_v29 = vld [vmem:[%s5761_s0 + $0x4b8] sm:$0xf0] }
 0x27a   :  { %v3916_v8 = vld [vmem:[%s5761_s0 + $0x4c0] sm:$0xf0] }
 0x27b   :  { %v2692_v41 = vadd.f32 %v5402_v42, %v2506_v1 }
 0x27c   :  { %v2309_v30 = vpop.f32.mrf.mxu2 }
 0x27d   :  { %v2310_v59 = vadd.f32 %v2309_v30, %v2211_v21  ;;  %v2728_v3 = vmax.f32 %v2692_v41, 0.0  ;;  %v3431_v21 = vor.u32 %v3915_v29, %v3430_v58 }
 0x27e   :  { %v2213_v31 = vpop.f32.mrf.mxu1  ;;  %v5633_v14 = vpop.f32.mrf.mxu3 }
 0x27f   :  { %v2409_v38 = vadd.f32 %v5559_v36, %v2310_v59  ;;  %v2214_v44 = vadd.f32 %v2213_v31, %v5028_v46  ;;  %v3910_v46 = vld [vmem:[%s5761_s0 + $0x494] sm:$0xf] }
 0x280   :  { %v3427_v60 = vor.u32 %v3910_v46, %v3424_v16 }
 0x281   :  { %v2510_v10 = vpop.f32.mrf.mxu0  ;;  %v2508_v11 = vadd.f32 %v2507_v53, %v2409_v38  ;;  %2252 = vmatmul.bf16.gmra.mxu1 %v3391_v12  ;;  %2351 = vmatmul.bf16.gmra.mxu2 %v3395_v19 }
 0x283   :  { %v2693_v7 = vadd.f32 %v5402_v42, %v2508_v11  ;;  %2460 = vmatmul.bf16.gmra.mxu3 %v3471_v43 }
 0x284   :  { %2549 = vmatmul.bf16.gmra.mxu0 %v3403_v35  ;;  %v2312_v63 = vpop.f32.mrf.mxu2 }
 0x285   :  { %v2729_v51 = vmax.f32 %v2693_v7, 0.0  ;;  %v2313_v24 = vadd.f32 %v2312_v63, %v2214_v44  ;;  %v3919_v7 = vld [vmem:[%s5761_s0 + $0x4dc] sm:$0xf]  ;;  %v3466_v44 = vld [vmem:[%s5761_s0 + $0x4e0] sm:$0xf] }
 0x286   :  { %v2215_v36 = vpop.f32.mrf.mxu1  ;;  %v5638_v0 = vpop.f32.mrf.mxu3  ;;  %v3924_v63 = vld [vmem:[%s5761_s0 + $0x500] sm:$0xf0] }
 0x287   :  { %v4031_v15 = vpack.c.bf16 %v2729_v51, %v2728_v3  ;;  %v2412_v18 = vadd.f32 %v5564_v23, %v2313_v24  ;;  %v2216_v53 = vadd.f32 %v2215_v36, %v5053_v62  ;;  %v3438_v23 = vld [vmem:[%s5761_s0 + $0x4a0] sm:$0xf]  ;;  %v3925_v51 = vld [vmem:[%s5761_s0 + $0x508] sm:$0xf0] }
 0x288   :  { %v3439_v57 = vor.u32 %v3916_v8, %v3438_v23 }
 0x289   :  { %v2512_v48 = vpop.f32.mrf.mxu0  ;;  %4093 = vst [vmem:[%s5763_s3 + $0x30] sm:$0xff] %v4031_v15   ;;  %v2511_v5 = vadd.f32 %v2510_v10, %v2412_v18  ;;  %v3467_v18 = vor.u32 %v3924_v63, %v3466_v44 }
 0x28b   :  { %v2694_v62 = vadd.f32 %v5402_v42, %v2511_v5 }
 0x28c   :  { %v2314_v47 = vpop.f32.mrf.mxu2 }
 0x28d   :  { %v2315_v17 = vadd.f32 %v2314_v47, %v2216_v53  ;;  %v2730_v56 = vmax.f32 %v2694_v62, 0.0 }
 0x28e   :  { %v2218_v6 = vpop.f32.mrf.mxu1  ;;  %v2423_v59 = vpop.f32.mrf.mxu3 }
 0x28f   :  { %v2414_v30 = vadd.f32 %v5596_v52, %v2315_v17  ;;  %v2219_v31 = vadd.f32 %v2218_v6, %v5062_v32  ;;  %v3460_v32 = vld [vmem:[%s5761_s0 + $0x4fc] sm:$0xf0] }
 0x291   :  { %v2515_v1 = vpop.f32.mrf.mxu0  ;;  %v2513_v12 = vadd.f32 %v2512_v48, %v2414_v30  ;;  %2257 = vmatmul.bf16.gmra.mxu1 %v3427_v60  ;;  %2356 = vmatmul.bf16.gmra.mxu2 %v3431_v21  ;;  %v3463_v48 = vor.u32 %v3919_v7, %v3460_v32 }
 0x293   :  { %v2695_v19 = vadd.f32 %v5402_v42, %v2513_v12 }
 0x294   :  { %2554 = vmatmul.bf16.gmra.mxu0 %v3439_v57  ;;  %v2317_v35 = vpop.f32.mrf.mxu2 }
 0x295   :  { %v2731_v9 = vmax.f32 %v2695_v19, 0.0  ;;  %v2318_v38 = vadd.f32 %v2317_v35, %v2219_v31 }
 0x296   :  { %v2220_v10 = vpop.f32.mrf.mxu1  ;;  %v2426_v52 = vpop.f32.mrf.mxu3 }
 0x297   :  { %v4036_v41 = vpack.c.bf16 %v2731_v9, %v2730_v56  ;;  %v2417_v43 = vadd.f32 %v5601_v37, %v2318_v38  ;;  %v2221_v3 = vadd.f32 %v2220_v10, %v5088_v25  ;;  %v3474_v37 = vld [vmem:[%s5761_s0 + $0x4e8] sm:$0xf] }
 0x298   :  { %v3475_v16 = vor.u32 %v3925_v51, %v3474_v37 }
 0x299   :  { %v2517_v11 = vpop.f32.mrf.mxu0  ;;  %4094 = vst [vmem:[%s5763_s3 + $0x38] sm:$0xff] %v4036_v41   ;;  %v2516_v36 = vadd.f32 %v2515_v1, %v2417_v43 }
 0x29b   :  { %v2696_v25 = vadd.f32 %v5402_v42, %v2516_v36 }
 0x29c   :  { %v2319_v24 = vpop.f32.mrf.mxu2 }
 0x29d   :  { %v2320_v15 = vadd.f32 %v2319_v24, %v2221_v3  ;;  %v2732_v17 = vmax.f32 %v2696_v25, 0.0 }
 0x29e   :  { %v2223_v46 = vpop.f32.mrf.mxu1  ;;  %v2428_v23 = vpop.f32.mrf.mxu3 }
 0x29f   :  { %v2419_v58 = vadd.f32 %v5633_v14, %v2320_v15  ;;  %v2224_v47 = vadd.f32 %v2223_v46, %v5096_v45 }
 0x2a1   :  { %v2520_v29 = vpop.f32.mrf.mxu0  ;;  %v2518_v53 = vadd.f32 %v2517_v11, %v2419_v58  ;;  %2262 = vmatmul.bf16.gmra.mxu1 %v3463_v48  ;;  %2361 = vmatmul.bf16.gmra.mxu2 %v3467_v18 }
 0x2a3   :  { %v2697_v8 = vadd.f32 %v5402_v42, %v2518_v53 }
 0x2a4   :  { %2559 = vmatmul.bf16.gmra.mxu0 %v3475_v16  ;;  %v2322_v5 = vpop.f32.mrf.mxu2 }
 0x2a5   :  { %v2733_v60 = vmax.f32 %v2697_v8, 0.0  ;;  %v2323_v21 = vadd.f32 %v2322_v5, %v2224_v47 }
 0x2a6   :  { %v2225_v6 = vpop.f32.mrf.mxu1  ;;  %v2431_v12 = vpop.f32.mrf.mxu3 }
 0x2a7   :  { %v4041_v57 = vpack.c.bf16 %v2733_v60, %v2732_v17  ;;  %v2422_v14 = vadd.f32 %v5638_v0, %v2323_v21  ;;  %v2226_v1 = vadd.f32 %v2225_v6, %v5122_v27 }
 0x2a9   :  { %v2522_v30 = vpop.f32.mrf.mxu0  ;;  %4095 = vst [vmem:[%s5763_s3 + $0x40] sm:$0xff] %v4041_v57   ;;  %v2521_v19 = vadd.f32 %v2520_v29, %v2422_v14 }
 0x2ab   :  { %v2698_v9 = vadd.f32 %v5402_v42, %v2521_v19 }
 0x2ac   :  { %v2324_v62 = vpop.f32.mrf.mxu2 }
 0x2ad   :  { %v2325_v31 = vadd.f32 %v2324_v62, %v2226_v1  ;;  %v2734_v43 = vmax.f32 %v2698_v9, 0.0 }
 0x2ae   :  { %v2228_v45 = vpop.f32.mrf.mxu1  ;;  %v2433_v27 = vpop.f32.mrf.mxu3 }
 0x2af   :  { %v2424_v35 = vadd.f32 %v2423_v59, %v2325_v31  ;;  %v2229_v41 = vadd.f32 %v2228_v45, %v5129_v26 }
 0x2b1   :  { %v2525_v56 = vpop.f32.mrf.mxu0  ;;  %v2523_v38 = vadd.f32 %v2522_v30, %v2424_v35 }
 0x2b3   :  { %v2699_v10 = vadd.f32 %v5402_v42, %v2523_v38 }
 0x2b4   :  { %v2327_v11 = vpop.f32.mrf.mxu2 }
 0x2b5   :  { %v2735_v7 = vmax.f32 %v2699_v10, 0.0  ;;  %v2328_v0 = vadd.f32 %v2327_v11, %v2229_v41 }
 0x2b6   :  { %v2230_v32 = vpop.f32.mrf.mxu1  ;;  %v2436_v48 = vpop.f32.mrf.mxu3 }
 0x2b7   :  { %v4046_v44 = vpack.c.bf16 %v2735_v7, %v2734_v43  ;;  %v2427_v59 = vadd.f32 %v2426_v52, %v2328_v0  ;;  %v2231_v3 = vadd.f32 %v2230_v32, %v5154_v39 }
 0x2b9   :  { %v2527_v63 = vpop.f32.mrf.mxu0  ;;  %4096 = vst [vmem:[%s5763_s3 + $0x48] sm:$0xff] %v4046_v44   ;;  %v2526_v51 = vadd.f32 %v2525_v56, %v2427_v59 }
 0x2bb   :  { %v2700_v18 = vadd.f32 %v5402_v42, %v2526_v51 }
 0x2bc   :  { %v2329_v37 = vpop.f32.mrf.mxu2 }
 0x2bd   :  { %v2330_v24 = vadd.f32 %v2329_v37, %v2231_v3  ;;  %v2736_v25 = vmax.f32 %v2700_v18, 0.0 }
 0x2be   :  { %v2233_v36 = vpop.f32.mrf.mxu1  ;;  %v2438_v5 = vpop.f32.mrf.mxu3 }
 0x2bf   :  { %v2429_v26 = vadd.f32 %v2428_v23, %v2330_v24  ;;  %v2234_v58 = vadd.f32 %v2233_v36, %v5161_v4 }
 0x2c1   :  { %v2530_v15 = vpop.f32.mrf.mxu0  ;;  %v2528_v46 = vadd.f32 %v2527_v63, %v2429_v26 }
 0x2c3   :  { %v2701_v16 = vadd.f32 %v5402_v42, %v2528_v46 }
 0x2c4   :  { %v2332_v29 = vpop.f32.mrf.mxu2 }
 0x2c5   :  { %v2737_v53 = vmax.f32 %v2701_v16, 0.0  ;;  %v2333_v52 = vadd.f32 %v2332_v29, %v2234_v58 }
 0x2c6   :  { %v2235_v8 = vpop.f32.mrf.mxu1  ;;  %v2441_v45 = vpop.f32.mrf.mxu3 }
 0x2c7   :  { %v4051_v39 = vpack.c.bf16 %v2737_v53, %v2736_v25  ;;  %v2432_v23 = vadd.f32 %v2431_v12, %v2333_v52  ;;  %v2236_v17 = vadd.f32 %v2235_v8, %v5186_v2 }
 0x2c9   :  { %v2532_v47 = vpop.f32.mrf.mxu0  ;;  %4097 = vst [vmem:[%s5763_s3 + $0x50] sm:$0xff] %v4051_v39   ;;  %v2531_v21 = vadd.f32 %v2530_v15, %v2432_v23 }
 0x2cb   :  { %v2702_v14 = vadd.f32 %v5402_v42, %v2531_v21 }
 0x2cc   :  { %v2334_v60 = vpop.f32.mrf.mxu2 }
 0x2cd   :  { %v2335_v6 = vadd.f32 %v2334_v60, %v2236_v17  ;;  %v2738_v35 = vmax.f32 %v2702_v14, 0.0 }
 0x2ce   :  { %v2238_v57 = vpop.f32.mrf.mxu1 }
 0x2cf   :  { %v2434_v4 = vadd.f32 %v2433_v27, %v2335_v6  ;;  %v2239_v19 = vadd.f32 %v2238_v57, %v5192_v28  ;;  %v2443_v28 = vpop.f32.mrf.mxu3 }
 0x2d1   :  { %v2535_v30 = vpop.f32.mrf.mxu0  ;;  %v2533_v1 = vadd.f32 %v2532_v47, %v2434_v4 }
 0x2d3   :  { %v2703_v62 = vadd.f32 %v5402_v42, %v2533_v1 }
 0x2d4   :  { %v2337_v31 = vpop.f32.mrf.mxu2 }
 0x2d5   :  { %v2739_v12 = vmax.f32 %v2703_v62, 0.0  ;;  %v2338_v56 = vadd.f32 %v2337_v31, %v2239_v19 }
 0x2d6   :  { %v2240_v9 = vpop.f32.mrf.mxu1 }
 0x2d7   :  { %v4056_v2 = vpack.c.bf16 %v2739_v12, %v2738_v35  ;;  %v2437_v10 = vadd.f32 %v2436_v48, %v2338_v56  ;;  %v2241_v41 = vadd.f32 %v2240_v9, %v5216_v50  ;;  %v2446_v48 = vpop.f32.mrf.mxu3 }
 0x2d9   :  { %v2537_v38 = vpop.f32.mrf.mxu0  ;;  %4098 = vst [vmem:[%s5763_s3 + $0x58] sm:$0xff] %v4056_v2   ;;  %v2536_v43 = vadd.f32 %v2535_v30, %v2437_v10 }
 0x2db   :  { %v2704_v44 = vadd.f32 %v5402_v42, %v2536_v43 }
 0x2dc   :  { %v2339_v11 = vpop.f32.mrf.mxu2 }
 0x2dd   :  { %v2340_v7 = vadd.f32 %v2339_v11, %v2241_v41  ;;  %v2740_v51 = vmax.f32 %v2704_v44, 0.0 }
 0x2de   :  { %v2243_v0 = vpop.f32.mrf.mxu1 }
 0x2df   :  { %v2439_v32 = vadd.f32 %v2438_v5, %v2340_v7  ;;  %v2244_v3 = vadd.f32 %v2243_v0, %v5222_v61  ;;  %v2448_v39 = vpop.f32.mrf.mxu3 }
 0x2e1   :  { %v2540_v27 = vpop.f32.mrf.mxu0  ;;  %v2538_v63 = vadd.f32 %v2537_v38, %v2439_v32 }
 0x2e3   :  { %v2705_v59 = vadd.f32 %v5402_v42, %v2538_v63 }
 0x2e4   :  { %v2342_v37 = vpop.f32.mrf.mxu2 }
 0x2e5   :  { %v2741_v24 = vmax.f32 %v2705_v59, 0.0  ;;  %v2343_v36 = vadd.f32 %v2342_v37, %v2244_v3 }
 0x2e6   :  { %v2245_v26 = vpop.f32.mrf.mxu1 }
 0x2e7   :  { %v4061_v50 = vpack.c.bf16 %v2741_v24, %v2740_v51  ;;  %v2442_v18 = vadd.f32 %v2441_v45, %v2343_v36  ;;  %v2246_v46 = vadd.f32 %v2245_v26, %v5246_v49  ;;  %v2451_v1 = vpop.f32.mrf.mxu3 }
 0x2e9   :  { %v2542_v15 = vpop.f32.mrf.mxu0  ;;  %4099 = vst [vmem:[%s5763_s3 + $0x60] sm:$0xff] %v4061_v50   ;;  %v2541_v58 = vadd.f32 %v2540_v27, %v2442_v18 }
 0x2eb   :  { %v2706_v52 = vadd.f32 %v5402_v42, %v2541_v58 }
 0x2ec   :  { %v2344_v16 = vpop.f32.mrf.mxu2 }
 0x2ed   :  { %v2345_v29 = vadd.f32 %v2344_v16, %v2246_v46  ;;  %v2742_v17 = vmax.f32 %v2706_v52, 0.0 }
 0x2ee   :  { %v2248_v25 = vpop.f32.mrf.mxu1 }
 0x2ef   :  { %v2444_v61 = vadd.f32 %v2443_v28, %v2345_v29  ;;  %v2249_v23 = vadd.f32 %v2248_v25, %v5252_v34 }
 0x2f1   :  { %v2545_v53 = vpop.f32.mrf.mxu0  ;;  %v2543_v8 = vadd.f32 %v2542_v15, %v2444_v61 }
 0x2f3   :  { %v2707_v47 = vadd.f32 %v5402_v42, %v2543_v8 }
 0x2f4   :  { %v2347_v5 = vpop.f32.mrf.mxu2 }
 0x2f5   :  { %v2743_v60 = vmax.f32 %v2707_v47, 0.0  ;;  %v2348_v21 = vadd.f32 %v2347_v5, %v2249_v23 }
 0x2f6   :  { %v2250_v6 = vpop.f32.mrf.mxu1 }
 0x2f7   :  { %v4066_v49 = vpack.c.bf16 %v2743_v60, %v2742_v17  ;;  %v2447_v4 = vadd.f32 %v2446_v48, %v2348_v21  ;;  %v2251_v30 = vadd.f32 %v2250_v6, %v5276_v33  ;;  %v2453_v33 = vpop.f32.mrf.mxu3 }
 0x2f9   :  { %v2547_v57 = vpop.f32.mrf.mxu0  ;;  %4100 = vst [vmem:[%s5763_s3 + $0x68] sm:$0xff] %v4066_v49   ;;  %v2546_v62 = vadd.f32 %v2545_v53, %v2447_v4 }
 0x2fb   :  { %v2708_v35 = vadd.f32 %v5402_v42, %v2546_v62 }
 0x2fc   :  { %v2349_v14 = vpop.f32.mrf.mxu2 }
 0x2fd   :  { %v2350_v19 = vadd.f32 %v2349_v14, %v2251_v30  ;;  %v2744_v38 = vmax.f32 %v2708_v35, 0.0 }
 0x2fe   :  { %v2253_v31 = vpop.f32.mrf.mxu1 }
 0x2ff   :  { %v2449_v34 = vadd.f32 %v2448_v39, %v2350_v19  ;;  %v2254_v9 = vadd.f32 %v2253_v31, %v5282_v54  ;;  %v2456_v59 = vpop.f32.mrf.mxu3 }
 0x301   :  { %v2550_v45 = vpop.f32.mrf.mxu0  ;;  %v2548_v12 = vadd.f32 %v2547_v57, %v2449_v34 }
 0x303   :  { %v2709_v56 = vadd.f32 %v5402_v42, %v2548_v12 }
 0x304   :  { %v2352_v2 = vpop.f32.mrf.mxu2 }
 0x305   :  { %v2745_v10 = vmax.f32 %v2709_v56, 0.0  ;;  %v2353_v41 = vadd.f32 %v2352_v2, %v2254_v9 }
 0x306   :  { %v2255_v11 = vpop.f32.mrf.mxu1 }
 0x307   :  { %v4071_v43 = vpack.c.bf16 %v2745_v10, %v2744_v38  ;;  %v2452_v0 = vadd.f32 %v2451_v1, %v2353_v41  ;;  %v2256_v28 = vadd.f32 %v2255_v11, %v5306_v20  ;;  %v2458_v16 = vpop.f32.mrf.mxu3 }
 0x309   :  { %v2552_v7 = vpop.f32.mrf.mxu0  ;;  %4101 = vst [vmem:[%s5763_s3 + $0x70] sm:$0xff] %v4071_v43   ;;  %v2551_v27 = vadd.f32 %v2550_v45, %v2452_v0 }
 0x30b   :  { %v2710_v3 = vadd.f32 %v5402_v42, %v2551_v27 }
 0x30c   :  { %v2354_v32 = vpop.f32.mrf.mxu2 }
 0x30d   :  { %v2355_v44 = vadd.f32 %v2354_v32, %v2256_v28  ;;  %v2746_v50 = vmax.f32 %v2710_v3, 0.0 }
 0x30e   :  { %v2258_v63 = vpop.f32.mrf.mxu1 }
 0x30f   :  { %v2454_v54 = vadd.f32 %v2453_v33, %v2355_v44  ;;  %v2259_v36 = vadd.f32 %v2258_v63, %v5314_v13  ;;  %v2461_v5 = vpop.f32.mrf.mxu3 }
 0x311   :  { %v2553_v37 = vadd.f32 %v2552_v7, %v2454_v54  ;;  %v2555_v51 = vpop.f32.mrf.mxu0 }
 0x313   :  { %v2711_v24 = vadd.f32 %v5402_v42, %v2553_v37 }
 0x314   :  { %v2357_v26 = vpop.f32.mrf.mxu2 }
 0x315   :  { %v2747_v15 = vmax.f32 %v2711_v24, 0.0  ;;  %v2358_v48 = vadd.f32 %v2357_v26, %v2259_v36 }
 0x316   :  { %v2260_v18 = vpop.f32.mrf.mxu1 }
 0x317   :  { %v4076_v20 = vpack.c.bf16 %v2747_v15, %v2746_v50  ;;  %v2457_v46 = vadd.f32 %v2456_v59, %v2358_v48  ;;  %v2261_v58 = vadd.f32 %v2260_v18, %v5340_v22  ;;  %v2463_v19 = vpop.f32.mrf.mxu3 }
 0x319   :  { %4102 = vst [vmem:[%s5763_s3 + $0x78] sm:$0xff] %v4076_v20   ;;  %v2557_v29 = vpop.f32.mrf.mxu0  ;;  %v2556_v61 = vadd.f32 %v2555_v51, %v2457_v46 }
 0x31b   :  { %v2712_v8 = vadd.f32 %v5402_v42, %v2556_v61 }
 0x31c   :  { %v2359_v25 = vpop.f32.mrf.mxu2 }
 0x31d   :  { %v2360_v53 = vadd.f32 %v2359_v25, %v2261_v58  ;;  %v2748_v60 = vmax.f32 %v2712_v8, 0.0 }
 0x31e   :  { %v2263_v52 = vpop.f32.mrf.mxu1 }
 0x31f   :  { %v2459_v13 = vadd.f32 %v2458_v16, %v2360_v53  ;;  %v2264_v23 = vadd.f32 %v2263_v52, %v5348_v40 }
 0x321   :  { %v2558_v39 = vadd.f32 %v2557_v29, %v2459_v13  ;;  %v2560_v49 = vpop.f32.mrf.mxu0 }
 0x323   :  { %v2713_v47 = vadd.f32 %v5402_v42, %v2558_v39 }
 0x324   :  { %v2362_v17 = vpop.f32.mrf.mxu2 }
 0x325   :  { %v2749_v21 = vmax.f32 %v2713_v47, 0.0  ;;  %v2363_v6 = vadd.f32 %v2362_v17, %v2264_v23 }
 0x326   :  { %v2265_v57 = vpop.f32.mrf.mxu1 }
 0x327   :  { %v4081_v22 = vpack.c.bf16 %v2749_v21, %v2748_v60  ;;  %v2462_v4 = vadd.f32 %v2461_v5, %v2363_v6  ;;  %v2266_v30 = vadd.f32 %v2265_v57, %v5374_v55 }
 0x329   :  { %4103 = vst [vmem:[%s5763_s3 + $0x80] sm:$0xff] %v4081_v22   ;;  %v2561_v1 = vadd.f32 %v2560_v49, %v2462_v4  ;;  %v2562_v31 = vpop.f32.mrf.mxu0 }
 0x32b   :  { %v2714_v34 = vadd.f32 %v5402_v42, %v2561_v1 }
 0x32c   :  { %v2364_v14 = vpop.f32.mrf.mxu2 }
 0x32d   :  { %v2365_v62 = vadd.f32 %v2364_v14, %v2266_v30  ;;  %v2750_v12 = vmax.f32 %v2714_v34, 0.0 }
 0x32f   :  { %v2464_v40 = vadd.f32 %v2463_v19, %v2365_v62 }
 0x331   :  { %v2563_v45 = vadd.f32 %v2562_v31, %v2464_v40 }
 0x333   :  { %v2715_v35 = vadd.f32 %v5402_v42, %v2563_v45 }
 0x335   :  { %v2751_v56 = vmax.f32 %v2715_v35, 0.0 }
 0x337   :  { %v4086_v9 = vpack.c.bf16 %v2751_v56, %v2750_v12 }
 0x339   :  { %4104 = vst [vmem:[%s5763_s3 + $0x88] sm:$0xff] %v4086_v9  }

// kernel: net3_forward.14
= control target key start
LH: loop header
LB: loop body
LE: loop exit
PB: predicated region body
PF: predicated region fallthrough
CT: control target
= control target key end

     0   :  { %s334_s6 = smov 0   ;;  %s394_s0 = inlined_call_operand.vmem [shape: bf16[20,5,256], index: 0, kind: input, shape index: {}]   ;;  %s395_s1 = inlined_call_operand.vmem [shape: bf16[10,5,128], index: 1, kind: output, shape index: {}]  }
   0x1 LB: > { %s297_s7 = sadd.s32 4294967295, %s322_s6   ;;  %p301_p0 = scmp.ge.s32.totalorder %s322_s6, 1  ;;  %s322_s6 = sphi %s334_s6, %s11_s6  }
   0x2   : > { %p89_p1 = scmp.lt.s32.totalorder %s322_s6, 3 }
   0x4   : > { %p90_p2 = pnand %p301_p0, %p89_p1 }
   0x5   : > { %s110_s8 = smul.u32 (!%p90_p2), 10, %s297_s7 }
   0x6   : > { %93 = sbr.rel (%p90_p2) target bundleno = 36 (0x24), region = 24 }
   0x7   : > { %s117_s9 = smul.u32 (!%p90_p2), 5, %s297_s7  ;;  %p111_p3 = scmp.lt.s32.totalorder (!%p90_p2), %s110_s8, 19 }
   0x9   : > { %p118_p4 = scmp.lt.s32.totalorder (!%p90_p2), %s117_s9, 9 }
   0xb   : > { %s399_s8 = smov (!%p111_p3, %s110_s8), 19  ;;  %s401_s9 = smov (!%p118_p4, %s117_s9), 9  ;;  %vm223_vm0 = vcmask 1042432   ;;  %vm224_vm1 = vsmask.f32 2304 }
   0xc   : > { %s307_s10 = sshll.u32 %s399_s8, 3  ;;  %s304_s14 = sshll.u32 %s401_s9, 2  ;;  %vm367_vm2 = vmand %vm223_vm0, %vm224_vm1 }
   0xd   : > { %s347_s13 = scalar_lea.vmem %s394_s0, %s307_s10  ;;  %s361_s17 = scalar_lea.vmem %s395_s1, %s304_s14 }
   0xe   : > { %v123_v0 = vld [vmem:[%s347_s13] sm:$0x77]  ;;  %v124_v1 = vld [vmem:[%s347_s13 + $0x8] sm:$0x77]  ;;  %v125_v2 = vld [vmem:[%s347_s13 + $0x10] sm:$0x77] }
   0xf   : > { %v133_v3 = vunpack.c.l.bf16 %v123_v0  ;;  %v134_v4 = vunpack.c.l.bf16 %v124_v1  ;;  %v153_v5 = vrot.slane %v123_v0, 4  ;;  %v154_v6 = vrot.slane %v124_v1, 4  ;;  %v126_v7 = vld [vmem:[%s347_s13 + $0x18] sm:$0x77]  ;;  %v127_v12 = vld [vmem:[%s347_s13 + $0x20] sm:$0x77] }
  0x10   : > { %v135_v8 = vunpack.c.l.bf16 %v125_v2  ;;  %v136_v9 = vunpack.c.l.bf16 %v126_v7  ;;  %v155_v10 = vrot.slane %v125_v2, 4  ;;  %v156_v11 = vrot.slane %v126_v7, 4  ;;  %v128_v15 = vld [vmem:[%s347_s13 + $0x28] sm:$0x77]  ;;  %v129_v22 = vld [vmem:[%s347_s13 + $0x30] sm:$0x77] }
  0x11   : > { %v173_v13 = vunpack.c.l.bf16 %v153_v5  ;;  %v174_v14 = vunpack.c.l.bf16 %v154_v6  ;;  %v137_v16 = vunpack.c.l.bf16 %v127_v12  ;;  %v157_v17 = vrot.slane %v127_v12, 4  ;;  %v130_v23 = vld [vmem:[%s347_s13 + $0x38] sm:$0x77]  ;;  %v131_v32 = vld [vmem:[%s347_s13 + $0x40] sm:$0x77] }
  0x12   : > { %v175_v18 = vunpack.c.l.bf16 %v155_v10  ;;  %v176_v19 = vunpack.c.l.bf16 %v156_v11  ;;  %v138_v20 = vunpack.c.l.bf16 %v128_v15  ;;  %v158_v21 = vrot.slane %v128_v15, 4  ;;  %v132_v37 = vld [vmem:[%s347_s13 + $0x48] sm:$0x77]  ;;  %v226_v39 = vld [vmem:[%s361_s17] sm:$0x7] }
  0x13   : > { %v183_v24 = vmax.f32 %v133_v3, %v173_v13  ;;  %v184_v25 = vmax.f32 %v134_v4, %v174_v14  ;;  %v177_v26 = vunpack.c.l.bf16 %v157_v17  ;;  %v139_v27 = vunpack.c.l.bf16 %v129_v22  ;;  %v229_v44 = vld [vmem:[%s361_s17 + $0x4] sm:$0x7]  ;;  %v232_v53 = vld [vmem:[%s361_s17 + $0x8] sm:$0x7]  ;;  %v235_v63 = vld [vmem:[%s361_s17 + $0xc] sm:$0x7] }
  0x14   : > { %v185_v28 = vmax.f32 %v135_v8, %v175_v18  ;;  %v186_v29 = vmax.f32 %v136_v9, %v176_v19  ;;  %v178_v30 = vunpack.c.l.bf16 %v158_v21  ;;  %v140_v31 = vunpack.c.l.bf16 %v130_v23  ;;  %v238_v4 = vld [vmem:[%s361_s17 + $0x10] sm:$0x7] }
  0x15   : > { %v213_v33 = vmax.f32 %v183_v24, %v184_v25  ;;  %v187_v34 = vmax.f32 %v137_v16, %v177_v26  ;;  %v159_v35 = vrot.slane %v129_v22, 4  ;;  %v160_v36 = vrot.slane %v130_v23, 4 }
  0x16   : > { %v214_v40 = vmax.f32 %v185_v28, %v186_v29  ;;  %v188_v41 = vmax.f32 %v138_v20, %v178_v30  ;;  %v141_v42 = vunpack.c.l.bf16 %v131_v32  ;;  %v161_v47 = vrot.slane %v131_v32, 4 }
  0x17   : > { %v218_v43 = vpack.c.bf16 %v213_v33, %v213_v33  ;;  %v179_v45 = vunpack.c.l.bf16 %v159_v35  ;;  %v180_v46 = vunpack.c.l.bf16 %v160_v36  ;;  %v142_v50 = vunpack.c.l.bf16 %v132_v37 }
  0x18   : > { %v219_v48 = vpack.c.bf16 %v214_v40, %v214_v40  ;;  %v215_v49 = vmax.f32 %v187_v34, %v188_v41  ;;  %v162_v51 = vrot.slane %v132_v37, 4  ;;  %v181_v56 = vunpack.c.l.bf16 %v161_v47 }
  0x19   : > { %v227_v52 = vsel %vm367_vm2, %v218_v43, %v226_v39  ;;  %v189_v54 = vmax.f32 %v139_v27, %v179_v45  ;;  %v190_v55 = vmax.f32 %v140_v31, %v180_v46 }
  0x1a   : > { %228 = vst [vmem:[%s361_s17] sm:$0x7] %v227_v52  ;;  %v230_v57 = vsel %vm367_vm2, %v219_v48, %v229_v44  ;;  %v220_v58 = vpack.c.bf16 %v215_v49, %v215_v49  ;;  %v182_v59 = vunpack.c.l.bf16 %v162_v51  ;;  %v191_v61 = vmax.f32 %v141_v42, %v181_v56 }
  0x1b   : > { %231 = vst [vmem:[%s361_s17 + $0x4] sm:$0x7] %v230_v57  ;;  %v216_v60 = vmax.f32 %v189_v54, %v190_v55 }
  0x1c   : > { %v233_v62 = vsel %vm367_vm2, %v220_v58, %v232_v53  ;;  %v192_v0 = vmax.f32 %v142_v50, %v182_v59 }
  0x1d   : > { %234 = vst [vmem:[%s361_s17 + $0x8] sm:$0x7] %v233_v62  ;;  %v221_v1 = vpack.c.bf16 %v216_v60, %v216_v60 }
  0x1e   : > { %v217_v2 = vmax.f32 %v191_v61, %v192_v0 }
  0x1f   : > { %v236_v3 = vsel %vm367_vm2, %v221_v1, %v235_v63 }
  0x20   : > { %237 = vst [vmem:[%s361_s17 + $0xc] sm:$0x7] %v236_v3  ;;  %v222_v5 = vpack.c.bf16 %v217_v2, %v217_v2 }
  0x22   : > { %v239_v6 = vsel %vm367_vm2, %v222_v5, %v238_v4 }
  0x23   : > { %240 = vst [vmem:[%s361_s17 + $0x10] sm:$0x7] %v239_v6 }
  0x24 PF: > { %s11_s6 = sadd.s32 1, %s322_s6  }
  0x25   : > { %p8_p5 = scmp.ge.s32.totalorder %s11_s6, 4  }
  0x27   :  { %10 = sbr.rel (!%p8_p5) target bundleno = 1 (0x1), region = 54 }

// kernel: net3_forward.16
= control target key start
LH: loop header
LB: loop body
LE: loop exit
PB: predicated region body
PF: predicated region fallthrough
CT: control target
= control target key end

     0   :  { %s726_s1 = inlined_call_operand.vmem [shape: bf16[256,256], index: 1, kind: input, shape index: {}]   ;;  %s727_s0 = inlined_call_operand.vmem [shape: bf16[16,256], index: 0, kind: input, shape index: {}]   ;;  %s728_s2 = inlined_call_operand.vmem [shape: f32[1,256], index: 2, kind: input, shape index: {}]   ;;  %s729_s3 = inlined_call_operand.vmem [shape: bf16[16,256], index: 3, kind: output, shape index: {}]  }
   0x1   :  { %v389_v0 = vld [vmem:[%s726_s1 + $0x70] sm:$0xf]  ;;  %v476_v1 = vld [vmem:[%s726_s1 + $0x74] sm:$0xf0]  ;;  %v475_v5 = vld [vmem:[%s726_s1 + $0x74] sm:$0xf] }
   0x2   :  { %v453_v2 = vld [vmem:[%s726_s1 + $0xf0] sm:$0xf]  ;;  %v390_v3 = vor.u32 %v476_v1, %v389_v0  ;;  %v492_v4 = vld [vmem:[%s726_s1 + $0xf4] sm:$0xf0]  ;;  %v391_v6 = vld [vmem:[%s726_s1 + $0x78] sm:$0xf0] }
   0x3   :  { %v454_v7 = vor.u32 %v492_v4, %v453_v2  ;;  %v394_v8 = vor.u32 %v475_v5, %v391_v6  ;;  %v491_v9 = vld [vmem:[%s726_s1 + $0xf4] sm:$0xf]  ;;  %v455_v10 = vld [vmem:[%s726_s1 + $0xf8] sm:$0xf0]  ;;  %v381_v11 = vld [vmem:[%s726_s1 + $0x60] sm:$0xf] }
   0x4   :  { %230 = vmatpush.bf16.msra.mxu0 %v390_v3  ;;  %v458_v12 = vor.u32 %v491_v9, %v455_v10  ;;  %v474_v13 = vld [vmem:[%s726_s1 + $0x64] sm:$0xf0]  ;;  %v445_v14 = vld [vmem:[%s726_s1 + $0xe0] sm:$0xf]  ;;  %v473_v18 = vld [vmem:[%s726_s1 + $0x64] sm:$0xf] }
   0x5   :  { %v490_v15 = vld [vmem:[%s726_s1 + $0xe4] sm:$0xf0]  ;;  %244 = vmatpush.bf16.msra.mxu1 %v454_v7  ;;  %258 = vmatpush.bf16.msra.mxu2 %v394_v8  ;;  %v382_v16 = vor.u32 %v474_v13, %v381_v11  ;;  %v383_v19 = vld [vmem:[%s726_s1 + $0x68] sm:$0xf0]  ;;  %v489_v20 = vld [vmem:[%s726_s1 + $0xe4] sm:$0xf] }
   0x6   :  { %v446_v17 = vor.u32 %v490_v15, %v445_v14  ;;  %272 = vmatpush.bf16.msra.mxu3 %v458_v12  ;;  %v386_v21 = vor.u32 %v473_v18, %v383_v19  ;;  %v447_v22 = vld [vmem:[%s726_s1 + $0xe8] sm:$0xf0]  ;;  %v373_v23 = vld [vmem:[%s726_s1 + $0x50] sm:$0xf]  ;;  %v472_v24 = vld [vmem:[%s726_s1 + $0x54] sm:$0xf0] }
   0x7   :  { %v450_v25 = vor.u32 %v489_v20, %v447_v22  ;;  %v437_v26 = vld [vmem:[%s726_s1 + $0xd0] sm:$0xf]  ;;  %v488_v27 = vld [vmem:[%s726_s1 + $0xd4] sm:$0xf0]  ;;  %v471_v28 = vld [vmem:[%s726_s1 + $0x54] sm:$0xf]  ;;  %v374_v29 = vor.u32 %v472_v24, %v373_v23 }
   0x8   :  { %231 = vmatpush.bf16.msra.mxu0 %v382_v16  ;;  %v375_v30 = vld [vmem:[%s726_s1 + $0x58] sm:$0xf0]  ;;  %v487_v31 = vld [vmem:[%s726_s1 + $0xd4] sm:$0xf]  ;;  %v438_v33 = vor.u32 %v488_v27, %v437_v26  ;;  %v365_v35 = vld [vmem:[%s726_s1 + $0x40] sm:$0xf] }
   0x9   :  { %v439_v32 = vld [vmem:[%s726_s1 + $0xd8] sm:$0xf0]  ;;  %245 = vmatpush.bf16.msra.mxu1 %v446_v17  ;;  %259 = vmatpush.bf16.msra.mxu2 %v386_v21  ;;  %v378_v34 = vor.u32 %v471_v28, %v375_v30  ;;  %v470_v36 = vld [vmem:[%s726_s1 + $0x44] sm:$0xf0]  ;;  %v429_v37 = vld [vmem:[%s726_s1 + $0xc0] sm:$0xf] }
   0xa   :  { %273 = vmatpush.bf16.msra.mxu3 %v450_v25  ;;  %v442_v38 = vor.u32 %v487_v31, %v439_v32  ;;  %v486_v39 = vld [vmem:[%s726_s1 + $0xc4] sm:$0xf0]  ;;  %v469_v40 = vld [vmem:[%s726_s1 + $0x44] sm:$0xf]  ;;  %v367_v41 = vld [vmem:[%s726_s1 + $0x48] sm:$0xf0]  ;;  %v366_v44 = vor.u32 %v470_v36, %v365_v35 }
   0xb   :  { %v485_v42 = vld [vmem:[%s726_s1 + $0xc4] sm:$0xf]  ;;  %v431_v43 = vld [vmem:[%s726_s1 + $0xc8] sm:$0xf0]  ;;  %v430_v45 = vor.u32 %v486_v39, %v429_v37  ;;  %v370_v46 = vor.u32 %v469_v40, %v367_v41  ;;  %v357_v47 = vld [vmem:[%s726_s1 + $0x30] sm:$0xf] }
   0xc   :  { %232 = vmatpush.bf16.msra.mxu0 %v374_v29  ;;  %v468_v48 = vld [vmem:[%s726_s1 + $0x34] sm:$0xf0]  ;;  %v421_v49 = vld [vmem:[%s726_s1 + $0xb0] sm:$0xf]  ;;  %v434_v50 = vor.u32 %v485_v42, %v431_v43  ;;  %v467_v52 = vld [vmem:[%s726_s1 + $0x34] sm:$0xf] }
   0xd   :  { %246 = vmatpush.bf16.msra.mxu1 %v438_v33  ;;  %260 = vmatpush.bf16.msra.mxu2 %v378_v34  ;;  %v484_v51 = vld [vmem:[%s726_s1 + $0xb4] sm:$0xf0]  ;;  %v359_v53 = vld [vmem:[%s726_s1 + $0x38] sm:$0xf0]  ;;  %v483_v54 = vld [vmem:[%s726_s1 + $0xb4] sm:$0xf]  ;;  %v358_v56 = vor.u32 %v468_v48, %v357_v47 }
   0xe   :  { %274 = vmatpush.bf16.msra.mxu3 %v442_v38  ;;  %v423_v55 = vld [vmem:[%s726_s1 + $0xb8] sm:$0xf0]  ;;  %v422_v57 = vor.u32 %v484_v51, %v421_v49  ;;  %v362_v58 = vor.u32 %v467_v52, %v359_v53  ;;  %v349_v59 = vld [vmem:[%s726_s1 + $0x20] sm:$0xf]  ;;  %v466_v60 = vld [vmem:[%s726_s1 + $0x24] sm:$0xf0] }
   0xf   :  { %v413_v61 = vld [vmem:[%s726_s1 + $0xa0] sm:$0xf]  ;;  %v426_v62 = vor.u32 %v483_v54, %v423_v55  ;;  %v482_v63 = vld [vmem:[%s726_s1 + $0xa4] sm:$0xf0]  ;;  %v465_v0 = vld [vmem:[%s726_s1 + $0x24] sm:$0xf]  ;;  %v350_v4 = vor.u32 %v466_v60, %v349_v59 }
  0x10   :  { %233 = vmatpush.bf16.msra.mxu0 %v366_v44  ;;  %v351_v1 = vld [vmem:[%s726_s1 + $0x28] sm:$0xf0]  ;;  %v481_v2 = vld [vmem:[%s726_s1 + $0xa4] sm:$0xf]  ;;  %v414_v5 = vor.u32 %v482_v63, %v413_v61  ;;  %v341_v7 = vld [vmem:[%s726_s1 + $0x10] sm:$0xf] }
  0x11   :  { %247 = vmatpush.bf16.msra.mxu1 %v430_v45  ;;  %261 = vmatpush.bf16.msra.mxu2 %v370_v46  ;;  %v415_v3 = vld [vmem:[%s726_s1 + $0xa8] sm:$0xf0]  ;;  %v354_v6 = vor.u32 %v465_v0, %v351_v1  ;;  %v464_v8 = vld [vmem:[%s726_s1 + $0x14] sm:$0xf0]  ;;  %v405_v9 = vld [vmem:[%s726_s1 + $0x90] sm:$0xf] }
  0x12   :  { %275 = vmatpush.bf16.msra.mxu3 %v434_v50  ;;  %v418_v10 = vor.u32 %v481_v2, %v415_v3  ;;  %v480_v11 = vld [vmem:[%s726_s1 + $0x94] sm:$0xf0]  ;;  %v463_v12 = vld [vmem:[%s726_s1 + $0x14] sm:$0xf]  ;;  %v343_v13 = vld [vmem:[%s726_s1 + $0x18] sm:$0xf0]  ;;  %v342_v16 = vor.u32 %v464_v8, %v341_v7 }
  0x13   :  { %v479_v14 = vld [vmem:[%s726_s1 + $0x94] sm:$0xf]  ;;  %v407_v15 = vld [vmem:[%s726_s1 + $0x98] sm:$0xf0]  ;;  %v406_v17 = vor.u32 %v480_v11, %v405_v9  ;;  %v346_v18 = vor.u32 %v463_v12, %v343_v13  ;;  %v333_v19 = vld [vmem:[%s726_s1] sm:$0xf] }
  0x14   :  { %234 = vmatpush.bf16.msra.mxu0 %v358_v56  ;;  %v462_v20 = vld [vmem:[%s726_s1 + $0x4] sm:$0xf0]  ;;  %v397_v21 = vld [vmem:[%s726_s1 + $0x80] sm:$0xf]  ;;  %v410_v22 = vor.u32 %v479_v14, %v407_v15  ;;  %v461_v24 = vld [vmem:[%s726_s1 + $0x4] sm:$0xf] }
  0x15   :  { %248 = vmatpush.bf16.msra.mxu1 %v422_v57  ;;  %262 = vmatpush.bf16.msra.mxu2 %v362_v58  ;;  %v478_v23 = vld [vmem:[%s726_s1 + $0x84] sm:$0xf0]  ;;  %v335_v25 = vld [vmem:[%s726_s1 + $0x8] sm:$0xf0]  ;;  %v477_v26 = vld [vmem:[%s726_s1 + $0x84] sm:$0xf]  ;;  %v334_v28 = vor.u32 %v462_v20, %v333_v19 }
  0x16   :  { %276 = vmatpush.bf16.msra.mxu3 %v426_v62  ;;  %v399_v27 = vld [vmem:[%s726_s1 + $0x88] sm:$0xf0]  ;;  %v325_v29 = vld [vmem:[%s727_s0] sm:$0xf]  ;;  %v460_v30 = vld [vmem:[%s727_s0 + $0x4] sm:$0xf0]  ;;  %v398_v31 = vor.u32 %v478_v23, %v397_v21  ;;  %v338_v32 = vor.u32 %v461_v24, %v335_v25 }
  0x17   :  { %v459_v33 = vld [vmem:[%s727_s0 + $0x4] sm:$0xf]  ;;  %v327_v34 = vld [vmem:[%s727_s0 + $0x8] sm:$0xf0]  ;;  %v402_v35 = vor.u32 %v477_v26, %v399_v27  ;;  %v326_v36 = vor.u32 %v460_v30, %v325_v29  ;;  %v301_v39 = vld [vmem:[%s728_s2] sm:$0x3] }
  0x18   :  { %235 = vmatpush.bf16.msra.mxu0 %v350_v4  ;;  %v330_v37 = vor.u32 %v459_v33, %v327_v34  ;;  %v303_v42 = vperm.slane %v301_v39, 0  ;;  %v304_v45 = vperm.slane %v301_v39, 1 }
  0x19   :  { %249 = vmatpush.bf16.msra.mxu1 %v414_v5  ;;  %263 = vmatpush.bf16.msra.mxu2 %v354_v6 }
  0x1a   :  { %277 = vmatpush.bf16.msra.mxu3 %v418_v10 }
  0x1c   :  { %236 = vmatpush.bf16.msra.mxu0 %v342_v16 }
  0x1d   :  { %250 = vmatpush.bf16.msra.mxu1 %v406_v17  ;;  %264 = vmatpush.bf16.msra.mxu2 %v346_v18 }
  0x1e   :  { %278 = vmatpush.bf16.msra.mxu3 %v410_v22 }
  0x20   :  { %237 = vmatpush.bf16.msra.mxu0 %v334_v28 }
  0x21   :  { %251 = vmatpush.bf16.msra.mxu1 %v398_v31  ;;  %265 = vmatpush.bf16.msra.mxu2 %v338_v32 }
  0x22   :  { %279 = vmatpush.bf16.msra.mxu3 %v402_v35 }
  0x23   :  { %238 = vmatmul.bf16.vlgmr.msra.gmra.mxu0 %v326_v36 }
  0x24   :  { %252 = vmatmul.bf16.vlgmr.msra.gmra.mxu1 %v330_v37  ;;  %266 = vmatmul.bf16.vlgmr.msra.gmra.mxu2 %v326_v36 }
  0x25   :  { %280 = vmatmul.bf16.vlgmr.msra.gmra.mxu3 %v330_v37 }
  0xa0   :  { %v239_v38 = vpop.f32.mrf.mxu0 }
  0xa1   :  { %v253_v40 = vpop.f32.mrf.mxu1 }
  0xa2   :  { %v254_v41 = vadd.f32 %v253_v40, %v239_v38 }
  0xa4   :  { %v307_v43 = vadd.f32 %v303_v42, %v254_v41 }
  0xa6   :  { %v311_v50 = vmax.f32 %v307_v43, 0.0 }
  0xa7   :  { %v267_v44 = vpop.f32.mrf.mxu2 }
  0xa8   :  { %v281_v46 = vpop.f32.mrf.mxu3  ;;  %v241_v48 = vpop.f32.mrf.mxu0 }
  0xa9   :  { %v282_v47 = vadd.f32 %v281_v46, %v267_v44  ;;  %v255_v49 = vpop.f32.mrf.mxu1 }
  0xaa   :  { %v256_v53 = vadd.f32 %v255_v49, %v241_v48 }
  0xab   :  { %v308_v51 = vadd.f32 %v304_v45, %v282_v47 }
  0xac   :  { %v309_v57 = vadd.f32 %v303_v42, %v256_v53 }
  0xad   :  { %v312_v52 = vmax.f32 %v308_v51, 0.0 }
  0xae   :  { %v313_v60 = vmax.f32 %v309_v57, 0.0 }
  0xaf   :  { %v315_v54 = vpack.c.bf16 %v312_v52, %v311_v50  ;;  %v269_v55 = vpop.f32.mrf.mxu2 }
  0xb0   :  { %v283_v56 = vpop.f32.mrf.mxu3 }
  0xb1   :  { %317 = vst [vmem:[%s729_s3] sm:$0xff] %v315_v54  ;;  %v284_v58 = vadd.f32 %v283_v56, %v269_v55 }
  0xb3   :  { %v310_v59 = vadd.f32 %v304_v45, %v284_v58 }
  0xb5   :  { %v314_v61 = vmax.f32 %v310_v59, 0.0 }
  0xb7   :  { %v316_v62 = vpack.c.bf16 %v314_v61, %v313_v60 }
  0xb9   :  { %318 = vst [vmem:[%s729_s3 + $0x8] sm:$0xff] %v316_v62 }

// kernel: net3_forward.15
= control target key start
LH: loop header
LB: loop body
LE: loop exit
PB: predicated region body
PF: predicated region fallthrough
CT: control target
= control target key end

     0   :  { %s1593_s12 = smov 0   ;;  %s1595_s13 = smov 0   ;;  %s1863_s0 = inlined_call_operand.vmem [shape: bf16[16,3200], index: 0, kind: input, shape index: {}]   ;;  %s1864_s1 = inlined_call_operand.vmem [shape: bf16[3200,256], index: 1, kind: input, shape index: {}]   ;;  %s1865_s2 = inlined_call_operand.vmem [shape: f32[1,256], index: 2, kind: input, shape index: {}]   ;;  %s1866_s3 = inlined_call_operand.vmem [shape: bf16[16,256], index: 3, kind: output, shape index: {}]  }
   0x1   :  { %s1597_s14 = smov 0   ;;  %s1599_s15 = smov 0  }
   0x2   :  { %s1601_s16 = smov 0  }
   0x3 LB: > { %s22_s17 = sadd.s32 1, %s1566_s15  ;;  %p41_p1 = scmp.ne.s32.totalorder %s1558_s13, %s1554_s12  ;;  %s1570_s16 = sphi %s1601_s16, %s13_s16   ;;  %s1566_s15 = sphi %s1599_s15, %s1870_s15   ;;  %s1562_s14 = sphi %s1597_s14, %s1869_s14   ;;  %s1558_s13 = sphi %s1595_s13, %s1868_s13   ;;  %s1554_s12 = sphi %s1593_s12, %s1867_s12  }
   0x4   : > { %p23_p0 = scmp.ge.s32.totalorder %s22_s17, 5  ;;  %p42_p2 = scmp.eq.s32.totalorder %s1570_s16, 0 }
   0x5   : > { %s34_s19 = sadd.s32 1, %s1558_s13  ;;  %p1047_p5 = scmp.ge.s32.totalorder %s1570_s16, 5 }
   0x6   : > { %s1872_s17 = smov (%p23_p0, %s22_s17), 0  ;;  %p43_p3 = por %p42_p2, %p41_p1 }
   0x7   : > { %s30_s18 = ssub.s32 %s1566_s15, %s1872_s17  ;;  %143 = sbr.rel (%p1047_p5) target bundleno = 23 (0x17), region = 20 }
   0x8   : > { %p32_p4 = scmp.eq.s32.totalorder %s30_s18, 0 }
   0xa   : > { %s1628_s20 = scalar_select %p32_p4, %s1558_s13, %s34_s19  }
   0xc   : > { %146 = sbr.rel (!%p43_p3) target bundleno = 23 (0x17), region = 24  ;;  %s148_s21 = sand.u32 (%p43_p3), 1, %s1558_s13  }
   0xd   : > { %s1402_s22 = smul.u32 (%p43_p3), 20, %s1566_s15 }
   0xe   : > { %s1489_s23 = smul.u32 (%p43_p3), 40, %s148_s21 }
   0xf   : > { %s156_s26 = scalar_lea.vmem (%p43_p3), %s1863_s0, %s1402_s22 }
  0x10   : > { %v171_v0 = vld [vmem:[%s156_s26] sm:$0xff] (%p43_p3)  ;;  %v173_v1 = vld [vmem:[%s156_s26 + $0x8] sm:$0xff] (%p43_p3)  ;;  %s150_s27 = scalar_lea.vmem (%p43_p3), [#allocation3], %s1489_s23  ;;  %v1049_v4 = vld [vmem:[%s156_s26 + $0x10] sm:$0xf] (%p43_p3) }
  0x11   : > { %v175_v2 = vld [vmem:[%s156_s26 + $0x64] sm:$0xff]  ;;  %172 = vst [vmem:[%s150_s27] sm:$0xff] %v171_v0  ;;  %v177_v3 = vld [vmem:[%s156_s26 + $0x6c] sm:$0xff]  ;;  %v1051_v5 = vld [vmem:[%s156_s26 + $0x74] sm:$0xf] }
  0x12   : > { %174 = vst [vmem:[%s150_s27 + $0x8] sm:$0xff] %v173_v1 }
  0x13   : > { %176 = vst [vmem:[%s150_s27 + $0x14] sm:$0xff] %v175_v2 }
  0x14   : > { %178 = vst [vmem:[%s150_s27 + $0x1c] sm:$0xff] %v177_v3 }
  0x15   : > { %1050 = vst [vmem:[%s150_s27 + $0x10] sm:$0xf] %v1049_v4 }
  0x16   : > { %1052 = vst [vmem:[%s150_s27 + $0x24] sm:$0xf] %v1051_v5 }
  0x17 PF: > { %p1053_p6 = scmp.ge.s32.totalorder %s1570_s16, 1  ;;  %p205_p7 = scmp.lt.s32.totalorder %s1570_s16, 6 }
  0x19   : > { %p206_p8 = pnand %p1053_p6, %p205_p7 }
  0x1a   : > { %s212_s28 = sand.u32 (!%p206_p8), 1, %s1554_s12   ;;  %s244_s29 = smul.u32 (!%p206_p8), 80, %s1562_s14 }
  0x1b   : > { %209 = sbr.rel (%p206_p8) target bundleno = 295 (0x127), region = 54  ;;  %p1056_p10 = scmp.ne.s32.totalorder (!%p206_p8), %s1562_s14, 0 }
  0x1c   : > { %s1490_s30 = smul.u32 (!%p206_p8), 40, %s212_s28  ;;  %p245_p9 = scmp.lt.s32.totalorder (!%p206_p8), %s244_s29, 399 }
  0x1e   : > { %s1645_s8 = scalar_lea.vmem (!%p206_p8), [#allocation3], %s1490_s30 }
  0x20   : > { %s1874_s29 = smov (!%p245_p9, %s244_s29), 399  ;;  %261 = sbr.rel (%p1056_p10) target bundleno = 42 (0x2a), region = 62 }
  0x21   : > { %s1403_s4 = sshll.u32 %s1874_s29, 3 }
  0x22   : > { %s1643_s7 = scalar_lea.vmem %s1864_s1, %s1403_s4 }
  0x25   : > { %v1572_v6 = vmov 0.0  }
  0x26   : > { %262 = vst [vmem:[#allocation2 + $0x10] sm:$0xff] %v1572_v6 }
  0x27   : > { %263 = vst [vmem:[#allocation2] sm:$0xff] %v1572_v6 }
  0x28   : > { %264 = vst [vmem:[#allocation2 + $0x18] sm:$0xff] %v1572_v6 }
  0x29   : > { %265 = vst [vmem:[#allocation2 + $0x8] sm:$0xff] %v1572_v6 }
  0x2a PF: > { %v1135_v7 = vld [vmem:[%s1643_s7 + $0x70] sm:$0xf]  ;;  %v1424_v8 = vld [vmem:[%s1643_s7 + $0x74] sm:$0xf0]  ;;  %v1127_v18 = vld [vmem:[%s1643_s7 + $0x60] sm:$0xf] }
  0x2b   : > { %v1199_v9 = vld [vmem:[%s1643_s7 + $0xf0] sm:$0xf]  ;;  %v1136_v10 = vor.u32 %v1424_v8, %v1135_v7  ;;  %v1440_v11 = vld [vmem:[%s1643_s7 + $0xf4] sm:$0xf0]  ;;  %v1422_v20 = vld [vmem:[%s1643_s7 + $0x64] sm:$0xf0] }
  0x2c   : > { %v1263_v12 = vld [vmem:[%s1643_s7 + $0x170] sm:$0xf]  ;;  %v1456_v13 = vld [vmem:[%s1643_s7 + $0x174] sm:$0xf0]  ;;  %v1200_v14 = vor.u32 %v1440_v11, %v1199_v9  ;;  %v1191_v21 = vld [vmem:[%s1643_s7 + $0xe0] sm:$0xf]  ;;  %v1128_v23 = vor.u32 %v1422_v20, %v1127_v18 }
  0x2d   : > { %v1264_v15 = vor.u32 %v1456_v13, %v1263_v12  ;;  %v1327_v16 = vld [vmem:[%s1643_s7 + $0x1f0] sm:$0xf]  ;;  %v1472_v17 = vld [vmem:[%s1643_s7 + $0x1f4] sm:$0xf0]  ;;  %782 = vmatpush.bf16.msra.mxu0 %v1136_v10  ;;  %v1438_v22 = vld [vmem:[%s1643_s7 + $0xe4] sm:$0xf0] }
  0x2e   : > { %v1328_v19 = vor.u32 %v1472_v17, %v1327_v16  ;;  %796 = vmatpush.bf16.msra.mxu1 %v1200_v14  ;;  %v1192_v24 = vor.u32 %v1438_v22, %v1191_v21  ;;  %v1255_v25 = vld [vmem:[%s1643_s7 + $0x160] sm:$0xf]  ;;  %v1454_v26 = vld [vmem:[%s1643_s7 + $0x164] sm:$0xf0]  ;;  %v1119_v30 = vld [vmem:[%s1643_s7 + $0x50] sm:$0xf] }
  0x2f   : > { %810 = vmatpush.bf16.msra.mxu2 %v1264_v15  ;;  %v1319_v27 = vld [vmem:[%s1643_s7 + $0x1e0] sm:$0xf]  ;;  %v1256_v28 = vor.u32 %v1454_v26, %v1255_v25  ;;  %v1470_v29 = vld [vmem:[%s1643_s7 + $0x1e4] sm:$0xf0]  ;;  %v1420_v31 = vld [vmem:[%s1643_s7 + $0x54] sm:$0xf0] }
  0x30   : > { %824 = vmatpush.bf16.msra.mxu3 %v1328_v19  ;;  %v1320_v32 = vor.u32 %v1470_v29, %v1319_v27  ;;  %v1183_v33 = vld [vmem:[%s1643_s7 + $0xd0] sm:$0xf]  ;;  %v1436_v34 = vld [vmem:[%s1643_s7 + $0xd4] sm:$0xf0]  ;;  %v1120_v36 = vor.u32 %v1420_v31, %v1119_v30  ;;  %v1111_v42 = vld [vmem:[%s1643_s7 + $0x40] sm:$0xf] }
  0x31   : > { %v1247_v35 = vld [vmem:[%s1643_s7 + $0x150] sm:$0xf]  ;;  %783 = vmatpush.bf16.msra.mxu0 %v1128_v23  ;;  %v1452_v37 = vld [vmem:[%s1643_s7 + $0x154] sm:$0xf0]  ;;  %v1184_v40 = vor.u32 %v1436_v34, %v1183_v33  ;;  %v1418_v43 = vld [vmem:[%s1643_s7 + $0x44] sm:$0xf0] }
  0x32   : > { %v1311_v38 = vld [vmem:[%s1643_s7 + $0x1d0] sm:$0xf]  ;;  %v1468_v39 = vld [vmem:[%s1643_s7 + $0x1d4] sm:$0xf0]  ;;  %797 = vmatpush.bf16.msra.mxu1 %v1192_v24  ;;  %v1248_v41 = vor.u32 %v1452_v37, %v1247_v35  ;;  %v1175_v44 = vld [vmem:[%s1643_s7 + $0xc0] sm:$0xf]  ;;  %v1112_v51 = vor.u32 %v1418_v43, %v1111_v42 }
  0x33   : > { %811 = vmatpush.bf16.msra.mxu2 %v1256_v28  ;;  %v1312_v45 = vor.u32 %v1468_v39, %v1311_v38  ;;  %v1434_v46 = vld [vmem:[%s1643_s7 + $0xc4] sm:$0xf0]  ;;  %v1239_v47 = vld [vmem:[%s1643_s7 + $0x140] sm:$0xf]  ;;  %v1103_v54 = vld [vmem:[%s1643_s7 + $0x30] sm:$0xf] }
  0x34   : > { %825 = vmatpush.bf16.msra.mxu3 %v1320_v32  ;;  %v1450_v48 = vld [vmem:[%s1643_s7 + $0x144] sm:$0xf0]  ;;  %v1303_v49 = vld [vmem:[%s1643_s7 + $0x1c0] sm:$0xf]  ;;  %v1176_v52 = vor.u32 %v1434_v46, %v1175_v44  ;;  %v1416_v55 = vld [vmem:[%s1643_s7 + $0x34] sm:$0xf0] }
  0x35   : > { %v1466_v50 = vld [vmem:[%s1643_s7 + $0x1c4] sm:$0xf0]  ;;  %784 = vmatpush.bf16.msra.mxu0 %v1120_v36  ;;  %v1240_v53 = vor.u32 %v1450_v48, %v1239_v47  ;;  %v1167_v56 = vld [vmem:[%s1643_s7 + $0xb0] sm:$0xf]  ;;  %v1432_v58 = vld [vmem:[%s1643_s7 + $0xb4] sm:$0xf0]  ;;  %v1104_v63 = vor.u32 %v1416_v55, %v1103_v54 }
  0x36   : > { %798 = vmatpush.bf16.msra.mxu1 %v1184_v40  ;;  %v1304_v57 = vor.u32 %v1466_v50, %v1303_v49  ;;  %v1231_v59 = vld [vmem:[%s1643_s7 + $0x130] sm:$0xf]  ;;  %v1448_v60 = vld [vmem:[%s1643_s7 + $0x134] sm:$0xf0]  ;;  %v1168_v0 = vor.u32 %v1432_v58, %v1167_v56  ;;  %v1095_v2 = vld [vmem:[%s1643_s7 + $0x20] sm:$0xf] }
  0x37   : > { %812 = vmatpush.bf16.msra.mxu2 %v1248_v41  ;;  %v1295_v61 = vld [vmem:[%s1643_s7 + $0x1b0] sm:$0xf]  ;;  %v1464_v62 = vld [vmem:[%s1643_s7 + $0x1b4] sm:$0xf0]  ;;  %v1232_v1 = vor.u32 %v1448_v60, %v1231_v59  ;;  %v1414_v3 = vld [vmem:[%s1643_s7 + $0x24] sm:$0xf0] }
  0x38   : > { %826 = vmatpush.bf16.msra.mxu3 %v1312_v45  ;;  %v1159_v4 = vld [vmem:[%s1643_s7 + $0xa0] sm:$0xf]  ;;  %v1296_v5 = vor.u32 %v1464_v62, %v1295_v61  ;;  %v1430_v6 = vld [vmem:[%s1643_s7 + $0xa4] sm:$0xf0]  ;;  %v1096_v11 = vor.u32 %v1414_v3, %v1095_v2  ;;  %v1087_v14 = vld [vmem:[%s1643_s7 + $0x10] sm:$0xf] }
  0x39   : > { %785 = vmatpush.bf16.msra.mxu0 %v1112_v51  ;;  %v1223_v7 = vld [vmem:[%s1643_s7 + $0x120] sm:$0xf]  ;;  %v1446_v8 = vld [vmem:[%s1643_s7 + $0x124] sm:$0xf0]  ;;  %v1160_v12 = vor.u32 %v1430_v6, %v1159_v4  ;;  %v1412_v15 = vld [vmem:[%s1643_s7 + $0x14] sm:$0xf0] }
  0x3a   : > { %799 = vmatpush.bf16.msra.mxu1 %v1176_v52  ;;  %v1287_v9 = vld [vmem:[%s1643_s7 + $0x1a0] sm:$0xf]  ;;  %v1462_v10 = vld [vmem:[%s1643_s7 + $0x1a4] sm:$0xf0]  ;;  %v1224_v13 = vor.u32 %v1446_v8, %v1223_v7  ;;  %v1151_v16 = vld [vmem:[%s1643_s7 + $0x90] sm:$0xf]  ;;  %v1088_v23 = vor.u32 %v1412_v15, %v1087_v14 }
  0x3b   : > { %813 = vmatpush.bf16.msra.mxu2 %v1240_v53  ;;  %v1288_v17 = vor.u32 %v1462_v10, %v1287_v9  ;;  %v1428_v18 = vld [vmem:[%s1643_s7 + $0x94] sm:$0xf0]  ;;  %v1215_v19 = vld [vmem:[%s1643_s7 + $0x110] sm:$0xf]  ;;  %v1079_v24 = vld [vmem:[%s1643_s7] sm:$0xf] }
  0x3c   : > { %827 = vmatpush.bf16.msra.mxu3 %v1304_v57  ;;  %v1444_v20 = vld [vmem:[%s1643_s7 + $0x114] sm:$0xf0]  ;;  %v1279_v21 = vld [vmem:[%s1643_s7 + $0x190] sm:$0xf]  ;;  %v1410_v25 = vld [vmem:[%s1643_s7 + $0x4] sm:$0xf0]  ;;  %v1152_v26 = vor.u32 %v1428_v18, %v1151_v16 }
  0x3d   : > { %786 = vmatpush.bf16.msra.mxu0 %v1104_v63  ;;  %v1460_v22 = vld [vmem:[%s1643_s7 + $0x194] sm:$0xf0]  ;;  %v1216_v27 = vor.u32 %v1444_v20, %v1215_v19  ;;  %v1143_v28 = vld [vmem:[%s1643_s7 + $0x80] sm:$0xf]  ;;  %v1426_v29 = vld [vmem:[%s1643_s7 + $0x84] sm:$0xf0]  ;;  %v1080_v38 = vor.u32 %v1410_v25, %v1079_v24 }
  0x3e   : > { %800 = vmatpush.bf16.msra.mxu1 %v1168_v0  ;;  %v1207_v30 = vld [vmem:[%s1643_s7 + $0x100] sm:$0xf]  ;;  %v1280_v31 = vor.u32 %v1460_v22, %v1279_v21  ;;  %v1442_v32 = vld [vmem:[%s1643_s7 + $0x104] sm:$0xf0]  ;;  %v1391_v33 = vld [vmem:[%s1643_s7 + $0x270] sm:$0xf]  ;;  %v1144_v42 = vor.u32 %v1426_v29, %v1143_v28 }
  0x3f   : > { %814 = vmatpush.bf16.msra.mxu2 %v1232_v1  ;;  %v1488_v34 = vld [vmem:[%s1643_s7 + $0x274] sm:$0xf0]  ;;  %v1423_v35 = vld [vmem:[%s1643_s7 + $0x74] sm:$0xf]  ;;  %v1137_v36 = vld [vmem:[%s1643_s7 + $0x78] sm:$0xf0]  ;;  %v1208_v43 = vor.u32 %v1442_v32, %v1207_v30 }
  0x40   : > { %828 = vmatpush.bf16.msra.mxu3 %v1296_v5  ;;  %v1439_v37 = vld [vmem:[%s1643_s7 + $0xf4] sm:$0xf]  ;;  %v1201_v39 = vld [vmem:[%s1643_s7 + $0xf8] sm:$0xf0]  ;;  %v1271_v40 = vld [vmem:[%s1643_s7 + $0x180] sm:$0xf]  ;;  %v1392_v46 = vor.u32 %v1488_v34, %v1391_v33  ;;  %v1140_v47 = vor.u32 %v1423_v35, %v1137_v36 }
  0x41   : > { %787 = vmatpush.bf16.msra.mxu0 %v1096_v11  ;;  %v1458_v41 = vld [vmem:[%s1643_s7 + $0x184] sm:$0xf0]  ;;  %v1455_v44 = vld [vmem:[%s1643_s7 + $0x174] sm:$0xf]  ;;  %v1265_v45 = vld [vmem:[%s1643_s7 + $0x178] sm:$0xf0]  ;;  %v1204_v50 = vor.u32 %v1439_v37, %v1201_v39 }
  0x42   : > { %801 = vmatpush.bf16.msra.mxu1 %v1160_v12  ;;  %v1383_v48 = vld [vmem:[%s1643_s7 + $0x260] sm:$0xf]  ;;  %v1486_v49 = vld [vmem:[%s1643_s7 + $0x264] sm:$0xf0]  ;;  %v1272_v51 = vor.u32 %v1458_v41, %v1271_v40  ;;  %v1421_v52 = vld [vmem:[%s1643_s7 + $0x64] sm:$0xf]  ;;  %v1268_v55 = vor.u32 %v1455_v44, %v1265_v45 }
  0x43   : > { %815 = vmatpush.bf16.msra.mxu2 %v1224_v13  ;;  %v1129_v53 = vld [vmem:[%s1643_s7 + $0x68] sm:$0xf0]  ;;  %v1437_v54 = vld [vmem:[%s1643_s7 + $0xe4] sm:$0xf]  ;;  %v1059_v57 = vld [vmem:[%s1645_s8] sm:$0xf]  ;;  %v1384_v63 = vor.u32 %v1486_v49, %v1383_v48 }
  0x44   : > { %829 = vmatpush.bf16.msra.mxu3 %v1288_v17  ;;  %v1193_v56 = vld [vmem:[%s1643_s7 + $0xe8] sm:$0xf0]  ;;  %v1406_v58 = vld [vmem:[%s1645_s8 + $0x10] sm:$0xf0]  ;;  %v1453_v59 = vld [vmem:[%s1643_s7 + $0x164] sm:$0xf]  ;;  %v1132_v0 = vor.u32 %v1421_v52, %v1129_v53 }
  0x45   : > { %788 = vmatpush.bf16.msra.mxu0 %v1088_v23  ;;  %v1257_v60 = vld [vmem:[%s1643_s7 + $0x168] sm:$0xf0]  ;;  %v1730_v61 = vor.u32 %v1406_v58, %v1059_v57  ;;  %v1067_v62 = vld [vmem:[%s1645_s8 + $0x8] sm:$0xf]  ;;  %v1484_v2 = vld [vmem:[%s1643_s7 + $0x254] sm:$0xf0]  ;;  %v1196_v4 = vor.u32 %v1437_v54, %v1193_v56 }
  0x46   : > { %802 = vmatpush.bf16.msra.mxu1 %v1152_v26  ;;  %v1375_v1 = vld [vmem:[%s1643_s7 + $0x250] sm:$0xf]  ;;  %v1407_v3 = vld [vmem:[%s1645_s8 + $0x18] sm:$0xf0]  ;;  %v1419_v5 = vld [vmem:[%s1643_s7 + $0x54] sm:$0xf]  ;;  %v1260_v9 = vor.u32 %v1453_v59, %v1257_v60 }
  0x47   : > { %816 = vmatpush.bf16.msra.mxu2 %v1216_v27  ;;  %v1121_v6 = vld [vmem:[%s1643_s7 + $0x58] sm:$0xf0]  ;;  %v1435_v7 = vld [vmem:[%s1643_s7 + $0xd4] sm:$0xf]  ;;  %v1739_v8 = vor.u32 %v1407_v3, %v1067_v62  ;;  %v1069_v12 = vld [vmem:[%s1645_s8 + $0x1c] sm:$0xf0]  ;;  %v1376_v17 = vor.u32 %v1484_v2, %v1375_v1 }
  0x48   : > { %830 = vmatpush.bf16.msra.mxu3 %v1280_v31  ;;  %v1185_v10 = vld [vmem:[%s1643_s7 + $0xd8] sm:$0xf0]  ;;  %v1405_v11 = vld [vmem:[%s1645_s8 + $0xc] sm:$0xf]  ;;  %v1404_v16 = vld [vmem:[%s1645_s8 + $0x4] sm:$0xf]  ;;  %v1124_v18 = vor.u32 %v1419_v5, %v1121_v6 }
  0x49   : > { %789 = vmatpush.bf16.msra.mxu0 %v1080_v38  ;;  %v1451_v13 = vld [vmem:[%s1643_s7 + $0x154] sm:$0xf]  ;;  %v1249_v14 = vld [vmem:[%s1643_s7 + $0x158] sm:$0xf0]  ;;  %v1748_v15 = vor.u32 %v1405_v11, %v1069_v12  ;;  %v1367_v19 = vld [vmem:[%s1643_s7 + $0x240] sm:$0xf]  ;;  %v1188_v21 = vor.u32 %v1435_v7, %v1185_v10 }
  0x4a   : > { %803 = vmatpush.bf16.msra.mxu1 %v1144_v42  ;;  %v1061_v20 = vld [vmem:[%s1645_s8 + $0x14] sm:$0xf0]  ;;  %v1482_v22 = vld [vmem:[%s1643_s7 + $0x244] sm:$0xf0]  ;;  %v1417_v23 = vld [vmem:[%s1643_s7 + $0x44] sm:$0xf]  ;;  %v1252_v26 = vor.u32 %v1451_v13, %v1249_v14 }
  0x4b   : > { %817 = vmatpush.bf16.msra.mxu2 %v1208_v43  ;;  %v1113_v24 = vld [vmem:[%s1643_s7 + $0x48] sm:$0xf0]  ;;  %v1757_v25 = vor.u32 %v1404_v16, %v1061_v20  ;;  %v1433_v27 = vld [vmem:[%s1643_s7 + $0xc4] sm:$0xf]  ;;  %v1368_v31 = vor.u32 %v1482_v22, %v1367_v19  ;;  %v1359_v33 = vld [vmem:[%s1643_s7 + $0x230] sm:$0xf] }
  0x4c   : > { %831 = vmatpush.bf16.msra.mxu3 %v1272_v51  ;;  %790 = vmatmul.bf16.vlgmr.msra.gmra.mxu0 %v1730_v61  ;;  %v1177_v28 = vld [vmem:[%s1643_s7 + $0xc8] sm:$0xf0]  ;;  %v1449_v29 = vld [vmem:[%s1643_s7 + $0x144] sm:$0xf]  ;;  %v1116_v32 = vor.u32 %v1417_v23, %v1113_v24  ;;  %v1480_v35 = vld [vmem:[%s1643_s7 + $0x234] sm:$0xf0] }
  0x4d   : > { %838 = vmatpush.bf16.msrb.mxu0 %v1392_v46  ;;  %v1241_v30 = vld [vmem:[%s1643_s7 + $0x148] sm:$0xf0]  ;;  %804 = vmatmul.bf16.vlgmr.msra.gmra.mxu1 %v1757_v25  ;;  %v1180_v34 = vor.u32 %v1433_v27, %v1177_v28  ;;  %v1415_v36 = vld [vmem:[%s1643_s7 + $0x34] sm:$0xf]  ;;  %v1105_v37 = vld [vmem:[%s1643_s7 + $0x38] sm:$0xf0]  ;;  %v1360_v43 = vor.u32 %v1480_v35, %v1359_v33 }
  0x4e   : > { %852 = vmatpush.bf16.msrb.mxu1 %v1140_v47  ;;  %818 = vmatmul.bf16.vlgmr.msra.gmra.mxu2 %v1739_v8  ;;  %v1244_v38 = vor.u32 %v1449_v29, %v1241_v30  ;;  %v1431_v39 = vld [vmem:[%s1643_s7 + $0xb4] sm:$0xf]  ;;  %v1169_v40 = vld [vmem:[%s1643_s7 + $0xb8] sm:$0xf0]  ;;  %v1108_v44 = vor.u32 %v1415_v36, %v1105_v37  ;;  %v1351_v45 = vld [vmem:[%s1643_s7 + $0x220] sm:$0xf] }
  0x4f   : > { %866 = vmatpush.bf16.msrb.mxu2 %v1204_v50  ;;  %832 = vmatmul.bf16.vlgmr.msra.gmra.mxu3 %v1748_v15  ;;  %v1447_v41 = vld [vmem:[%s1643_s7 + $0x134] sm:$0xf]  ;;  %v1233_v42 = vld [vmem:[%s1643_s7 + $0x138] sm:$0xf0]  ;;  %v1172_v46 = vor.u32 %v1431_v39, %v1169_v40  ;;  %v1478_v47 = vld [vmem:[%s1643_s7 + $0x224] sm:$0xf0] }
  0x50   : > { %880 = vmatpush.bf16.msrb.mxu3 %v1268_v55  ;;  %v1413_v48 = vld [vmem:[%s1643_s7 + $0x24] sm:$0xf]  ;;  %v1097_v49 = vld [vmem:[%s1643_s7 + $0x28] sm:$0xf0]  ;;  %v1236_v50 = vor.u32 %v1447_v41, %v1233_v42  ;;  %v1352_v55 = vor.u32 %v1478_v47, %v1351_v45  ;;  %v1343_v57 = vld [vmem:[%s1643_s7 + $0x210] sm:$0xf] }
  0x51   : > { %839 = vmatpush.bf16.msrb.mxu0 %v1384_v63  ;;  %v1429_v51 = vld [vmem:[%s1643_s7 + $0xa4] sm:$0xf]  ;;  %v1161_v52 = vld [vmem:[%s1643_s7 + $0xa8] sm:$0xf0]  ;;  %v1100_v56 = vor.u32 %v1413_v48, %v1097_v49  ;;  %v1476_v59 = vld [vmem:[%s1643_s7 + $0x214] sm:$0xf0] }
  0x52   : > { %853 = vmatpush.bf16.msrb.mxu1 %v1132_v0  ;;  %v1445_v53 = vld [vmem:[%s1643_s7 + $0x124] sm:$0xf]  ;;  %v1225_v54 = vld [vmem:[%s1643_s7 + $0x128] sm:$0xf0]  ;;  %v1164_v58 = vor.u32 %v1429_v51, %v1161_v52  ;;  %v1411_v60 = vld [vmem:[%s1643_s7 + $0x14] sm:$0xf] }
  0x53   : > { %867 = vmatpush.bf16.msrb.mxu2 %v1196_v4  ;;  %v1089_v62 = vld [vmem:[%s1643_s7 + $0x18] sm:$0xf0]  ;;  %v1228_v63 = vor.u32 %v1445_v53, %v1225_v54  ;;  %v1427_v0 = vld [vmem:[%s1643_s7 + $0x94] sm:$0xf]  ;;  %v1344_v4 = vor.u32 %v1476_v59, %v1343_v57  ;;  %v1335_v6 = vld [vmem:[%s1643_s7 + $0x200] sm:$0xf] }
  0x54   : > { %881 = vmatpush.bf16.msrb.mxu3 %v1260_v9  ;;  %v1153_v1 = vld [vmem:[%s1643_s7 + $0x98] sm:$0xf0]  ;;  %v1443_v2 = vld [vmem:[%s1643_s7 + $0x114] sm:$0xf]  ;;  %v1092_v5 = vor.u32 %v1411_v60, %v1089_v62  ;;  %v1474_v7 = vld [vmem:[%s1643_s7 + $0x204] sm:$0xf0] }
  0x55   : > { %840 = vmatpush.bf16.msrb.mxu0 %v1376_v17  ;;  %v1217_v3 = vld [vmem:[%s1643_s7 + $0x118] sm:$0xf0]  ;;  %v1409_v9 = vld [vmem:[%s1643_s7 + $0x4] sm:$0xf]  ;;  %v1156_v10 = vor.u32 %v1427_v0, %v1153_v1  ;;  %v1081_v11 = vld [vmem:[%s1643_s7 + $0x8] sm:$0xf0]  ;;  %v1336_v22 = vor.u32 %v1474_v7, %v1335_v6 }
  0x56   : > { %854 = vmatpush.bf16.msrb.mxu1 %v1124_v18  ;;  %v1425_v12 = vld [vmem:[%s1643_s7 + $0x84] sm:$0xf]  ;;  %v1145_v13 = vld [vmem:[%s1643_s7 + $0x88] sm:$0xf0]  ;;  %v1220_v14 = vor.u32 %v1443_v2, %v1217_v3  ;;  %v1471_v16 = vld [vmem:[%s1643_s7 + $0x1f4] sm:$0xf]  ;;  %v1084_v23 = vor.u32 %v1409_v9, %v1081_v11 }
  0x57   : > { %868 = vmatpush.bf16.msrb.mxu2 %v1188_v21  ;;  %v1329_v17 = vld [vmem:[%s1643_s7 + $0x1f8] sm:$0xf0]  ;;  %v1487_v18 = vld [vmem:[%s1643_s7 + $0x274] sm:$0xf]  ;;  %v1441_v20 = vld [vmem:[%s1643_s7 + $0x104] sm:$0xf]  ;;  %v1148_v27 = vor.u32 %v1425_v12, %v1145_v13 }
  0x58   : > { %882 = vmatpush.bf16.msrb.mxu3 %v1252_v26  ;;  %v1393_v19 = vld [vmem:[%s1643_s7 + $0x278] sm:$0xf0]  ;;  %v1209_v21 = vld [vmem:[%s1643_s7 + $0x108] sm:$0xf0]  ;;  %v1075_v24 = vld [vmem:[%s1645_s8 + $0x10] sm:$0xf]  ;;  %v1332_v28 = vor.u32 %v1471_v16, %v1329_v17 }
  0x59   : > { %841 = vmatpush.bf16.msrb.mxu0 %v1368_v31  ;;  %v1408_v26 = vld [vmem:[%s1645_s8 + $0x20] sm:$0xf0]  ;;  %v1396_v29 = vor.u32 %v1487_v18, %v1393_v19  ;;  %v1212_v30 = vor.u32 %v1441_v20, %v1209_v21  ;;  %v1313_v39 = vld [vmem:[%s1643_s7 + $0x1d8] sm:$0xf0]  ;;  %v1483_v40 = vld [vmem:[%s1643_s7 + $0x254] sm:$0xf] }
  0x5a   : > { %855 = vmatpush.bf16.msrb.mxu1 %v1116_v32  ;;  %v1469_v31 = vld [vmem:[%s1643_s7 + $0x1e4] sm:$0xf]  ;;  %v1321_v32 = vld [vmem:[%s1643_s7 + $0x1e8] sm:$0xf0]  ;;  %v1804_v33 = vor.u32 %v1408_v26, %v1075_v24  ;;  %v1377_v41 = vld [vmem:[%s1643_s7 + $0x258] sm:$0xf0] }
  0x5b   : > { %869 = vmatpush.bf16.msrb.mxu2 %v1180_v34  ;;  %v1485_v34 = vld [vmem:[%s1643_s7 + $0x264] sm:$0xf]  ;;  %v1385_v35 = vld [vmem:[%s1643_s7 + $0x268] sm:$0xf0]  ;;  %v1324_v36 = vor.u32 %v1469_v31, %v1321_v32  ;;  %v1463_v48 = vld [vmem:[%s1643_s7 + $0x1b4] sm:$0xf] }
  0x5c   : > { %883 = vmatpush.bf16.msrb.mxu3 %v1244_v38  ;;  %v1388_v37 = vor.u32 %v1485_v34, %v1385_v35  ;;  %v1467_v38 = vld [vmem:[%s1643_s7 + $0x1d4] sm:$0xf]  ;;  %v1305_v45 = vld [vmem:[%s1643_s7 + $0x1c8] sm:$0xf0]  ;;  %v1297_v49 = vld [vmem:[%s1643_s7 + $0x1b8] sm:$0xf0] }
  0x5d   : > { %842 = vmatpush.bf16.msrb.mxu0 %v1360_v43  ;;  %v1316_v42 = vor.u32 %v1467_v38, %v1313_v39  ;;  %v1380_v43 = vor.u32 %v1483_v40, %v1377_v41  ;;  %v1369_v47 = vld [vmem:[%s1643_s7 + $0x248] sm:$0xf0]  ;;  %v1300_v51 = vor.u32 %v1463_v48, %v1297_v49  ;;  %v1461_v53 = vld [vmem:[%s1643_s7 + $0x1a4] sm:$0xf]  ;;  %v1459_v59 = vld [vmem:[%s1643_s7 + $0x194] sm:$0xf] }
  0x5e   : > { %856 = vmatpush.bf16.msrb.mxu1 %v1108_v44  ;;  %v1465_v44 = vld [vmem:[%s1643_s7 + $0x1c4] sm:$0xf]  ;;  %v1289_v54 = vld [vmem:[%s1643_s7 + $0x1a8] sm:$0xf0]  ;;  %v1281_v60 = vld [vmem:[%s1643_s7 + $0x198] sm:$0xf0] }
  0x5f   : > { %870 = vmatpush.bf16.msrb.mxu2 %v1172_v46  ;;  %v1481_v46 = vld [vmem:[%s1643_s7 + $0x244] sm:$0xf]  ;;  %v1292_v57 = vor.u32 %v1461_v53, %v1289_v54  ;;  %v1475_v62 = vld [vmem:[%s1643_s7 + $0x214] sm:$0xf]  ;;  %v1284_v0 = vor.u32 %v1459_v59, %v1281_v60  ;;  %v1273_v3 = vld [vmem:[%s1643_s7 + $0x188] sm:$0xf0] }
  0x60   : > { %884 = vmatpush.bf16.msrb.mxu3 %v1236_v50  ;;  %v1361_v50 = vld [vmem:[%s1643_s7 + $0x238] sm:$0xf0]  ;;  %v1457_v2 = vld [vmem:[%s1643_s7 + $0x184] sm:$0xf]  ;;  %v266_v21 = vld [vmem:[#allocation2 + $0x10] sm:$0xff]  ;;  %p1397_p11 = scmp.ne.s32.totalorder %s1562_s14, 4 }
  0x61   : > { %843 = vmatpush.bf16.msrb.mxu0 %v1352_v55  ;;  %v1477_v55 = vld [vmem:[%s1643_s7 + $0x224] sm:$0xf]  ;;  %v1276_v6 = vor.u32 %v1457_v2, %v1273_v3  ;;  %v269_v48 = vld [vmem:[#allocation2 + $0x8] sm:$0xff] }
  0x62   : > { %857 = vmatpush.bf16.msrb.mxu1 %v1100_v56  ;;  %v1353_v56 = vld [vmem:[%s1643_s7 + $0x228] sm:$0xf0] }
  0x63   : > { %871 = vmatpush.bf16.msrb.mxu2 %v1164_v58  ;;  %v1356_v58 = vor.u32 %v1477_v55, %v1353_v56 }
  0x64   : > { %885 = vmatpush.bf16.msrb.mxu3 %v1228_v63  ;;  %v1345_v63 = vld [vmem:[%s1643_s7 + $0x218] sm:$0xf0] }
  0x65   : > { %844 = vmatpush.bf16.msrb.mxu0 %v1344_v4  ;;  %v1348_v1 = vor.u32 %v1475_v62, %v1345_v63  ;;  %v1473_v4 = vld [vmem:[%s1643_s7 + $0x204] sm:$0xf] }
  0x66   : > { %858 = vmatpush.bf16.msrb.mxu1 %v1092_v5  ;;  %v1337_v5 = vld [vmem:[%s1643_s7 + $0x208] sm:$0xf0] }
  0x67   : > { %872 = vmatpush.bf16.msrb.mxu2 %v1156_v10  ;;  %v1340_v7 = vor.u32 %v1473_v4, %v1337_v5 }
  0x68   : > { %886 = vmatpush.bf16.msrb.mxu3 %v1220_v14 }
  0x69   : > { %845 = vmatpush.bf16.msrb.mxu0 %v1336_v22 }
  0x6a   : > { %859 = vmatpush.bf16.msrb.mxu1 %v1084_v23 }
  0x6b   : > { %873 = vmatpush.bf16.msrb.mxu2 %v1148_v27 }
  0x6c   : > { %887 = vmatpush.bf16.msrb.mxu3 %v1212_v30  ;;  %846 = vmatmul.bf16.vlgmr.msrb.gmra.mxu0 %v1804_v33 }
  0x6d   : > { %894 = vmatpush.bf16.msra.mxu0 %v1332_v28  ;;  %860 = vmatmul.bf16.vlgmr.msrb.gmra.mxu1 %v1730_v61  ;;  %v1308_v61 = vor.u32 %v1465_v44, %v1305_v45  ;;  %v268_v28 = vld [vmem:[#allocation2 + $0x18] sm:$0xff] }
  0x6e   : > { %908 = vmatpush.bf16.msra.mxu1 %v1396_v29  ;;  %874 = vmatmul.bf16.vlgmr.msrb.gmra.mxu2 %v1757_v25  ;;  %v1372_v25 = vor.u32 %v1481_v46, %v1369_v47 }
  0x6f   : > { %888 = vmatmul.bf16.vlgmr.msrb.gmra.mxu3 %v1739_v8  ;;  %v1479_v8 = vld [vmem:[%s1643_s7 + $0x234] sm:$0xf] }
  0x70   : > { %v1364_v52 = vor.u32 %v1479_v8, %v1361_v50 }
  0x71   : > { %895 = vmatpush.bf16.msra.mxu0 %v1324_v36 }
  0x72   : > { %909 = vmatpush.bf16.msra.mxu1 %v1388_v37 }
  0x75   : > { %896 = vmatpush.bf16.msra.mxu0 %v1316_v42  ;;  %v267_v42 = vld [vmem:[#allocation2] sm:$0xff] }
  0x76   : > { %910 = vmatpush.bf16.msra.mxu1 %v1380_v43 }
  0x79   : > { %897 = vmatpush.bf16.msra.mxu0 %v1308_v61 }
  0x7a   : > { %911 = vmatpush.bf16.msra.mxu1 %v1372_v25 }
  0x7d   : > { %898 = vmatpush.bf16.msra.mxu0 %v1300_v51 }
  0x7e   : > { %912 = vmatpush.bf16.msra.mxu1 %v1364_v52 }
  0x81   : > { %899 = vmatpush.bf16.msra.mxu0 %v1292_v57 }
  0x82   : > { %913 = vmatpush.bf16.msra.mxu1 %v1356_v58 }
  0x85   : > { %900 = vmatpush.bf16.msra.mxu0 %v1284_v0 }
  0x86   : > { %914 = vmatpush.bf16.msra.mxu1 %v1348_v1 }
  0x89   : > { %901 = vmatpush.bf16.msra.mxu0 %v1276_v6 }
  0x8a   : > { %915 = vmatpush.bf16.msra.mxu1 %v1340_v7 }
  0x8c   : > { %902 = vmatmul.bf16.vlgmr.msra.gmra.mxu0 %v1748_v15 }
  0x8d   : > { %916 = vmatmul.bf16.vlgmr.msra.gmra.mxu1 %v1804_v33 }
  0xc9   : > { %v791_v9 = vpop.f32.mrf.mxu0 }
  0xca   : > { %v805_v10 = vpop.f32.mrf.mxu1 }
  0xcb   : > { %v806_v11 = vadd.f32 %v805_v10, %v791_v9 }
  0xd1   : > { %v819_v12 = vpop.f32.mrf.mxu2  ;;  %v793_v13 = vpop.f32.mrf.mxu0 }
  0xd2   : > { %v820_v14 = vadd.f32 %v819_v12, %v806_v11  ;;  %v833_v16 = vpop.f32.mrf.mxu3  ;;  %v807_v17 = vpop.f32.mrf.mxu1 }
  0xd3   : > { %v808_v19 = vadd.f32 %v807_v17, %v793_v13 }
  0xd4   : > { %v834_v18 = vadd.f32 %v833_v16, %v820_v14 }
  0xd9   : > { %v821_v20 = vpop.f32.mrf.mxu2 }
  0xda   : > { %v822_v24 = vadd.f32 %v821_v20, %v808_v19  ;;  %v835_v27 = vpop.f32.mrf.mxu3 }
  0xdc   : > { %v836_v15 = vadd.f32 %v835_v27, %v822_v24 }
  0xe9   : > { %v847_v22 = vpop.f32.mrf.mxu0 }
  0xea   : > { %v848_v23 = vadd.f32 %v847_v22, %v834_v18  ;;  %v861_v32 = vpop.f32.mrf.mxu1 }
  0xec   : > { %v922_v26 = vadd.f32 %v848_v23, %v266_v21 }
  0xee   : > { %926 = vst [vmem:[#allocation2 + $0x10] sm:$0xff] %v922_v26 }
  0xf1   : > { %v849_v29 = vpop.f32.mrf.mxu0  ;;  %v875_v33 = vpop.f32.mrf.mxu2 }
  0xf2   : > { %v850_v30 = vadd.f32 %v849_v29, %v836_v15  ;;  %v863_v34 = vpop.f32.mrf.mxu1  ;;  %v889_v35 = vpop.f32.mrf.mxu3  ;;  %v876_v36 = vadd.f32 %v875_v33, %v861_v32 }
  0xf4   : > { %v924_v31 = vadd.f32 %v850_v30, %v268_v28  ;;  %v890_v37 = vadd.f32 %v889_v35, %v876_v36 }
  0xf6   : > { %928 = vst [vmem:[#allocation2 + $0x18] sm:$0xff] %v924_v31 }
  0xf9   : > { %v877_v38 = vpop.f32.mrf.mxu2 }
  0xfa   : > { %v878_v43 = vadd.f32 %v877_v38, %v863_v34  ;;  %v891_v45 = vpop.f32.mrf.mxu3 }
  0xfc   : > { %v892_v47 = vadd.f32 %v891_v45, %v878_v43 }
 0x109   : > { %v903_v39 = vpop.f32.mrf.mxu0 }
 0x10a   : > { %v904_v40 = vadd.f32 %v903_v39, %v890_v37  ;;  %v917_v41 = vpop.f32.mrf.mxu1 }
 0x10c   : > { %v918_v44 = vadd.f32 %v917_v41, %v904_v40 }
 0x10e   : > { %v923_v46 = vadd.f32 %v918_v44, %v267_v42 }
 0x110   : > { %927 = vst [vmem:[#allocation2] sm:$0xff] %v923_v46 }
 0x111   : > { %v905_v61 = vpop.f32.mrf.mxu0 }
 0x112   : > { %v906_v25 = vadd.f32 %v905_v61, %v892_v47  ;;  %v919_v49 = vpop.f32.mrf.mxu1 }
 0x114   : > { %v920_v8 = vadd.f32 %v919_v49, %v906_v25  ;;  %933 = sbr.rel (%p1397_p11) target bundleno = 295 (0x127), region = 66 }
 0x116   : > { %v925_v50 = vadd.f32 %v920_v8, %v269_v48 }
 0x118   : > { %929 = vst [vmem:[#allocation2 + $0x8] sm:$0xff] %v925_v50 }
 0x119   : > { %v934_v51 = vld [vmem:[#allocation2 + $0x10] sm:$0xff]  ;;  %v935_v52 = vld [vmem:[#allocation2] sm:$0xff]  ;;  %v936_v56 = vld [vmem:[#allocation2 + $0x18] sm:$0xff] }
 0x11a   : > { %v938_v53 = vld [vmem:[%s1865_s2] sm:$0x3] }
 0x11b   : > { %v940_v54 = vperm.slane %v938_v53, 0  ;;  %v941_v55 = vperm.slane %v938_v53, 1 }
 0x11d   : > { %v944_v58 = vadd.f32 %v940_v54, %v934_v51  ;;  %v945_v59 = vadd.f32 %v941_v55, %v935_v52  ;;  %v946_v60 = vadd.f32 %v940_v54, %v936_v56 }
 0x11f   : > { %v937_v57 = vld [vmem:[#allocation2 + $0x8] sm:$0xff]  ;;  %v948_v63 = vmax.f32 %v944_v58, 0.0  ;;  %v949_v0 = vmax.f32 %v945_v59, 0.0  ;;  %v950_v1 = vmax.f32 %v946_v60, 0.0 }
 0x120   : > { %v947_v62 = vadd.f32 %v941_v55, %v937_v57 }
 0x121   : > { %v952_v3 = vpack.c.bf16 %v949_v0, %v948_v63 }
 0x122   : > { %v951_v2 = vmax.f32 %v947_v62, 0.0 }
 0x123   : > { %954 = vst [vmem:[%s1866_s3] sm:$0xff] %v952_v3 }
 0x124   : > { %v953_v4 = vpack.c.bf16 %v951_v2, %v950_v1 }
 0x126   : > { %955 = vst [vmem:[%s1866_s3 + $0x8] sm:$0xff] %v953_v4 }
 0x127 PF: > { %s13_s16 = sadd.s32 1, %s1570_s16   ;;  %s1867_s12 = smov %s1558_s13 }
 0x128   : > { %p10_p12 = scmp.ge.s32.totalorder %s13_s16, 7   ;;  %s1868_s13 = smov %s1628_s20 }
 0x129   : > { %s1869_s14 = smov %s1566_s15  ;;  %s1870_s15 = smov %s1872_s17 }
 0x12a   :  { %12 = sbr.rel (!%p10_p12) target bundleno = 3 (0x3), region = 110 }

// kernel: net3_forward.17
= control target key start
LH: loop header
LB: loop body
LE: loop exit
PB: predicated region body
PF: predicated region fallthrough
CT: control target
= control target key end

     0   :  { %s400_s1 = inlined_call_operand.vmem [shape: bf16[256,128], index: 1, kind: input, shape index: {}]   ;;  %s401_s2 = inlined_call_operand.vmem [shape: f32[1,128], index: 2, kind: input, shape index: {}]   ;;  %s402_s0 = inlined_call_operand.vmem [shape: bf16[16,256], index: 0, kind: input, shape index: {}]   ;;  %s403_s3 = inlined_call_operand.vmem [shape: f32[16,128], index: 3, kind: output, shape index: {}]  }
   0x1   :  { %v293_v0 = vld [vmem:[%s400_s1 + $0x38] sm:$0xff]  ;;  %v292_v2 = vld [vmem:[%s400_s1 + $0x30] sm:$0xff]  ;;  %v291_v4 = vld [vmem:[%s400_s1 + $0x28] sm:$0xff] }
   0x2   :  { %v301_v1 = vld [vmem:[%s400_s1 + $0x78] sm:$0xff]  ;;  %158 = vmatpush.bf16.msra.mxu0 %v293_v0  ;;  %v300_v3 = vld [vmem:[%s400_s1 + $0x70] sm:$0xff]  ;;  %v299_v5 = vld [vmem:[%s400_s1 + $0x68] sm:$0xff] }
   0x3   :  { %172 = vmatpush.bf16.msra.mxu1 %v301_v1  ;;  %v290_v6 = vld [vmem:[%s400_s1 + $0x20] sm:$0xff]  ;;  %v289_v8 = vld [vmem:[%s400_s1 + $0x18] sm:$0xff]  ;;  %v288_v10 = vld [vmem:[%s400_s1 + $0x10] sm:$0xff] }
   0x4   :  { %v298_v7 = vld [vmem:[%s400_s1 + $0x60] sm:$0xff]  ;;  %v297_v9 = vld [vmem:[%s400_s1 + $0x58] sm:$0xff]  ;;  %v296_v11 = vld [vmem:[%s400_s1 + $0x50] sm:$0xff] }
   0x5   :  { %v287_v12 = vld [vmem:[%s400_s1 + $0x8] sm:$0xff]  ;;  %v286_v14 = vld [vmem:[%s400_s1] sm:$0xff] }
   0x6   :  { %159 = vmatpush.bf16.msra.mxu0 %v292_v2  ;;  %v295_v13 = vld [vmem:[%s400_s1 + $0x48] sm:$0xff]  ;;  %v294_v15 = vld [vmem:[%s400_s1 + $0x40] sm:$0xff] }
   0x7   :  { %173 = vmatpush.bf16.msra.mxu1 %v300_v3  ;;  %v214_v16 = vld [vmem:[%s402_s0] sm:$0xf]  ;;  %v285_v17 = vld [vmem:[%s402_s0 + $0x4] sm:$0xf0]  ;;  %v284_v18 = vld [vmem:[%s402_s0 + $0x4] sm:$0xf] }
   0x8   :  { %v216_v19 = vld [vmem:[%s402_s0 + $0x8] sm:$0xf0]  ;;  %v215_v20 = vor.u32 %v285_v17, %v214_v16  ;;  %v302_v22 = vld [vmem:[%s401_s2] ss:$0 sm:$0xff] }
   0x9   :  { %v219_v21 = vor.u32 %v284_v18, %v216_v19 }
   0xa   :  { %160 = vmatpush.bf16.msra.mxu0 %v291_v4 }
   0xb   :  { %174 = vmatpush.bf16.msra.mxu1 %v299_v5 }
   0xe   :  { %161 = vmatpush.bf16.msra.mxu0 %v290_v6 }
   0xf   :  { %175 = vmatpush.bf16.msra.mxu1 %v298_v7 }
  0x12   :  { %162 = vmatpush.bf16.msra.mxu0 %v289_v8 }
  0x13   :  { %176 = vmatpush.bf16.msra.mxu1 %v297_v9 }
  0x16   :  { %163 = vmatpush.bf16.msra.mxu0 %v288_v10 }
  0x17   :  { %177 = vmatpush.bf16.msra.mxu1 %v296_v11 }
  0x1a   :  { %164 = vmatpush.bf16.msra.mxu0 %v287_v12 }
  0x1b   :  { %178 = vmatpush.bf16.msra.mxu1 %v295_v13 }
  0x1e   :  { %165 = vmatpush.bf16.msra.mxu0 %v286_v14 }
  0x1f   :  { %179 = vmatpush.bf16.msra.mxu1 %v294_v15 }
  0x21   :  { %166 = vmatmul.bf16.vlgmr.msra.gmra.mxu0 %v215_v20 }
  0x22   :  { %180 = vmatmul.bf16.vlgmr.msra.gmra.mxu1 %v219_v21 }
  0x9e   :  { %v167_v23 = vpop.f32.mrf.mxu0 }
  0x9f   :  { %v181_v24 = vpop.f32.mrf.mxu1  ;;  %v168_v25 = vadd.f32 %v302_v22, %v167_v23 }
  0xa1   :  { %v182_v26 = vadd.f32 %v181_v24, %v168_v25 }
  0xa3   :  { %186 = vmax.xlane.f32.xlu0 %v182_v26 }
  0xa6   :  { %v169_v27 = vpop.f32.mrf.mxu0 }
  0xa7   :  { %v170_v28 = vadd.f32 %v302_v22, %v169_v27  ;;  %v183_v29 = vpop.f32.mrf.mxu1 }
  0xa9   :  { %v184_v30 = vadd.f32 %v183_v29, %v170_v28 }
  0xab   :  { %188 = vmax.xlane.f32.xlu0 %v184_v30 }
 0x116   :  { %v187_v31 = vpop.xlane.xlu0 %186 }
 0x117   :  { %v190_v32 = vsub.f32 %v182_v26, %v187_v31 }
 0x119   :  { %v192_v33 = vmul.f32 1.442695, %v190_v32 }
 0x11b   :  { %303 = vpow2.f32 %v192_v33 }
 0x11e   :  { %v189_v34 = vpop.xlane.xlu0 %188 }
 0x11f   :  { %v191_v35 = vsub.f32 %v184_v30, %v189_v34 }
 0x121   :  { %v304_v36 = vpop.eup %303  ;;  %v194_v37 = vmul.f32 1.442695, %v191_v35 }
 0x122   :  { %196 = vadd.xlane.f32.xlu1 %v304_v36 }
 0x123   :  { %305 = vpow2.f32 %v194_v37 }
 0x129   :  { %v306_v38 = vpop.eup %305 }
 0x12a   :  { %198 = vadd.xlane.f32.xlu1 %v306_v38 }
 0x195   :  { %v197_v39 = vpop.xlane.xlu1 %196 }
 0x196   :  { %307 = vlog2.f32 %v197_v39 }
 0x19c   :  { %v308_v40 = vpop.eup %307 }
 0x19d   :  { %v201_v41 = vmul.f32 0.6931472, %v308_v40  ;;  %v199_v42 = vpop.xlane.xlu1 %198 }
 0x19e   :  { %309 = vlog2.f32 %v199_v42 }
 0x19f   :  { %v204_v43 = vsub.f32 %v190_v32, %v201_v41 }
 0x1a1   :  { %206 = vst [vmem:[%s403_s3] sm:$0xff] %v204_v43 }
 0x1a4   :  { %v310_v44 = vpop.eup %309 }
 0x1a5   :  { %v203_v45 = vmul.f32 0.6931472, %v310_v44 }
 0x1a7   :  { %v205_v46 = vsub.f32 %v191_v35, %v203_v45 }
 0x1a9   :  { %207 = vst [vmem:[%s403_s3 + $0x8] sm:$0xff] %v205_v46 }

// kernel: net3_forward.13
= control target key start
LH: loop header
LB: loop body
LE: loop exit
PB: predicated region body
PF: predicated region fallthrough
CT: control target
= control target key end

     0   :  { %s4447_s1 = inlined_call_operand.vmem [shape: bf16[1152,128], index: 1, kind: input, shape index: {}]   ;;  %s4448_s0 = inlined_call_operand.vmem [shape: bf16[208,1152], index: 0, kind: input, shape index: {}]   ;;  %s4449_s2 = inlined_call_operand.vmem [shape: f32[1,128], index: 2, kind: input, shape index: {}]   ;;  %s4450_s3 = inlined_call_operand.vmem [shape: bf16[208,128], index: 3, kind: output, shape index: {}]  }
   0x1   :  { %v3113_v0 = vld [vmem:[%s4447_s1 + $0x38] sm:$0xff]  ;;  %v3112_v1 = vld [vmem:[%s4447_s1 + $0x30] sm:$0xff]  ;;  %v3111_v2 = vld [vmem:[%s4447_s1 + $0x28] sm:$0xff] }
   0x2   :  { %1374 = vmatpush.bf16.msra.mxu0 %v3113_v0  ;;  %3255 = vmatpush.bf16.msra.mxu1 %v3113_v0  ;;  %v3110_v3 = vld [vmem:[%s4447_s1 + $0x20] sm:$0xff]  ;;  %v3109_v4 = vld [vmem:[%s4447_s1 + $0x18] sm:$0xff]  ;;  %v3108_v5 = vld [vmem:[%s4447_s1 + $0x10] sm:$0xff] }
   0x3   :  { %3257 = vmatpush.bf16.msra.mxu3 %v3113_v0  ;;  %3256 = vmatpush.bf16.msra.mxu2 %v3113_v0  ;;  %v3107_v6 = vld [vmem:[%s4447_s1 + $0x8] sm:$0xff]  ;;  %v3106_v7 = vld [vmem:[%s4447_s1] sm:$0xff]  ;;  %v3121_v12 = vld [vmem:[%s4447_s1 + $0x78] sm:$0xff] }
   0x4   :  { %v2235_v8 = vld [vmem:[%s4448_s0] sm:$0xf]  ;;  %v2993_v9 = vld [vmem:[%s4448_s0 + $0x20] sm:$0xf0]  ;;  %v2595_v13 = vld [vmem:[%s4448_s0 + $0x2d0] sm:$0xf] }
   0x5   :  { %v2379_v10 = vld [vmem:[%s4448_s0 + $0x120] sm:$0xf]  ;;  %v3029_v11 = vld [vmem:[%s4448_s0 + $0x140] sm:$0xf0]  ;;  %v3083_v14 = vld [vmem:[%s4448_s0 + $0x2f0] sm:$0xf0]  ;;  %v2236_v17 = vor.u32 %v2993_v9, %v2235_v8 }
   0x6   :  { %1375 = vmatpush.bf16.msra.mxu0 %v3112_v1  ;;  %3258 = vmatpush.bf16.msra.mxu1 %v3112_v1  ;;  %v3145_v15 = vld [vmem:[%s4447_s1 + $0x138] sm:$0xff]  ;;  %v2380_v18 = vor.u32 %v3029_v11, %v2379_v10  ;;  %v2596_v19 = vor.u32 %v3083_v14, %v2595_v13  ;;  %v2523_v20 = vld [vmem:[%s4448_s0 + $0x240] sm:$0xf]  ;;  %v3065_v21 = vld [vmem:[%s4448_s0 + $0x260] sm:$0xf0] }
   0x7   :  { %3260 = vmatpush.bf16.msra.mxu3 %v3112_v1  ;;  %3259 = vmatpush.bf16.msra.mxu2 %v3112_v1  ;;  %v3137_v16 = vld [vmem:[%s4447_s1 + $0xf8] sm:$0xff]  ;;  %v3120_v22 = vld [vmem:[%s4447_s1 + $0x70] sm:$0xff]  ;;  %v2524_v26 = vor.u32 %v3065_v21, %v2523_v20  ;;  %v3119_v27 = vld [vmem:[%s4447_s1 + $0x68] sm:$0xff] }
   0x8   :  { %v3129_v23 = vld [vmem:[%s4447_s1 + $0xb8] sm:$0xff]  ;;  %v3144_v24 = vld [vmem:[%s4447_s1 + $0x130] sm:$0xff]  ;;  %v3143_v29 = vld [vmem:[%s4447_s1 + $0x128] sm:$0xff] }
   0x9   :  { %v3136_v25 = vld [vmem:[%s4447_s1 + $0xf0] sm:$0xff]  ;;  %v3135_v30 = vld [vmem:[%s4447_s1 + $0xe8] sm:$0xff]  ;;  %v3118_v31 = vld [vmem:[%s4447_s1 + $0x60] sm:$0xff] }
   0xa   :  { %1376 = vmatpush.bf16.msra.mxu0 %v3111_v2  ;;  %3261 = vmatpush.bf16.msra.mxu1 %v3111_v2  ;;  %v3128_v28 = vld [vmem:[%s4447_s1 + $0xb0] sm:$0xff]  ;;  %v3127_v32 = vld [vmem:[%s4447_s1 + $0xa8] sm:$0xff]  ;;  %v3142_v33 = vld [vmem:[%s4447_s1 + $0x120] sm:$0xff] }
   0xb   :  { %3263 = vmatpush.bf16.msra.mxu3 %v3111_v2  ;;  %3262 = vmatpush.bf16.msra.mxu2 %v3111_v2  ;;  %v3134_v34 = vld [vmem:[%s4447_s1 + $0xe0] sm:$0xff]  ;;  %v2271_v35 = vld [vmem:[%s4448_s0 + $0x48] sm:$0xf]  ;;  %v3002_v36 = vld [vmem:[%s4448_s0 + $0x68] sm:$0xf0] }
   0xc   :  { %v2415_v37 = vld [vmem:[%s4448_s0 + $0x168] sm:$0xf]  ;;  %v3038_v38 = vld [vmem:[%s4448_s0 + $0x188] sm:$0xf0]  ;;  %v2631_v39 = vld [vmem:[%s4448_s0 + $0x318] sm:$0xf]  ;;  %v2272_v45 = vor.u32 %v3002_v36, %v2271_v35 }
   0xd   :  { %v3092_v40 = vld [vmem:[%s4448_s0 + $0x338] sm:$0xf0]  ;;  %v3126_v42 = vld [vmem:[%s4447_s1 + $0xa0] sm:$0xff]  ;;  %v2416_v46 = vor.u32 %v3038_v38, %v2415_v37  ;;  %v2559_v48 = vld [vmem:[%s4448_s0 + $0x288] sm:$0xf] }
   0xe   :  { %1377 = vmatpush.bf16.msra.mxu0 %v3110_v3  ;;  %3264 = vmatpush.bf16.msra.mxu1 %v3110_v3  ;;  %v3117_v41 = vld [vmem:[%s4447_s1 + $0x58] sm:$0xff]  ;;  %v2632_v47 = vor.u32 %v3092_v40, %v2631_v39  ;;  %v3074_v49 = vld [vmem:[%s4448_s0 + $0x2a8] sm:$0xf0]  ;;  %v3116_v51 = vld [vmem:[%s4447_s1 + $0x50] sm:$0xff] }
   0xf   :  { %3266 = vmatpush.bf16.msra.mxu3 %v3110_v3  ;;  %3265 = vmatpush.bf16.msra.mxu2 %v3110_v3  ;;  %v3133_v43 = vld [vmem:[%s4447_s1 + $0xd8] sm:$0xff]  ;;  %v3132_v52 = vld [vmem:[%s4447_s1 + $0xd0] sm:$0xff]  ;;  %v2560_v54 = vor.u32 %v3074_v49, %v2559_v48  ;;  %v3115_v56 = vld [vmem:[%s4447_s1 + $0x48] sm:$0xff] }
  0x10   :  { %v3141_v44 = vld [vmem:[%s4447_s1 + $0x118] sm:$0xff]  ;;  %v3140_v53 = vld [vmem:[%s4447_s1 + $0x110] sm:$0xff]  ;;  %v3131_v57 = vld [vmem:[%s4447_s1 + $0xc8] sm:$0xff] }
  0x11   :  { %v3125_v50 = vld [vmem:[%s4447_s1 + $0x98] sm:$0xff]  ;;  %v3124_v55 = vld [vmem:[%s4447_s1 + $0x90] sm:$0xff]  ;;  %v3139_v58 = vld [vmem:[%s4447_s1 + $0x108] sm:$0xff] }
  0x12   :  { %1378 = vmatpush.bf16.msra.mxu0 %v3109_v4  ;;  %3267 = vmatpush.bf16.msra.mxu1 %v3109_v4  ;;  %v3123_v59 = vld [vmem:[%s4447_s1 + $0x88] sm:$0xff]  ;;  %v3114_v60 = vld [vmem:[%s4447_s1 + $0x40] sm:$0xff]  ;;  %v2307_v63 = vld [vmem:[%s4448_s0 + $0x90] sm:$0xf] }
  0x13   :  { %3269 = vmatpush.bf16.msra.mxu3 %v3109_v4  ;;  %3268 = vmatpush.bf16.msra.mxu2 %v3109_v4  ;;  %v3130_v61 = vld [vmem:[%s4447_s1 + $0xc0] sm:$0xff]  ;;  %v3169_v0 = vld [vmem:[%s4447_s1 + $0x1f8] sm:$0xff]  ;;  %v3011_v1 = vld [vmem:[%s4448_s0 + $0xb0] sm:$0xf0] }
  0x14   :  { %v3138_v62 = vld [vmem:[%s4447_s1 + $0x100] sm:$0xff]  ;;  %v2451_v2 = vld [vmem:[%s4448_s0 + $0x1b0] sm:$0xf]  ;;  %v3047_v3 = vld [vmem:[%s4448_s0 + $0x1d0] sm:$0xf0]  ;;  %v2308_v8 = vor.u32 %v3011_v1, %v2307_v63 }
  0x15   :  { %v2667_v4 = vld [vmem:[%s4448_s0 + $0x360] sm:$0xf]  ;;  %v2452_v9 = vor.u32 %v3047_v3, %v2451_v2  ;;  %v2243_v11 = vld [vmem:[%s4448_s0 + $0x8] sm:$0xf]  ;;  %v3153_v14 = vld [vmem:[%s4447_s1 + $0x178] sm:$0xff] }
  0x16   :  { %1379 = vmatpush.bf16.msra.mxu0 %v3108_v5  ;;  %3270 = vmatpush.bf16.msra.mxu1 %v3108_v5  ;;  %v2990_v20 = vld [vmem:[%s4448_s0 + $0xc] sm:$0xf]  ;;  %v2245_v21 = vld [vmem:[%s4448_s0 + $0x2c] sm:$0xf0]  ;;  %v2999_v35 = vld [vmem:[%s4448_s0 + $0x54] sm:$0xf] }
  0x17   :  { %3272 = vmatpush.bf16.msra.mxu3 %v3108_v5  ;;  %3271 = vmatpush.bf16.msra.mxu2 %v3108_v5  ;;  %v3101_v5 = vld [vmem:[%s4448_s0 + $0x380] sm:$0xf0]  ;;  %v2281_v36 = vld [vmem:[%s4448_s0 + $0x74] sm:$0xf0]  ;;  %v3008_v48 = vld [vmem:[%s4448_s0 + $0x9c] sm:$0xf] }
  0x18   :  { %v2668_v10 = vor.u32 %v3101_v5, %v2667_v4  ;;  %v2284_v39 = vor.u32 %v2999_v35, %v2281_v36  ;;  %v2315_v40 = vld [vmem:[%s4448_s0 + $0x98] sm:$0xf]  ;;  %v2317_v49 = vld [vmem:[%s4448_s0 + $0xbc] sm:$0xf0]  ;;  %v3013_v63 = vld [vmem:[%s4448_s0 + $0xc0] sm:$0xf0] }
  0x19   :  { %v2353_v1 = vld [vmem:[%s4448_s0 + $0x104] sm:$0xf0]  ;;  %v2459_v35 = vld [vmem:[%s4448_s0 + $0x1b8] sm:$0xf]  ;;  %v3048_v36 = vld [vmem:[%s4448_s0 + $0x1d8] sm:$0xf0] }
  0x1a   :  { %1380 = vmatpush.bf16.msra.mxu0 %v3107_v6  ;;  %3273 = vmatpush.bf16.msra.mxu1 %v3107_v6  ;;  %v2387_v5 = vld [vmem:[%s4448_s0 + $0x128] sm:$0xf] }
  0x1b   :  { %3275 = vmatpush.bf16.msra.mxu3 %v3107_v6  ;;  %3274 = vmatpush.bf16.msra.mxu2 %v3107_v6  ;;  %v3122_v6 = vld [vmem:[%s4447_s1 + $0x80] sm:$0xff] }
  0x1e   :  { %1381 = vmatpush.bf16.msra.mxu0 %v3106_v7  ;;  %3276 = vmatpush.bf16.msra.mxu1 %v3106_v7 }
  0x1f   :  { %3278 = vmatpush.bf16.msra.mxu3 %v3106_v7  ;;  %3277 = vmatpush.bf16.msra.mxu2 %v3106_v7  ;;  %v3161_v7 = vld [vmem:[%s4447_s1 + $0x1b8] sm:$0xff] }
  0x21   :  { %1382 = vmatmul.bf16.vlgmr.msra.gmra.mxu0 %v2236_v17  ;;  %1402 = vmatmul.bf16.vlgmr.msra.gmra.mxu1 %v2380_v18  ;;  %v3020_v17 = vld [vmem:[%s4448_s0 + $0xf8] sm:$0xf0]  ;;  %v2487_v18 = vld [vmem:[%s4448_s0 + $0x1f8] sm:$0xf] }
  0x22   :  { %1448 = vmatpush.bf16.msrb.mxu1 %v3121_v12  ;;  %1670 = vmatpush.bf16.msrb.mxu0 %v3145_v15  ;;  %v2994_v12 = vld [vmem:[%s4448_s0 + $0x28] sm:$0xf0]  ;;  %v3177_v15 = vld [vmem:[%s4447_s1 + $0x238] sm:$0xff] }
  0x23   :  { %1596 = vmatpush.bf16.msrb.mxu3 %v3137_v16  ;;  %1522 = vmatpush.bf16.msrb.mxu2 %v3129_v23  ;;  %v2244_v13 = vor.u32 %v2994_v12, %v2243_v11  ;;  %v2343_v16 = vld [vmem:[%s4448_s0 + $0xd8] sm:$0xf]  ;;  %v2345_v11 = vld [vmem:[%s4448_s0 + $0xfc] sm:$0xf0]  ;;  %v2359_v12 = vld [vmem:[%s4448_s0 + $0xe8] sm:$0xf] }
  0x24   :  { %1432 = vmatmul.bf16.vlgmr.msra.gmra.mxu3 %v2596_v19  ;;  %1422 = vmatmul.bf16.vlgmr.msra.gmra.mxu2 %v2524_v26  ;;  %v3056_v19 = vld [vmem:[%s4448_s0 + $0x218] sm:$0xf0]  ;;  %v3003_v26 = vld [vmem:[%s4448_s0 + $0x70] sm:$0xf0] }
  0x25   :  { %v2488_v23 = vor.u32 %v3056_v19, %v2487_v18  ;;  %v2423_v19 = vld [vmem:[%s4448_s0 + $0x170] sm:$0xf] }
  0x26   :  { %1449 = vmatpush.bf16.msrb.mxu1 %v3120_v22  ;;  %1671 = vmatpush.bf16.msrb.mxu0 %v3144_v24  ;;  %v2344_v22 = vor.u32 %v3020_v17, %v2343_v16  ;;  %v2248_v24 = vor.u32 %v2990_v20, %v2245_v21  ;;  %v3039_v20 = vld [vmem:[%s4448_s0 + $0x190] sm:$0xf0]  ;;  %v3150_v21 = vld [vmem:[%s4447_s1 + $0x160] sm:$0xff] }
  0x27   :  { %1597 = vmatpush.bf16.msrb.mxu3 %v3136_v25  ;;  %1523 = vmatpush.bf16.msrb.mxu2 %v3128_v28  ;;  %v2279_v25 = vld [vmem:[%s4448_s0 + $0x50] sm:$0xf] }
  0x28   :  { %v3160_v28 = vld [vmem:[%s4447_s1 + $0x1b0] sm:$0xff] }
  0x2a   :  { %1450 = vmatpush.bf16.msrb.mxu1 %v3119_v27  ;;  %1672 = vmatpush.bf16.msrb.mxu0 %v3143_v29  ;;  %v2280_v27 = vor.u32 %v3003_v26, %v2279_v25  ;;  %v3168_v29 = vld [vmem:[%s4447_s1 + $0x1f0] sm:$0xff]  ;;  %v2381_v25 = vld [vmem:[%s4448_s0 + $0x144] sm:$0xf0] }
  0x2b   :  { %1598 = vmatpush.bf16.msrb.mxu3 %v3135_v30  ;;  %1524 = vmatpush.bf16.msrb.mxu2 %v3127_v32  ;;  %v3152_v30 = vld [vmem:[%s4447_s1 + $0x170] sm:$0xff]  ;;  %v2237_v32 = vld [vmem:[%s4448_s0 + $0x24] sm:$0xf0] }
  0x2c   :  { %v2395_v26 = vld [vmem:[%s4448_s0 + $0x130] sm:$0xf] }
  0x2e   :  { %1451 = vmatpush.bf16.msrb.mxu1 %v3118_v31  ;;  %1673 = vmatpush.bf16.msrb.mxu0 %v3142_v33  ;;  %v2989_v31 = vld [vmem:[%s4448_s0 + $0x4] sm:$0xf]  ;;  %v2251_v33 = vld [vmem:[%s4448_s0 + $0x10] sm:$0xf] }
  0x2f   :  { %1599 = vmatpush.bf16.msrb.mxu3 %v3134_v34  ;;  %1525 = vmatpush.bf16.msrb.mxu2 %v3126_v42  ;;  %v2995_v34 = vld [vmem:[%s4448_s0 + $0x30] sm:$0xf0]  ;;  %v2240_v37 = vor.u32 %v2989_v31, %v2237_v32 }
  0x30   :  { %v2252_v38 = vor.u32 %v2995_v34, %v2251_v33 }
  0x31   :  { %1387 = vmatmul.bf16.gmra.mxu0 %v2272_v45  ;;  %1407 = vmatmul.bf16.gmra.mxu1 %v2416_v46  ;;  %v2273_v45 = vld [vmem:[%s4448_s0 + $0x6c] sm:$0xf0]  ;;  %v2287_v46 = vld [vmem:[%s4448_s0 + $0x58] sm:$0xf] }
  0x32   :  { %1452 = vmatpush.bf16.msrb.mxu1 %v3117_v41  ;;  %1674 = vmatpush.bf16.msrb.mxu0 %v3141_v44  ;;  %v3012_v41 = vld [vmem:[%s4448_s0 + $0xb8] sm:$0xf0]  ;;  %v2998_v44 = vld [vmem:[%s4448_s0 + $0x4c] sm:$0xf] }
  0x33   :  { %1600 = vmatpush.bf16.msrb.mxu3 %v3133_v43  ;;  %1526 = vmatpush.bf16.msrb.mxu2 %v3125_v50  ;;  %v2316_v42 = vor.u32 %v3012_v41, %v2315_v40  ;;  %v3176_v43 = vld [vmem:[%s4447_s1 + $0x230] sm:$0xff]  ;;  %v2276_v50 = vor.u32 %v2998_v44, %v2273_v45  ;;  %v3034_v45 = vld [vmem:[%s4448_s0 + $0x16c] sm:$0xf] }
  0x34   :  { %1437 = vmatmul.bf16.gmra.mxu3 %v2632_v47  ;;  %1427 = vmatmul.bf16.gmra.mxu2 %v2560_v54  ;;  %v3004_v47 = vld [vmem:[%s4448_s0 + $0x78] sm:$0xf0]  ;;  %v3021_v54 = vld [vmem:[%s4448_s0 + $0x100] sm:$0xf0] }
  0x36   :  { %1453 = vmatpush.bf16.msrb.mxu1 %v3116_v51  ;;  %1675 = vmatpush.bf16.msrb.mxu0 %v3140_v53  ;;  %v2288_v51 = vor.u32 %v3004_v47, %v2287_v46  ;;  %v2351_v53 = vld [vmem:[%s4448_s0 + $0xe0] sm:$0xf]  ;;  %v2417_v46 = vld [vmem:[%s4448_s0 + $0x18c] sm:$0xf0]  ;;  %v2431_v47 = vld [vmem:[%s4448_s0 + $0x178] sm:$0xf] }
  0x37   :  { %1601 = vmatpush.bf16.msrb.mxu3 %v3132_v52  ;;  %1527 = vmatpush.bf16.msrb.mxu2 %v3124_v55  ;;  %v2320_v52 = vor.u32 %v3008_v48, %v2317_v49  ;;  %v2352_v55 = vor.u32 %v3021_v54, %v2351_v53  ;;  %v3040_v48 = vld [vmem:[%s4448_s0 + $0x198] sm:$0xf0] }
  0x38   :  { %v3044_v49 = vld [vmem:[%s4448_s0 + $0x1bc] sm:$0xf] }
  0x3a   :  { %1454 = vmatpush.bf16.msrb.mxu1 %v3115_v56  ;;  %1676 = vmatpush.bf16.msrb.mxu0 %v3139_v58  ;;  %v3159_v56 = vld [vmem:[%s4447_s1 + $0x1a8] sm:$0xff] }
  0x3b   :  { %1602 = vmatpush.bf16.msrb.mxu3 %v3131_v57  ;;  %1528 = vmatpush.bf16.msrb.mxu2 %v3123_v59  ;;  %v3167_v57 = vld [vmem:[%s4447_s1 + $0x1e8] sm:$0xff] }
  0x3c   :  { %v3151_v58 = vld [vmem:[%s4447_s1 + $0x168] sm:$0xff] }
  0x3d   :  { %v3175_v59 = vld [vmem:[%s4447_s1 + $0x228] sm:$0xff] }
  0x3e   :  { %1455 = vmatpush.bf16.msrb.mxu1 %v3114_v60  ;;  %1677 = vmatpush.bf16.msrb.mxu0 %v3138_v62  ;;  %v3007_v60 = vld [vmem:[%s4448_s0 + $0x94] sm:$0xf]  ;;  %v2323_v62 = vld [vmem:[%s4448_s0 + $0xa0] sm:$0xf] }
  0x3f   :  { %1603 = vmatpush.bf16.msrb.mxu3 %v3130_v61  ;;  %1529 = vmatpush.bf16.msrb.mxu2 %v3122_v6  ;;  %v2309_v61 = vld [vmem:[%s4448_s0 + $0xb4] sm:$0xf0]  ;;  %v2324_v3 = vor.u32 %v3013_v63, %v2323_v62  ;;  %v3030_v6 = vld [vmem:[%s4448_s0 + $0x148] sm:$0xf0] }
  0x40   :  { %v2312_v2 = vor.u32 %v3007_v60, %v2309_v61 }
  0x41   :  { %1392 = vmatmul.bf16.gmra.mxu0 %v2308_v8  ;;  %1412 = vmatmul.bf16.gmra.mxu1 %v2452_v9  ;;  %v3158_v8 = vld [vmem:[%s4447_s1 + $0x1a0] sm:$0xff] }
  0x42   :  { %1744 = vmatpush.bf16.msra.mxu1 %v3153_v14  ;;  %1966 = vmatpush.bf16.msra.mxu0 %v3177_v15  ;;  %v3166_v9 = vld [vmem:[%s4447_s1 + $0x1e0] sm:$0xff]  ;;  %v3026_v14 = vld [vmem:[%s4448_s0 + $0x12c] sm:$0xf]  ;;  %v2389_v15 = vld [vmem:[%s4448_s0 + $0x14c] sm:$0xf0] }
  0x43   :  { %1892 = vmatpush.bf16.msra.mxu3 %v3169_v0  ;;  %1818 = vmatpush.bf16.msra.mxu2 %v3161_v7  ;;  %v3017_v0 = vld [vmem:[%s4448_s0 + $0xe4] sm:$0xf]  ;;  %v2388_v7 = vor.u32 %v3030_v6, %v2387_v5  ;;  %v2392_v18 = vor.u32 %v3026_v14, %v2389_v15  ;;  %v2531_v14 = vld [vmem:[%s4448_s0 + $0x248] sm:$0xf]  ;;  %v3066_v15 = vld [vmem:[%s4448_s0 + $0x268] sm:$0xf0] }
  0x44   :  { %1442 = vmatmul.bf16.gmra.mxu3 %v2668_v10  ;;  %1530 = vmatmul.bf16.vlgmr.msrb.gmra.mxu2 %v2244_v13  ;;  %v2356_v4 = vor.u32 %v3017_v0, %v2353_v1  ;;  %v3016_v10 = vld [vmem:[%s4448_s0 + $0xdc] sm:$0xf]  ;;  %v3022_v13 = vld [vmem:[%s4448_s0 + $0x108] sm:$0xf0]  ;;  %v3049_v5 = vld [vmem:[%s4448_s0 + $0x1e0] sm:$0xf0] }
  0x45   :  { %v2348_v16 = vor.u32 %v3016_v10, %v2345_v11  ;;  %v2360_v17 = vor.u32 %v3022_v13, %v2359_v12  ;;  %v3053_v6 = vld [vmem:[%s4448_s0 + $0x204] sm:$0xf] }
  0x46   :  { %1745 = vmatpush.bf16.msra.mxu1 %v3152_v30  ;;  %1967 = vmatpush.bf16.msra.mxu0 %v3176_v43  ;;  %v3149_v43 = vld [vmem:[%s4447_s1 + $0x158] sm:$0xff] }
  0x47   :  { %1819 = vmatpush.bf16.msra.mxu2 %v3160_v28  ;;  %1893 = vmatpush.bf16.msra.mxu3 %v3168_v29  ;;  %v3035_v28 = vld [vmem:[%s4448_s0 + $0x174] sm:$0xf]  ;;  %v2425_v29 = vld [vmem:[%s4448_s0 + $0x194] sm:$0xf0] }
  0x48   :  { %v2428_v34 = vor.u32 %v3035_v28, %v2425_v29  ;;  %v3058_v28 = vld [vmem:[%s4448_s0 + $0x228] sm:$0xf0] }
  0x49   :  { %v3062_v29 = vld [vmem:[%s4448_s0 + $0x24c] sm:$0xf] }
  0x4a   :  { %1746 = vmatpush.bf16.msra.mxu1 %v3151_v58  ;;  %1968 = vmatpush.bf16.msra.mxu0 %v3175_v59  ;;  %v3057_v58 = vld [vmem:[%s4448_s0 + $0x220] sm:$0xf0]  ;;  %v3173_v59 = vld [vmem:[%s4447_s1 + $0x218] sm:$0xff] }
  0x4b   :  { %1820 = vmatpush.bf16.msra.mxu2 %v3159_v56  ;;  %1894 = vmatpush.bf16.msra.mxu3 %v3167_v57  ;;  %v2495_v57 = vld [vmem:[%s4448_s0 + $0x200] sm:$0xf] }
  0x4c   :  { %v2496_v61 = vor.u32 %v3057_v58, %v2495_v57  ;;  %v2539_v57 = vld [vmem:[%s4448_s0 + $0x250] sm:$0xf]  ;;  %v3067_v58 = vld [vmem:[%s4448_s0 + $0x270] sm:$0xf0] }
  0x4e   :  { %1747 = vmatpush.bf16.msra.mxu1 %v3150_v21  ;;  %v3148_v21 = vld [vmem:[%s4447_s1 + $0x150] sm:$0xff] }
  0x4f   :  { %1821 = vmatpush.bf16.msra.mxu2 %v3158_v8  ;;  %1895 = vmatpush.bf16.msra.mxu3 %v3166_v9 }
  0x51   :  { %1397 = vmatmul.bf16.gmra.mxu0 %v2344_v22  ;;  %1417 = vmatmul.bf16.gmra.mxu1 %v2488_v23  ;;  %v2424_v22 = vor.u32 %v3039_v20, %v2423_v19  ;;  %v3174_v23 = vld [vmem:[%s4447_s1 + $0x220] sm:$0xff]  ;;  %v3156_v19 = vld [vmem:[%s4447_s1 + $0x190] sm:$0xff] }
  0x52   :  { %1969 = vmatpush.bf16.msra.mxu0 %v3174_v23  ;;  %1748 = vmatpush.bf16.msra.mxu1 %v3149_v43  ;;  %v3164_v20 = vld [vmem:[%s4447_s1 + $0x1d0] sm:$0xff] }
  0x53   :  { %v2567_v43 = vld [vmem:[%s4448_s0 + $0x290] sm:$0xf] }
  0x54   :  { %1604 = vmatmul.bf16.vlgmr.msrb.gmra.mxu3 %v2248_v24  ;;  %1535 = vmatmul.bf16.gmra.mxu2 %v2280_v27  ;;  %v3025_v24 = vld [vmem:[%s4448_s0 + $0x124] sm:$0xf]  ;;  %v3031_v27 = vld [vmem:[%s4448_s0 + $0x150] sm:$0xf0] }
  0x55   :  { %v2384_v30 = vor.u32 %v3025_v24, %v2381_v25  ;;  %v2396_v31 = vor.u32 %v3031_v27, %v2395_v26  ;;  %v3052_v25 = vld [vmem:[%s4448_s0 + $0x1fc] sm:$0xf]  ;;  %v2489_v26 = vld [vmem:[%s4448_s0 + $0x21c] sm:$0xf0]  ;;  %v2503_v27 = vld [vmem:[%s4448_s0 + $0x208] sm:$0xf] }
  0x56   :  { %1970 = vmatpush.bf16.msra.mxu0 %v3173_v59  ;;  %1749 = vmatpush.bf16.msra.mxu1 %v3148_v21  ;;  %v3071_v59 = vld [vmem:[%s4448_s0 + $0x294] sm:$0xf] }
  0x61   :  { %1456 = vmatmul.bf16.vlgmr.msrb.gmra.mxu1 %v2240_v37  ;;  %1678 = vmatmul.bf16.vlgmr.msrb.gmra.mxu0 %v2252_v38  ;;  %v2460_v37 = vor.u32 %v3048_v36, %v2459_v35  ;;  %v3157_v38 = vld [vmem:[%s4447_s1 + $0x198] sm:$0xff]  ;;  %v3172_v36 = vld [vmem:[%s4447_s1 + $0x210] sm:$0xff] }
  0x62   :  { %1822 = vmatpush.bf16.msra.mxu2 %v3157_v38  ;;  %1971 = vmatpush.bf16.msra.mxu0 %v3172_v36  ;;  %v2561_v36 = vld [vmem:[%s4448_s0 + $0x2ac] sm:$0xf0] }
  0x64   :  { %1609 = vmatmul.bf16.gmra.mxu3 %v2284_v39  ;;  %1540 = vmatmul.bf16.gmra.mxu2 %v2316_v42  ;;  %v3165_v42 = vld [vmem:[%s4447_s1 + $0x1d8] sm:$0xff] }
  0x65   :  { %1896 = vmatpush.bf16.msra.mxu3 %v3165_v42 }
  0x66   :  { %1823 = vmatpush.bf16.msra.mxu2 %v3156_v19 }
  0x69   :  { %1897 = vmatpush.bf16.msra.mxu3 %v3164_v20 }
  0x71   :  { %1461 = vmatmul.bf16.gmra.mxu1 %v2276_v50  ;;  %1683 = vmatmul.bf16.gmra.mxu0 %v2288_v51  ;;  %v2461_v50 = vld [vmem:[%s4448_s0 + $0x1dc] sm:$0xf0]  ;;  %v2420_v51 = vor.u32 %v3034_v45, %v2417_v46  ;;  %v3075_v45 = vld [vmem:[%s4448_s0 + $0x2b0] sm:$0xf0] }
  0x72   :  { %v2464_v56 = vor.u32 %v3044_v49, %v2461_v50 }
  0x74   :  { %1614 = vmatmul.bf16.gmra.mxu3 %v2320_v52  ;;  %1545 = vmatmul.bf16.gmra.mxu2 %v2352_v55  ;;  %v2432_v52 = vor.u32 %v3040_v48, %v2431_v47  ;;  %v2568_v47 = vor.u32 %v3075_v45, %v2567_v43  ;;  %v3076_v43 = vld [vmem:[%s4448_s0 + $0x2b8] sm:$0xf0] }
  0x75   :  { %v3080_v45 = vld [vmem:[%s4448_s0 + $0x2dc] sm:$0xf] }
  0x81   :  { %1466 = vmatmul.bf16.gmra.mxu1 %v2312_v2  ;;  %1688 = vmatmul.bf16.gmra.mxu0 %v2324_v3  ;;  %v3043_v2 = vld [vmem:[%s4448_s0 + $0x1b4] sm:$0xf]  ;;  %v2453_v3 = vld [vmem:[%s4448_s0 + $0x1d4] sm:$0xf0] }
  0x82   :  { %v2456_v8 = vor.u32 %v3043_v2, %v2453_v3  ;;  %v2540_v3 = vor.u32 %v3067_v58, %v2539_v57 }
  0x84   :  { %1619 = vmatmul.bf16.gmra.mxu3 %v2356_v4  ;;  %1550 = vmatmul.bf16.gmra.mxu2 %v2388_v7  ;;  %v2467_v4 = vld [vmem:[%s4448_s0 + $0x1c0] sm:$0xf]  ;;  %v2497_v7 = vld [vmem:[%s4448_s0 + $0x224] sm:$0xf0] }
  0x85   :  { %v2468_v9 = vor.u32 %v3049_v5, %v2467_v4  ;;  %v2500_v13 = vor.u32 %v3053_v6, %v2497_v7  ;;  %v3155_v5 = vld [vmem:[%s4447_s1 + $0x188] sm:$0xff] }
  0x86   :  { %v3163_v6 = vld [vmem:[%s4447_s1 + $0x1c8] sm:$0xff]  ;;  %1824 = vmatpush.bf16.msra.mxu2 %v3155_v5 }
  0x87   :  { %v3147_v7 = vld [vmem:[%s4447_s1 + $0x148] sm:$0xff]  ;;  %1898 = vmatpush.bf16.msra.mxu3 %v3163_v6 }
  0x88   :  { %1750 = vmatpush.bf16.msra.mxu1 %v3147_v7 }
  0x91   :  { %1471 = vmatmul.bf16.gmra.mxu1 %v2348_v16  ;;  %1693 = vmatmul.bf16.gmra.mxu0 %v2360_v17  ;;  %v2532_v17 = vor.u32 %v3066_v15, %v2531_v14  ;;  %v2603_v14 = vld [vmem:[%s4448_s0 + $0x2d8] sm:$0xf]  ;;  %v3084_v15 = vld [vmem:[%s4448_s0 + $0x2f8] sm:$0xf0] }
  0x92   :  { %v2604_v21 = vor.u32 %v3084_v15, %v2603_v14  ;;  %v3162_v14 = vld [vmem:[%s4447_s1 + $0x1c0] sm:$0xff] }
  0x93   :  { %1899 = vmatpush.bf16.msra.mxu3 %v3162_v14  ;;  %v3094_v14 = vld [vmem:[%s4448_s0 + $0x348] sm:$0xf0] }
  0x94   :  { %1624 = vmatmul.bf16.gmra.mxu3 %v2392_v18  ;;  %1555 = vmatmul.bf16.gmra.mxu2 %v2424_v22 }
  0x9e   :  { %v3678_v32 = vpop.f32.mrf.mxu0  ;;  %v3680_v33 = vpop.f32.mrf.mxu1 }
  0xa1   :  { %1476 = vmatmul.bf16.gmra.mxu1 %v2384_v30  ;;  %1698 = vmatmul.bf16.gmra.mxu0 %v2396_v31  ;;  %v2533_v30 = vld [vmem:[%s4448_s0 + $0x26c] sm:$0xf0]  ;;  %v2492_v31 = vor.u32 %v3052_v25, %v2489_v26 }
  0xa2   :  { %v2536_v42 = vor.u32 %v3062_v29, %v2533_v30 }
  0xa4   :  { %1629 = vmatmul.bf16.gmra.mxu3 %v2428_v34  ;;  %1560 = vmatmul.bf16.gmra.mxu2 %v2460_v37  ;;  %v2504_v34 = vor.u32 %v3058_v28, %v2503_v27  ;;  %v3171_v28 = vld [vmem:[%s4447_s1 + $0x208] sm:$0xff] }
  0xa5   :  { %1972 = vmatpush.bf16.msra.mxu0 %v3171_v28 }
  0xa6   :  { %v3693_v40 = vpop.f32.mrf.mxu0  ;;  %v3695_v41 = vpop.f32.mrf.mxu1 }
  0xa7   :  { %v3691_v39 = vpop.f32.mrf.mxu3  ;;  %v3703_v44 = vpop.f32.mrf.mxu2 }
  0xae   :  { %v3725_v54 = vpop.f32.mrf.mxu0  ;;  %v3727_v55 = vpop.f32.mrf.mxu1 }
  0xaf   :  { %v3723_v53 = vpop.f32.mrf.mxu3  ;;  %v3738_v60 = vpop.f32.mrf.mxu2 }
  0xb1   :  { %1481 = vmatmul.bf16.gmra.mxu1 %v2420_v51  ;;  %1703 = vmatmul.bf16.gmra.mxu0 %v2432_v52  ;;  %v3061_v52 = vld [vmem:[%s4448_s0 + $0x244] sm:$0xf] }
  0xb4   :  { %1634 = vmatmul.bf16.gmra.mxu3 %v2464_v56  ;;  %1565 = vmatmul.bf16.gmra.mxu2 %v2496_v61  ;;  %v2525_v56 = vld [vmem:[%s4448_s0 + $0x264] sm:$0xf0]  ;;  %v2569_v61 = vld [vmem:[%s4448_s0 + $0x2b4] sm:$0xf0] }
  0xb5   :  { %v2528_v2 = vor.u32 %v3061_v52, %v2525_v56 }
  0xb6   :  { %v3742_v63 = vpop.f32.mrf.mxu0  ;;  %v3744_v0 = vpop.f32.mrf.mxu1 }
  0xb7   :  { %v3740_v62 = vpop.f32.mrf.mxu3  ;;  %v3746_v1 = vpop.f32.mrf.mxu2 }
  0xbe   :  { %v3768_v11 = vpop.f32.mrf.mxu0  ;;  %v3770_v12 = vpop.f32.mrf.mxu1 }
  0xbf   :  { %v3766_v10 = vpop.f32.mrf.mxu3  ;;  %v3778_v16 = vpop.f32.mrf.mxu2 }
  0xc1   :  { %1486 = vmatmul.bf16.gmra.mxu1 %v2456_v8  ;;  %1708 = vmatmul.bf16.gmra.mxu0 %v2468_v9 }
  0xc4   :  { %1639 = vmatmul.bf16.gmra.mxu3 %v2500_v13  ;;  %1570 = vmatmul.bf16.gmra.mxu2 %v2532_v17  ;;  %v2572_v13 = vor.u32 %v3071_v59, %v2569_v61  ;;  %v2639_v61 = vld [vmem:[%s4448_s0 + $0x320] sm:$0xf] }
  0xc6   :  { %v3791_v22 = vpop.f32.mrf.mxu0  ;;  %v3793_v23 = vpop.f32.mrf.mxu1 }
  0xc7   :  { %v3780_v18 = vpop.f32.mrf.mxu3  ;;  %v1531_v24 = vpop.f32.mrf.mxu2 }
  0xce   :  { %v3818_v37 = vpop.f32.mrf.mxu0  ;;  %v3820_v38 = vpop.f32.mrf.mxu1 }
  0xcf   :  { %v3813_v35 = vpop.f32.mrf.mxu3  ;;  %v1533_v46 = vpop.f32.mrf.mxu2 }
  0xd1   :  { %1491 = vmatmul.bf16.gmra.mxu1 %v2492_v31  ;;  %1713 = vmatmul.bf16.gmra.mxu0 %v2504_v34  ;;  %v3070_v34 = vld [vmem:[%s4448_s0 + $0x28c] sm:$0xf] }
  0xd4   :  { %1644 = vmatmul.bf16.gmra.mxu3 %v2536_v42  ;;  %1575 = vmatmul.bf16.gmra.mxu2 %v2568_v47  ;;  %v2575_v42 = vld [vmem:[%s4448_s0 + $0x298] sm:$0xf] }
  0xd5   :  { %v2576_v52 = vor.u32 %v3076_v43, %v2575_v42  ;;  %v3170_v42 = vld [vmem:[%s4447_s1 + $0x200] sm:$0xff] }
  0xd6   :  { %v3828_v49 = vpop.f32.mrf.mxu0  ;;  %v3830_v50 = vpop.f32.mrf.mxu1  ;;  %1973 = vmatpush.bf16.msra.mxu0 %v3170_v42 }
  0xd7   :  { %v1605_v48 = vpop.f32.mrf.mxu3  ;;  %v1536_v51 = vpop.f32.mrf.mxu2 }
  0xde   :  { %v1457_v8 = vpop.f32.mrf.mxu1  ;;  %v1679_v9 = vpop.f32.mrf.mxu0 }
  0xdf   :  { %v1607_v4 = vpop.f32.mrf.mxu3  ;;  %v1458_v17 = vadd.f32 %v1457_v8, %v3678_v32  ;;  %v1538_v19 = vpop.f32.mrf.mxu2 }
  0xe1   :  { %v1532_v20 = vadd.f32 %v1531_v24, %v1458_v17  ;;  %1496 = vmatmul.bf16.gmra.mxu1 %v2528_v2  ;;  %1718 = vmatmul.bf16.gmra.mxu0 %v2540_v3  ;;  %v3093_v2 = vld [vmem:[%s4448_s0 + $0x340] sm:$0xf0] }
  0xe2   :  { %v2640_v6 = vor.u32 %v3093_v2, %v2639_v61 }
  0xe3   :  { %v1606_v25 = vadd.f32 %v1605_v48, %v1532_v20  ;;  %v2564_v48 = vor.u32 %v3070_v34, %v2561_v36  ;;  %v3146_v36 = vld [vmem:[%s4447_s1 + $0x140] sm:$0xff] }
  0xe4   :  { %1649 = vmatmul.bf16.gmra.mxu3 %v2572_v13  ;;  %1580 = vmatmul.bf16.gmra.mxu2 %v2604_v21  ;;  %v3154_v13 = vld [vmem:[%s4447_s1 + $0x180] sm:$0xff]  ;;  %v3079_v21 = vld [vmem:[%s4448_s0 + $0x2d4] sm:$0xf] }
  0xe5   :  { %v3866_v26 = vadd.f32 %v1679_v9, %v1606_v25  ;;  %1825 = vmatpush.bf16.msra.mxu2 %v3154_v13  ;;  %v2597_v25 = vld [vmem:[%s4448_s0 + $0x2f4] sm:$0xf0]  ;;  %1751 = vmatpush.bf16.msra.mxu1 %v3146_v36 }
  0xe6   :  { %v1459_v29 = vpop.f32.mrf.mxu1  ;;  %v1681_v32 = vpop.f32.mrf.mxu0 }
  0xe7   :  { %v1610_v27 = vpop.f32.mrf.mxu3  ;;  %v1460_v30 = vadd.f32 %v1459_v29, %v3693_v40  ;;  %v1541_v31 = vpop.f32.mrf.mxu2  ;;  %v2641_v29 = vld [vmem:[%s4448_s0 + $0x344] sm:$0xf0] }
  0xe9   :  { %v1534_v24 = vadd.f32 %v1533_v46, %v1460_v30  ;;  %v2605_v46 = vld [vmem:[%s4448_s0 + $0x2fc] sm:$0xf0]  ;;  %v2600_v30 = vor.u32 %v3079_v21, %v2597_v25 }
  0xea   :  { %v2608_v59 = vor.u32 %v3080_v45, %v2605_v46  ;;  %v2675_v46 = vld [vmem:[%s4448_s0 + $0x368] sm:$0xf] }
  0xeb   :  { %v1608_v40 = vadd.f32 %v1607_v4, %v1534_v24 }
  0xed   :  { %v3890_v47 = vadd.f32 %v1681_v32, %v1608_v40 }
  0xee   :  { %v1462_v57 = vpop.f32.mrf.mxu1  ;;  %v1684_v58 = vpop.f32.mrf.mxu0 }
  0xef   :  { %v1612_v56 = vpop.f32.mrf.mxu3  ;;  %v1463_v3 = vadd.f32 %v1462_v57, %v3725_v54  ;;  %v1543_v4 = vpop.f32.mrf.mxu2 }
  0xf1   :  { %v1537_v5 = vadd.f32 %v1536_v51, %v1463_v3  ;;  %1501 = vmatmul.bf16.gmra.mxu1 %v2564_v48  ;;  %1723 = vmatmul.bf16.gmra.mxu0 %v2576_v52  ;;  %v3102_v48 = vld [vmem:[%s4448_s0 + $0x388] sm:$0xf0] }
  0xf3   :  { %v1611_v7 = vadd.f32 %v1610_v27, %v1537_v5  ;;  %v2611_v27 = vld [vmem:[%s4448_s0 + $0x2e0] sm:$0xf] }
  0xf4   :  { %1654 = vmatmul.bf16.gmra.mxu3 %v2608_v59  ;;  %1585 = vmatmul.bf16.gmra.mxu2 %v2640_v6 }
  0xf5   :  { %v3899_v8 = vadd.f32 %v1684_v58, %v1611_v7  ;;  %v2676_v58 = vor.u32 %v3102_v48, %v2675_v46 }
  0xf6   :  { %v1464_v54 = vpop.f32.mrf.mxu1  ;;  %v1686_v15 = vpop.f32.mrf.mxu0 }
  0xf7   :  { %v1615_v9 = vpop.f32.mrf.mxu3  ;;  %v1465_v51 = vadd.f32 %v1464_v54, %v3742_v63  ;;  %v1546_v17 = vpop.f32.mrf.mxu2  ;;  %v3085_v63 = vld [vmem:[%s4448_s0 + $0x300] sm:$0xf0] }
  0xf8   :  { %v2612_v24 = vor.u32 %v3085_v63, %v2611_v27 }
  0xf9   :  { %v1539_v20 = vadd.f32 %v1538_v19, %v1465_v51  ;;  %v3089_v19 = vld [vmem:[%s4448_s0 + $0x324] sm:$0xf] }
  0xfa   :  { %v2644_v45 = vor.u32 %v3089_v19, %v2641_v29  ;;  %v2996_v19 = vld [vmem:[%s4448_s0 + $0x38] sm:$0xf0] }
  0xfb   :  { %v1613_v28 = vadd.f32 %v1612_v56, %v1539_v20 }
  0xfd   :  { %v3926_v32 = vadd.f32 %v1686_v15, %v1613_v28  ;;  %v2259_v28 = vld [vmem:[%s4448_s0 + $0x18] sm:$0xf] }
  0xfe   :  { %v1467_v43 = vpop.f32.mrf.mxu1  ;;  %v1689_v40 = vpop.f32.mrf.mxu0 }
  0xff   :  { %v1617_v34 = vpop.f32.mrf.mxu3  ;;  %v1468_v52 = vadd.f32 %v1467_v43, %v3768_v11  ;;  %v1548_v56 = vpop.f32.mrf.mxu2  ;;  %v3088_v11 = vld [vmem:[%s4448_s0 + $0x31c] sm:$0xf] }
 0x101   :  { %v1542_v57 = vadd.f32 %v1541_v31, %v1468_v52  ;;  %1506 = vmatmul.bf16.gmra.mxu1 %v2600_v30  ;;  %1728 = vmatmul.bf16.gmra.mxu0 %v2612_v24  ;;  %v2633_v31 = vld [vmem:[%s4448_s0 + $0x33c] sm:$0xf0] }
 0x102   :  { %v2636_v51 = vor.u32 %v3088_v11, %v2633_v31 }
 0x103   :  { %v1616_v59 = vadd.f32 %v1615_v9, %v1542_v57  ;;  %v2647_v9 = vld [vmem:[%s4448_s0 + $0x328] sm:$0xf]  ;;  %v2683_v57 = vld [vmem:[%s4448_s0 + $0x370] sm:$0xf] }
 0x104   :  { %1659 = vmatmul.bf16.gmra.mxu3 %v2644_v45  ;;  %1590 = vmatmul.bf16.gmra.mxu2 %v2676_v58  ;;  %v2648_v20 = vor.u32 %v3094_v14, %v2647_v9  ;;  %v3103_v58 = vld [vmem:[%s4448_s0 + $0x390] sm:$0xf0]  ;;  %v2295_v9 = vld [vmem:[%s4448_s0 + $0x60] sm:$0xf]  ;;  %v3005_v14 = vld [vmem:[%s4448_s0 + $0x80] sm:$0xf0] }
 0x105   :  { %v3941_v61 = vadd.f32 %v1689_v40, %v1616_v59 }
 0x106   :  { %v1469_v3 = vpop.f32.mrf.mxu1  ;;  %v1691_v5 = vpop.f32.mrf.mxu0 }
 0x107   :  { %v1620_v2 = vpop.f32.mrf.mxu3  ;;  %v1470_v6 = vadd.f32 %v1469_v3, %v3791_v22  ;;  %v1551_v7 = vpop.f32.mrf.mxu2  ;;  %v3098_v22 = vld [vmem:[%s4448_s0 + $0x36c] sm:$0xf] }
 0x109   :  { %v1544_v13 = vadd.f32 %v1543_v4, %v1470_v6  ;;  %v2677_v4 = vld [vmem:[%s4448_s0 + $0x38c] sm:$0xf0] }
 0x10a   :  { %v2680_v63 = vor.u32 %v3098_v22, %v2677_v4 }
 0x10b   :  { %v1618_v54 = vadd.f32 %v1617_v34, %v1544_v13  ;;  %v2260_v34 = vor.u32 %v2996_v19, %v2259_v28 }
 0x10d   :  { %v3962_v15 = vadd.f32 %v1691_v5, %v1618_v54  ;;  %v2684_v5 = vor.u32 %v3103_v58, %v2683_v57  ;;  %v2331_v57 = vld [vmem:[%s4448_s0 + $0xa8] sm:$0xf]  ;;  %v3014_v58 = vld [vmem:[%s4448_s0 + $0xc8] sm:$0xf0] }
 0x10e   :  { %v1472_v25 = vpop.f32.mrf.mxu1  ;;  %v1694_v27 = vpop.f32.mrf.mxu0 }
 0x10f   :  { %v1622_v21 = vpop.f32.mrf.mxu3  ;;  %v1473_v29 = vadd.f32 %v1472_v25, %v3818_v37  ;;  %v1553_v30 = vpop.f32.mrf.mxu2  ;;  %v3097_v37 = vld [vmem:[%s4448_s0 + $0x364] sm:$0xf] }
 0x111   :  { %v1547_v24 = vadd.f32 %v1546_v17, %v1473_v29  ;;  %1511 = vmatmul.bf16.gmra.mxu1 %v2636_v51  ;;  %1733 = vmatmul.bf16.gmra.mxu0 %v2648_v20  ;;  %v2669_v17 = vld [vmem:[%s4448_s0 + $0x384] sm:$0xf0]  ;;  %v2296_v51 = vor.u32 %v3005_v14, %v2295_v9 }
 0x112   :  { %v2672_v3 = vor.u32 %v3097_v37, %v2669_v17 }
 0x113   :  { %v1621_v36 = vadd.f32 %v1620_v2, %v1547_v24  ;;  %v2267_v24 = vld [vmem:[%s4448_s0 + $0x20] sm:$0xf] }
 0x114   :  { %1664 = vmatmul.bf16.gmra.mxu3 %v2680_v63  ;;  %1826 = vmatmul.bf16.vlgmr.msra.gmra.mxu2 %v2260_v34  ;;  %v2997_v34 = vld [vmem:[%s4448_s0 + $0x40] sm:$0xf0] }
 0x115   :  { %v3971_v42 = vadd.f32 %v1694_v27, %v1621_v36 }
 0x116   :  { %v1474_v40 = vpop.f32.mrf.mxu1  ;;  %v1696_v45 = vpop.f32.mrf.mxu0 }
 0x117   :  { %v1625_v43 = vpop.f32.mrf.mxu3  ;;  %v1475_v46 = vadd.f32 %v1474_v40, %v3828_v49  ;;  %v1556_v48 = vpop.f32.mrf.mxu2  ;;  %v2992_v49 = vld [vmem:[%s4448_s0 + $0x1c] sm:$0xf] }
 0x119   :  { %v1549_v52 = vadd.f32 %v1548_v56, %v1475_v46  ;;  %v2261_v56 = vld [vmem:[%s4448_s0 + $0x3c] sm:$0xf0] }
 0x11a   :  { %v2264_v31 = vor.u32 %v2992_v49, %v2261_v56 }
 0x11b   :  { %v1623_v59 = vadd.f32 %v1622_v21, %v1549_v52 }
 0x11d   :  { %v3992_v2 = vadd.f32 %v1696_v45, %v1623_v59  ;;  %v2268_v45 = vor.u32 %v2997_v34, %v2267_v24  ;;  %v2367_v24 = vld [vmem:[%s4448_s0 + $0xf0] sm:$0xf]  ;;  %v3023_v34 = vld [vmem:[%s4448_s0 + $0x110] sm:$0xf0] }
 0x11e   :  { %v1477_v13 = vpop.f32.mrf.mxu1  ;;  %v1699_v11 = vpop.f32.mrf.mxu0 }
 0x11f   :  { %v1627_v6 = vpop.f32.mrf.mxu3  ;;  %v1478_v54 = vadd.f32 %v1477_v13, %v3680_v33  ;;  %v1558_v22 = vpop.f32.mrf.mxu2  ;;  %v2991_v33 = vld [vmem:[%s4448_s0 + $0x14] sm:$0xf] }
 0x121   :  { %v1552_v4 = vadd.f32 %v1551_v7, %v1478_v54  ;;  %1516 = vmatmul.bf16.gmra.mxu1 %v2672_v3  ;;  %1738 = vmatmul.bf16.gmra.mxu0 %v2684_v5  ;;  %v2253_v7 = vld [vmem:[%s4448_s0 + $0x34] sm:$0xf0]  ;;  %v2332_v3 = vor.u32 %v3014_v58, %v2331_v57 }
 0x122   :  { %v2256_v40 = vor.u32 %v2991_v33, %v2253_v7 }
 0x123   :  { %v1626_v20 = vadd.f32 %v1625_v43, %v1552_v4  ;;  %v2303_v4 = vld [vmem:[%s4448_s0 + $0x68] sm:$0xf] }
 0x124   :  { %1900 = vmatmul.bf16.vlgmr.msra.gmra.mxu3 %v2264_v31  ;;  %1831 = vmatmul.bf16.gmra.mxu2 %v2296_v51  ;;  %v3006_v51 = vld [vmem:[%s4448_s0 + $0x88] sm:$0xf0] }
 0x125   :  { %v4001_v21 = vadd.f32 %v1699_v11, %v1626_v20 }
 0x126   :  { %v1479_v27 = vpop.f32.mrf.mxu1  ;;  %v1701_v63 = vpop.f32.mrf.mxu0 }
 0x127   :  { %v1630_v25 = vpop.f32.mrf.mxu3  ;;  %v1480_v28 = vadd.f32 %v1479_v27, %v3695_v41  ;;  %v1561_v19 = vpop.f32.mrf.mxu2  ;;  %v3001_v41 = vld [vmem:[%s4448_s0 + $0x64] sm:$0xf] }
 0x129   :  { %v1554_v29 = vadd.f32 %v1553_v30, %v1480_v28  ;;  %v2297_v30 = vld [vmem:[%s4448_s0 + $0x84] sm:$0xf0] }
 0x12a   :  { %v2300_v17 = vor.u32 %v3001_v41, %v2297_v30 }
 0x12b   :  { %v1628_v36 = vadd.f32 %v1627_v6, %v1554_v29 }
 0x12d   :  { %v4022_v43 = vadd.f32 %v1701_v63, %v1628_v36  ;;  %v2304_v63 = vor.u32 %v3006_v51, %v2303_v4  ;;  %v2403_v4 = vld [vmem:[%s4448_s0 + $0x138] sm:$0xf]  ;;  %v3032_v51 = vld [vmem:[%s4448_s0 + $0x158] sm:$0xf0] }
 0x12e   :  { %v1482_v52 = vpop.f32.mrf.mxu1  ;;  %v1704_v37 = vpop.f32.mrf.mxu0 }
 0x12f   :  { %v1632_v46 = vpop.f32.mrf.mxu3  ;;  %v1483_v59 = vadd.f32 %v1482_v52, %v3727_v55  ;;  %v1563_v49 = vpop.f32.mrf.mxu2  ;;  %v3000_v55 = vld [vmem:[%s4448_s0 + $0x5c] sm:$0xf] }
 0x131   :  { %v1557_v56 = vadd.f32 %v1556_v48, %v1483_v59  ;;  %1752 = vmatmul.bf16.vlgmr.msra.gmra.mxu1 %v2256_v40  ;;  %1974 = vmatmul.bf16.vlgmr.msra.gmra.mxu0 %v2268_v45  ;;  %v2289_v48 = vld [vmem:[%s4448_s0 + $0x7c] sm:$0xf0]  ;;  %v2368_v40 = vor.u32 %v3023_v34, %v2367_v24 }
 0x132   :  { %v2292_v27 = vor.u32 %v3000_v55, %v2289_v48 }
 0x133   :  { %v1631_v5 = vadd.f32 %v1630_v25, %v1557_v56  ;;  %v2339_v56 = vld [vmem:[%s4448_s0 + $0xb0] sm:$0xf] }
 0x134   :  { %1905 = vmatmul.bf16.gmra.mxu3 %v2300_v17  ;;  %1836 = vmatmul.bf16.gmra.mxu2 %v2332_v3  ;;  %v3015_v3 = vld [vmem:[%s4448_s0 + $0xd0] sm:$0xf0] }
 0x135   :  { %v4031_v6 = vadd.f32 %v1704_v37, %v1631_v5 }
 0x136   :  { %v1484_v11 = vpop.f32.mrf.mxu1  ;;  %v1706_v31 = vpop.f32.mrf.mxu0 }
 0x137   :  { %v1635_v13 = vpop.f32.mrf.mxu3  ;;  %v1485_v9 = vadd.f32 %v1484_v11, %v3744_v0  ;;  %v1566_v14 = vpop.f32.mrf.mxu2  ;;  %v3010_v0 = vld [vmem:[%s4448_s0 + $0xac] sm:$0xf] }
 0x139   :  { %v1559_v54 = vadd.f32 %v1558_v22, %v1485_v9  ;;  %v2333_v22 = vld [vmem:[%s4448_s0 + $0xcc] sm:$0xf0] }
 0x13a   :  { %v2336_v7 = vor.u32 %v3010_v0, %v2333_v22 }
 0x13b   :  { %v1633_v20 = vadd.f32 %v1632_v46, %v1559_v54 }
 0x13d   :  { %v4052_v25 = vadd.f32 %v1706_v31, %v1633_v20  ;;  %v2340_v31 = vor.u32 %v3015_v3, %v2339_v56  ;;  %v2439_v56 = vld [vmem:[%s4448_s0 + $0x180] sm:$0xf]  ;;  %v3041_v3 = vld [vmem:[%s4448_s0 + $0x1a0] sm:$0xf0] }
 0x13e   :  { %v1487_v29 = vpop.f32.mrf.mxu1  ;;  %v1709_v33 = vpop.f32.mrf.mxu0 }
 0x13f   :  { %v1637_v28 = vpop.f32.mrf.mxu3  ;;  %v1488_v36 = vadd.f32 %v1487_v29, %v3770_v12  ;;  %v1568_v41 = vpop.f32.mrf.mxu2  ;;  %v3009_v12 = vld [vmem:[%s4448_s0 + $0xa4] sm:$0xf] }
 0x141   :  { %v1562_v30 = vadd.f32 %v1561_v19, %v1488_v36  ;;  %1757 = vmatmul.bf16.gmra.mxu1 %v2292_v27  ;;  %1979 = vmatmul.bf16.gmra.mxu0 %v2304_v63  ;;  %v2325_v19 = vld [vmem:[%s4448_s0 + $0xc4] sm:$0xf0]  ;;  %v2404_v27 = vor.u32 %v3032_v51, %v2403_v4 }
 0x142   :  { %v2328_v11 = vor.u32 %v3009_v12, %v2325_v19 }
 0x143   :  { %v1636_v45 = vadd.f32 %v1635_v13, %v1562_v30  ;;  %v2375_v30 = vld [vmem:[%s4448_s0 + $0xf8] sm:$0xf] }
 0x144   :  { %1910 = vmatmul.bf16.gmra.mxu3 %v2336_v7  ;;  %1841 = vmatmul.bf16.gmra.mxu2 %v2368_v40  ;;  %v3024_v40 = vld [vmem:[%s4448_s0 + $0x118] sm:$0xf0] }
 0x145   :  { %v4061_v46 = vadd.f32 %v1709_v33, %v1636_v45 }
 0x146   :  { %v1489_v37 = vpop.f32.mrf.mxu1  ;;  %v1711_v17 = vpop.f32.mrf.mxu0 }
 0x147   :  { %v1640_v52 = vpop.f32.mrf.mxu3  ;;  %v1490_v57 = vadd.f32 %v1489_v37, %v3793_v23  ;;  %v1571_v58 = vpop.f32.mrf.mxu2  ;;  %v3019_v23 = vld [vmem:[%s4448_s0 + $0xf4] sm:$0xf] }
 0x149   :  { %v1564_v59 = vadd.f32 %v1563_v49, %v1490_v57  ;;  %v2369_v49 = vld [vmem:[%s4448_s0 + $0x114] sm:$0xf0] }
 0x14a   :  { %v2372_v48 = vor.u32 %v3019_v23, %v2369_v49 }
 0x14b   :  { %v1638_v5 = vadd.f32 %v1637_v28, %v1564_v59 }
 0x14d   :  { %v4082_v13 = vadd.f32 %v1711_v17, %v1638_v5  ;;  %v2376_v17 = vor.u32 %v3024_v40, %v2375_v30  ;;  %v2475_v30 = vld [vmem:[%s4448_s0 + $0x1c8] sm:$0xf]  ;;  %v3050_v40 = vld [vmem:[%s4448_s0 + $0x1e8] sm:$0xf0] }
 0x14e   :  { %v1492_v54 = vpop.f32.mrf.mxu1  ;;  %v1714_v55 = vpop.f32.mrf.mxu0 }
 0x14f   :  { %v1642_v9 = vpop.f32.mrf.mxu3  ;;  %v1493_v20 = vadd.f32 %v1492_v54, %v3820_v38  ;;  %v1573_v0 = vpop.f32.mrf.mxu2  ;;  %v3018_v38 = vld [vmem:[%s4448_s0 + $0xec] sm:$0xf] }
 0x151   :  { %v1567_v22 = vadd.f32 %v1566_v14, %v1493_v20  ;;  %1762 = vmatmul.bf16.gmra.mxu1 %v2328_v11  ;;  %1984 = vmatmul.bf16.gmra.mxu0 %v2340_v31  ;;  %v2361_v14 = vld [vmem:[%s4448_s0 + $0x10c] sm:$0xf0]  ;;  %v2440_v11 = vor.u32 %v3041_v3, %v2439_v56 }
 0x152   :  { %v2364_v37 = vor.u32 %v3018_v38, %v2361_v14 }
 0x153   :  { %v1641_v63 = vadd.f32 %v1640_v52, %v1567_v22  ;;  %v2411_v22 = vld [vmem:[%s4448_s0 + $0x140] sm:$0xf] }
 0x154   :  { %1915 = vmatmul.bf16.gmra.mxu3 %v2372_v48  ;;  %1846 = vmatmul.bf16.gmra.mxu2 %v2404_v27  ;;  %v3033_v27 = vld [vmem:[%s4448_s0 + $0x160] sm:$0xf0] }
 0x155   :  { %v4091_v28 = vadd.f32 %v1714_v55, %v1641_v63 }
 0x156   :  { %v1494_v33 = vpop.f32.mrf.mxu1  ;;  %v1716_v7 = vpop.f32.mrf.mxu0 }
 0x157   :  { %v1645_v29 = vpop.f32.mrf.mxu3  ;;  %v1495_v24 = vadd.f32 %v1494_v33, %v3830_v50  ;;  %v1576_v34 = vpop.f32.mrf.mxu2  ;;  %v3028_v50 = vld [vmem:[%s4448_s0 + $0x13c] sm:$0xf] }
 0x159   :  { %v1569_v36 = vadd.f32 %v1568_v41, %v1495_v24  ;;  %v2405_v41 = vld [vmem:[%s4448_s0 + $0x15c] sm:$0xf0] }
 0x15a   :  { %v2408_v19 = vor.u32 %v3028_v50, %v2405_v41 }
 0x15b   :  { %v1643_v45 = vadd.f32 %v1642_v9, %v1569_v36 }
 0x15d   :  { %v4112_v52 = vadd.f32 %v1716_v7, %v1643_v45  ;;  %v2412_v7 = vor.u32 %v3033_v27, %v2411_v22  ;;  %v2511_v22 = vld [vmem:[%s4448_s0 + $0x210] sm:$0xf]  ;;  %v3059_v27 = vld [vmem:[%s4448_s0 + $0x230] sm:$0xf0] }
 0x15e   :  { %v1497_v59 = vpop.f32.mrf.mxu1  ;;  %v1719_v12 = vpop.f32.mrf.mxu0 }
 0x15f   :  { %v1647_v57 = vpop.f32.mrf.mxu3  ;;  %v1498_v5 = vadd.f32 %v1497_v59, %v3703_v44  ;;  %v1578_v23 = vpop.f32.mrf.mxu2  ;;  %v3027_v44 = vld [vmem:[%s4448_s0 + $0x134] sm:$0xf] }
 0x161   :  { %v1572_v49 = vadd.f32 %v1571_v58, %v1498_v5  ;;  %1767 = vmatmul.bf16.gmra.mxu1 %v2364_v37  ;;  %1989 = vmatmul.bf16.gmra.mxu0 %v2376_v17  ;;  %v2397_v58 = vld [vmem:[%s4448_s0 + $0x154] sm:$0xf0]  ;;  %v2476_v37 = vor.u32 %v3050_v40, %v2475_v30 }
 0x162   :  { %v2400_v33 = vor.u32 %v3027_v44, %v2397_v58 }
 0x163   :  { %v1646_v31 = vadd.f32 %v1645_v29, %v1572_v49  ;;  %v2447_v49 = vld [vmem:[%s4448_s0 + $0x188] sm:$0xf] }
 0x164   :  { %1920 = vmatmul.bf16.gmra.mxu3 %v2408_v19  ;;  %1851 = vmatmul.bf16.gmra.mxu2 %v2440_v11  ;;  %v3042_v11 = vld [vmem:[%s4448_s0 + $0x1a8] sm:$0xf0] }
 0x165   :  { %v4121_v9 = vadd.f32 %v1719_v12, %v1646_v31 }
 0x166   :  { %v1499_v55 = vpop.f32.mrf.mxu1  ;;  %v1721_v48 = vpop.f32.mrf.mxu0 }
 0x167   :  { %v1650_v54 = vpop.f32.mrf.mxu3  ;;  %v1500_v4 = vadd.f32 %v1499_v55, %v3738_v60  ;;  %v1581_v51 = vpop.f32.mrf.mxu2  ;;  %v3037_v60 = vld [vmem:[%s4448_s0 + $0x184] sm:$0xf] }
 0x169   :  { %v1574_v20 = vadd.f32 %v1573_v0, %v1500_v4  ;;  %v2441_v0 = vld [vmem:[%s4448_s0 + $0x1a4] sm:$0xf0] }
 0x16a   :  { %v2444_v14 = vor.u32 %v3037_v60, %v2441_v0 }
 0x16b   :  { %v1648_v63 = vadd.f32 %v1647_v57, %v1574_v20 }
 0x16d   :  { %v4142_v29 = vadd.f32 %v1721_v48, %v1648_v63  ;;  %v2448_v48 = vor.u32 %v3042_v11, %v2447_v49  ;;  %v2547_v49 = vld [vmem:[%s4448_s0 + $0x258] sm:$0xf]  ;;  %v3068_v11 = vld [vmem:[%s4448_s0 + $0x278] sm:$0xf0] }
 0x16e   :  { %v1502_v36 = vpop.f32.mrf.mxu1  ;;  %v1724_v38 = vpop.f32.mrf.mxu0 }
 0x16f   :  { %v1652_v24 = vpop.f32.mrf.mxu3  ;;  %v1503_v45 = vadd.f32 %v1502_v36, %v3746_v1  ;;  %v1583_v50 = vpop.f32.mrf.mxu2  ;;  %v3036_v1 = vld [vmem:[%s4448_s0 + $0x17c] sm:$0xf] }
 0x171   :  { %v1577_v41 = vadd.f32 %v1576_v34, %v1503_v45  ;;  %1772 = vmatmul.bf16.gmra.mxu1 %v2400_v33  ;;  %1994 = vmatmul.bf16.gmra.mxu0 %v2412_v7  ;;  %v2433_v34 = vld [vmem:[%s4448_s0 + $0x19c] sm:$0xf0]  ;;  %v2512_v33 = vor.u32 %v3059_v27, %v2511_v22 }
 0x172   :  { %v2436_v55 = vor.u32 %v3036_v1, %v2433_v34 }
 0x173   :  { %v1651_v17 = vadd.f32 %v1650_v54, %v1577_v41  ;;  %v2483_v41 = vld [vmem:[%s4448_s0 + $0x1d0] sm:$0xf] }
 0x174   :  { %1925 = vmatmul.bf16.gmra.mxu3 %v2444_v14  ;;  %1856 = vmatmul.bf16.gmra.mxu2 %v2476_v37  ;;  %v3051_v37 = vld [vmem:[%s4448_s0 + $0x1f0] sm:$0xf0] }
 0x175   :  { %v4151_v57 = vadd.f32 %v1724_v38, %v1651_v17 }
 0x176   :  { %v1504_v12 = vpop.f32.mrf.mxu1  ;;  %v1726_v19 = vpop.f32.mrf.mxu0 }
 0x177   :  { %v1655_v59 = vpop.f32.mrf.mxu3  ;;  %v1505_v56 = vadd.f32 %v1504_v12, %v3778_v16  ;;  %v1586_v3 = vpop.f32.mrf.mxu2  ;;  %v3046_v16 = vld [vmem:[%s4448_s0 + $0x1cc] sm:$0xf] }
 0x179   :  { %v1579_v5 = vadd.f32 %v1578_v23, %v1505_v56  ;;  %v2477_v23 = vld [vmem:[%s4448_s0 + $0x1ec] sm:$0xf0] }
 0x17a   :  { %v2480_v58 = vor.u32 %v3046_v16, %v2477_v23 }
 0x17b   :  { %v1653_v31 = vadd.f32 %v1652_v24, %v1579_v5 }
 0x17d   :  { %v4172_v54 = vadd.f32 %v1726_v19, %v1653_v31  ;;  %v2484_v19 = vor.u32 %v3051_v37, %v2483_v41  ;;  %v2583_v41 = vld [vmem:[%s4448_s0 + $0x2a0] sm:$0xf]  ;;  %v3077_v37 = vld [vmem:[%s4448_s0 + $0x2c0] sm:$0xf0] }
 0x17e   :  { %v1507_v20 = vpop.f32.mrf.mxu1  ;;  %v1729_v44 = vpop.f32.mrf.mxu0 }
 0x17f   :  { %v1657_v4 = vpop.f32.mrf.mxu3  ;;  %v1508_v63 = vadd.f32 %v1507_v20, %v3691_v39  ;;  %v1588_v60 = vpop.f32.mrf.mxu2  ;;  %v3045_v39 = vld [vmem:[%s4448_s0 + $0x1c4] sm:$0xf] }
 0x181   :  { %v1582_v0 = vadd.f32 %v1581_v51, %v1508_v63  ;;  %1777 = vmatmul.bf16.gmra.mxu1 %v2436_v55  ;;  %1999 = vmatmul.bf16.gmra.mxu0 %v2448_v48  ;;  %v2469_v51 = vld [vmem:[%s4448_s0 + $0x1e4] sm:$0xf0]  ;;  %v2548_v55 = vor.u32 %v3068_v11, %v2547_v49 }
 0x182   :  { %v2472_v12 = vor.u32 %v3045_v39, %v2469_v51 }
 0x183   :  { %v1656_v7 = vadd.f32 %v1655_v59, %v1582_v0  ;;  %v2519_v0 = vld [vmem:[%s4448_s0 + $0x218] sm:$0xf] }
 0x184   :  { %1930 = vmatmul.bf16.gmra.mxu3 %v2480_v58  ;;  %1861 = vmatmul.bf16.gmra.mxu2 %v2512_v33  ;;  %v3060_v33 = vld [vmem:[%s4448_s0 + $0x238] sm:$0xf0] }
 0x185   :  { %v4181_v24 = vadd.f32 %v1729_v44, %v1656_v7 }
 0x186   :  { %v1509_v38 = vpop.f32.mrf.mxu1  ;;  %v1731_v14 = vpop.f32.mrf.mxu0 }
 0x187   :  { %v1660_v36 = vpop.f32.mrf.mxu3  ;;  %v1510_v30 = vadd.f32 %v1509_v38, %v3723_v53  ;;  %v1591_v40 = vpop.f32.mrf.mxu2  ;;  %v3055_v53 = vld [vmem:[%s4448_s0 + $0x214] sm:$0xf] }
 0x189   :  { %v1584_v45 = vadd.f32 %v1583_v50, %v1510_v30  ;;  %v2513_v50 = vld [vmem:[%s4448_s0 + $0x234] sm:$0xf0] }
 0x18a   :  { %v2516_v34 = vor.u32 %v3055_v53, %v2513_v50 }
 0x18b   :  { %v1658_v17 = vadd.f32 %v1657_v4, %v1584_v45 }
 0x18d   :  { %v4202_v59 = vadd.f32 %v1731_v14, %v1658_v17  ;;  %v2520_v14 = vor.u32 %v3060_v33, %v2519_v0  ;;  %v2619_v0 = vld [vmem:[%s4448_s0 + $0x2e8] sm:$0xf]  ;;  %v3086_v33 = vld [vmem:[%s4448_s0 + $0x308] sm:$0xf0] }
 0x18e   :  { %v1512_v5 = vpop.f32.mrf.mxu1  ;;  %v1734_v1 = vpop.f32.mrf.mxu0 }
 0x18f   :  { %v1662_v56 = vpop.f32.mrf.mxu3  ;;  %v1513_v31 = vadd.f32 %v1512_v5, %v3740_v62  ;;  %v1593_v16 = vpop.f32.mrf.mxu2  ;;  %v3054_v62 = vld [vmem:[%s4448_s0 + $0x20c] sm:$0xf] }
 0x191   :  { %v1587_v23 = vadd.f32 %v1586_v3, %v1513_v31  ;;  %1782 = vmatmul.bf16.gmra.mxu1 %v2472_v12  ;;  %2004 = vmatmul.bf16.gmra.mxu0 %v2484_v19  ;;  %v2505_v3 = vld [vmem:[%s4448_s0 + $0x22c] sm:$0xf0]  ;;  %v2584_v12 = vor.u32 %v3077_v37, %v2583_v41 }
 0x192   :  { %v2508_v38 = vor.u32 %v3054_v62, %v2505_v3 }
 0x193   :  { %v1661_v48 = vadd.f32 %v1660_v36, %v1587_v23  ;;  %v2555_v23 = vld [vmem:[%s4448_s0 + $0x260] sm:$0xf] }
 0x194   :  { %1935 = vmatmul.bf16.gmra.mxu3 %v2516_v34  ;;  %1866 = vmatmul.bf16.gmra.mxu2 %v2548_v55  ;;  %v3069_v55 = vld [vmem:[%s4448_s0 + $0x280] sm:$0xf0] }
 0x195   :  { %v4211_v4 = vadd.f32 %v1734_v1, %v1661_v48 }
 0x196   :  { %v1514_v44 = vpop.f32.mrf.mxu1  ;;  %v1736_v58 = vpop.f32.mrf.mxu0 }
 0x197   :  { %v1665_v20 = vpop.f32.mrf.mxu3  ;;  %v1515_v22 = vadd.f32 %v1514_v44, %v3766_v10  ;;  %v1827_v27 = vpop.f32.mrf.mxu2  ;;  %v3064_v10 = vld [vmem:[%s4448_s0 + $0x25c] sm:$0xf] }
 0x199   :  { %v1589_v63 = vadd.f32 %v1588_v60, %v1515_v22  ;;  %v2549_v60 = vld [vmem:[%s4448_s0 + $0x27c] sm:$0xf0] }
 0x19a   :  { %v2552_v51 = vor.u32 %v3064_v10, %v2549_v60 }
 0x19b   :  { %v1663_v7 = vadd.f32 %v1662_v56, %v1589_v63 }
 0x19d   :  { %v4232_v36 = vadd.f32 %v1736_v58, %v1663_v7  ;;  %v2556_v58 = vor.u32 %v3069_v55, %v2555_v23 }
 0x19e   :  { %v1517_v45 = vpop.f32.mrf.mxu1  ;;  %v1739_v39 = vpop.f32.mrf.mxu0 }
 0x19f   :  { %v1667_v30 = vpop.f32.mrf.mxu3  ;;  %v1518_v17 = vadd.f32 %v1517_v45, %v3780_v18  ;;  %v1829_v53 = vpop.f32.mrf.mxu2  ;;  %v3063_v18 = vld [vmem:[%s4448_s0 + $0x254] sm:$0xf] }
 0x1a1   :  { %v1592_v50 = vadd.f32 %v1591_v40, %v1518_v17  ;;  %1787 = vmatmul.bf16.gmra.mxu1 %v2508_v38  ;;  %2009 = vmatmul.bf16.gmra.mxu0 %v2520_v14  ;;  %v2541_v40 = vld [vmem:[%s4448_s0 + $0x274] sm:$0xf0]  ;;  %v2620_v38 = vor.u32 %v3086_v33, %v2619_v0  ;;  %v3072_v17 = vld [vmem:[%s4448_s0 + $0x29c] sm:$0xf] }
 0x1a2   :  { %v2544_v44 = vor.u32 %v3063_v18, %v2541_v40 }
 0x1a3   :  { %v1666_v19 = vadd.f32 %v1665_v20, %v1592_v50  ;;  %v2577_v50 = vld [vmem:[%s4448_s0 + $0x2bc] sm:$0xf0] }
 0x1a4   :  { %1940 = vmatmul.bf16.gmra.mxu3 %v2552_v51  ;;  %1871 = vmatmul.bf16.gmra.mxu2 %v2584_v12  ;;  %v3078_v12 = vld [vmem:[%s4448_s0 + $0x2c8] sm:$0xf0] }
 0x1a5   :  { %v4241_v56 = vadd.f32 %v1739_v39, %v1666_v19 }
 0x1a6   :  { %v1519_v1 = vpop.f32.mrf.mxu1  ;;  %v1741_v34 = vpop.f32.mrf.mxu0 }
 0x1a7   :  { %v1901_v5 = vpop.f32.mrf.mxu3  ;;  %v1520_v49 = vadd.f32 %v1519_v1, %v3813_v35  ;;  %v1832_v11 = vpop.f32.mrf.mxu2  ;;  %v3073_v35 = vld [vmem:[%s4448_s0 + $0x2a4] sm:$0xf] }
 0x1a9   :  { %v1594_v31 = vadd.f32 %v1593_v16, %v1520_v49  ;;  %v2585_v16 = vld [vmem:[%s4448_s0 + $0x2c4] sm:$0xf0]  ;;  %v2580_v49 = vor.u32 %v3072_v17, %v2577_v50 }
 0x1aa   :  { %v2588_v3 = vor.u32 %v3073_v35, %v2585_v16  ;;  %v3095_v35 = vld [vmem:[%s4448_s0 + $0x350] sm:$0xf0] }
 0x1ab   :  { %v1668_v48 = vadd.f32 %v1667_v30, %v1594_v31 }
 0x1ad   :  { %v4262_v20 = vadd.f32 %v1741_v34, %v1668_v48  ;;  %v2655_v48 = vld [vmem:[%s4448_s0 + $0x330] sm:$0xf] }
 0x1ae   :  { %v1753_v63 = vpop.f32.mrf.mxu1  ;;  %v1975_v62 = vpop.f32.mrf.mxu0 }
 0x1af   :  { %v1903_v22 = vpop.f32.mrf.mxu3  ;;  %v1754_v7 = vadd.f32 %v1753_v63, %v3866_v26  ;;  %v1834_v10 = vpop.f32.mrf.mxu2  ;;  %v4277_v26 = vld [vmem:[%s4449_s2] ss:$0 sm:$0xff] }
 0x1b1   :  { %v1828_v60 = vadd.f32 %v1827_v27, %v1754_v7  ;;  %1792 = vmatmul.bf16.gmra.mxu1 %v2544_v44  ;;  %2014 = vmatmul.bf16.gmra.mxu0 %v2556_v58 }
 0x1b3   :  { %v1902_v14 = vadd.f32 %v1901_v5, %v1828_v60  ;;  %v2621_v5 = vld [vmem:[%s4448_s0 + $0x30c] sm:$0xf0] }
 0x1b4   :  { %1945 = vmatmul.bf16.gmra.mxu3 %v2588_v3  ;;  %1876 = vmatmul.bf16.gmra.mxu2 %v2620_v38  ;;  %v2656_v3 = vor.u32 %v3095_v35, %v2655_v48 }
 0x1b5   :  { %v1976_v37 = vadd.f32 %v1975_v62, %v1902_v14 }
 0x1b6   :  { %v1755_v45 = vpop.f32.mrf.mxu1  ;;  %v1977_v39 = vpop.f32.mrf.mxu0 }
 0x1b7   :  { %v1906_v30 = vpop.f32.mrf.mxu3  ;;  %v1756_v51 = vadd.f32 %v1755_v45, %v3890_v47  ;;  %v4272_v41 = vpop.f32.mrf.mxu2  ;;  %v2591_v47 = vld [vmem:[%s4448_s0 + $0x2a8] sm:$0xf]  ;;  %v2125_v1 = vadd.f32 %v4277_v26, %v1976_v37  ;;  %v3087_v37 = vld [vmem:[%s4448_s0 + $0x310] sm:$0xf0] }
 0x1b8   :  { %v2592_v31 = vor.u32 %v3078_v12, %v2591_v47 }
 0x1b9   :  { %v1830_v27 = vadd.f32 %v1829_v53, %v1756_v51  ;;  %v3082_v53 = vld [vmem:[%s4448_s0 + $0x2ec] sm:$0xf]  ;;  %v2613_v51 = vld [vmem:[%s4448_s0 + $0x304] sm:$0xf0] }
 0x1ba   :  { %v2624_v55 = vor.u32 %v3082_v53, %v2621_v5 }
 0x1bb   :  { %v1904_v19 = vadd.f32 %v1903_v22, %v1830_v27  ;;  %v2151_v22 = vmax.f32 %v2125_v1, 0.0  ;;  %v2657_v27 = vld [vmem:[%s4448_s0 + $0x354] sm:$0xf0] }
 0x1bd   :  { %v1978_v34 = vadd.f32 %v1977_v39, %v1904_v19 }
 0x1be   :  { %v1758_v40 = vpop.f32.mrf.mxu1  ;;  %v1980_v23 = vpop.f32.mrf.mxu0 }
 0x1bf   :  { %v1908_v18 = vpop.f32.mrf.mxu3  ;;  %v2126_v16 = vadd.f32 %v4277_v26, %v1978_v34  ;;  %v1759_v44 = vadd.f32 %v1758_v40, %v3899_v8  ;;  %v1839_v58 = vpop.f32.mrf.mxu2  ;;  %v2691_v34 = vld [vmem:[%s4448_s0 + $0x378] sm:$0xf] }
 0x1c1   :  { %v2152_v63 = vmax.f32 %v2126_v16, 0.0  ;;  %v1833_v62 = vadd.f32 %v1832_v11, %v1759_v44  ;;  %1797 = vmatmul.bf16.gmra.mxu1 %v2580_v49  ;;  %2019 = vmatmul.bf16.gmra.mxu0 %v2592_v31  ;;  %v3081_v11 = vld [vmem:[%s4448_s0 + $0x2e4] sm:$0xf]  ;;  %v3104_v49 = vld [vmem:[%s4448_s0 + $0x398] sm:$0xf0] }
 0x1c2   :  { %v2616_v47 = vor.u32 %v3081_v11, %v2613_v51  ;;  %v2692_v35 = vor.u32 %v3104_v49, %v2691_v34 }
 0x1c3   :  { %v3181_v0 = vpack.c.bf16 %v2152_v63, %v2151_v22  ;;  %v1907_v33 = vadd.f32 %v1906_v30, %v1833_v62  ;;  %v2627_v30 = vld [vmem:[%s4448_s0 + $0x2f0] sm:$0xf] }
 0x1c4   :  { %1950 = vmatmul.bf16.gmra.mxu3 %v2624_v55  ;;  %1881 = vmatmul.bf16.gmra.mxu2 %v2656_v3  ;;  %v2628_v12 = vor.u32 %v3087_v37, %v2627_v30 }
 0x1c5   :  { %3182 = vst [vmem:[%s4450_s3] sm:$0xff] %v3181_v0   ;;  %v1981_v45 = vadd.f32 %v1980_v23, %v1907_v33 }
 0x1c6   :  { %v1760_v60 = vpop.f32.mrf.mxu1  ;;  %v1982_v38 = vpop.f32.mrf.mxu0 }
 0x1c7   :  { %v1911_v7 = vpop.f32.mrf.mxu3  ;;  %v1761_v8 = vadd.f32 %v1760_v60, %v3926_v32  ;;  %v1842_v14 = vpop.f32.mrf.mxu2  ;;  %v2127_v17 = vadd.f32 %v4277_v26, %v1981_v45  ;;  %v2649_v60 = vld [vmem:[%s4448_s0 + $0x34c] sm:$0xf0] }
 0x1c9   :  { %v1835_v39 = vadd.f32 %v1834_v10, %v1761_v8  ;;  %v3091_v10 = vld [vmem:[%s4448_s0 + $0x334] sm:$0xf]  ;;  %v2153_v23 = vmax.f32 %v2127_v17, 0.0  ;;  %v2693_v8 = vld [vmem:[%s4448_s0 + $0x39c] sm:$0xf0] }
 0x1ca   :  { %v2660_v1 = vor.u32 %v3091_v10, %v2657_v27 }
 0x1cb   :  { %v1909_v32 = vadd.f32 %v1908_v18, %v1835_v39 }
 0x1cd   :  { %v1983_v50 = vadd.f32 %v1982_v38, %v1909_v32  ;;  %v3096_v38 = vld [vmem:[%s4448_s0 + $0x358] sm:$0xf0] }
 0x1ce   :  { %v1763_v53 = vpop.f32.mrf.mxu1  ;;  %v1985_v5 = vpop.f32.mrf.mxu0 }
 0x1cf   :  { %v1913_v19 = vpop.f32.mrf.mxu3  ;;  %v2128_v31 = vadd.f32 %v4277_v26, %v1983_v50  ;;  %v1764_v18 = vadd.f32 %v1763_v53, %v3941_v61  ;;  %v1844_v40 = vpop.f32.mrf.mxu2 }
 0x1d1   :  { %v2154_v55 = vmax.f32 %v2128_v31, 0.0  ;;  %v1838_v48 = vadd.f32 %v4272_v41, %v1764_v18  ;;  %1802 = vmatmul.bf16.gmra.mxu1 %v2616_v47  ;;  %2024 = vmatmul.bf16.gmra.mxu0 %v2628_v12  ;;  %v3090_v41 = vld [vmem:[%s4448_s0 + $0x32c] sm:$0xf] }
 0x1d2   :  { %v2652_v11 = vor.u32 %v3090_v41, %v2649_v60 }
 0x1d3   :  { %v3186_v16 = vpack.c.bf16 %v2154_v55, %v2153_v23  ;;  %v1912_v44 = vadd.f32 %v1911_v7, %v1838_v48  ;;  %v2663_v7 = vld [vmem:[%s4448_s0 + $0x338] sm:$0xf]  ;;  %v2699_v48 = vld [vmem:[%s4448_s0 + $0x380] sm:$0xf] }
 0x1d4   :  { %1955 = vmatmul.bf16.gmra.mxu3 %v2660_v1  ;;  %1886 = vmatmul.bf16.gmra.mxu2 %v2692_v35  ;;  %v2664_v51 = vor.u32 %v3096_v38, %v2663_v7  ;;  %v2685_v55 = vld [vmem:[%s4448_s0 + $0x394] sm:$0xf0]  ;;  %v3105_v35 = vld [vmem:[%s4448_s0 + $0x3a0] sm:$0xf0] }
 0x1d5   :  { %3243 = vst [vmem:[%s4450_s3 + $0x8] sm:$0xff] %v3186_v16   ;;  %v1986_v0 = vadd.f32 %v1985_v5, %v1912_v44 }
 0x1d6   :  { %v1765_v63 = vpop.f32.mrf.mxu1  ;;  %v1987_v62 = vpop.f32.mrf.mxu0 }
 0x1d7   :  { %v1916_v22 = vpop.f32.mrf.mxu3  ;;  %v1766_v61 = vadd.f32 %v1765_v63, %v3962_v15  ;;  %v1847_v3 = vpop.f32.mrf.mxu2  ;;  %v2129_v45 = vadd.f32 %v4277_v26, %v1986_v0 }
 0x1d9   :  { %v1840_v33 = vadd.f32 %v1839_v58, %v1766_v61  ;;  %v3100_v58 = vld [vmem:[%s4448_s0 + $0x37c] sm:$0xf]  ;;  %v2155_v47 = vmax.f32 %v2129_v45, 0.0 }
 0x1da   :  { %v2696_v10 = vor.u32 %v3100_v58, %v2693_v8 }
 0x1db   :  { %v1914_v15 = vadd.f32 %v1913_v19, %v1840_v33 }
 0x1dd   :  { %v1988_v39 = vadd.f32 %v1987_v62, %v1914_v15 }
 0x1de   :  { %v1768_v37 = vpop.f32.mrf.mxu1  ;;  %v1990_v32 = vpop.f32.mrf.mxu0 }
 0x1df   :  { %v1918_v30 = vpop.f32.mrf.mxu3  ;;  %v2130_v27 = vadd.f32 %v4277_v26, %v1988_v39  ;;  %v1769_v17 = vadd.f32 %v1768_v37, %v3971_v42  ;;  %v1849_v50 = vpop.f32.mrf.mxu2 }
 0x1e1   :  { %v2156_v12 = vmax.f32 %v2130_v27, 0.0  ;;  %v1843_v19 = vadd.f32 %v1842_v14, %v1769_v17  ;;  %1807 = vmatmul.bf16.gmra.mxu1 %v2652_v11  ;;  %2029 = vmatmul.bf16.gmra.mxu0 %v2664_v51  ;;  %v3099_v14 = vld [vmem:[%s4448_s0 + $0x374] sm:$0xf] }
 0x1e2   :  { %v2688_v44 = vor.u32 %v3099_v14, %v2685_v55 }
 0x1e3   :  { %v3191_v53 = vpack.c.bf16 %v2156_v12, %v2155_v47  ;;  %v1917_v5 = vadd.f32 %v1916_v22, %v1843_v19  ;;  %v2700_v22 = vor.u32 %v3105_v35, %v2699_v48 }
 0x1e4   :  { %1960 = vmatmul.bf16.gmra.mxu3 %v2696_v10 }
 0x1e5   :  { %3244 = vst [vmem:[%s4450_s3 + $0x10] sm:$0xff] %v3191_v53   ;;  %v1991_v42 = vadd.f32 %v1990_v32, %v1917_v5 }
 0x1e6   :  { %v1770_v34 = vpop.f32.mrf.mxu1  ;;  %v1992_v49 = vpop.f32.mrf.mxu0 }
 0x1e7   :  { %v1921_v1 = vpop.f32.mrf.mxu3  ;;  %v1771_v31 = vadd.f32 %v1770_v34, %v3992_v2  ;;  %v1852_v18 = vpop.f32.mrf.mxu2  ;;  %v2131_v16 = vadd.f32 %v4277_v26, %v1991_v42 }
 0x1e9   :  { %v1845_v23 = vadd.f32 %v1844_v40, %v1771_v31  ;;  %v2157_v60 = vmax.f32 %v2131_v16, 0.0 }
 0x1eb   :  { %v1919_v2 = vadd.f32 %v1918_v30, %v1845_v23 }
 0x1ed   :  { %v1993_v40 = vadd.f32 %v1992_v49, %v1919_v2 }
 0x1ee   :  { %v1773_v62 = vpop.f32.mrf.mxu1  ;;  %v1995_v61 = vpop.f32.mrf.mxu0 }
 0x1ef   :  { %v1923_v63 = vpop.f32.mrf.mxu3  ;;  %v2132_v0 = vadd.f32 %v4277_v26, %v1993_v40  ;;  %v1774_v33 = vadd.f32 %v1773_v62, %v4001_v21  ;;  %v1854_v41 = vpop.f32.mrf.mxu2 }
 0x1f1   :  { %v2158_v7 = vmax.f32 %v2132_v0, 0.0  ;;  %v1848_v38 = vadd.f32 %v1847_v3, %v1774_v33  ;;  %1812 = vmatmul.bf16.gmra.mxu1 %v2688_v44  ;;  %2034 = vmatmul.bf16.gmra.mxu0 %v2700_v22 }
 0x1f3   :  { %v3196_v15 = vpack.c.bf16 %v2158_v7, %v2157_v60  ;;  %v1922_v58 = vadd.f32 %v1921_v1, %v1848_v38 }
 0x1f5   :  { %3245 = vst [vmem:[%s4450_s3 + $0x18] sm:$0xff] %v3196_v15   ;;  %v1996_v30 = vadd.f32 %v1995_v61, %v1922_v58 }
 0x1f6   :  { %v1775_v45 = vpop.f32.mrf.mxu1  ;;  %v1997_v39 = vpop.f32.mrf.mxu0 }
 0x1f7   :  { %v1926_v8 = vpop.f32.mrf.mxu3  ;;  %v1776_v11 = vadd.f32 %v1775_v45, %v4022_v43  ;;  %v1857_v51 = vpop.f32.mrf.mxu2  ;;  %v2133_v32 = vadd.f32 %v4277_v26, %v1996_v30 }
 0x1f9   :  { %v1850_v21 = vadd.f32 %v1849_v50, %v1776_v11  ;;  %v2159_v53 = vmax.f32 %v2133_v32, 0.0 }
 0x1fb   :  { %v1924_v37 = vadd.f32 %v1923_v63, %v1850_v21 }
 0x1fd   :  { %v1998_v3 = vadd.f32 %v1997_v39, %v1924_v37 }
 0x1fe   :  { %v1778_v27 = vpop.f32.mrf.mxu1  ;;  %v2000_v17 = vpop.f32.mrf.mxu0 }
 0x1ff   :  { %v1928_v10 = vpop.f32.mrf.mxu3  ;;  %v2134_v47 = vadd.f32 %v4277_v26, %v1998_v3  ;;  %v1779_v12 = vadd.f32 %v1778_v27, %v4031_v6  ;;  %v1859_v19 = vpop.f32.mrf.mxu2 }
 0x201   :  { %v2160_v5 = vmax.f32 %v2134_v47, 0.0  ;;  %v1853_v1 = vadd.f32 %v1852_v18, %v1779_v12 }
 0x203   :  { %v3201_v34 = vpack.c.bf16 %v2160_v5, %v2159_v53  ;;  %v1927_v43 = vadd.f32 %v1926_v8, %v1853_v1 }
 0x205   :  { %3246 = vst [vmem:[%s4450_s3 + $0x20] sm:$0xff] %v3201_v34   ;;  %v2001_v23 = vadd.f32 %v2000_v17, %v1927_v43 }
 0x206   :  { %v1780_v49 = vpop.f32.mrf.mxu1  ;;  %v2002_v31 = vpop.f32.mrf.mxu0 }
 0x207   :  { %v1931_v50 = vpop.f32.mrf.mxu3  ;;  %v1781_v42 = vadd.f32 %v1780_v49, %v4052_v25  ;;  %v1862_v55 = vpop.f32.mrf.mxu2  ;;  %v2135_v6 = vadd.f32 %v4277_v26, %v2001_v23 }
 0x209   :  { %v1855_v14 = vadd.f32 %v1854_v41, %v1781_v42  ;;  %v2161_v22 = vmax.f32 %v2135_v6, 0.0 }
 0x20b   :  { %v1929_v48 = vadd.f32 %v1928_v10, %v1855_v14 }
 0x20d   :  { %v2003_v35 = vadd.f32 %v2002_v31, %v1929_v48 }
 0x20e   :  { %v1783_v18 = vpop.f32.mrf.mxu1  ;;  %v2005_v16 = vpop.f32.mrf.mxu0 }
 0x20f   :  { %v1933_v2 = vpop.f32.mrf.mxu3  ;;  %v2136_v40 = vadd.f32 %v4277_v26, %v2003_v35  ;;  %v1784_v44 = vadd.f32 %v1783_v18, %v4061_v46  ;;  %v1864_v0 = vpop.f32.mrf.mxu2 }
 0x211   :  { %v2162_v63 = vmax.f32 %v2136_v40, 0.0  ;;  %v1858_v62 = vadd.f32 %v1857_v51, %v1784_v44 }
 0x213   :  { %v3206_v61 = vpack.c.bf16 %v2162_v63, %v2161_v22  ;;  %v1932_v25 = vadd.f32 %v1931_v50, %v1858_v62 }
 0x215   :  { %3247 = vst [vmem:[%s4450_s3 + $0x28] sm:$0xff] %v3206_v61   ;;  %v2006_v38 = vadd.f32 %v2005_v16, %v1932_v25 }
 0x216   :  { %v1785_v41 = vpop.f32.mrf.mxu1  ;;  %v2007_v60 = vpop.f32.mrf.mxu0 }
 0x217   :  { %v1936_v33 = vpop.f32.mrf.mxu3  ;;  %v1786_v7 = vadd.f32 %v1785_v41, %v4082_v13  ;;  %v2137_v46 = vadd.f32 %v4277_v26, %v2006_v38  ;;  %v1867_v39 = vpop.f32.mrf.mxu2 }
 0x219   :  { %v1860_v15 = vadd.f32 %v1859_v19, %v1786_v7  ;;  %v2163_v37 = vmax.f32 %v2137_v46, 0.0 }
 0x21b   :  { %v1934_v58 = vadd.f32 %v1933_v2, %v1860_v15 }
 0x21d   :  { %v2008_v8 = vadd.f32 %v2007_v60, %v1934_v58 }
 0x21e   :  { %v1788_v11 = vpop.f32.mrf.mxu1  ;;  %v2010_v51 = vpop.f32.mrf.mxu0 }
 0x21f   :  { %v1938_v45 = vpop.f32.mrf.mxu3  ;;  %v2138_v30 = vadd.f32 %v4277_v26, %v2008_v8  ;;  %v1789_v21 = vadd.f32 %v1788_v11, %v4091_v28  ;;  %v1869_v19 = vpop.f32.mrf.mxu2 }
 0x221   :  { %v2164_v32 = vmax.f32 %v2138_v30, 0.0  ;;  %v1863_v3 = vadd.f32 %v1862_v55, %v1789_v21 }
 0x223   :  { %v3211_v10 = vpack.c.bf16 %v2164_v32, %v2163_v37  ;;  %v1937_v13 = vadd.f32 %v1936_v33, %v1863_v3 }
 0x225   :  { %3248 = vst [vmem:[%s4450_s3 + $0x30] sm:$0xff] %v3211_v10   ;;  %v2011_v53 = vadd.f32 %v2010_v51, %v1937_v13 }
 0x226   :  { %v1790_v17 = vpop.f32.mrf.mxu1  ;;  %v2012_v47 = vpop.f32.mrf.mxu0 }
 0x227   :  { %v1941_v27 = vpop.f32.mrf.mxu3  ;;  %v1791_v12 = vadd.f32 %v1790_v17, %v4112_v52  ;;  %v2139_v28 = vadd.f32 %v4277_v26, %v2011_v53  ;;  %v1872_v48 = vpop.f32.mrf.mxu2 }
 0x229   :  { %v1865_v5 = vadd.f32 %v1864_v0, %v1791_v12  ;;  %v2165_v23 = vmax.f32 %v2139_v28, 0.0 }
 0x22b   :  { %v1939_v1 = vadd.f32 %v1938_v45, %v1865_v5 }
 0x22d   :  { %v2013_v34 = vadd.f32 %v2012_v47, %v1939_v1 }
 0x22e   :  { %v1793_v50 = vpop.f32.mrf.mxu1  ;;  %v2015_v49 = vpop.f32.mrf.mxu0 }
 0x22f   :  { %v1943_v43 = vpop.f32.mrf.mxu3  ;;  %v2140_v31 = vadd.f32 %v4277_v26, %v2013_v34  ;;  %v1794_v42 = vadd.f32 %v1793_v50, %v4121_v9  ;;  %v1874_v63 = vpop.f32.mrf.mxu2 }
 0x231   :  { %v2166_v14 = vmax.f32 %v2140_v31, 0.0  ;;  %v1868_v55 = vadd.f32 %v1867_v39, %v1794_v42 }
 0x233   :  { %v3216_v6 = vpack.c.bf16 %v2166_v14, %v2165_v23  ;;  %v1942_v52 = vadd.f32 %v1941_v27, %v1868_v55 }
 0x235   :  { %3249 = vst [vmem:[%s4450_s3 + $0x38] sm:$0xff] %v3216_v6   ;;  %v2016_v40 = vadd.f32 %v2015_v49, %v1942_v52 }
 0x236   :  { %v1795_v2 = vpop.f32.mrf.mxu1  ;;  %v2017_v18 = vpop.f32.mrf.mxu0 }
 0x237   :  { %v1946_v35 = vpop.f32.mrf.mxu3  ;;  %v1796_v16 = vadd.f32 %v1795_v2, %v4142_v29  ;;  %v2141_v9 = vadd.f32 %v4277_v26, %v2016_v40  ;;  %v1877_v58 = vpop.f32.mrf.mxu2 }
 0x239   :  { %v1870_v44 = vadd.f32 %v1869_v19, %v1796_v16  ;;  %v2167_v60 = vmax.f32 %v2141_v9, 0.0 }
 0x23b   :  { %v1944_v22 = vadd.f32 %v1943_v43, %v1870_v44 }
 0x23d   :  { %v2018_v62 = vadd.f32 %v2017_v18, %v1944_v22 }
 0x23e   :  { %v1798_v0 = vpop.f32.mrf.mxu1  ;;  %v2020_v25 = vpop.f32.mrf.mxu0 }
 0x23f   :  { %v1948_v61 = vpop.f32.mrf.mxu3  ;;  %v2142_v33 = vadd.f32 %v4277_v26, %v2018_v62  ;;  %v1799_v41 = vadd.f32 %v1798_v0, %v4151_v57  ;;  %v1879_v13 = vpop.f32.mrf.mxu2 }
 0x241   :  { %v2168_v7 = vmax.f32 %v2142_v33, 0.0  ;;  %v1873_v38 = vadd.f32 %v1872_v48, %v1799_v41 }
 0x243   :  { %v3221_v15 = vpack.c.bf16 %v2168_v7, %v2167_v60  ;;  %v1947_v29 = vadd.f32 %v1946_v35, %v1873_v38 }
 0x245   :  { %3250 = vst [vmem:[%s4450_s3 + $0x40] sm:$0xff] %v3221_v15   ;;  %v2021_v11 = vadd.f32 %v2020_v25, %v1947_v29 }
 0x246   :  { %v1800_v46 = vpop.f32.mrf.mxu1  ;;  %v2022_v8 = vpop.f32.mrf.mxu0 }
 0x247   :  { %v1801_v45 = vadd.f32 %v1800_v46, %v4172_v54  ;;  %v1951_v39 = vpop.f32.mrf.mxu3  ;;  %v2143_v57 = vadd.f32 %v4277_v26, %v2021_v11  ;;  %v1882_v43 = vpop.f32.mrf.mxu2 }
 0x249   :  { %v1875_v51 = vadd.f32 %v1874_v63, %v1801_v45  ;;  %v2169_v27 = vmax.f32 %v2143_v57, 0.0 }
 0x24b   :  { %v1949_v30 = vadd.f32 %v1948_v61, %v1875_v51 }
 0x24d   :  { %v2023_v21 = vadd.f32 %v2022_v8, %v1949_v30 }
 0x24e   :  { %v1803_v37 = vpop.f32.mrf.mxu1  ;;  %v2025_v32 = vpop.f32.mrf.mxu0 }
 0x24f   :  { %v2144_v3 = vadd.f32 %v4277_v26, %v2023_v21  ;;  %v1804_v10 = vadd.f32 %v1803_v37, %v4181_v24  ;;  %v1953_v12 = vpop.f32.mrf.mxu3  ;;  %v1884_v2 = vpop.f32.mrf.mxu2 }
 0x251   :  { %v2170_v17 = vmax.f32 %v2144_v3, 0.0  ;;  %v1878_v47 = vadd.f32 %v1877_v58, %v1804_v10 }
 0x253   :  { %v3226_v19 = vpack.c.bf16 %v2170_v17, %v2169_v27  ;;  %v1952_v54 = vadd.f32 %v1951_v39, %v1878_v47 }
 0x255   :  { %3251 = vst [vmem:[%s4450_s3 + $0x48] sm:$0xff] %v3226_v19   ;;  %v2026_v28 = vadd.f32 %v2025_v32, %v1952_v54 }
 0x256   :  { %v1805_v53 = vpop.f32.mrf.mxu1  ;;  %v2027_v5 = vpop.f32.mrf.mxu0 }
 0x257   :  { %v1806_v1 = vadd.f32 %v1805_v53, %v4202_v59  ;;  %v1956_v24 = vpop.f32.mrf.mxu3  ;;  %v2145_v49 = vadd.f32 %v4277_v26, %v2026_v28  ;;  %v1887_v61 = vpop.f32.mrf.mxu2 }
 0x259   :  { %v1880_v34 = vadd.f32 %v1879_v13, %v1806_v1  ;;  %v2171_v48 = vmax.f32 %v2145_v49, 0.0 }
 0x25b   :  { %v1954_v50 = vadd.f32 %v1953_v12, %v1880_v34 }
 0x25d   :  { %v2028_v31 = vadd.f32 %v2027_v5, %v1954_v50 }
 0x25e   :  { %v1808_v42 = vpop.f32.mrf.mxu1  ;;  %v2030_v23 = vpop.f32.mrf.mxu0 }
 0x25f   :  { %v2146_v14 = vadd.f32 %v4277_v26, %v2028_v31  ;;  %v1809_v55 = vadd.f32 %v1808_v42, %v4211_v4  ;;  %v1958_v18 = vpop.f32.mrf.mxu3  ;;  %v1889_v8 = vpop.f32.mrf.mxu2 }
 0x261   :  { %v2172_v6 = vmax.f32 %v2146_v14, 0.0  ;;  %v1883_v52 = vadd.f32 %v1882_v43, %v1809_v55 }
 0x263   :  { %v3231_v35 = vpack.c.bf16 %v2172_v6, %v2171_v48  ;;  %v1957_v59 = vadd.f32 %v1956_v24, %v1883_v52 }
 0x265   :  { %3252 = vst [vmem:[%s4450_s3 + $0x50] sm:$0xff] %v3231_v35   ;;  %v2031_v22 = vadd.f32 %v2030_v23, %v1957_v59 }
 0x266   :  { %v1810_v16 = vpop.f32.mrf.mxu1  ;;  %v2032_v44 = vpop.f32.mrf.mxu0 }
 0x267   :  { %v1811_v40 = vadd.f32 %v1810_v16, %v4232_v36  ;;  %v2147_v4 = vadd.f32 %v4277_v26, %v2031_v22  ;;  %v1961_v41 = vpop.f32.mrf.mxu3 }
 0x269   :  { %v1885_v63 = vadd.f32 %v1884_v2, %v1811_v40  ;;  %v2173_v60 = vmax.f32 %v2147_v4, 0.0 }
 0x26b   :  { %v1959_v9 = vadd.f32 %v1958_v18, %v1885_v63 }
 0x26d   :  { %v2033_v62 = vadd.f32 %v2032_v44, %v1959_v9 }
 0x26e   :  { %v1813_v0 = vpop.f32.mrf.mxu1  ;;  %v2035_v15 = vpop.f32.mrf.mxu0 }
 0x26f   :  { %v2148_v25 = vadd.f32 %v4277_v26, %v2033_v62  ;;  %v1814_v33 = vadd.f32 %v1813_v0, %v4241_v56  ;;  %v1963_v11 = vpop.f32.mrf.mxu3 }
 0x271   :  { %v2174_v7 = vmax.f32 %v2148_v25, 0.0  ;;  %v1888_v38 = vadd.f32 %v1887_v61, %v1814_v33 }
 0x273   :  { %v3236_v29 = vpack.c.bf16 %v2174_v7, %v2173_v60  ;;  %v1962_v36 = vadd.f32 %v1961_v41, %v1888_v38 }
 0x275   :  { %3253 = vst [vmem:[%s4450_s3 + $0x58] sm:$0xff] %v3236_v29   ;;  %v2036_v45 = vadd.f32 %v2035_v15, %v1962_v36 }
 0x276   :  { %v1815_v58 = vpop.f32.mrf.mxu1  ;;  %v2037_v56 = vpop.f32.mrf.mxu0 }
 0x277   :  { %v1816_v46 = vadd.f32 %v1815_v58, %v4262_v20  ;;  %v2149_v30 = vadd.f32 %v4277_v26, %v2036_v45 }
 0x279   :  { %v1890_v39 = vadd.f32 %v1889_v8, %v1816_v46  ;;  %v2175_v37 = vmax.f32 %v2149_v30, 0.0 }
 0x27b   :  { %v1964_v51 = vadd.f32 %v1963_v11, %v1890_v39 }
 0x27d   :  { %v2038_v57 = vadd.f32 %v2037_v56, %v1964_v51 }
 0x27f   :  { %v2150_v21 = vadd.f32 %v4277_v26, %v2038_v57 }
 0x281   :  { %v2176_v32 = vmax.f32 %v2150_v21, 0.0 }
 0x283   :  { %v3241_v3 = vpack.c.bf16 %v2176_v32, %v2175_v37 }
 0x285   :  { %3254 = vst [vmem:[%s4450_s3 + $0x60] sm:$0xff] %v3241_v3  }

</bundles_post_ra>
